<compile_context>
chip_gen: v7x
topology: tpu7x:2x2x1
jax: 0.10.0
libtpu: 0.0.40
codegen_flags: <defaults>
</compile_context>

<pallas_src>
import functools

import jax
import jax.numpy as jnp
from jax.experimental import pallas as pl
from jax.experimental.pallas import tpu as pltpu

_NEG_BIG = -1e30   # large-but-safe mask value (avoids finfo.min overflow)


# --------------------- per-generation config & tiling ------------------------

@functools.lru_cache(maxsize=None)
def _device_config():
    """(vmem_limit_bytes, attn_tile, proj_tm, proj_tn, proj_tk) per TPU gen."""
    vmem_cap = 64 * 1024 * 1024
    chip_name = ""
    get_info = getattr(pltpu, "get_tpu_info", None)
    if get_info is not None:
        try:
            info = get_info()
            vmem_cap = int(getattr(info, "vmem_capacity_bytes", vmem_cap))
            chip_name = str(getattr(info, "chip_version", ""))
        except Exception:
            pass
    big_vmem = vmem_cap >= 96 * 1024 * 1024            # v5e/v6e: 128 MiB
    vmem_limit = max(32 * 1024 * 1024,
                     min(vmem_cap * 3 // 4, 96 * 1024 * 1024))
    # 256-wide MXU on v6e/v7x; 128 on v5-family
    attn_tile = 128 if "5" in chip_name.lower() else 256
    if big_vmem:                                        # v5e / v6e
        tm, tn, tk = 256, 1024, 2048
    else:                                               # v7x (64 MiB physical)
        tm, tn, tk = 256, 512, 1024
    return vmem_limit, attn_tile, tm, tn, tk


def _pick_tile(dim, target, min_tile):
    """Largest multiple of min_tile that divides `dim` and is <= target.
    Falls back to the full dim (always legal)."""
    if dim <= target:
        return dim
    t = (target // min_tile) * min_tile
    while t >= min_tile:
        if dim % t == 0:
            return t
        t -= min_tile
    # TODO(synk): pad awkward dims instead of falling back to the full dim.
    return dim


# -------------------- fused RMSNorm + dense projection ----------------------
# Norm is computed once per row tile (j == 0) and cached in VMEM scratch.

def _rmsnorm_matmul_kernel(x_ref, g_ref, w_ref, o_ref, xn_ref, *, eps):
    @pl.when(pl.program_id(1) == 0)
    def _():
        x = x_ref[...]                                            # (tm, H) f32
        var = jnp.mean(x * x, axis=-1, keepdims=True)
        xn_ref[...] = ((x * jax.lax.rsqrt(var + eps)) *
                       g_ref[...]).astype(jnp.bfloat16)
    o_ref[...] = jnp.dot(xn_ref[...], w_ref[...],
                         preferred_element_type=jnp.float32).astype(o_ref.dtype)


def pallas_rmsnorm_matmul(x, gamma, w, *, eps=1e-6, out_dtype=jnp.float32,
                          tm_target=None, tn_target=None):
    """RMSNorm(x) @ w.  x:(M,H) f32, w:(H,N) bf16 -> (M,N) out_dtype."""
    M, H = x.shape
    N = w.shape[1]
    vmem_limit, _, cfg_tm, cfg_tn, _ = _device_config()
    tm = _pick_tile(M, tm_target or cfg_tm, 8)
    tn = _pick_tile(N, tn_target or cfg_tn, 128)
    g2 = gamma.reshape(1, H).astype(jnp.float32)
    return pl.pallas_call(
        functools.partial(_rmsnorm_matmul_kernel, eps=eps),
        out_shape=jax.ShapeDtypeStruct((M, N), out_dtype),
        grid=(M // tm, N // tn),
        in_specs=[pl.BlockSpec((tm, H), lambda i, j: (i, 0)),
                  pl.BlockSpec((1, H), lambda i, j: (0, 0)),
                  pl.BlockSpec((H, tn), lambda i, j: (0, j))],
        out_specs=pl.BlockSpec((tm, tn), lambda i, j: (i, j)),
        scratch_shapes=[pltpu.VMEM((tm, H), jnp.bfloat16)],
        compiler_params=pltpu.CompilerParams(
            # j must stay sequential: norm cache is written at j == 0
            dimension_semantics=("parallel", "arbitrary"),
            vmem_limit_bytes=vmem_limit),
    )(x, g2, w)


# ------------------ fused RMSNorm + SwiGLU gate/up half ----------------------

def _rmsnorm_swiglu_kernel(x_ref, g_ref, wg_ref, wu_ref, o_ref, xn_ref, *, eps):
    @pl.when(pl.program_id(1) == 0)
    def _():
        x = x_ref[...]
        var = jnp.mean(x * x, axis=-1, keepdims=True)
        xn_ref[...] = ((x * jax.lax.rsqrt(var + eps)) *
                       g_ref[...]).astype(jnp.bfloat16)
    xn = xn_ref[...]
    gate = jnp.dot(xn, wg_ref[...], preferred_element_type=jnp.float32)
    up = jnp.dot(xn, wu_ref[...], preferred_element_type=jnp.float32)
    o_ref[...] = (jax.nn.silu(gate) * up).astype(o_ref.dtype)


def pallas_rmsnorm_swiglu(x, gamma, wg, wu, *, eps=1e-6,
                          tm_target=None, tn_target=None):
    """silu(RMSNorm(x)@wg) * (RMSNorm(x)@wu) -> (M, I) bf16."""
    M, H = x.shape
    I = wg.shape[1]
    vmem_limit, _, cfg_tm, cfg_tn, _ = _device_config()
    tm = _pick_tile(M, tm_target or cfg_tm, 8)
    tn = _pick_tile(I, tn_target or cfg_tn, 128)
    g2 = gamma.reshape(1, H).astype(jnp.float32)
    return pl.pallas_call(
        functools.partial(_rmsnorm_swiglu_kernel, eps=eps),
        out_shape=jax.ShapeDtypeStruct((M, I), jnp.bfloat16),
        grid=(M // tm, I // tn),
        in_specs=[pl.BlockSpec((tm, H), lambda i, j: (i, 0)),
                  pl.BlockSpec((1, H), lambda i, j: (0, 0)),
                  pl.BlockSpec((H, tn), lambda i, j: (0, j)),
                  pl.BlockSpec((H, tn), lambda i, j: (0, j))],
        out_specs=pl.BlockSpec((tm, tn), lambda i, j: (i, j)),
        scratch_shapes=[pltpu.VMEM((tm, H), jnp.bfloat16)],
        compiler_params=pltpu.CompilerParams(
            dimension_semantics=("parallel", "arbitrary"),
            vmem_limit_bytes=vmem_limit),
    )(x, g2, wg, wu)


# ------- fused RMSNorm + QKV projection + RoPE, head-major output ------------
# Grid (B, S/tm, nH); writes q/k/v directly as (B*nH, S, D) -> no XLA
# transpose afterwards.  RoPE + 1/sqrt(D) scale applied in the epilogue, so the
# attention kernel never rotates and needs no cos/sin streams.

def _rmsnorm_qkv_rope_kernel(x_ref, g_ref, wq_ref, wk_ref, wv_ref,
                             cos_ref, sin_ref, q_ref, k_ref, v_ref,
                             xn_ref, *, eps, scale):
    @pl.when(pl.program_id(2) == 0)
    def _():
        x = x_ref[...]                                            # (tm, H) f32
        var = jnp.mean(x * x, axis=-1, keepdims=True)
        xn_ref[...] = ((x * jax.lax.rsqrt(var + eps)) *
                       g_ref[...]).astype(jnp.bfloat16)
    xn = xn_ref[...]
    d = q_ref.shape[-1]
    cos = cos_ref[...]
    sin = sin_ref[...]                                            # sign-folded
    q = jnp.dot(xn, wq_ref[...], preferred_element_type=jnp.float32)
    k = jnp.dot(xn, wk_ref[...], preferred_element_type=jnp.float32)
    v = jnp.dot(xn, wv_ref[...], preferred_element_type=jnp.float32)
    # rotate_half(x)*sin == roll(x, D/2)*sin_signed; scale folded into q
    q = (q * cos + pltpu.roll(q, shift=d // 2, axis=1) * sin) * scale
    k = k * cos + pltpu.roll(k, shift=d // 2, axis=1) * sin
    q_ref[0] = q.astype(q_ref.dtype)
    k_ref[0] = k.astype(k_ref.dtype)
    v_ref[0] = v.astype(v_ref.dtype)


def pallas_rmsnorm_qkv_rope(x, gamma, wqkv, cos, sin_signed, *, batch, seq,
                            n_heads, head_dim, eps=1e-6, tm_target=None):
    M, H = x.shape
    D = head_dim
    vmem_limit, _, cfg_tm, _, _ = _device_config()
    tm = _pick_tile(seq, tm_target or cfg_tm, 8)
    sblocks = seq // tm
    scale = 1.0 / float(D) ** 0.5
    g2 = gamma.reshape(1, H).astype(jnp.float32)
    BH = batch * n_heads

    x_spec = pl.BlockSpec((tm, H), lambda b, si, h: (b * sblocks + si, 0))
    g_spec = pl.BlockSpec((1, H), lambda b, si, h: (0, 0))
    # fused wqkv columns ordered [3, nH, D]
    wq_spec = pl.BlockSpec((H, D), lambda b, si, h: (0, h))
    wk_spec = pl.BlockSpec((H, D), lambda b, si, h: (0, n_heads + h))
    wv_spec = pl.BlockSpec((H, D), lambda b, si, h: (0, 2 * n_heads + h))
    cs_spec = pl.BlockSpec((tm, D), lambda b, si, h: (si, 0))
    out_spec = pl.BlockSpec((1, tm, D), lambda b, si, h: (b * n_heads + h, si, 0))

    out_sds = jax.ShapeDtypeStruct((BH, seq, D), jnp.bfloat16)
    q, k, v = pl.pallas_call(
        functools.partial(_rmsnorm_qkv_rope_kernel, eps=eps, scale=scale),
        out_shape=[out_sds, out_sds, out_sds],
        grid=(batch, sblocks, n_heads),
        in_specs=[x_spec, g_spec, wq_spec, wk_spec, wv_spec, cs_spec, cs_spec],
        out_specs=[out_spec, out_spec, out_spec],
        scratch_shapes=[pltpu.VMEM((tm, H), jnp.bfloat16)],
        compiler_params=pltpu.CompilerParams(
            dimension_semantics=("parallel", "parallel", "arbitrary"),
            vmem_limit_bytes=vmem_limit),
    )(x, g2, wqkv, wqkv, wqkv, cos, sin_signed)
    return q, k, v


# ----------------- flash-style causal attention (RoPE pre-applied) -----------

def _flash_attn_kernel(q_ref, k_ref, v_ref, o_ref, m_scr, l_scr, acc_scr):
    qi = pl.program_id(1)
    ki = pl.program_id(2)

    @pl.when(ki == 0)
    def _():
        m_scr[...] = jnp.full_like(m_scr, _NEG_BIG)
        l_scr[...] = jnp.zeros_like(l_scr)
        acc_scr[...] = jnp.zeros_like(acc_scr)

    def process(masked):
        # q already carries the 1/sqrt(D) scale; contract last dims directly.
        s = jax.lax.dot_general(
            q_ref[0], k_ref[0],
            dimension_numbers=(((1,), (1,)), ((), ())),
            preferred_element_type=jnp.float32)                   # (tq, tk)
        if masked:   # diagonal block only
            tq, tk = s.shape
            row = qi * tq + jax.lax.broadcasted_iota(jnp.int32, (tq, tk), 0)
            col = ki * tk + jax.lax.broadcasted_iota(jnp.int32, (tq, tk), 1)
            s = jnp.where(col <= row, s, _NEG_BIG)
        m_new = jnp.maximum(m_scr[...], jnp.max(s, axis=-1, keepdims=True))
        alpha = jnp.exp(m_scr[...] - m_new)
        p = jnp.exp(s - m_new)
        l_scr[...] = alpha * l_scr[...] + jnp.sum(p, axis=-1, keepdims=True)
        acc_scr[...] = alpha * acc_scr[...] + jnp.dot(
            p.astype(jnp.bfloat16), v_ref[0], preferred_element_type=jnp.float32)
        m_scr[...] = m_new

    @pl.when(ki < qi)          # interior block: no mask construction
    def _():
        process(False)

    @pl.when(ki == qi)         # diagonal block: build + apply causal mask
    def _():
        process(True)
    # ki > qi: fully masked -> skipped entirely (and K/V not re-DMA'd, see spec)

    @pl.when(ki == pl.num_programs(2) - 1)
    def _():
        o_ref[0] = (acc_scr[...] *
                    pl.reciprocal(l_scr[...], approx=True)).astype(o_ref.dtype)


def pallas_flash_attention(q, k, v, *, tq_target=None):
    """q,k,v: (B*nH, S, D) bf16 (RoPE + scale pre-applied) -> (B*nH, S, D) bf16."""
    BH, S, D = q.shape
    vmem_limit, attn_tile, _, _, _ = _device_config()
    tq = _pick_tile(S, tq_target or attn_tile, 8)
    tk = tq                      # causal block skip assumes tq == tk
    q_spec = pl.BlockSpec((1, tq, D), lambda b, i, j: (b, i, 0))
    # clamp j to i: upper-triangle (fully masked) K/V blocks keep the same
    # block index as the diagonal -> Pallas skips the redundant DMA.
    kv_spec = pl.BlockSpec((1, tk, D), lambda b, i, j: (b, jnp.minimum(j, i), 0))
    return pl.pallas_call(
        _flash_attn_kernel,
        out_shape=jax.ShapeDtypeStruct((BH, S, D), jnp.bfloat16),
        grid=(BH, S // tq, S // tk),
        in_specs=[q_spec, kv_spec, kv_spec],
        out_specs=q_spec,
        scratch_shapes=[pltpu.VMEM((tq, 1), jnp.float32),
                        pltpu.VMEM((tq, 1), jnp.float32),
                        pltpu.VMEM((tq, D), jnp.float32)],
        compiler_params=pltpu.CompilerParams(
            dimension_semantics=("parallel", "parallel", "arbitrary"),
            vmem_limit_bytes=vmem_limit),
    )(q, k, v)


# ----- o-projection: per-head contraction grid + fused residual (no acc) -----
# attn stays head-major (B*nH, S, D); contraction over heads is a grid axis so
# no XLA transpose is needed.  Residual loaded into the resident f32 output
# block at h == 0; accumulation happens directly in o_ref (no scratch).

def _oproj_residual_kernel(a_ref, w_ref, r_ref, o_ref):
    @pl.when(pl.program_id(3) == 0)
    def _():
        o_ref[...] = r_ref[...]
    o_ref[...] += jnp.dot(a_ref[0], w_ref[...],
                          preferred_element_type=jnp.float32)


def pallas_oproj_residual(attn, wo, res, *, batch, seq, n_heads, head_dim,
                          tm_target=None, tn_target=None):
    M, H = res.shape
    D = head_dim
    vmem_limit, _, cfg_tm, cfg_tn, _ = _device_config()
    tm = _pick_tile(seq, tm_target or cfg_tm, 8)
    tn = _pick_tile(H, tn_target or cfg_tn, 128)
    sblocks = seq // tm

    a_spec = pl.BlockSpec((1, tm, D), lambda b, si, j, h: (b * n_heads + h, si, 0))
    w_spec = pl.BlockSpec((D, tn), lambda b, si, j, h: (h, j))
    r_spec = pl.BlockSpec((tm, tn), lambda b, si, j, h: (b * sblocks + si, j))

    return pl.pallas_call(
        _oproj_residual_kernel,
        out_shape=jax.ShapeDtypeStruct((M, H), res.dtype),
        grid=(batch, sblocks, H // tn, n_heads),
        in_specs=[a_spec, w_spec, r_spec],
        out_specs=r_spec,
        input_output_aliases={2: 0},      # residual buffer reused for output
        compiler_params=pltpu.CompilerParams(
            dimension_semantics=("parallel", "parallel", "parallel", "arbitrary"),
            vmem_limit_bytes=vmem_limit),
    )(attn, wo, res)


# -------------- tiled matmul + K-accumulation + fused residual --------------
# Accumulates directly into the resident f32 output block (residual at k==0);
# residual input aliased to the output buffer.

def _matmul_residual_kernel(a_ref, b_ref, r_ref, o_ref):
    @pl.when(pl.program_id(2) == 0)
    def _():
        o_ref[...] = r_ref[...]
    o_ref[...] += jnp.dot(a_ref[...], b_ref[...],
                          preferred_element_type=jnp.float32)


def pallas_matmul_residual(a, b, res, *, tm_target=None, tn_target=None,
                           tk_target=None):
    """(a @ b) + res.  a:(M,K) bf16, b:(K,N) bf16, res:(M,N) f32 -> (M,N) f32."""
    M, K = a.shape
    N = b.shape[1]
    vmem_limit, _, cfg_tm, cfg_tn, cfg_tk = _device_config()
    tm = _pick_tile(M, tm_target or cfg_tm, 8)
    tn = _pick_tile(N, tn_target or cfg_tn, 128)
    tk = _pick_tile(K, tk_target or cfg_tk, 128)
    return pl.pallas_call(
        _matmul_residual_kernel,
        out_shape=jax.ShapeDtypeStruct((M, N), res.dtype),
        grid=(M // tm, N // tn, K // tk),
        in_specs=[pl.BlockSpec((tm, tk), lambda i, j, k: (i, k)),
                  pl.BlockSpec((tk, tn), lambda i, j, k: (k, j)),
                  pl.BlockSpec((tm, tn), lambda i, j, k: (i, j))],
        out_specs=pl.BlockSpec((tm, tn), lambda i, j, k: (i, j)),
        input_output_aliases={2: 0},
        compiler_params=pltpu.CompilerParams(
            dimension_semantics=("parallel", "parallel", "arbitrary"),
            vmem_limit_bytes=vmem_limit),
    )(a, b, res)


# --------------------------------- JAX glue ----------------------------------

def rope_tables(S, D, base=10000.0):
    # TODO(synk): rope_theta / rope scaling should come from the HF config.
    inv_freq = 1.0 / (base ** (jnp.arange(0, D, 2, dtype=jnp.float32) / D))
    pos = jnp.arange(S, dtype=jnp.float32)
    freqs = pos[:, None] * inv_freq[None, :]
    emb = jnp.concatenate([freqs, freqs], axis=-1)            # (S, D)
    cos = jnp.cos(emb)
    sin = jnp.sin(emb)
    # fold the rotate_half sign into sin so the kernel only needs a lane roll
    sin_signed = jnp.concatenate([-sin[:, : D // 2], sin[:, D // 2:]], axis=-1)
    return cos, sin_signed


def init_params(key, vocab, hidden, n_layers, n_heads, head_dim, inter):
    keys = jax.random.split(key, 2 + n_layers)

    def dense(k, shape, scale=0.05, dtype=jnp.bfloat16):
        return (scale * jax.random.normal(k, shape, dtype=jnp.float32)).astype(dtype)

    params = {
        "embed": dense(keys[0], (vocab, hidden), dtype=jnp.float32),
        "final_norm": jnp.ones((hidden,), jnp.float32),
        "lm_head": dense(keys[1], (hidden, vocab)),
        "layers": [],
    }
    qkv_n = 3 * n_heads * head_dim
    for li in range(n_layers):
        ks = jax.random.split(keys[2 + li], 5)
        params["layers"].append({
            "input_norm": jnp.ones((hidden,), jnp.float32),
            "post_norm": jnp.ones((hidden,), jnp.float32),
            "wqkv": dense(ks[0], (hidden, qkv_n)),    # columns ordered [3,nH,D]
            "wo": dense(ks[1], (n_heads * head_dim, hidden)),
            "wg": dense(ks[2], (hidden, inter)),
            "wu": dense(ks[3], (hidden, inter)),
            "wd": dense(ks[4], (inter, hidden)),
        })
    return params


def deepseek_forward(params, input_ids, n_heads, head_dim):
    """Mirrors DeepSeekWrapper.forward for the attention_mask=None /
    past_key_values=None path: embed -> causal decoder stack -> lm_head logits."""
    B, S = input_ids.shape
    H = params["embed"].shape[1]

    # inputs_embeds = self.embed_tokens(input_tensor)   (gather — glue)
    h2d = jnp.take(params["embed"], input_ids.reshape(-1), axis=0)   # (B*S, H) f32

    cos, sin_signed = rope_tables(S, head_dim)

    for lyr in params["layers"]:
        # attention block: fused RMSNorm + QKV + RoPE, head-major outputs
        q, k, v = pallas_rmsnorm_qkv_rope(
            h2d, lyr["input_norm"], lyr["wqkv"], cos, sin_signed,
            batch=B, seq=S, n_heads=n_heads, head_dim=head_dim)

        attn = pallas_flash_attention(q, k, v)                       # (B*nH,S,D)
        h2d = pallas_oproj_residual(attn, lyr["wo"], h2d,
                                    batch=B, seq=S, n_heads=n_heads,
                                    head_dim=head_dim)               # (B*S,H) f32

        # MLP block: fused RMSNorm + gate/up + SiLU, then down-proj + residual
        gu = pallas_rmsnorm_swiglu(h2d, lyr["post_norm"], lyr["wg"], lyr["wu"])
        h2d = pallas_matmul_residual(gu, lyr["wd"], h2d)             # (B*S,H) f32

    # final norm + lm_head (lane-dense vocab tiles) -> logits
    logits = pallas_rmsnorm_matmul(h2d, params["final_norm"], params["lm_head"],
                                   out_dtype=jnp.float32)
    return logits.reshape(B, S, -1)


# ----------------------------------- main ------------------------------------

if __name__ == "__main__":
    VOCAB, HIDDEN, LAYERS, HEADS, HEAD_DIM, INTER = 512, 256, 2, 2, 128, 512
    B, S = 2, 128

    key = jax.random.PRNGKey(0)
    pkey, ikey = jax.random.split(key)
    params = init_params(pkey, VOCAB, HIDDEN, LAYERS, HEADS, HEAD_DIM, INTER)
    input_ids = jax.random.randint(ikey, (B, S), 0, VOCAB, dtype=jnp.int32)

    fwd = jax.jit(functools.partial(deepseek_forward,
                                    n_heads=HEADS, head_dim=HEAD_DIM))
    logits = fwd(params, input_ids)
    jax.block_until_ready(logits)

    assert logits.shape == (B, S, VOCAB), logits.shape
    assert logits.dtype == jnp.float32
    assert bool(jnp.all(jnp.isfinite(logits)))
    print("KERNEL_OK")
</pallas_src>

<mosaic_0001>
module attributes {stable_mosaic.version = 11 : i64} {
  func.func @_rmsnorm_qkv_rope_kernel(%arg0: i32, %arg1: i32, %arg2: i32, %arg3: memref<128x256xf32, #tpu.memory_space<vmem>>, %arg4: memref<1x256xf32, #tpu.memory_space<vmem>>, %arg5: memref<256x128xbf16, #tpu.memory_space<vmem>>, %arg6: memref<256x128xbf16, #tpu.memory_space<vmem>>, %arg7: memref<256x128xbf16, #tpu.memory_space<vmem>>, %arg8: memref<128x128xf32, #tpu.memory_space<vmem>>, %arg9: memref<128x128xf32, #tpu.memory_space<vmem>>, %arg10: memref<1x128x128xbf16, #tpu.memory_space<vmem>>, %arg11: memref<1x128x128xbf16, #tpu.memory_space<vmem>>, %arg12: memref<1x128x128xbf16, #tpu.memory_space<vmem>>, %arg13: memref<128x256xbf16, #tpu.memory_space<vmem>>) attributes {dimension_semantics = [#tpu.dimension_semantics<parallel>, #tpu.dimension_semantics<parallel>, #tpu.dimension_semantics<arbitrary>], iteration_bounds = array<i64: 2, 1, 2>, scalar_prefetch = 0 : i64, scratch_operands = 1 : i64, tpu.core_type = #tpu.core_type<tc>, window_params = [{transform_indices = @transform_0, window_bounds = array<i64: 128, 256>}, {pipeline_mode = #tpu.pipeline_mode<synchronous>, transform_indices = @transform_1, window_bounds = array<i64: 1, 256>}, {transform_indices = @transform_2, window_bounds = array<i64: 256, 128>}, {transform_indices = @transform_3, window_bounds = array<i64: 256, 128>}, {transform_indices = @transform_4, window_bounds = array<i64: 256, 128>}, {transform_indices = @transform_5, window_bounds = array<i64: 128, 128>}, {transform_indices = @transform_6, window_bounds = array<i64: 128, 128>}, {transform_indices = @transform_7, window_bounds = array<i64: 1, 128, 128>}, {transform_indices = @transform_8, window_bounds = array<i64: 1, 128, 128>}, {transform_indices = @transform_9, window_bounds = array<i64: 1, 128, 128>}]} {
    %c0_i32 = arith.constant 0 : i32
    %0 = arith.cmpi eq, %arg2, %c0_i32 : i32
    %1 = arith.extui %0 : i1 to i32
    %c0_i32_0 = arith.constant 0 : i32
    %2 = arith.cmpi ne, %1, %c0_i32_0 : i32
    scf.if %2 {
      %c0_25 = arith.constant 0 : index
      %c0_26 = arith.constant 0 : index
      %34 = vector.load %arg3[%c0_25, %c0_26] : memref<128x256xf32, #tpu.memory_space<vmem>>, vector<128x256xf32>
      %35 = arith.mulf %34, %34 : vector<128x256xf32>
      %cst_27 = arith.constant dense<0.000000e+00> : vector<128xf32>
      %36 = vector.multi_reduction <add>, %35, %cst_27 [1] : vector<128x256xf32> to vector<128xf32>
      %37 = vector.shape_cast %36 : vector<128xf32> to vector<128x1xf32>
      %cst_28 = arith.constant 2.560000e+02 : f32
      %38 = vector.broadcast %cst_28 : f32 to vector<128x1xf32>
      %39 = arith.divf %37, %38 : vector<128x1xf32>
      %cst_29 = arith.constant 9.99999997E-7 : f32
      %40 = vector.broadcast %cst_29 : f32 to vector<128x1xf32>
      %41 = arith.addf %39, %40 : vector<128x1xf32>
      %42 = math.rsqrt %41 : vector<128x1xf32>
      %43 = vector.broadcast %42 : vector<128x1xf32> to vector<128x256xf32>
      %44 = arith.mulf %34, %43 : vector<128x256xf32>
      %c0_30 = arith.constant 0 : index
      %c0_31 = arith.constant 0 : index
      %45 = vector.load %arg4[%c0_30, %c0_31] : memref<1x256xf32, #tpu.memory_space<vmem>>, vector<1x256xf32>
      %46 = vector.broadcast %45 : vector<1x256xf32> to vector<128x256xf32>
      %47 = arith.mulf %44, %46 : vector<128x256xf32>
      %48 = arith.truncf %47 : vector<128x256xf32> to vector<128x256xbf16>
      %c0_32 = arith.constant 0 : index
      %c0_33 = arith.constant 0 : index
      %49 = vector.load %arg13[%c0_32, %c0_33] : memref<128x256xbf16, #tpu.memory_space<vmem>>, vector<128x256xbf16>
      tpu.vector_store %arg13[%c0_32, %c0_33], %48 {strides = array<i32>} : memref<128x256xbf16, #tpu.memory_space<vmem>>, vector<128x256xbf16>,
    } else {
    }
    %c0 = arith.constant 0 : index
    %c0_1 = arith.constant 0 : index
    %3 = vector.load %arg13[%c0, %c0_1] : memref<128x256xbf16, #tpu.memory_space<vmem>>, vector<128x256xbf16>
    %c0_2 = arith.constant 0 : index
    %c0_3 = arith.constant 0 : index
    %4 = vector.load %arg8[%c0_2, %c0_3] : memref<128x128xf32, #tpu.memory_space<vmem>>, vector<128x128xf32>
    %c0_4 = arith.constant 0 : index
    %c0_5 = arith.constant 0 : index
    %5 = vector.load %arg9[%c0_4, %c0_5] : memref<128x128xf32, #tpu.memory_space<vmem>>, vector<128x128xf32>
    %c0_6 = arith.constant 0 : index
    %c0_7 = arith.constant 0 : index
    %6 = vector.load %arg5[%c0_6, %c0_7] : memref<256x128xbf16, #tpu.memory_space<vmem>>, vector<256x128xbf16>
    %cst = arith.constant dense<0.000000e+00> : vector<128x128xf32>
    %7 = tpu.matmul %3, %6, %cst {dimension_numbers = #tpu.dot_dimension_numbers<[1], [0], [0], [1], [0, 0, 1, 1], [], []>} : vector<128x256xbf16>, vector<256x128xbf16>, vector<128x128xf32> -> vector<128x128xf32>
    %c0_8 = arith.constant 0 : index
    %c0_9 = arith.constant 0 : index
    %8 = vector.load %arg6[%c0_8, %c0_9] : memref<256x128xbf16, #tpu.memory_space<vmem>>, vector<256x128xbf16>
    %cst_10 = arith.constant dense<0.000000e+00> : vector<128x128xf32>
    %9 = tpu.matmul %3, %8, %cst_10 {dimension_numbers = #tpu.dot_dimension_numbers<[1], [0], [0], [1], [0, 0, 1, 1], [], []>} : vector<128x256xbf16>, vector<256x128xbf16>, vector<128x128xf32> -> vector<128x128xf32>
    %c0_11 = arith.constant 0 : index
    %c0_12 = arith.constant 0 : index
    %10 = vector.load %arg7[%c0_11, %c0_12] : memref<256x128xbf16, #tpu.memory_space<vmem>>, vector<256x128xbf16>
    %cst_13 = arith.constant dense<0.000000e+00> : vector<128x128xf32>
    %11 = tpu.matmul %3, %10, %cst_13 {dimension_numbers = #tpu.dot_dimension_numbers<[1], [0], [0], [1], [0, 0, 1, 1], [], []>} : vector<128x256xbf16>, vector<256x128xbf16>, vector<128x128xf32> -> vector<128x128xf32>
    %12 = arith.mulf %7, %4 : vector<128x128xf32>
    %c64_i32 = arith.constant 64 : i32
    %13 = tpu.dynamic_rotate %7 by %c64_i32 dim 1 : vector<128x128xf32>, i32 -> vector<128x128xf32>
    %14 = arith.mulf %13, %5 : vector<128x128xf32>
    %15 = arith.addf %12, %14 : vector<128x128xf32>
    %cst_14 = arith.constant 0.0883883461 : f32
    %16 = vector.broadcast %cst_14 : f32 to vector<128x128xf32>
    %17 = arith.mulf %15, %16 : vector<128x128xf32>
    %18 = arith.mulf %9, %4 : vector<128x128xf32>
    %c64_i32_15 = arith.constant 64 : i32
    %19 = tpu.dynamic_rotate %9 by %c64_i32_15 dim 1 : vector<128x128xf32>, i32 -> vector<128x128xf32>
    %20 = arith.mulf %19, %5 : vector<128x128xf32>
    %21 = arith.addf %18, %20 : vector<128x128xf32>
    %22 = arith.truncf %17 : vector<128x128xf32> to vector<128x128xbf16>
    %c0_16 = arith.constant 0 : index
    %c0_17 = arith.constant 0 : index
    %c0_18 = arith.constant 0 : index
    %23 = vector.load %arg10[%c0_16, %c0_17, %c0_18] : memref<1x128x128xbf16, #tpu.memory_space<vmem>>, vector<1x128x128xbf16>
    %24 = vector.shape_cast %23 : vector<1x128x128xbf16> to vector<128x128xbf16>
    %25 = vector.shape_cast %22 : vector<128x128xbf16> to vector<1x128x128xbf16>
    tpu.vector_store %arg10[%c0_16, %c0_17, %c0_18], %25 {strides = array<i32>} : memref<1x128x128xbf16, #tpu.memory_space<vmem>>, vector<1x128x128xbf16>,
    %26 = arith.truncf %21 : vector<128x128xf32> to vector<128x128xbf16>
    %c0_19 = arith.constant 0 : index
    %c0_20 = arith.constant 0 : index
    %c0_21 = arith.constant 0 : index
    %27 = vector.load %arg11[%c0_19, %c0_20, %c0_21] : memref<1x128x128xbf16, #tpu.memory_space<vmem>>, vector<1x128x128xbf16>
    %28 = vector.shape_cast %27 : vector<1x128x128xbf16> to vector<128x128xbf16>
    %29 = vector.shape_cast %26 : vector<128x128xbf16> to vector<1x128x128xbf16>
    tpu.vector_store %arg11[%c0_19, %c0_20, %c0_21], %29 {strides = array<i32>} : memref<1x128x128xbf16, #tpu.memory_space<vmem>>, vector<1x128x128xbf16>,
    %30 = arith.truncf %11 : vector<128x128xf32> to vector<128x128xbf16>
    %c0_22 = arith.constant 0 : index
    %c0_23 = arith.constant 0 : index
    %c0_24 = arith.constant 0 : index
    %31 = vector.load %arg12[%c0_22, %c0_23, %c0_24] : memref<1x128x128xbf16, #tpu.memory_space<vmem>>, vector<1x128x128xbf16>
    %32 = vector.shape_cast %31 : vector<1x128x128xbf16> to vector<128x128xbf16>
    %33 = vector.shape_cast %30 : vector<128x128xbf16> to vector<1x128x128xbf16>
    tpu.vector_store %arg12[%c0_22, %c0_23, %c0_24], %33 {strides = array<i32>} : memref<1x128x128xbf16, #tpu.memory_space<vmem>>, vector<1x128x128xbf16>,
    return
  }
  func.func @transform_0(%arg0: i32, %arg1: i32, %arg2: i32) -> (i32, i32) {
    %c1_i32 = arith.constant 1 : i32
    %0 = arith.muli %arg0, %c1_i32 : i32
    %1 = arith.addi %0, %arg1 : i32
    %c0_i32 = arith.constant 0 : i32
    %c0_i32_0 = arith.constant 0 : i32
    return %1, %c0_i32 : i32, i32
  }
  func.func @transform_1(%arg0: i32, %arg1: i32, %arg2: i32) -> (i32, i32) {
    %c0_i32 = arith.constant 0 : i32
    %c0_i32_0 = arith.constant 0 : i32
    %c0_i32_1 = arith.constant 0 : i32
    return %c0_i32, %c0_i32_0 : i32, i32
  }
  func.func @transform_2(%arg0: i32, %arg1: i32, %arg2: i32) -> (i32, i32) {
    %c0_i32 = arith.constant 0 : i32
    %c0_i32_0 = arith.constant 0 : i32
    return %c0_i32, %arg2 : i32, i32
  }
  func.func @transform_3(%arg0: i32, %arg1: i32, %arg2: i32) -> (i32, i32) {
    %c2_i32 = arith.constant 2 : i32
    %0 = arith.addi %c2_i32, %arg2 : i32
    %c0_i32 = arith.constant 0 : i32
    %c0_i32_0 = arith.constant 0 : i32
    return %c0_i32, %0 : i32, i32
  }
  func.func @transform_4(%arg0: i32, %arg1: i32, %arg2: i32) -> (i32, i32) {
    %c4_i32 = arith.constant 4 : i32
    %0 = arith.addi %c4_i32, %arg2 : i32
    %c0_i32 = arith.constant 0 : i32
    %c0_i32_0 = arith.constant 0 : i32
    return %c0_i32, %0 : i32, i32
  }
  func.func @transform_5(%arg0: i32, %arg1: i32, %arg2: i32) -> (i32, i32) {
    %c0_i32 = arith.constant 0 : i32
    %c0_i32_0 = arith.constant 0 : i32
    return %arg1, %c0_i32 : i32, i32
  }
  func.func @transform_6(%arg0: i32, %arg1: i32, %arg2: i32) -> (i32, i32) {
    %c0_i32 = arith.constant 0 : i32
    %c0_i32_0 = arith.constant 0 : i32
    return %arg1, %c0_i32 : i32, i32
  }
  func.func @transform_7(%arg0: i32, %arg1: i32, %arg2: i32) -> (i32, i32, i32) {
    %c2_i32 = arith.constant 2 : i32
    %0 = arith.muli %arg0, %c2_i32 : i32
    %1 = arith.addi %0, %arg2 : i32
    %c0_i32 = arith.constant 0 : i32
    %c0_i32_0 = arith.constant 0 : i32
    return %1, %arg1, %c0_i32 : i32, i32, i32
  }
  func.func @transform_8(%arg0: i32, %arg1: i32, %arg2: i32) -> (i32, i32, i32) {
    %c2_i32 = arith.constant 2 : i32
    %0 = arith.muli %arg0, %c2_i32 : i32
    %1 = arith.addi %0, %arg2 : i32
    %c0_i32 = arith.constant 0 : i32
    %c0_i32_0 = arith.constant 0 : i32
    return %1, %arg1, %c0_i32 : i32, i32, i32
  }
  func.func @transform_9(%arg0: i32, %arg1: i32, %arg2: i32) -> (i32, i32, i32) {
    %c2_i32 = arith.constant 2 : i32
    %0 = arith.muli %arg0, %c2_i32 : i32
    %1 = arith.addi %0, %arg2 : i32
    %c0_i32 = arith.constant 0 : i32
    %c0_i32_0 = arith.constant 0 : i32
    return %1, %arg1, %c0_i32 : i32, i32, i32
  }
}

module attributes {stable_mosaic.version = 11 : i64} {
  func.func @_flash_attn_kernel(%arg0: i32, %arg1: i32, %arg2: i32, %arg3: memref<1x128x128xbf16, #tpu.memory_space<vmem>>, %arg4: memref<1x128x128xbf16, #tpu.memory_space<vmem>>, %arg5: memref<1x128x128xbf16, #tpu.memory_space<vmem>>, %arg6: memref<1x128x128xbf16, #tpu.memory_space<vmem>>, %arg7: memref<128x1xf32, #tpu.memory_space<vmem>>, %arg8: memref<128x1xf32, #tpu.memory_space<vmem>>, %arg9: memref<128x128xf32, #tpu.memory_space<vmem>>) attributes {dimension_semantics = [#tpu.dimension_semantics<parallel>, #tpu.dimension_semantics<parallel>, #tpu.dimension_semantics<arbitrary>], iteration_bounds = array<i64: 4, 1, 1>, scalar_prefetch = 0 : i64, scratch_operands = 3 : i64, tpu.core_type = #tpu.core_type<tc>, window_params = [{transform_indices = @transform_0, window_bounds = array<i64: 1, 128, 128>}, {transform_indices = @transform_1, window_bounds = array<i64: 1, 128, 128>}, {transform_indices = @transform_2, window_bounds = array<i64: 1, 128, 128>}, {transform_indices = @transform_3, window_bounds = array<i64: 1, 128, 128>}]} {
    %c0_i32 = arith.constant 0 : i32
    %0 = arith.cmpi eq, %arg2, %c0_i32 : i32
    %1 = arith.extui %0 : i1 to i32
    %c0_i32_0 = arith.constant 0 : i32
    %2 = arith.cmpi ne, %1, %c0_i32_0 : i32
    scf.if %2 {
      %cst = arith.constant -1.000000e+30 : f32
      %12 = vector.broadcast %cst : f32 to vector<128x1xf32>
      %c0 = arith.constant 0 : index
      %c0_5 = arith.constant 0 : index
      %13 = vector.load %arg7[%c0, %c0_5] : memref<128x1xf32, #tpu.memory_space<vmem>>, vector<128x1xf32>
      tpu.vector_store %arg7[%c0, %c0_5], %12 {strides = array<i32>} : memref<128x1xf32, #tpu.memory_space<vmem>>, vector<128x1xf32>,
      %cst_6 = arith.constant 0.000000e+00 : f32
      %14 = vector.broadcast %cst_6 : f32 to vector<128x1xf32>
      %c0_7 = arith.constant 0 : index
      %c0_8 = arith.constant 0 : index
      %15 = vector.load %arg8[%c0_7, %c0_8] : memref<128x1xf32, #tpu.memory_space<vmem>>, vector<128x1xf32>
      tpu.vector_store %arg8[%c0_7, %c0_8], %14 {strides = array<i32>} : memref<128x1xf32, #tpu.memory_space<vmem>>, vector<128x1xf32>,
      %cst_9 = arith.constant 0.000000e+00 : f32
      %16 = vector.broadcast %cst_9 : f32 to vector<128x128xf32>
      %c0_10 = arith.constant 0 : index
      %c0_11 = arith.constant 0 : index
      %17 = vector.load %arg9[%c0_10, %c0_11] : memref<128x128xf32, #tpu.memory_space<vmem>>, vector<128x128xf32>
      tpu.vector_store %arg9[%c0_10, %c0_11], %16 {strides = array<i32>} : memref<128x128xf32, #tpu.memory_space<vmem>>, vector<128x128xf32>,
    } else {
    }
    %3 = arith.cmpi slt, %arg2, %arg1 : i32
    %4 = arith.extui %3 : i1 to i32
    %c0_i32_1 = arith.constant 0 : i32
    %5 = arith.cmpi ne, %4, %c0_i32_1 : i32
    scf.if %5 {
      %c0 = arith.constant 0 : index
      %c0_5 = arith.constant 0 : index
      %c0_6 = arith.constant 0 : index
      %12 = vector.load %arg3[%c0, %c0_5, %c0_6] : memref<1x128x128xbf16, #tpu.memory_space<vmem>>, vector<1x128x128xbf16>
      %13 = vector.shape_cast %12 : vector<1x128x128xbf16> to vector<128x128xbf16>
      %c0_7 = arith.constant 0 : index
      %c0_8 = arith.constant 0 : index
      %c0_9 = arith.constant 0 : index
      %14 = vector.load %arg4[%c0_7, %c0_8, %c0_9] : memref<1x128x128xbf16, #tpu.memory_space<vmem>>, vector<1x128x128xbf16>
      %15 = vector.shape_cast %14 : vector<1x128x128xbf16> to vector<128x128xbf16>
      %cst = arith.constant dense<0.000000e+00> : vector<128x128xf32>
      %16 = tpu.matmul %13, %15, %cst {dimension_numbers = #tpu.dot_dimension_numbers<[1], [1], [0], [0], [0, 0, 1, 0], [], []>} : vector<128x128xbf16>, vector<128x128xbf16>, vector<128x128xf32> -> vector<128x128xf32>
      %c0_10 = arith.constant 0 : index
      %c0_11 = arith.constant 0 : index
      %17 = vector.load %arg7[%c0_10, %c0_11] : memref<128x1xf32, #tpu.memory_space<vmem>>, vector<128x1xf32>
      %cst_12 = arith.constant dense<0xFF800000> : vector<128xf32>
      %18 = vector.multi_reduction <maximumf>, %16, %cst_12 [1] : vector<128x128xf32> to vector<128xf32>
      %19 = vector.shape_cast %18 : vector<128xf32> to vector<128x1xf32>
      %20 = arith.maximumf %17, %19 : vector<128x1xf32>
      %c0_13 = arith.constant 0 : index
      %c0_14 = arith.constant 0 : index
      %21 = vector.load %arg7[%c0_13, %c0_14] : memref<128x1xf32, #tpu.memory_space<vmem>>, vector<128x1xf32>
      %22 = arith.subf %21, %20 : vector<128x1xf32>
      %23 = math.exp %22 : vector<128x1xf32>
      %24 = vector.broadcast %20 : vector<128x1xf32> to vector<128x128xf32>
      %25 = arith.subf %16, %24 : vector<128x128xf32>
      %26 = math.exp %25 : vector<128x128xf32>
      %c0_15 = arith.constant 0 : index
      %c0_16 = arith.constant 0 : index
      %27 = vector.load %arg8[%c0_15, %c0_16] : memref<128x1xf32, #tpu.memory_space<vmem>>, vector<128x1xf32>
      %28 = arith.mulf %23, %27 : vector<128x1xf32>
      %cst_17 = arith.constant dense<0.000000e+00> : vector<128xf32>
      %29 = vector.multi_reduction <add>, %26, %cst_17 [1] : vector<128x128xf32> to vector<128xf32>
      %30 = vector.shape_cast %29 : vector<128xf32> to vector<128x1xf32>
      %31 = arith.addf %28, %30 : vector<128x1xf32>
      %c0_18 = arith.constant 0 : index
      %c0_19 = arith.constant 0 : index
      %32 = vector.load %arg8[%c0_18, %c0_19] : memref<128x1xf32, #tpu.memory_space<vmem>>, vector<128x1xf32>
      tpu.vector_store %arg8[%c0_18, %c0_19], %31 {strides = array<i32>} : memref<128x1xf32, #tpu.memory_space<vmem>>, vector<128x1xf32>,
      %c0_20 = arith.constant 0 : index
      %c0_21 = arith.constant 0 : index
      %33 = vector.load %arg9[%c0_20, %c0_21] : memref<128x128xf32, #tpu.memory_space<vmem>>, vector<128x128xf32>
      %34 = vector.broadcast %23 : vector<128x1xf32> to vector<128x128xf32>
      %35 = arith.mulf %34, %33 : vector<128x128xf32>
      %36 = arith.truncf %26 : vector<128x128xf32> to vector<128x128xbf16>
      %c0_22 = arith.constant 0 : index
      %c0_23 = arith.constant 0 : index
      %c0_24 = arith.constant 0 : index
      %37 = vector.load %arg5[%c0_22, %c0_23, %c0_24] : memref<1x128x128xbf16, #tpu.memory_space<vmem>>, vector<1x128x128xbf16>
      %38 = vector.shape_cast %37 : vector<1x128x128xbf16> to vector<128x128xbf16>
      %cst_25 = arith.constant dense<0.000000e+00> : vector<128x128xf32>
      %39 = tpu.matmul %36, %38, %cst_25 {dimension_numbers = #tpu.dot_dimension_numbers<[1], [0], [0], [1], [0, 0, 1, 1], [], []>} : vector<128x128xbf16>, vector<128x128xbf16>, vector<128x128xf32> -> vector<128x128xf32>
      %40 = arith.addf %35, %39 : vector<128x128xf32>
      %c0_26 = arith.constant 0 : index
      %c0_27 = arith.constant 0 : index
      %41 = vector.load %arg9[%c0_26, %c0_27] : memref<128x128xf32, #tpu.memory_space<vmem>>, vector<128x128xf32>
      tpu.vector_store %arg9[%c0_26, %c0_27], %40 {strides = array<i32>} : memref<128x128xf32, #tpu.memory_space<vmem>>, vector<128x128xf32>,
      %c0_28 = arith.constant 0 : index
      %c0_29 = arith.constant 0 : index
      %42 = vector.load %arg7[%c0_28, %c0_29] : memref<128x1xf32, #tpu.memory_space<vmem>>, vector<128x1xf32>
      tpu.vector_store %arg7[%c0_28, %c0_29], %20 {strides = array<i32>} : memref<128x1xf32, #tpu.memory_space<vmem>>, vector<128x1xf32>,
    } else {
    }
    %6 = arith.cmpi eq, %arg2, %arg1 : i32
    %7 = arith.extui %6 : i1 to i32
    %c0_i32_2 = arith.constant 0 : i32
    %8 = arith.cmpi ne, %7, %c0_i32_2 : i32
    scf.if %8 {
      %c0 = arith.constant 0 : index
      %c0_5 = arith.constant 0 : index
      %c0_6 = arith.constant 0 : index
      %12 = vector.load %arg3[%c0, %c0_5, %c0_6] : memref<1x128x128xbf16, #tpu.memory_space<vmem>>, vector<1x128x128xbf16>
      %13 = vector.shape_cast %12 : vector<1x128x128xbf16> to vector<128x128xbf16>
      %c0_7 = arith.constant 0 : index
      %c0_8 = arith.constant 0 : index
      %c0_9 = arith.constant 0 : index
      %14 = vector.load %arg4[%c0_7, %c0_8, %c0_9] : memref<1x128x128xbf16, #tpu.memory_space<vmem>>, vector<1x128x128xbf16>
      %15 = vector.shape_cast %14 : vector<1x128x128xbf16> to vector<128x128xbf16>
      %cst = arith.constant dense<0.000000e+00> : vector<128x128xf32>
      %16 = tpu.matmul %13, %15, %cst {dimension_numbers = #tpu.dot_dimension_numbers<[1], [1], [0], [0], [0, 0, 1, 0], [], []>} : vector<128x128xbf16>, vector<128x128xbf16>, vector<128x128xf32> -> vector<128x128xf32>
      %c128_i32 = arith.constant 128 : i32
      %17 = arith.muli %arg1, %c128_i32 : i32
      %18 = tpu.iota {dimensions = array<i32: 0>} : vector<128x128xi32>
      %19 = vector.broadcast %17 : i32 to vector<128x128xi32>
      %20 = arith.addi %19, %18 : vector<128x128xi32>
      %c128_i32_10 = arith.constant 128 : i32
      %21 = arith.muli %arg2, %c128_i32_10 : i32
      %22 = tpu.iota {dimensions = array<i32: 1>} : vector<128x128xi32>
      %23 = vector.broadcast %21 : i32 to vector<128x128xi32>
      %24 = arith.addi %23, %22 : vector<128x128xi32>
      %25 = arith.cmpi sle, %24, %20 : vector<128x128xi32>
      %cst_11 = arith.constant -1.000000e+30 : f32
      %26 = vector.broadcast %cst_11 : f32 to vector<128x128xf32>
      %27 = arith.select %25, %16, %26 : vector<128x128xi1>, vector<128x128xf32>
      %c0_12 = arith.constant 0 : index
      %c0_13 = arith.constant 0 : index
      %28 = vector.load %arg7[%c0_12, %c0_13] : memref<128x1xf32, #tpu.memory_space<vmem>>, vector<128x1xf32>
      %cst_14 = arith.constant dense<0xFF800000> : vector<128xf32>
      %29 = vector.multi_reduction <maximumf>, %27, %cst_14 [1] : vector<128x128xf32> to vector<128xf32>
      %30 = vector.shape_cast %29 : vector<128xf32> to vector<128x1xf32>
      %31 = arith.maximumf %28, %30 : vector<128x1xf32>
      %c0_15 = arith.constant 0 : index
      %c0_16 = arith.constant 0 : index
      %32 = vector.load %arg7[%c0_15, %c0_16] : memref<128x1xf32, #tpu.memory_space<vmem>>, vector<128x1xf32>
      %33 = arith.subf %32, %31 : vector<128x1xf32>
      %34 = math.exp %33 : vector<128x1xf32>
      %35 = vector.broadcast %31 : vector<128x1xf32> to vector<128x128xf32>
      %36 = arith.subf %27, %35 : vector<128x128xf32>
      %37 = math.exp %36 : vector<128x128xf32>
      %c0_17 = arith.constant 0 : index
      %c0_18 = arith.constant 0 : index
      %38 = vector.load %arg8[%c0_17, %c0_18] : memref<128x1xf32, #tpu.memory_space<vmem>>, vector<128x1xf32>
      %39 = arith.mulf %34, %38 : vector<128x1xf32>
      %cst_19 = arith.constant dense<0.000000e+00> : vector<128xf32>
      %40 = vector.multi_reduction <add>, %37, %cst_19 [1] : vector<128x128xf32> to vector<128xf32>
      %41 = vector.shape_cast %40 : vector<128xf32> to vector<128x1xf32>
      %42 = arith.addf %39, %41 : vector<128x1xf32>
      %c0_20 = arith.constant 0 : index
      %c0_21 = arith.constant 0 : index
      %43 = vector.load %arg8[%c0_20, %c0_21] : memref<128x1xf32, #tpu.memory_space<vmem>>, vector<128x1xf32>
      tpu.vector_store %arg8[%c0_20, %c0_21], %42 {strides = array<i32>} : memref<128x1xf32, #tpu.memory_space<vmem>>, vector<128x1xf32>,
      %c0_22 = arith.constant 0 : index
      %c0_23 = arith.constant 0 : index
      %44 = vector.load %arg9[%c0_22, %c0_23] : memref<128x128xf32, #tpu.memory_space<vmem>>, vector<128x128xf32>
      %45 = vector.broadcast %34 : vector<128x1xf32> to vector<128x128xf32>
      %46 = arith.mulf %45, %44 : vector<128x128xf32>
      %47 = arith.truncf %37 : vector<128x128xf32> to vector<128x128xbf16>
      %c0_24 = arith.constant 0 : index
      %c0_25 = arith.constant 0 : index
      %c0_26 = arith.constant 0 : index
      %48 = vector.load %arg5[%c0_24, %c0_25, %c0_26] : memref<1x128x128xbf16, #tpu.memory_space<vmem>>, vector<1x128x128xbf16>
      %49 = vector.shape_cast %48 : vector<1x128x128xbf16> to vector<128x128xbf16>
      %cst_27 = arith.constant dense<0.000000e+00> : vector<128x128xf32>
      %50 = tpu.matmul %47, %49, %cst_27 {dimension_numbers = #tpu.dot_dimension_numbers<[1], [0], [0], [1], [0, 0, 1, 1], [], []>} : vector<128x128xbf16>, vector<128x128xbf16>, vector<128x128xf32> -> vector<128x128xf32>
      %51 = arith.addf %46, %50 : vector<128x128xf32>
      %c0_28 = arith.constant 0 : index
      %c0_29 = arith.constant 0 : index
      %52 = vector.load %arg9[%c0_28, %c0_29] : memref<128x128xf32, #tpu.memory_space<vmem>>, vector<128x128xf32>
      tpu.vector_store %arg9[%c0_28, %c0_29], %51 {strides = array<i32>} : memref<128x128xf32, #tpu.memory_space<vmem>>, vector<128x128xf32>,
      %c0_30 = arith.constant 0 : index
      %c0_31 = arith.constant 0 : index
      %53 = vector.load %arg7[%c0_30, %c0_31] : memref<128x1xf32, #tpu.memory_space<vmem>>, vector<128x1xf32>
      tpu.vector_store %arg7[%c0_30, %c0_31], %31 {strides = array<i32>} : memref<128x1xf32, #tpu.memory_space<vmem>>, vector<128x1xf32>,
    } else {
    }
    %c0_i32_3 = arith.constant 0 : i32
    %9 = arith.cmpi eq, %arg2, %c0_i32_3 : i32
    %10 = arith.extui %9 : i1 to i32
    %c0_i32_4 = arith.constant 0 : i32
    %11 = arith.cmpi ne, %10, %c0_i32_4 : i32
    scf.if %11 {
      %c0 = arith.constant 0 : index
      %c0_5 = arith.constant 0 : index
      %12 = vector.load %arg9[%c0, %c0_5] : memref<128x128xf32, #tpu.memory_space<vmem>>, vector<128x128xf32>
      %c0_6 = arith.constant 0 : index
      %c0_7 = arith.constant 0 : index
      %13 = vector.load %arg8[%c0_6, %c0_7] : memref<128x1xf32, #tpu.memory_space<vmem>>, vector<128x1xf32>
      %14 = tpu.reciprocal %13 {approx = true} : vector<128x1xf32> -> vector<128x1xf32>
      %15 = vector.broadcast %14 : vector<128x1xf32> to vector<128x128xf32>
      %16 = arith.mulf %12, %15 : vector<128x128xf32>
      %17 = arith.truncf %16 : vector<128x128xf32> to vector<128x128xbf16>
      %c0_8 = arith.constant 0 : index
      %c0_9 = arith.constant 0 : index
      %c0_10 = arith.constant 0 : index
      %18 = vector.load %arg6[%c0_8, %c0_9, %c0_10] : memref<1x128x128xbf16, #tpu.memory_space<vmem>>, vector<1x128x128xbf16>
      %19 = vector.shape_cast %18 : vector<1x128x128xbf16> to vector<128x128xbf16>
      %20 = vector.shape_cast %17 : vector<128x128xbf16> to vector<1x128x128xbf16>
      tpu.vector_store %arg6[%c0_8, %c0_9, %c0_10], %20 {strides = array<i32>} : memref<1x128x128xbf16, #tpu.memory_space<vmem>>, vector<1x128x128xbf16>,
    } else {
    }
    return
  }
  func.func @transform_0(%arg0: i32, %arg1: i32, %arg2: i32) -> (i32, i32, i32) {
    %c0_i32 = arith.constant 0 : i32
    %c0_i32_0 = arith.constant 0 : i32
    return %arg0, %arg1, %c0_i32 : i32, i32, i32
  }
  func.func @transform_1(%arg0: i32, %arg1: i32, %arg2: i32) -> (i32, i32, i32) {
    %0 = arith.minsi %arg2, %arg1 : i32
    %c0_i32 = arith.constant 0 : i32
    %c0_i32_0 = arith.constant 0 : i32
    return %arg0, %0, %c0_i32 : i32, i32, i32
  }
  func.func @transform_2(%arg0: i32, %arg1: i32, %arg2: i32) -> (i32, i32, i32) {
    %0 = arith.minsi %arg2, %arg1 : i32
    %c0_i32 = arith.constant 0 : i32
    %c0_i32_0 = arith.constant 0 : i32
    return %arg0, %0, %c0_i32 : i32, i32, i32
  }
  func.func @transform_3(%arg0: i32, %arg1: i32, %arg2: i32) -> (i32, i32, i32) {
    %c0_i32 = arith.constant 0 : i32
    %c0_i32_0 = arith.constant 0 : i32
    return %arg0, %arg1, %c0_i32 : i32, i32, i32
  }
}

module attributes {stable_mosaic.version = 11 : i64} {
  func.func @_rmsnorm_swiglu_kernel(%arg0: i32, %arg1: i32, %arg2: memref<256x256xf32, #tpu.memory_space<vmem>>, %arg3: memref<1x256xf32, #tpu.memory_space<vmem>>, %arg4: memref<256x512xbf16, #tpu.memory_space<vmem>>, %arg5: memref<256x512xbf16, #tpu.memory_space<vmem>>, %arg6: memref<256x512xbf16, #tpu.memory_space<vmem>>, %arg7: memref<256x256xbf16, #tpu.memory_space<vmem>>) attributes {dimension_semantics = [#tpu.dimension_semantics<parallel>, #tpu.dimension_semantics<arbitrary>], iteration_bounds = array<i64: 1, 1>, scalar_prefetch = 0 : i64, scratch_operands = 1 : i64, tpu.core_type = #tpu.core_type<tc>, window_params = [{transform_indices = @transform_0, window_bounds = array<i64: 256, 256>}, {pipeline_mode = #tpu.pipeline_mode<synchronous>, transform_indices = @transform_1, window_bounds = array<i64: 1, 256>}, {transform_indices = @transform_2, window_bounds = array<i64: 256, 512>}, {transform_indices = @transform_3, window_bounds = array<i64: 256, 512>}, {transform_indices = @transform_4, window_bounds = array<i64: 256, 512>}]} {
    %c0_i32 = arith.constant 0 : i32
    %0 = arith.cmpi eq, %arg1, %c0_i32 : i32
    %1 = arith.extui %0 : i1 to i32
    %c0_i32_0 = arith.constant 0 : i32
    %2 = arith.cmpi ne, %1, %c0_i32_0 : i32
    scf.if %2 {
      %c0_10 = arith.constant 0 : index
      %c0_11 = arith.constant 0 : index
      %17 = vector.load %arg2[%c0_10, %c0_11] : memref<256x256xf32, #tpu.memory_space<vmem>>, vector<256x256xf32>
      %18 = arith.mulf %17, %17 : vector<256x256xf32>
      %cst_12 = arith.constant dense<0.000000e+00> : vector<256xf32>
      %19 = vector.multi_reduction <add>, %18, %cst_12 [1] : vector<256x256xf32> to vector<256xf32>
      %20 = vector.shape_cast %19 : vector<256xf32> to vector<256x1xf32>
      %cst_13 = arith.constant 2.560000e+02 : f32
      %21 = vector.broadcast %cst_13 : f32 to vector<256x1xf32>
      %22 = arith.divf %20, %21 : vector<256x1xf32>
      %cst_14 = arith.constant 9.99999997E-7 : f32
      %23 = vector.broadcast %cst_14 : f32 to vector<256x1xf32>
      %24 = arith.addf %22, %23 : vector<256x1xf32>
      %25 = math.rsqrt %24 : vector<256x1xf32>
      %26 = vector.broadcast %25 : vector<256x1xf32> to vector<256x256xf32>
      %27 = arith.mulf %17, %26 : vector<256x256xf32>
      %c0_15 = arith.constant 0 : index
      %c0_16 = arith.constant 0 : index
      %28 = vector.load %arg3[%c0_15, %c0_16] : memref<1x256xf32, #tpu.memory_space<vmem>>, vector<1x256xf32>
      %29 = vector.broadcast %28 : vector<1x256xf32> to vector<256x256xf32>
      %30 = arith.mulf %27, %29 : vector<256x256xf32>
      %31 = arith.truncf %30 : vector<256x256xf32> to vector<256x256xbf16>
      %c0_17 = arith.constant 0 : index
      %c0_18 = arith.constant 0 : index
      %32 = vector.load %arg7[%c0_17, %c0_18] : memref<256x256xbf16, #tpu.memory_space<vmem>>, vector<256x256xbf16>
      tpu.vector_store %arg7[%c0_17, %c0_18], %31 {strides = array<i32>} : memref<256x256xbf16, #tpu.memory_space<vmem>>, vector<256x256xbf16>,
    } else {
    }
    %c0 = arith.constant 0 : index
    %c0_1 = arith.constant 0 : index
    %3 = vector.load %arg7[%c0, %c0_1] : memref<256x256xbf16, #tpu.memory_space<vmem>>, vector<256x256xbf16>
    %c0_2 = arith.constant 0 : index
    %c0_3 = arith.constant 0 : index
    %4 = vector.load %arg4[%c0_2, %c0_3] : memref<256x512xbf16, #tpu.memory_space<vmem>>, vector<256x512xbf16>
    %cst = arith.constant dense<0.000000e+00> : vector<256x512xf32>
    %5 = tpu.matmul %3, %4, %cst {dimension_numbers = #tpu.dot_dimension_numbers<[1], [0], [0], [1], [0, 0, 1, 1], [], []>} : vector<256x256xbf16>, vector<256x512xbf16>, vector<256x512xf32> -> vector<256x512xf32>
    %c0_4 = arith.constant 0 : index
    %c0_5 = arith.constant 0 : index
    %6 = vector.load %arg5[%c0_4, %c0_5] : memref<256x512xbf16, #tpu.memory_space<vmem>>, vector<256x512xbf16>
    %cst_6 = arith.constant dense<0.000000e+00> : vector<256x512xf32>
    %7 = tpu.matmul %3, %6, %cst_6 {dimension_numbers = #tpu.dot_dimension_numbers<[1], [0], [0], [1], [0, 0, 1, 1], [], []>} : vector<256x256xbf16>, vector<256x512xbf16>, vector<256x512xf32> -> vector<256x512xf32>
    %8 = arith.negf %5 : vector<256x512xf32>
    %9 = math.exp %8 : vector<256x512xf32>
    %cst_7 = arith.constant 1.000000e+00 : f32
    %10 = vector.broadcast %cst_7 : f32 to vector<256x512xf32>
    %11 = arith.addf %10, %9 : vector<256x512xf32>
    %12 = arith.divf %10, %11 : vector<256x512xf32>
    %13 = arith.mulf %5, %12 : vector<256x512xf32>
    %14 = arith.mulf %13, %7 : vector<256x512xf32>
    %15 = arith.truncf %14 : vector<256x512xf32> to vector<256x512xbf16>
    %c0_8 = arith.constant 0 : index
    %c0_9 = arith.constant 0 : index
    %16 = vector.load %arg6[%c0_8, %c0_9] : memref<256x512xbf16, #tpu.memory_space<vmem>>, vector<256x512xbf16>
    tpu.vector_store %arg6[%c0_8, %c0_9], %15 {strides = array<i32>} : memref<256x512xbf16, #tpu.memory_space<vmem>>, vector<256x512xbf16>,
    return
  }
  func.func @transform_0(%arg0: i32, %arg1: i32) -> (i32, i32) {
    %c0_i32 = arith.constant 0 : i32
    %c0_i32_0 = arith.constant 0 : i32
    return %arg0, %c0_i32 : i32, i32
  }
  func.func @transform_1(%arg0: i32, %arg1: i32) -> (i32, i32) {
    %c0_i32 = arith.constant 0 : i32
    %c0_i32_0 = arith.constant 0 : i32
    %c0_i32_1 = arith.constant 0 : i32
    return %c0_i32, %c0_i32_0 : i32, i32
  }
  func.func @transform_2(%arg0: i32, %arg1: i32) -> (i32, i32) {
    %c0_i32 = arith.constant 0 : i32
    %c0_i32_0 = arith.constant 0 : i32
    return %c0_i32, %arg1 : i32, i32
  }
  func.func @transform_3(%arg0: i32, %arg1: i32) -> (i32, i32) {
    %c0_i32 = arith.constant 0 : i32
    %c0_i32_0 = arith.constant 0 : i32
    return %c0_i32, %arg1 : i32, i32
  }
  func.func @transform_4(%arg0: i32, %arg1: i32) -> (i32, i32) {
    %c0_i32 = arith.constant 0 : i32
    return %arg0, %arg1 : i32, i32
  }
}

module attributes {stable_mosaic.version = 11 : i64} {
  func.func @_oproj_residual_kernel(%arg0: i32, %arg1: i32, %arg2: i32, %arg3: i32, %arg4: memref<1x128x128xbf16, #tpu.memory_space<vmem>>, %arg5: memref<128x256xbf16, #tpu.memory_space<vmem>>, %arg6: memref<128x256xf32, #tpu.memory_space<vmem>>, %arg7: memref<128x256xf32, #tpu.memory_space<vmem>>) attributes {dimension_semantics = [#tpu.dimension_semantics<parallel>, #tpu.dimension_semantics<parallel>, #tpu.dimension_semantics<parallel>, #tpu.dimension_semantics<arbitrary>], iteration_bounds = array<i64: 2, 1, 1, 2>, scalar_prefetch = 0 : i64, scratch_operands = 0 : i64, tpu.core_type = #tpu.core_type<tc>, window_params = [{transform_indices = @transform_0, window_bounds = array<i64: 1, 128, 128>}, {transform_indices = @transform_1, window_bounds = array<i64: 128, 256>}, {transform_indices = @transform_2, window_bounds = array<i64: 128, 256>}, {transform_indices = @transform_3, window_bounds = array<i64: 128, 256>}]} {
    %c0_i32 = arith.constant 0 : i32
    %0 = arith.cmpi eq, %arg3, %c0_i32 : i32
    %1 = arith.extui %0 : i1 to i32
    %c0_i32_0 = arith.constant 0 : i32
    %2 = arith.cmpi ne, %1, %c0_i32_0 : i32
    scf.if %2 {
      %c0_9 = arith.constant 0 : index
      %c0_10 = arith.constant 0 : index
      %10 = vector.load %arg6[%c0_9, %c0_10] : memref<128x256xf32, #tpu.memory_space<vmem>>, vector<128x256xf32>
      %c0_11 = arith.constant 0 : index
      %c0_12 = arith.constant 0 : index
      %11 = vector.load %arg7[%c0_11, %c0_12] : memref<128x256xf32, #tpu.memory_space<vmem>>, vector<128x256xf32>
      tpu.vector_store %arg7[%c0_11, %c0_12], %10 {strides = array<i32>} : memref<128x256xf32, #tpu.memory_space<vmem>>, vector<128x256xf32>,
    } else {
    }
    %c0 = arith.constant 0 : index
    %c0_1 = arith.constant 0 : index
    %3 = vector.load %arg7[%c0, %c0_1] : memref<128x256xf32, #tpu.memory_space<vmem>>, vector<128x256xf32>
    %c0_2 = arith.constant 0 : index
    %c0_3 = arith.constant 0 : index
    %c0_4 = arith.constant 0 : index
    %4 = vector.load %arg4[%c0_2, %c0_3, %c0_4] : memref<1x128x128xbf16, #tpu.memory_space<vmem>>, vector<1x128x128xbf16>
    %5 = vector.shape_cast %4 : vector<1x128x128xbf16> to vector<128x128xbf16>
    %c0_5 = arith.constant 0 : index
    %c0_6 = arith.constant 0 : index
    %6 = vector.load %arg5[%c0_5, %c0_6] : memref<128x256xbf16, #tpu.memory_space<vmem>>, vector<128x256xbf16>
    %cst = arith.constant dense<0.000000e+00> : vector<128x256xf32>
    %7 = tpu.matmul %5, %6, %cst {dimension_numbers = #tpu.dot_dimension_numbers<[1], [0], [0], [1], [0, 0, 1, 1], [], []>} : vector<128x128xbf16>, vector<128x256xbf16>, vector<128x256xf32> -> vector<128x256xf32>
    %8 = arith.addf %3, %7 : vector<128x256xf32>
    %c0_7 = arith.constant 0 : index
    %c0_8 = arith.constant 0 : index
    %9 = vector.load %arg7[%c0_7, %c0_8] : memref<128x256xf32, #tpu.memory_space<vmem>>, vector<128x256xf32>
    tpu.vector_store %arg7[%c0_7, %c0_8], %8 {strides = array<i32>} : memref<128x256xf32, #tpu.memory_space<vmem>>, vector<128x256xf32>,
    return
  }
  func.func @transform_0(%arg0: i32, %arg1: i32, %arg2: i32, %arg3: i32) -> (i32, i32, i32) {
    %c2_i32 = arith.constant 2 : i32
    %0 = arith.muli %arg0, %c2_i32 : i32
    %1 = arith.addi %0, %arg3 : i32
    %c0_i32 = arith.constant 0 : i32
    %c0_i32_0 = arith.constant 0 : i32
    return %1, %arg1, %c0_i32 : i32, i32, i32
  }
  func.func @transform_1(%arg0: i32, %arg1: i32, %arg2: i32, %arg3: i32) -> (i32, i32) {
    %c0_i32 = arith.constant 0 : i32
    return %arg3, %arg2 : i32, i32
  }
  func.func @transform_2(%arg0: i32, %arg1: i32, %arg2: i32, %arg3: i32) -> (i32, i32) {
    %c1_i32 = arith.constant 1 : i32
    %0 = arith.muli %arg0, %c1_i32 : i32
    %1 = arith.addi %0, %arg1 : i32
    %c0_i32 = arith.constant 0 : i32
    return %1, %arg2 : i32, i32
  }
  func.func @transform_3(%arg0: i32, %arg1: i32, %arg2: i32, %arg3: i32) -> (i32, i32) {
    %c1_i32 = arith.constant 1 : i32
    %0 = arith.muli %arg0, %c1_i32 : i32
    %1 = arith.addi %0, %arg1 : i32
    %c0_i32 = arith.constant 0 : i32
    return %1, %arg2 : i32, i32
  }
}

module attributes {stable_mosaic.version = 11 : i64} {
  func.func @_matmul_residual_kernel(%arg0: i32, %arg1: i32, %arg2: i32, %arg3: memref<256x512xbf16, #tpu.memory_space<vmem>>, %arg4: memref<512x256xbf16, #tpu.memory_space<vmem>>, %arg5: memref<256x256xf32, #tpu.memory_space<vmem>>, %arg6: memref<256x256xf32, #tpu.memory_space<vmem>>) attributes {dimension_semantics = [#tpu.dimension_semantics<parallel>, #tpu.dimension_semantics<parallel>, #tpu.dimension_semantics<arbitrary>], iteration_bounds = array<i64: 1, 1, 1>, scalar_prefetch = 0 : i64, scratch_operands = 0 : i64, tpu.core_type = #tpu.core_type<tc>, window_params = [{transform_indices = @transform_0, window_bounds = array<i64: 256, 512>}, {transform_indices = @transform_1, window_bounds = array<i64: 512, 256>}, {transform_indices = @transform_2, window_bounds = array<i64: 256, 256>}, {transform_indices = @transform_3, window_bounds = array<i64: 256, 256>}]} {
    %c0_i32 = arith.constant 0 : i32
    %0 = arith.cmpi eq, %arg2, %c0_i32 : i32
    %1 = arith.extui %0 : i1 to i32
    %c0_i32_0 = arith.constant 0 : i32
    %2 = arith.cmpi ne, %1, %c0_i32_0 : i32
    scf.if %2 {
      %c0_8 = arith.constant 0 : index
      %c0_9 = arith.constant 0 : index
      %9 = vector.load %arg5[%c0_8, %c0_9] : memref<256x256xf32, #tpu.memory_space<vmem>>, vector<256x256xf32>
      %c0_10 = arith.constant 0 : index
      %c0_11 = arith.constant 0 : index
      %10 = vector.load %arg6[%c0_10, %c0_11] : memref<256x256xf32, #tpu.memory_space<vmem>>, vector<256x256xf32>
      tpu.vector_store %arg6[%c0_10, %c0_11], %9 {strides = array<i32>} : memref<256x256xf32, #tpu.memory_space<vmem>>, vector<256x256xf32>,
    } else {
    }
    %c0 = arith.constant 0 : index
    %c0_1 = arith.constant 0 : index
    %3 = vector.load %arg6[%c0, %c0_1] : memref<256x256xf32, #tpu.memory_space<vmem>>, vector<256x256xf32>
    %c0_2 = arith.constant 0 : index
    %c0_3 = arith.constant 0 : index
    %4 = vector.load %arg3[%c0_2, %c0_3] : memref<256x512xbf16, #tpu.memory_space<vmem>>, vector<256x512xbf16>
    %c0_4 = arith.constant 0 : index
    %c0_5 = arith.constant 0 : index
    %5 = vector.load %arg4[%c0_4, %c0_5] : memref<512x256xbf16, #tpu.memory_space<vmem>>, vector<512x256xbf16>
    %cst = arith.constant dense<0.000000e+00> : vector<256x256xf32>
    %6 = tpu.matmul %4, %5, %cst {dimension_numbers = #tpu.dot_dimension_numbers<[1], [0], [0], [1], [0, 0, 1, 1], [], []>} : vector<256x512xbf16>, vector<512x256xbf16>, vector<256x256xf32> -> vector<256x256xf32>
    %7 = arith.addf %3, %6 : vector<256x256xf32>
    %c0_6 = arith.constant 0 : index
    %c0_7 = arith.constant 0 : index
    %8 = vector.load %arg6[%c0_6, %c0_7] : memref<256x256xf32, #tpu.memory_space<vmem>>, vector<256x256xf32>
    tpu.vector_store %arg6[%c0_6, %c0_7], %7 {strides = array<i32>} : memref<256x256xf32, #tpu.memory_space<vmem>>, vector<256x256xf32>,
    return
  }
  func.func @transform_0(%arg0: i32, %arg1: i32, %arg2: i32) -> (i32, i32) {
    %c0_i32 = arith.constant 0 : i32
    return %arg0, %arg2 : i32, i32
  }
  func.func @transform_1(%arg0: i32, %arg1: i32, %arg2: i32) -> (i32, i32) {
    %c0_i32 = arith.constant 0 : i32
    return %arg2, %arg1 : i32, i32
  }
  func.func @transform_2(%arg0: i32, %arg1: i32, %arg2: i32) -> (i32, i32) {
    %c0_i32 = arith.constant 0 : i32
    return %arg0, %arg1 : i32, i32
  }
  func.func @transform_3(%arg0: i32, %arg1: i32, %arg2: i32) -> (i32, i32) {
    %c0_i32 = arith.constant 0 : i32
    return %arg0, %arg1 : i32, i32
  }
}

module attributes {stable_mosaic.version = 11 : i64} {
  func.func @_rmsnorm_matmul_kernel(%arg0: i32, %arg1: i32, %arg2: memref<256x256xf32, #tpu.memory_space<vmem>>, %arg3: memref<1x256xf32, #tpu.memory_space<vmem>>, %arg4: memref<256x512xbf16, #tpu.memory_space<vmem>>, %arg5: memref<256x512xf32, #tpu.memory_space<vmem>>, %arg6: memref<256x256xbf16, #tpu.memory_space<vmem>>) attributes {dimension_semantics = [#tpu.dimension_semantics<parallel>, #tpu.dimension_semantics<arbitrary>], iteration_bounds = array<i64: 1, 1>, scalar_prefetch = 0 : i64, scratch_operands = 1 : i64, tpu.core_type = #tpu.core_type<tc>, window_params = [{transform_indices = @transform_0, window_bounds = array<i64: 256, 256>}, {pipeline_mode = #tpu.pipeline_mode<synchronous>, transform_indices = @transform_1, window_bounds = array<i64: 1, 256>}, {transform_indices = @transform_2, window_bounds = array<i64: 256, 512>}, {transform_indices = @transform_3, window_bounds = array<i64: 256, 512>}]} {
    %c0_i32 = arith.constant 0 : i32
    %0 = arith.cmpi eq, %arg1, %c0_i32 : i32
    %1 = arith.extui %0 : i1 to i32
    %c0_i32_0 = arith.constant 0 : i32
    %2 = arith.cmpi ne, %1, %c0_i32_0 : i32
    scf.if %2 {
      %c0_6 = arith.constant 0 : index
      %c0_7 = arith.constant 0 : index
      %7 = vector.load %arg2[%c0_6, %c0_7] : memref<256x256xf32, #tpu.memory_space<vmem>>, vector<256x256xf32>
      %8 = arith.mulf %7, %7 : vector<256x256xf32>
      %cst_8 = arith.constant dense<0.000000e+00> : vector<256xf32>
      %9 = vector.multi_reduction <add>, %8, %cst_8 [1] : vector<256x256xf32> to vector<256xf32>
      %10 = vector.shape_cast %9 : vector<256xf32> to vector<256x1xf32>
      %cst_9 = arith.constant 2.560000e+02 : f32
      %11 = vector.broadcast %cst_9 : f32 to vector<256x1xf32>
      %12 = arith.divf %10, %11 : vector<256x1xf32>
      %cst_10 = arith.constant 9.99999997E-7 : f32
      %13 = vector.broadcast %cst_10 : f32 to vector<256x1xf32>
      %14 = arith.addf %12, %13 : vector<256x1xf32>
      %15 = math.rsqrt %14 : vector<256x1xf32>
      %16 = vector.broadcast %15 : vector<256x1xf32> to vector<256x256xf32>
      %17 = arith.mulf %7, %16 : vector<256x256xf32>
      %c0_11 = arith.constant 0 : index
      %c0_12 = arith.constant 0 : index
      %18 = vector.load %arg3[%c0_11, %c0_12] : memref<1x256xf32, #tpu.memory_space<vmem>>, vector<1x256xf32>
      %19 = vector.broadcast %18 : vector<1x256xf32> to vector<256x256xf32>
      %20 = arith.mulf %17, %19 : vector<256x256xf32>
      %21 = arith.truncf %20 : vector<256x256xf32> to vector<256x256xbf16>
      %c0_13 = arith.constant 0 : index
      %c0_14 = arith.constant 0 : index
      %22 = vector.load %arg6[%c0_13, %c0_14] : memref<256x256xbf16, #tpu.memory_space<vmem>>, vector<256x256xbf16>
      tpu.vector_store %arg6[%c0_13, %c0_14], %21 {strides = array<i32>} : memref<256x256xbf16, #tpu.memory_space<vmem>>, vector<256x256xbf16>,
    } else {
    }
    %c0 = arith.constant 0 : index
    %c0_1 = arith.constant 0 : index
    %3 = vector.load %arg6[%c0, %c0_1] : memref<256x256xbf16, #tpu.memory_space<vmem>>, vector<256x256xbf16>
    %c0_2 = arith.constant 0 : index
    %c0_3 = arith.constant 0 : index
    %4 = vector.load %arg4[%c0_2, %c0_3] : memref<256x512xbf16, #tpu.memory_space<vmem>>, vector<256x512xbf16>
    %cst = arith.constant dense<0.000000e+00> : vector<256x512xf32>
    %5 = tpu.matmul %3, %4, %cst {dimension_numbers = #tpu.dot_dimension_numbers<[1], [0], [0], [1], [0, 0, 1, 1], [], []>} : vector<256x256xbf16>, vector<256x512xbf16>, vector<256x512xf32> -> vector<256x512xf32>
    %c0_4 = arith.constant 0 : index
    %c0_5 = arith.constant 0 : index
    %6 = vector.load %arg5[%c0_4, %c0_5] : memref<256x512xf32, #tpu.memory_space<vmem>>, vector<256x512xf32>
    tpu.vector_store %arg5[%c0_4, %c0_5], %5 {strides = array<i32>} : memref<256x512xf32, #tpu.memory_space<vmem>>, vector<256x512xf32>,
    return
  }
  func.func @transform_0(%arg0: i32, %arg1: i32) -> (i32, i32) {
    %c0_i32 = arith.constant 0 : i32
    %c0_i32_0 = arith.constant 0 : i32
    return %arg0, %c0_i32 : i32, i32
  }
  func.func @transform_1(%arg0: i32, %arg1: i32) -> (i32, i32) {
    %c0_i32 = arith.constant 0 : i32
    %c0_i32_0 = arith.constant 0 : i32
    %c0_i32_1 = arith.constant 0 : i32
    return %c0_i32, %c0_i32_0 : i32, i32
  }
  func.func @transform_2(%arg0: i32, %arg1: i32) -> (i32, i32) {
    %c0_i32 = arith.constant 0 : i32
    %c0_i32_0 = arith.constant 0 : i32
    return %c0_i32, %arg1 : i32, i32
  }
  func.func @transform_3(%arg0: i32, %arg1: i32) -> (i32, i32) {
    %c0_i32 = arith.constant 0 : i32
    return %arg0, %arg1 : i32, i32
  }
}

</mosaic_0001>

<bundles_post_ra>
// kernel: deepseek_forward.13
= control target key start
LH: loop header
LB: loop body
LE: loop exit
PB: predicated region body
PF: predicated region fallthrough
CT: control target
= control target key end

     0   :  { %s1111_s12 = smov 0   ;;  %s1113_s13 = smov 0   ;;  %s1341_s0 = inlined_call_operand.vmem [shape: bf16[4,128,128], index: 0, kind: input, shape index: {}]   ;;  %s1342_s1 = inlined_call_operand.vmem [shape: bf16[256,256], index: 1, kind: input, shape index: {}]   ;;  %s1343_s2 = inlined_call_operand.vmem [shape: f32[256,256], index: 2, kind: input, shape index: {}, may-alias: {2,3}]   ;;  %s1344_s3 = inlined_call_operand.vmem [shape: f32[256,256], index: 3, kind: output, shape index: {}, may-alias: {2,3}]  }
   0x1   :  { %s1115_s14 = smov 0   ;;  %s1117_s15 = smov 0  }
   0x2   :  { %s1119_s16 = smov 0  }
   0x3 LB: > { %s28_s17 = sadd.s32 1, %s1080_s14  ;;  %s39_s18 = sadd.s32 1, %s1084_s15  ;;  %s1088_s16 = sphi %s1119_s16, %s13_s16   ;;  %s1084_s15 = sphi %s1117_s15, %s1348_s15   ;;  %s1080_s14 = sphi %s1115_s14, %s1347_s14   ;;  %s1076_s13 = sphi %s1113_s13, %s1346_s13   ;;  %s1072_s12 = sphi %s1111_s12, %s1345_s12  }
   0x4   : > { %p29_p0 = scmp.ge.s32.totalorder %s28_s17, 2  ;;  %p917_p1 = scmp.ge.s32.totalorder %s1088_s16, 1 }
   0x5   : > { %p224_p2 = scmp.lt.s32.totalorder %s1088_s16, 5 }
   0x6   : > { %s1350_s17 = smov (%p29_p0, %s28_s17), 0  ;;  %s1352_s18 = smov (!%p29_p0, %s39_s18), %s1084_s15 }
   0x7   : > { %p225_p3 = pnand %p917_p1, %p224_p2  ;;  %p41_p4 = scmp.ge.s32.totalorder %s1352_s18, 2 }
   0x8   : > { %s918_s19 = sshll.u32 (!%p225_p3), %s1076_s13, 1  ;;  %s921_s20 = sshll.u32 (!%p225_p3), %s1072_s12, 4 }
   0x9   : > { %s1354_s18 = smov (%p41_p4, %s1352_s18), 0  ;;  %228 = sbr.rel (%p225_p3) target bundleno = 325 (0x145), region = 32 }
   0xa   : > { %s282_s21 = sadd.s32 (!%p225_p3), %s1072_s12, %s918_s19  ;;  %p297_p5 = scmp.lt.s32.totalorder (!%p225_p3), %s921_s20, 31 }
   0xb   : > { %p284_p6 = scmp.lt.s32.totalorder (!%p225_p3), %s282_s21, 3  ;;  %s924_s22 = sshll.u32 (!%p225_p3), %s1076_s13, 4 }
   0xc   : > { %p310_p7 = scmp.lt.s32.totalorder (!%p225_p3), %s924_s22, 31  ;;  %p930_p8 = scmp.ne.s32.totalorder (!%p225_p3), %s1072_s12, 0 }
  0x10   : > { %s1356_s20 = smov (!%p297_p5, %s921_s20), 31  ;;  %s1358_s21 = smov (!%p284_p6, %s282_s21), 3 }
  0x11   : > { %s958_s23 = sshll.u32 %s1356_s20, 3  ;;  %s957_s24 = sshll.u32 %s1358_s21, 6 }
  0x12   : > { %s1148_s27 = scalar_lea.vmem %s1342_s1, %s958_s23  ;;  %s1153_s30 = scalar_lea.vmem %s1341_s0, %s957_s24 }
  0x13   : > { %s1360_s22 = smov (!%p310_p7, %s924_s22), 31  ;;  %339 = sbr.rel (%p930_p8) target bundleno = 49 (0x31), region = 36 }
  0x14   : > { %s959_s4 = sshll.u32 %s1360_s22, 4 }
  0x15   : > { %s1158_s7 = scalar_lea.vmem %s1343_s2, %s959_s4  ;;  %s1163_s10 = scalar_lea.vmem %s1344_s3, %s959_s4 }
  0x16   : > { %v340_v0 = vld [vmem:[%s1158_s7] sm:$0xff] (!%p930_p8)  ;;  %v341_v1 = vld [vmem:[%s1158_s7 + $0x8] sm:$0xff] (!%p930_p8)  ;;  %v342_v2 = vld [vmem:[%s1158_s7 + $0x10] sm:$0xff] (!%p930_p8) }
  0x17   : > { %v343_v3 = vld [vmem:[%s1158_s7 + $0x18] sm:$0xff] (!%p930_p8)  ;;  %v344_v4 = vld [vmem:[%s1158_s7 + $0x20] sm:$0xff] (!%p930_p8)  ;;  %v345_v5 = vld [vmem:[%s1158_s7 + $0x28] sm:$0xff] (!%p930_p8) }
  0x18   : > { %v346_v6 = vld [vmem:[%s1158_s7 + $0x30] sm:$0xff] (!%p930_p8)  ;;  %v347_v7 = vld [vmem:[%s1158_s7 + $0x38] sm:$0xff] (!%p930_p8)  ;;  %v348_v8 = vld [vmem:[%s1158_s7 + $0x40] sm:$0xff] (!%p930_p8) }
  0x19   : > { %v349_v9 = vld [vmem:[%s1158_s7 + $0x48] sm:$0xff] (!%p930_p8)  ;;  %v350_v10 = vld [vmem:[%s1158_s7 + $0x50] sm:$0xff] (!%p930_p8)  ;;  %v351_v11 = vld [vmem:[%s1158_s7 + $0x58] sm:$0xff] (!%p930_p8) }
  0x1a   : > { %v352_v12 = vld [vmem:[%s1158_s7 + $0x60] sm:$0xff]  ;;  %v353_v13 = vld [vmem:[%s1158_s7 + $0x68] sm:$0xff]  ;;  %v354_v14 = vld [vmem:[%s1158_s7 + $0x70] sm:$0xff] }
  0x1b   : > { %v355_v15 = vld [vmem:[%s1158_s7 + $0x78] sm:$0xff]  ;;  %v356_v16 = vld [vmem:[%s1158_s7 + $0x80] sm:$0xff]  ;;  %v357_v17 = vld [vmem:[%s1158_s7 + $0x88] sm:$0xff] }
  0x1c   : > { %v358_v18 = vld [vmem:[%s1158_s7 + $0x90] sm:$0xff]  ;;  %v359_v19 = vld [vmem:[%s1158_s7 + $0x98] sm:$0xff]  ;;  %v360_v20 = vld [vmem:[%s1158_s7 + $0xa0] sm:$0xff] }
  0x1d   : > { %v361_v21 = vld [vmem:[%s1158_s7 + $0xa8] sm:$0xff]  ;;  %v362_v22 = vld [vmem:[%s1158_s7 + $0xb0] sm:$0xff]  ;;  %v363_v23 = vld [vmem:[%s1158_s7 + $0xb8] sm:$0xff] }
  0x1e   : > { %v364_v24 = vld [vmem:[%s1158_s7 + $0xc0] sm:$0xff]  ;;  %v365_v25 = vld [vmem:[%s1158_s7 + $0xc8] sm:$0xff]  ;;  %v366_v26 = vld [vmem:[%s1158_s7 + $0xd0] sm:$0xff] }
  0x1f   : > { %v367_v27 = vld [vmem:[%s1158_s7 + $0xd8] sm:$0xff]  ;;  %v368_v28 = vld [vmem:[%s1158_s7 + $0xe0] sm:$0xff]  ;;  %v369_v29 = vld [vmem:[%s1158_s7 + $0xe8] sm:$0xff] }
  0x20   : > { %v370_v30 = vld [vmem:[%s1158_s7 + $0xf0] sm:$0xff]  ;;  %v371_v31 = vld [vmem:[%s1158_s7 + $0xf8] sm:$0xff] }
  0x21   : > { %372 = vst [vmem:[%s1163_s10] sm:$0xff] %v340_v0  ;;  %373 = vst [vmem:[%s1163_s10 + $0x8] sm:$0xff] %v341_v1 }
  0x22   : > { %374 = vst [vmem:[%s1163_s10 + $0x10] sm:$0xff] %v342_v2  ;;  %375 = vst [vmem:[%s1163_s10 + $0x18] sm:$0xff] %v343_v3 }
  0x23   : > { %376 = vst [vmem:[%s1163_s10 + $0x20] sm:$0xff] %v344_v4  ;;  %377 = vst [vmem:[%s1163_s10 + $0x28] sm:$0xff] %v345_v5 }
  0x24   : > { %378 = vst [vmem:[%s1163_s10 + $0x30] sm:$0xff] %v346_v6  ;;  %379 = vst [vmem:[%s1163_s10 + $0x38] sm:$0xff] %v347_v7 }
  0x25   : > { %380 = vst [vmem:[%s1163_s10 + $0x40] sm:$0xff] %v348_v8  ;;  %381 = vst [vmem:[%s1163_s10 + $0x48] sm:$0xff] %v349_v9 }
  0x26   : > { %382 = vst [vmem:[%s1163_s10 + $0x50] sm:$0xff] %v350_v10  ;;  %383 = vst [vmem:[%s1163_s10 + $0x58] sm:$0xff] %v351_v11 }
  0x27   : > { %384 = vst [vmem:[%s1163_s10 + $0x60] sm:$0xff] %v352_v12  ;;  %385 = vst [vmem:[%s1163_s10 + $0x68] sm:$0xff] %v353_v13 }
  0x28   : > { %386 = vst [vmem:[%s1163_s10 + $0x70] sm:$0xff] %v354_v14  ;;  %387 = vst [vmem:[%s1163_s10 + $0x78] sm:$0xff] %v355_v15 }
  0x29   : > { %388 = vst [vmem:[%s1163_s10 + $0x80] sm:$0xff] %v356_v16  ;;  %389 = vst [vmem:[%s1163_s10 + $0x88] sm:$0xff] %v357_v17 }
  0x2a   : > { %390 = vst [vmem:[%s1163_s10 + $0x90] sm:$0xff] %v358_v18  ;;  %391 = vst [vmem:[%s1163_s10 + $0x98] sm:$0xff] %v359_v19 }
  0x2b   : > { %392 = vst [vmem:[%s1163_s10 + $0xa0] sm:$0xff] %v360_v20  ;;  %393 = vst [vmem:[%s1163_s10 + $0xa8] sm:$0xff] %v361_v21 }
  0x2c   : > { %394 = vst [vmem:[%s1163_s10 + $0xb0] sm:$0xff] %v362_v22  ;;  %395 = vst [vmem:[%s1163_s10 + $0xb8] sm:$0xff] %v363_v23 }
  0x2d   : > { %396 = vst [vmem:[%s1163_s10 + $0xc0] sm:$0xff] %v364_v24  ;;  %397 = vst [vmem:[%s1163_s10 + $0xc8] sm:$0xff] %v365_v25 }
  0x2e   : > { %398 = vst [vmem:[%s1163_s10 + $0xd0] sm:$0xff] %v366_v26  ;;  %399 = vst [vmem:[%s1163_s10 + $0xd8] sm:$0xff] %v367_v27 }
  0x2f   : > { %400 = vst [vmem:[%s1163_s10 + $0xe0] sm:$0xff] %v368_v28  ;;  %401 = vst [vmem:[%s1163_s10 + $0xe8] sm:$0xff] %v369_v29 }
  0x30   : > { %402 = vst [vmem:[%s1163_s10 + $0xf0] sm:$0xff] %v370_v30  ;;  %403 = vst [vmem:[%s1163_s10 + $0xf8] sm:$0xff] %v371_v31 }
  0x31 PF: > { %v1018_v32 = vld [vmem:[%s1148_s27 + $0x4] ss:$8 sps:$4 sm:$0xff]   ;;  %v1020_v33 = vld [vmem:[%s1148_s27] ss:$8 sps:$4 sm:$0xff]   ;;  %v1090_v34 = vmov 0   ;;  %v1046_v53 = vld [vmem:[%s1153_s30 + $0x10] sm:$0xff]  }
  0x32   : > { %628 = vmatprep.mubr.bf16.mxu0 %v1090_v34  ;;  %668 = vmatprep.mubr.bf16.mxu1 %v1090_v34  ;;  %v1021_v35 = vld [vmem:[%s1148_s27 + $0x14] ss:$8 sps:$4 sm:$0xff]   ;;  %v1023_v36 = vld [vmem:[%s1148_s27 + $0x10] ss:$8 sps:$4 sm:$0xff]   ;;  %v1024_v37 = vld [vmem:[%s1148_s27 + $0x24] ss:$8 sps:$4 sm:$0xff]  }
  0x33   : > { %596 = vmatprep.subr.bf16.mxu0 %v1018_v32  ;;  %961 = vmatprep.subr.bf16.mxu1 %v1018_v32  ;;  %v1026_v38 = vld [vmem:[%s1148_s27 + $0x20] ss:$8 sps:$4 sm:$0xff]   ;;  %v1027_v39 = vld [vmem:[%s1148_s27 + $0x34] ss:$8 sps:$4 sm:$0xff]   ;;  %v1029_v40 = vld [vmem:[%s1148_s27 + $0x30] ss:$8 sps:$4 sm:$0xff]  }
  0x34   : > { %597 = vmatpush1.bf16.msra.mxu0 %v1020_v33  ;;  %969 = vmatpush1.bf16.msra.mxu1 %v1020_v33  ;;  %v1030_v41 = vld [vmem:[%s1148_s27 + $0x44] ss:$8 sps:$4 sm:$0xff]   ;;  %v1032_v42 = vld [vmem:[%s1148_s27 + $0x40] ss:$8 sps:$4 sm:$0xff]   ;;  %v1033_v43 = vld [vmem:[%s1148_s27 + $0x54] ss:$8 sps:$4 sm:$0xff]  }
  0x35   : > { %598 = vmatprep.subr.bf16.mxu0 %v1021_v35  ;;  %962 = vmatprep.subr.bf16.mxu1 %v1021_v35  ;;  %v1035_v44 = vld [vmem:[%s1148_s27 + $0x50] ss:$8 sps:$4 sm:$0xff]   ;;  %v1036_v45 = vld [vmem:[%s1148_s27 + $0x64] ss:$8 sps:$4 sm:$0xff]   ;;  %v1038_v46 = vld [vmem:[%s1148_s27 + $0x60] ss:$8 sps:$4 sm:$0xff]  }
  0x36   : > { %v1039_v47 = vld [vmem:[%s1148_s27 + $0x74] ss:$8 sps:$4 sm:$0xff]   ;;  %v1041_v48 = vld [vmem:[%s1148_s27 + $0x70] ss:$8 sps:$4 sm:$0xff]   ;;  %v1042_v49 = vld [vmem:[%s1153_s30] sm:$0xff]  }
  0x37   : > { %v1043_v50 = vld [vmem:[%s1153_s30 + $0x20] sm:$0xff]   ;;  %v1044_v51 = vld [vmem:[%s1153_s30 + $0x8] sm:$0xff]   ;;  %v1047_v54 = vld [vmem:[%s1153_s30 + $0x30] sm:$0xff]  }
  0x38   : > { %599 = vmatpush1.bf16.msra.mxu0 %v1023_v36  ;;  %970 = vmatpush1.bf16.msra.mxu1 %v1023_v36  ;;  %v1045_v52 = vld [vmem:[%s1153_s30 + $0x28] sm:$0xff]   ;;  %v1048_v55 = vld [vmem:[%s1153_s30 + $0x18] sm:$0xff]   ;;  %v404_v57 = vld [vmem:[%s1163_s10] sm:$0xff] }
  0x39   : > { %600 = vmatprep.subr.bf16.mxu0 %v1024_v37  ;;  %963 = vmatprep.subr.bf16.mxu1 %v1024_v37  ;;  %v1049_v56 = vld [vmem:[%s1153_s30 + $0x38] sm:$0xff]   ;;  %v420_v58 = vld [vmem:[%s1163_s10 + $0x80] sm:$0xff]  ;;  %v405_v59 = vld [vmem:[%s1163_s10 + $0x8] sm:$0xff] }
  0x3a   : > { %v421_v60 = vld [vmem:[%s1163_s10 + $0x88] sm:$0xff]  ;;  %v406_v63 = vld [vmem:[%s1163_s10 + $0x10] sm:$0xff]  ;;  %v407_v5 = vld [vmem:[%s1163_s10 + $0x18] sm:$0xff] }
  0x3b   : > { %v422_v0 = vld [vmem:[%s1163_s10 + $0x90] sm:$0xff]  ;;  %v423_v6 = vld [vmem:[%s1163_s10 + $0x98] sm:$0xff]  ;;  %v408_v17 = vld [vmem:[%s1163_s10 + $0x20] sm:$0xff] }
  0x3c   : > { %601 = vmatpush1.bf16.msra.mxu0 %v1026_v38  ;;  %971 = vmatpush1.bf16.msra.mxu1 %v1026_v38  ;;  %v424_v18 = vld [vmem:[%s1163_s10 + $0xa0] sm:$0xff]  ;;  %v409_v19 = vld [vmem:[%s1163_s10 + $0x28] sm:$0xff]  ;;  %v410_v23 = vld [vmem:[%s1163_s10 + $0x30] sm:$0xff] }
  0x3d   : > { %602 = vmatprep.subr.bf16.mxu0 %v1027_v39  ;;  %964 = vmatprep.subr.bf16.mxu1 %v1027_v39  ;;  %v425_v20 = vld [vmem:[%s1163_s10 + $0xa8] sm:$0xff]  ;;  %v426_v24 = vld [vmem:[%s1163_s10 + $0xb0] sm:$0xff]  ;;  %v411_v29 = vld [vmem:[%s1163_s10 + $0x38] sm:$0xff] }
  0x3e   : > { %v427_v30 = vld [vmem:[%s1163_s10 + $0xb8] sm:$0xff] }
  0x40   : > { %603 = vmatpush1.bf16.msra.mxu0 %v1029_v40  ;;  %972 = vmatpush1.bf16.msra.mxu1 %v1029_v40 }
  0x41   : > { %604 = vmatprep.subr.bf16.mxu0 %v1030_v41  ;;  %965 = vmatprep.subr.bf16.mxu1 %v1030_v41  ;;  %v412_v41 = vld [vmem:[%s1163_s10 + $0x40] sm:$0xff] }
  0x44   : > { %605 = vmatpush1.bf16.msra.mxu0 %v1032_v42  ;;  %973 = vmatpush1.bf16.msra.mxu1 %v1032_v42  ;;  %v428_v42 = vld [vmem:[%s1163_s10 + $0xc0] sm:$0xff] }
  0x45   : > { %606 = vmatprep.subr.bf16.mxu0 %v1033_v43  ;;  %966 = vmatprep.subr.bf16.mxu1 %v1033_v43  ;;  %v413_v43 = vld [vmem:[%s1163_s10 + $0x48] sm:$0xff] }
  0x48   : > { %607 = vmatpush1.bf16.msra.mxu0 %v1035_v44  ;;  %974 = vmatpush1.bf16.msra.mxu1 %v1035_v44  ;;  %v429_v44 = vld [vmem:[%s1163_s10 + $0xc8] sm:$0xff] }
  0x49   : > { %608 = vmatprep.subr.bf16.mxu0 %v1036_v45  ;;  %967 = vmatprep.subr.bf16.mxu1 %v1036_v45 }
  0x4c   : > { %609 = vmatpush1.bf16.msra.mxu0 %v1038_v46  ;;  %975 = vmatpush1.bf16.msra.mxu1 %v1038_v46 }
  0x4d   : > { %610 = vmatprep.subr.bf16.mxu0 %v1039_v47  ;;  %968 = vmatprep.subr.bf16.mxu1 %v1039_v47  ;;  %v414_v47 = vld [vmem:[%s1163_s10 + $0x50] sm:$0xff] }
  0x50   : > { %611 = vmatpush1.bf16.msra.mxu0 %v1041_v48  ;;  %976 = vmatpush1.bf16.msra.mxu1 %v1041_v48  ;;  %v430_v48 = vld [vmem:[%s1163_s10 + $0xd0] sm:$0xff] }
  0x53   : > { %629 = vmatmul.mubr.bf16.vlgmr.msra.gmra.mrb[0].mxu0 %v1042_v49  ;;  %669 = vmatmul.mubr.bf16.vlgmr.msra.gmra.mrb[0].mxu1 %v1043_v50 }
  0x54   : > { %638 = vmatprep.mubr.bf16.mxu0 %v1090_v34  ;;  %678 = vmatprep.mubr.bf16.mxu1 %v1090_v34 }
  0x5b   : > { %639 = vmatmul.mubr.bf16.gmra.mrb[4].mxu0 %v1044_v51  ;;  %679 = vmatmul.mubr.bf16.gmra.mrb[4].mxu1 %v1045_v52 }
  0x5c   : > { %648 = vmatprep.mubr.bf16.mxu0 %v1090_v34  ;;  %688 = vmatprep.mubr.bf16.mxu1 %v1090_v34 }
  0x63   : > { %649 = vmatmul.mubr.bf16.gmra.mrb[8].mxu0 %v1046_v53  ;;  %689 = vmatmul.mubr.bf16.gmra.mrb[8].mxu1 %v1047_v54  ;;  %v415_v53 = vld [vmem:[%s1163_s10 + $0x58] sm:$0xff] }
  0x64   : > { %658 = vmatprep.mubr.bf16.mxu0 %v1090_v34  ;;  %698 = vmatprep.mubr.bf16.mxu1 %v1090_v34  ;;  %v431_v54 = vld [vmem:[%s1163_s10 + $0xd8] sm:$0xff] }
  0x6b   : > { %659 = vmatmul.mubr.bf16.gmra.mrb[12].mxu0 %v1048_v55  ;;  %699 = vmatmul.mubr.bf16.gmra.mrb[12].mxu1 %v1049_v56 }
 0x126   : > { %v630_v61 = vpop.f32.mrb[0].mxu0  ;;  %v670_v62 = vpop.f32.mrb[0].mxu1 }
 0x127   : > { %v709_v1 = vadd.f32 %v630_v61, %v404_v57  ;;  %v725_v2 = vadd.f32 %v670_v62, %v420_v58  ;;  %v632_v3 = vpop.f32.mrb[1].mxu0  ;;  %v672_v4 = vpop.f32.mrb[1].mxu1 }
 0x128   : > { %v710_v7 = vadd.f32 %v632_v3, %v405_v59  ;;  %v726_v8 = vadd.f32 %v672_v4, %v421_v60  ;;  %v634_v9 = vpop.f32.mrb[2].mxu0  ;;  %v674_v10 = vpop.f32.mrb[2].mxu1  ;;  %v417_v3 = vld [vmem:[%s1163_s10 + $0x68] sm:$0xff] }
 0x129   : > { %741 = vst [vmem:[%s1163_s10] sm:$0xff] %v709_v1  ;;  %757 = vst [vmem:[%s1163_s10 + $0x80] sm:$0xff] %v725_v2  ;;  %v711_v11 = vadd.f32 %v634_v9, %v406_v63  ;;  %v727_v12 = vadd.f32 %v674_v10, %v422_v0  ;;  %v636_v13 = vpop.f32.mrb[3].mxu0  ;;  %v676_v14 = vpop.f32.mrb[3].mxu1  ;;  %v416_v1 = vld [vmem:[%s1163_s10 + $0x60] sm:$0xff]  ;;  %v433_v4 = vld [vmem:[%s1163_s10 + $0xe8] sm:$0xff] }
 0x12a   : > { %742 = vst [vmem:[%s1163_s10 + $0x8] sm:$0xff] %v710_v7  ;;  %758 = vst [vmem:[%s1163_s10 + $0x88] sm:$0xff] %v726_v8  ;;  %v712_v15 = vadd.f32 %v636_v13, %v407_v5  ;;  %v728_v16 = vadd.f32 %v676_v14, %v423_v6  ;;  %v432_v2 = vld [vmem:[%s1163_s10 + $0xe0] sm:$0xff]  ;;  %v418_v7 = vld [vmem:[%s1163_s10 + $0x70] sm:$0xff] }
 0x12b   : > { %743 = vst [vmem:[%s1163_s10 + $0x10] sm:$0xff] %v711_v11  ;;  %759 = vst [vmem:[%s1163_s10 + $0x90] sm:$0xff] %v727_v12  ;;  %v434_v8 = vld [vmem:[%s1163_s10 + $0xf0] sm:$0xff]  ;;  %v419_v13 = vld [vmem:[%s1163_s10 + $0x78] sm:$0xff] }
 0x12c   : > { %744 = vst [vmem:[%s1163_s10 + $0x18] sm:$0xff] %v712_v15  ;;  %760 = vst [vmem:[%s1163_s10 + $0x98] sm:$0xff] %v728_v16  ;;  %v435_v14 = vld [vmem:[%s1163_s10 + $0xf8] sm:$0xff] }
 0x12e   : > { %v640_v21 = vpop.f32.mrb[4].mxu0  ;;  %v680_v22 = vpop.f32.mrb[4].mxu1 }
 0x12f   : > { %v713_v25 = vadd.f32 %v640_v21, %v408_v17  ;;  %v729_v26 = vadd.f32 %v680_v22, %v424_v18  ;;  %v642_v27 = vpop.f32.mrb[5].mxu0  ;;  %v682_v28 = vpop.f32.mrb[5].mxu1 }
 0x130   : > { %v714_v31 = vadd.f32 %v642_v27, %v409_v19  ;;  %v730_v32 = vadd.f32 %v682_v28, %v425_v20  ;;  %v644_v33 = vpop.f32.mrb[6].mxu0  ;;  %v684_v34 = vpop.f32.mrb[6].mxu1 }
 0x131   : > { %745 = vst [vmem:[%s1163_s10 + $0x20] sm:$0xff] %v713_v25  ;;  %761 = vst [vmem:[%s1163_s10 + $0xa0] sm:$0xff] %v729_v26  ;;  %v715_v35 = vadd.f32 %v644_v33, %v410_v23  ;;  %v731_v36 = vadd.f32 %v684_v34, %v426_v24  ;;  %v646_v37 = vpop.f32.mrb[7].mxu0  ;;  %v686_v38 = vpop.f32.mrb[7].mxu1 }
 0x132   : > { %746 = vst [vmem:[%s1163_s10 + $0x28] sm:$0xff] %v714_v31  ;;  %762 = vst [vmem:[%s1163_s10 + $0xa8] sm:$0xff] %v730_v32  ;;  %v716_v39 = vadd.f32 %v646_v37, %v411_v29  ;;  %v732_v40 = vadd.f32 %v686_v38, %v427_v30 }
 0x133   : > { %747 = vst [vmem:[%s1163_s10 + $0x30] sm:$0xff] %v715_v35  ;;  %763 = vst [vmem:[%s1163_s10 + $0xb0] sm:$0xff] %v731_v36 }
 0x134   : > { %748 = vst [vmem:[%s1163_s10 + $0x38] sm:$0xff] %v716_v39  ;;  %764 = vst [vmem:[%s1163_s10 + $0xb8] sm:$0xff] %v732_v40 }
 0x136   : > { %v650_v45 = vpop.f32.mrb[8].mxu0  ;;  %v690_v46 = vpop.f32.mrb[8].mxu1 }
 0x137   : > { %v717_v49 = vadd.f32 %v650_v45, %v412_v41  ;;  %v733_v50 = vadd.f32 %v690_v46, %v428_v42  ;;  %v652_v51 = vpop.f32.mrb[9].mxu0  ;;  %v692_v52 = vpop.f32.mrb[9].mxu1 }
 0x138   : > { %v718_v55 = vadd.f32 %v652_v51, %v413_v43  ;;  %v734_v56 = vadd.f32 %v692_v52, %v429_v44  ;;  %v654_v57 = vpop.f32.mrb[10].mxu0  ;;  %v694_v58 = vpop.f32.mrb[10].mxu1 }
 0x139   : > { %749 = vst [vmem:[%s1163_s10 + $0x40] sm:$0xff] %v717_v49  ;;  %765 = vst [vmem:[%s1163_s10 + $0xc0] sm:$0xff] %v733_v50  ;;  %v719_v59 = vadd.f32 %v654_v57, %v414_v47  ;;  %v735_v60 = vadd.f32 %v694_v58, %v430_v48  ;;  %v656_v61 = vpop.f32.mrb[11].mxu0  ;;  %v696_v62 = vpop.f32.mrb[11].mxu1 }
 0x13a   : > { %750 = vst [vmem:[%s1163_s10 + $0x48] sm:$0xff] %v718_v55  ;;  %766 = vst [vmem:[%s1163_s10 + $0xc8] sm:$0xff] %v734_v56  ;;  %v720_v63 = vadd.f32 %v656_v61, %v415_v53  ;;  %v736_v0 = vadd.f32 %v696_v62, %v431_v54 }
 0x13b   : > { %751 = vst [vmem:[%s1163_s10 + $0x50] sm:$0xff] %v719_v59  ;;  %767 = vst [vmem:[%s1163_s10 + $0xd0] sm:$0xff] %v735_v60 }
 0x13c   : > { %752 = vst [vmem:[%s1163_s10 + $0x58] sm:$0xff] %v720_v63  ;;  %768 = vst [vmem:[%s1163_s10 + $0xd8] sm:$0xff] %v736_v0 }
 0x13e   : > { %v660_v5 = vpop.f32.mrb[12].mxu0  ;;  %v700_v6 = vpop.f32.mrb[12].mxu1 }
 0x13f   : > { %v721_v9 = vadd.f32 %v660_v5, %v416_v1  ;;  %v737_v10 = vadd.f32 %v700_v6, %v432_v2  ;;  %v662_v11 = vpop.f32.mrb[13].mxu0  ;;  %v702_v12 = vpop.f32.mrb[13].mxu1 }
 0x140   : > { %v722_v15 = vadd.f32 %v662_v11, %v417_v3  ;;  %v738_v16 = vadd.f32 %v702_v12, %v433_v4  ;;  %v664_v17 = vpop.f32.mrb[14].mxu0  ;;  %v704_v18 = vpop.f32.mrb[14].mxu1 }
 0x141   : > { %753 = vst [vmem:[%s1163_s10 + $0x60] sm:$0xff] %v721_v9  ;;  %769 = vst [vmem:[%s1163_s10 + $0xe0] sm:$0xff] %v737_v10  ;;  %v723_v19 = vadd.f32 %v664_v17, %v418_v7  ;;  %v739_v20 = vadd.f32 %v704_v18, %v434_v8  ;;  %v666_v21 = vpop.f32.mrb[15].mxu0  ;;  %v706_v22 = vpop.f32.mrb[15].mxu1 }
 0x142   : > { %754 = vst [vmem:[%s1163_s10 + $0x68] sm:$0xff] %v722_v15  ;;  %770 = vst [vmem:[%s1163_s10 + $0xe8] sm:$0xff] %v738_v16  ;;  %v724_v23 = vadd.f32 %v666_v21, %v419_v13  ;;  %v740_v24 = vadd.f32 %v706_v22, %v435_v14 }
 0x143   : > { %755 = vst [vmem:[%s1163_s10 + $0x70] sm:$0xff] %v723_v19  ;;  %771 = vst [vmem:[%s1163_s10 + $0xf0] sm:$0xff] %v739_v20 }
 0x144   : > { %756 = vst [vmem:[%s1163_s10 + $0x78] sm:$0xff] %v724_v23  ;;  %772 = vst [vmem:[%s1163_s10 + $0xf8] sm:$0xff] %v740_v24 }
 0x145 PF: > { %s13_s16 = sadd.s32 1, %s1088_s16   ;;  %s1345_s12 = smov %s1080_s14 }
 0x146   : > { %p10_p9 = scmp.ge.s32.totalorder %s13_s16, 6   ;;  %s1346_s13 = smov %s1084_s15 }
 0x147   : > { %s1347_s14 = smov %s1350_s17  ;;  %s1348_s15 = smov %s1354_s18 }
 0x148   :  { %12 = sbr.rel (!%p10_p9) target bundleno = 3 (0x3), region = 72 }

// kernel: deepseek_forward.12
= control target key start
LH: loop header
LB: loop body
LE: loop exit
PB: predicated region body
PF: predicated region fallthrough
CT: control target
= control target key end

     0   :  { %s3024_s12 = smov 0   ;;  %s3026_s13 = smov 0   ;;  %s3545_s0 = inlined_call_operand.vmem [shape: bf16[4,128,128], index: 0, kind: input, shape index: {}]   ;;  %s3546_s1 = inlined_call_operand.vmem [shape: bf16[4,128,128], index: 1, kind: input, shape index: {}]   ;;  %s3547_s2 = inlined_call_operand.vmem [shape: bf16[4,128,128], index: 2, kind: input, shape index: {}]   ;;  %s3548_s3 = inlined_call_operand.vmem [shape: bf16[4,128,128], index: 3, kind: output, shape index: {}]  }
   0x1   :  { %s3028_s14 = smov 0  }
   0x2 LB: > { %s32_s15 = sadd.s32 1, %s2995_s13  ;;  %p2590_p0 = scmp.ge.s32.totalorder %s2999_s14, 1  ;;  %s2999_s14 = sphi %s3028_s14, %s13_s14   ;;  %s2995_s13 = sphi %s3026_s13, %s3564_s13   ;;  %s2991_s12 = sphi %s3024_s12, %s3563_s12  }
   0x3   : > { %p34_p1 = scmp.ge.s32.totalorder %s32_s15, 4  ;;  %p215_p2 = scmp.lt.s32.totalorder %s2999_s14, 5 }
   0x5   : > { %s3566_s15 = smov (%p34_p1, %s32_s15), 0  ;;  %p216_p3 = pnand %p2590_p0, %p215_p2 }
   0x6   : > { %p270_p4 = scmp.lt.s32.totalorder (!%p216_p3), %s2991_s12, 3  ;;  %vm322_vm0 = vcmask (!%p216_p3), 7168   ;;  %v3001_v16 = vmov (!%p216_p3), -1e+30   ;;  %v1496_v17 = vlaneseq (!%p216_p3)  ;;  %v3002_v49 = vmov (!%p216_p3), 0  }
   0x7   : > { %219 = sbr.rel (%p216_p3) target bundleno = 928 (0x3a0), region = 32  ;;  %325 = vst.msk [vmem:[#allocation2 + $0x10] sm:$0xff] (!%p216_p3), %vm322_vm0, %v3001_v16  ;;  %323 = vst.msk [vmem:[#allocation2] sm:$0xff] (!%p216_p3), %vm322_vm0, %v3001_v16  ;;  %2856 = vset.pattern.permute.xlu1 (!%p216_p3), %v3002_v49  ;;  %2855 = vset.pattern.permute.xlu0 (!%p216_p3), %v3002_v49  ;;  %v3003_v62 = vmov (!%p216_p3), 0.0  }
   0x8   : > { %324 = vst.msk [vmem:[#allocation2 + $0x8] sm:$0xff] (!%p216_p3), %vm322_vm0, %v3001_v16  ;;  %326 = vst.msk [vmem:[#allocation2 + $0x18] sm:$0xff] (!%p216_p3), %vm322_vm0, %v3001_v16  ;;  %v3078_v18 = vshrl.u32 (!%p216_p3), %v1496_v17, 7  ;;  %v3081_v20 = vand.u32 (!%p216_p3), 127, %v1496_v17 }
   0x9   : > { %327 = vst.msk [vmem:[#allocation2 + $0x20] sm:$0xff] (!%p216_p3), %vm322_vm0, %v3001_v16  ;;  %328 = vst.msk [vmem:[#allocation2 + $0x28] sm:$0xff] (!%p216_p3), %vm322_vm0, %v3001_v16 }
   0xa   : > { %329 = vst.msk [vmem:[#allocation2 + $0x30] sm:$0xff] (!%p216_p3), %vm322_vm0, %v3001_v16  ;;  %330 = vst.msk [vmem:[#allocation2 + $0x38] sm:$0xff] (!%p216_p3), %vm322_vm0, %v3001_v16  ;;  %v1499_v19 = vadd.s32 (!%p216_p3), 16, %v3078_v18  ;;  %v1500_v21 = vadd.s32 (!%p216_p3), 24, %v3078_v18  ;;  %vm1535_vm2 = vcmp.le.s32.totalorder (!%p216_p3), %v3081_v20, %v3078_v18  ;;  %v1498_v22 = vadd.s32 (!%p216_p3), 8, %v3078_v18 }
   0xb   : > { %331 = vst.msk [vmem:[#allocation2 + $0x40] sm:$0xff] (!%p216_p3), %vm322_vm0, %v3001_v16  ;;  %332 = vst.msk [vmem:[#allocation2 + $0x48] sm:$0xff] (!%p216_p3), %vm322_vm0, %v3001_v16  ;;  %v1501_v29 = vadd.s32 (!%p216_p3), 32, %v3078_v18  ;;  %v1504_v30 = vadd.s32 (!%p216_p3), 56, %v3078_v18  ;;  %v1503_v33 = vadd.s32 (!%p216_p3), 48, %v3078_v18  ;;  %v1502_v35 = vadd.s32 (!%p216_p3), 40, %v3078_v18 }
   0xc   : > { %333 = vst.msk [vmem:[#allocation2 + $0x50] sm:$0xff] (!%p216_p3), %vm322_vm0, %v3001_v16  ;;  %334 = vst.msk [vmem:[#allocation2 + $0x58] sm:$0xff] (!%p216_p3), %vm322_vm0, %v3001_v16  ;;  %vm1537_vm1 = vcmp.le.s32.totalorder (!%p216_p3), %v3081_v20, %v1499_v19  ;;  %vm1538_vm3 = vcmp.le.s32.totalorder (!%p216_p3), %v3081_v20, %v1500_v21  ;;  %vm1536_vm4 = vcmp.le.s32.totalorder (!%p216_p3), %v3081_v20, %v1498_v22  ;;  %v1505_v41 = vadd.s32 (!%p216_p3), 64, %v3078_v18 }
   0xd   : > { %335 = vst.msk [vmem:[#allocation2 + $0x60] sm:$0xff] (!%p216_p3), %vm322_vm0, %v3001_v16  ;;  %336 = vst.msk [vmem:[#allocation2 + $0x68] sm:$0xff] (!%p216_p3), %vm322_vm0, %v3001_v16  ;;  %vm1539_vm5 = vcmp.le.s32.totalorder (!%p216_p3), %v3081_v20, %v1501_v29  ;;  %vm1542_vm6 = vcmp.le.s32.totalorder (!%p216_p3), %v3081_v20, %v1504_v30  ;;  %vm1541_vm7 = vcmp.le.s32.totalorder (!%p216_p3), %v3081_v20, %v1503_v33  ;;  %v1508_v42 = vadd.s32 (!%p216_p3), 88, %v3078_v18 }
   0xe   : > { %s3568_s12 = smov (!%p270_p4, %s2991_s12), 3  ;;  %337 = vst.msk [vmem:[#allocation2 + $0x70] sm:$0xff] %vm322_vm0, %v3001_v16  ;;  %338 = vst.msk [vmem:[#allocation2 + $0x78] sm:$0xff] %vm322_vm0, %v3001_v16  ;;  %vm1540_vm8 = vcmp.le.s32.totalorder %v3081_v20, %v1502_v35  ;;  %v1507_v43 = vadd.s32 80, %v3078_v18  ;;  %v1506_v45 = vadd.s32 72, %v3078_v18  ;;  %vm1543_vm9 = vcmp.le.s32.totalorder %v3081_v20, %v1505_v41 }
   0xf   : > { %s3042_s16 = sshll.u32 %s3568_s12, 6  ;;  %vm1546_vm10 = vcmp.le.s32.totalorder %v3081_v20, %v1508_v42  ;;  %v1509_v54 = vadd.s32 96, %v3078_v18  ;;  %v1512_v56 = vadd.s32 120, %v3078_v18  ;;  %v1511_v58 = vadd.s32 112, %v3078_v18  ;;  %341 = vst.msk [vmem:[#allocation3 + $0x10] sm:$0xff] %vm322_vm0, %v3003_v62  ;;  %339 = vst.msk [vmem:[#allocation3] sm:$0xff] %vm322_vm0, %v3003_v62 }
  0x10   : > { %s289_s19 = scalar_lea.vmem %s3546_s1, %s3042_s16  ;;  %s3052_s22 = scalar_lea.vmem %s3545_s0, %s3042_s16  ;;  %vm1545_vm11 = vcmp.le.s32.totalorder %v3081_v20, %v1507_v43  ;;  %vm1544_vm12 = vcmp.le.s32.totalorder %v3081_v20, %v1506_v45  ;;  %v1510_v59 = vadd.s32 104, %v3078_v18  ;;  %340 = vst.msk [vmem:[#allocation3 + $0x8] sm:$0xff] %vm322_vm0, %v3003_v62  ;;  %342 = vst.msk [vmem:[#allocation3 + $0x18] sm:$0xff] %vm322_vm0, %v3003_v62 }
  0x11   : > { %v2857_v0 = vld [vmem:[%s289_s19] sm:$0xff]   ;;  %v2858_v1 = vld [vmem:[%s289_s19 + $0x8] sm:$0xff]   ;;  %v2859_v2 = vld [vmem:[%s289_s19 + $0x10] sm:$0xff]   ;;  %vm1547_vm13 = vcmp.le.s32.totalorder %v3081_v20, %v1509_v54  ;;  %vm1550_vm14 = vcmp.le.s32.totalorder %v3081_v20, %v1512_v56  ;;  %vm1549_vm15 = vcmp.le.s32.totalorder %v3081_v20, %v1511_v58  ;;  %343 = vst.msk [vmem:[#allocation3 + $0x20] sm:$0xff] %vm322_vm0, %v3003_v62  ;;  %s3188_s25 = scalar_lea.vmem %s3547_s2, %s3042_s16  ;;  %s3514_s28 = scalar_lea.vmem %s3548_s3, %s3042_s16 }
  0x12   : > { %2764 = vmatprep.subr.bf16.mxu0 %v2857_v0  ;;  %v2865_v3 = vld [vmem:[%s3052_s22] sm:$0xff]   ;;  %v2860_v4 = vld [vmem:[%s289_s19 + $0x18] sm:$0xff]   ;;  %v2862_v6 = vld [vmem:[%s289_s19 + $0x28] sm:$0xff]   ;;  %344 = vst.msk [vmem:[#allocation3 + $0x28] sm:$0xff] %vm322_vm0, %v3003_v62 }
  0x13   : > { %2765 = vmatpush3.bf16.xpose.msra.mxu0 %v2857_v0  ;;  %2780 = vmatprep.mubr.bf16.mxu0 %v2865_v3  ;;  %v2861_v5 = vld [vmem:[%s289_s19 + $0x20] sm:$0xff]   ;;  %v2863_v7 = vld [vmem:[%s289_s19 + $0x30] sm:$0xff]   ;;  %v2864_v8 = vld [vmem:[%s289_s19 + $0x38] sm:$0xff]   ;;  %345 = vst.msk [vmem:[#allocation3 + $0x30] sm:$0xff] %vm322_vm0, %v3003_v62 }
  0x14   : > { %2766 = vmatprep.subr.bf16.mxu0 %v2858_v1  ;;  %v2866_v9 = vld [vmem:[%s3052_s22 + $0x8] sm:$0xff]   ;;  %v2867_v10 = vld [vmem:[%s3052_s22 + $0x10] sm:$0xff]   ;;  %v2868_v11 = vld [vmem:[%s3052_s22 + $0x18] sm:$0xff]   ;;  %346 = vst.msk [vmem:[#allocation3 + $0x38] sm:$0xff] %vm322_vm0, %v3003_v62 }
  0x15   : > { %v2869_v12 = vld [vmem:[%s3052_s22 + $0x20] sm:$0xff]   ;;  %v2870_v13 = vld [vmem:[%s3052_s22 + $0x28] sm:$0xff]   ;;  %v2871_v14 = vld [vmem:[%s3052_s22 + $0x30] sm:$0xff]   ;;  %347 = vst.msk [vmem:[#allocation3 + $0x40] sm:$0xff] %vm322_vm0, %v3003_v62 }
  0x16   : > { %v2872_v15 = vld [vmem:[%s3052_s22 + $0x38] sm:$0xff]   ;;  %348 = vst.msk [vmem:[#allocation3 + $0x48] sm:$0xff] %vm322_vm0, %v3003_v62  ;;  %349 = vst.msk [vmem:[#allocation3 + $0x50] sm:$0xff] %vm322_vm0, %v3003_v62  ;;  %v2875_v16 = vld [vmem:[%s3188_s25 + $0x10] sm:$0xff]  }
  0x17   : > { %350 = vst.msk [vmem:[#allocation3 + $0x58] sm:$0xff] %vm322_vm0, %v3003_v62  ;;  %351 = vst.msk [vmem:[#allocation3 + $0x60] sm:$0xff] %vm322_vm0, %v3003_v62  ;;  %v3244_v35 = vld [vmem:[#allocation2 + $0x30] sm:$0xff]  ;;  %v2878_v49 = vld [vmem:[%s3188_s25 + $0x28] sm:$0xff]  }
  0x18   : > { %352 = vst.msk [vmem:[#allocation3 + $0x68] sm:$0xff] %vm322_vm0, %v3003_v62  ;;  %353 = vst.msk [vmem:[#allocation3 + $0x70] sm:$0xff] %vm322_vm0, %v3003_v62 }
  0x19   : > { %354 = vst.msk [vmem:[#allocation3 + $0x78] sm:$0xff] %vm322_vm0, %v3003_v62  ;;  %v2879_v62 = vld [vmem:[%s3188_s25 + $0x30] sm:$0xff]  }
  0x1b   : > { %2767 = vmatpush3.bf16.xpose.msra.mxu0 %v2858_v1 }
  0x1c   : > { %2768 = vmatprep.subr.bf16.mxu0 %v2859_v2 }
  0x23   : > { %2769 = vmatpush3.bf16.xpose.msra.mxu0 %v2859_v2 }
  0x24   : > { %2770 = vmatprep.subr.bf16.mxu0 %v2860_v4 }
  0x2b   : > { %2771 = vmatpush3.bf16.xpose.msra.mxu0 %v2860_v4 }
  0x2c   : > { %2772 = vmatprep.subr.bf16.mxu0 %v2861_v5 }
  0x33   : > { %2773 = vmatpush3.bf16.xpose.msra.mxu0 %v2861_v5  ;;  %v2873_v5 = vld [vmem:[%s3188_s25] sm:$0xff]  }
  0x34   : > { %2774 = vmatprep.subr.bf16.mxu0 %v2862_v6  ;;  %2796 = vmatprep.subr.bf16.mxu1 %v2873_v5 }
  0x35   : > { %2797 = vmatpush3.bf16.msra.mxu1 %v2873_v5 }
  0x3b   : > { %2775 = vmatpush3.bf16.xpose.msra.mxu0 %v2862_v6  ;;  %v2874_v6 = vld [vmem:[%s3188_s25 + $0x8] sm:$0xff]  }
  0x3c   : > { %2776 = vmatprep.subr.bf16.mxu0 %v2863_v7  ;;  %2798 = vmatprep.subr.bf16.mxu1 %v2874_v6 }
  0x3d   : > { %2799 = vmatpush3.bf16.msra.mxu1 %v2874_v6 }
  0x3e   : > { %2800 = vmatprep.subr.bf16.mxu1 %v2875_v16 }
  0x41   : > { %2801 = vmatpush3.bf16.msra.mxu1 %v2875_v16 }
  0x43   : > { %2777 = vmatpush3.bf16.xpose.msra.mxu0 %v2863_v7  ;;  %v3192_v7 = vld [vmem:[#allocation2 + $0x10] sm:$0xff] }
  0x44   : > { %2778 = vmatprep.subr.bf16.mxu0 %v2864_v8 }
  0x4b   : > { %2779 = vmatpush3.bf16.xpose.msra.mxu0 %v2864_v8  ;;  %v3194_v8 = vld [vmem:[#allocation2] sm:$0xff] }
  0x52   : > { %2781 = vmatmul.mubr.bf16.vlgmr.msra.gmra.mrb[0].mxu0 %v2866_v9 }
  0x53   : > { %2784 = vmatprep.mubr.bf16.mxu0 %v2867_v10 }
  0x5a   : > { %2785 = vmatmul.mubr.bf16.gmra.mrb[4].mxu0 %v2868_v11 }
  0x5b   : > { %2788 = vmatprep.mubr.bf16.mxu0 %v2869_v12 }
  0x62   : > { %2789 = vmatmul.mubr.bf16.gmra.mrb[8].mxu0 %v2870_v13  ;;  %v3202_v13 = vld [vmem:[#allocation2 + $0x18] sm:$0xff] }
  0x63   : > { %2792 = vmatprep.mubr.bf16.mxu0 %v2871_v14 }
  0x6a   : > { %2793 = vmatmul.mubr.bf16.gmra.mrb[12].mxu0 %v2872_v15  ;;  %v3209_v15 = vld [vmem:[#allocation2 + $0x8] sm:$0xff] }
 0x125   : > { %v2782_v23 = vpop.f32.mrb[0].mxu0 }
 0x126   : > { %v1432_v24 = vpop.f32.mrb[1].mxu0  ;;  %v3088_v25 = vsel %vm1537_vm1, %v2782_v23, -1e+30  ;;  %vm1548_vm1 = vcmp.le.s32.totalorder %v3081_v20, %v1510_v59  ;;  %v3228_v23 = vld [vmem:[#allocation2 + $0x20] sm:$0xff] }
 0x127   : > { %1587 = vmax.xlane.f32.xlu1 %v3088_v25  ;;  %v2783_v26 = vpop.f32.mrb[2].mxu0  ;;  %v3091_v27 = vsel %vm1535_vm2, %v1432_v24, -1e+30  ;;  %v2876_v24 = vld [vmem:[%s3188_s25 + $0x18] sm:$0xff]  }
 0x128   : > { %1583 = vmax.xlane.f32.xlu0 %v3091_v27  ;;  %v1435_v28 = vpop.f32.mrb[3].mxu0  ;;  %v3098_v31 = vsel %vm1538_vm3, %v2783_v26, -1e+30  ;;  %2802 = vmatprep.subr.bf16.mxu1 %v2876_v24 }
 0x129   : > { %v3101_v32 = vsel %vm1536_vm4, %v1435_v28, -1e+30  ;;  %v3235_v28 = vld [vmem:[#allocation2 + $0x38] sm:$0xff]  ;;  %2803 = vmatpush3.bf16.msra.mxu1 %v2876_v24 }
 0x12b   : > { %1589 = vmax.xlane.f32.xlu1 %v3098_v31 }
 0x12c   : > { %1585 = vmax.xlane.f32.xlu0 %v3101_v32 }
 0x12d   : > { %v2786_v34 = vpop.f32.mrb[4].mxu0 }
 0x12e   : > { %v1448_v36 = vpop.f32.mrb[5].mxu0  ;;  %v3119_v44 = vsel %vm1541_vm7, %v2786_v34, -1e+30 }
 0x12f   : > { %v2787_v37 = vpop.f32.mrb[6].mxu0  ;;  %v3108_v38 = vsel %vm1539_vm5, %v1448_v36, -1e+30  ;;  %v2877_v36 = vld [vmem:[%s3188_s25 + $0x20] sm:$0xff]  }
 0x130   : > { %1591 = vmax.xlane.f32.xlu0 %v3108_v38  ;;  %v1451_v39 = vpop.f32.mrb[7].mxu0  ;;  %v3111_v40 = vsel %vm1542_vm6, %v2787_v37, -1e+30  ;;  %2804 = vmatprep.subr.bf16.mxu1 %v2877_v36 }
 0x131   : > { %1597 = vmax.xlane.f32.xlu1 %v3111_v40  ;;  %v3123_v46 = vsel %vm1540_vm8, %v1451_v39, -1e+30  ;;  %v3251_v39 = vld [vmem:[#allocation2 + $0x28] sm:$0xff]  ;;  %2805 = vmatpush3.bf16.msra.mxu1 %v2877_v36 }
 0x132   : > { %2806 = vmatprep.subr.bf16.mxu1 %v2878_v49 }
 0x134   : > { %1595 = vmax.xlane.f32.xlu0 %v3119_v44 }
 0x135   : > { %1593 = vmax.xlane.f32.xlu1 %v3123_v46  ;;  %v2790_v47 = vpop.f32.mrb[8].mxu0  ;;  %2807 = vmatpush3.bf16.msra.mxu1 %v2878_v49 }
 0x136   : > { %v1464_v48 = vpop.f32.mrb[9].mxu0  ;;  %v3137_v55 = vsel %vm1545_vm11, %v2790_v47, -1e+30  ;;  %2808 = vmatprep.subr.bf16.mxu1 %v2879_v62 }
 0x137   : > { %v2791_v50 = vpop.f32.mrb[10].mxu0  ;;  %v3129_v51 = vsel %vm1543_vm9, %v1464_v48, -1e+30  ;;  %v3263_v48 = vld [vmem:[#allocation2 + $0x40] sm:$0xff] }
 0x138   : > { %v3132_v52 = vsel %vm1546_vm10, %v2791_v50, -1e+30  ;;  %1599 = vmax.xlane.f32.xlu0 %v3129_v51  ;;  %v1467_v53 = vpop.f32.mrb[11].mxu0 }
 0x139   : > { %1605 = vmax.xlane.f32.xlu1 %v3132_v52  ;;  %v3140_v57 = vsel %vm1544_vm12, %v1467_v53, -1e+30  ;;  %v3271_v53 = vld [vmem:[#allocation2 + $0x58] sm:$0xff]  ;;  %2809 = vmatpush3.bf16.msra.mxu1 %v2879_v62  ;;  %v3331_v62 = vld [vmem:[#allocation2 + $0x68] sm:$0xff] }
 0x13c   : > { %1603 = vmax.xlane.f32.xlu0 %v3137_v55 }
 0x13d   : > { %1601 = vmax.xlane.f32.xlu1 %v3140_v57  ;;  %v2794_v60 = vpop.f32.mrb[12].mxu0 }
 0x13e   : > { %v1480_v61 = vpop.f32.mrb[13].mxu0  ;;  %v3178_v3 = vsel %vm1549_vm15, %v2794_v60, -1e+30 }
 0x13f   : > { %v2795_v63 = vpop.f32.mrb[14].mxu0  ;;  %v3167_v0 = vsel %vm1547_vm13, %v1480_v61, -1e+30  ;;  %v3283_v61 = vld [vmem:[#allocation2 + $0x50] sm:$0xff] }
 0x140   : > { %v3172_v1 = vsel %vm1550_vm14, %v2795_v63, -1e+30  ;;  %1607 = vmax.xlane.f32.xlu0 %v3167_v0  ;;  %v1483_v2 = vpop.f32.mrb[15].mxu0 }
 0x141   : > { %1613 = vmax.xlane.f32.xlu1 %v3172_v1  ;;  %v3180_v4 = vsel %vm1548_vm1, %v1483_v2, -1e+30  ;;  %v3291_v2 = vld [vmem:[#allocation2 + $0x48] sm:$0xff] }
 0x144   : > { %1611 = vmax.xlane.f32.xlu0 %v3178_v3 }
 0x145   : > { %1609 = vmax.xlane.f32.xlu1 %v3180_v4 }
 0x1b4   : > { %v1588_v9 = vpop.xlane.xlu1 %1587 }
 0x1b5   : > { %v3197_v10 = vmax.f32 %v3192_v7, %v1588_v9  ;;  %v1584_v11 = vpop.xlane.xlu0 %1583 }
 0x1b6   : > { %v3200_v12 = vmax.f32 %v3194_v8, %v1584_v11 }
 0x1b7   : > { %v1633_v14 = vsub.f32 %v3192_v7, %v3197_v10  ;;  %2219 = vst.msk [vmem:[#allocation2 + $0x10] sm:$0xff] %vm322_vm0, %v3197_v10  ;;  %1691 = vperm.xlu1 %2856, %v3197_v10  }
 0x1b8   : > { %2217 = vst.msk [vmem:[#allocation2] sm:$0xff] %vm322_vm0, %v3200_v12  ;;  %v1590_v18 = vpop.xlane.xlu1 %1589  ;;  %1681 = vperm.xlu0 %2855, %v3200_v12  }
 0x1b9   : > { %v3218_v19 = vmax.f32 %v3202_v13, %v1590_v18  ;;  %v1586_v20 = vpop.xlane.xlu0 %1585  ;;  %v3303_v18 = vld [vmem:[#allocation2 + $0x60] sm:$0xff] }
 0x1ba   : > { %v3221_v21 = vmax.f32 %v3209_v15, %v1586_v20  ;;  %v2880_v20 = vld [vmem:[%s3188_s25 + $0x38] sm:$0xff]  }
 0x1bb   : > { %2220 = vst.msk [vmem:[#allocation2 + $0x18] sm:$0xff] %vm322_vm0, %v3218_v19  ;;  %1696 = vperm.xlu1 %2856, %v3218_v19   ;;  %2810 = vmatprep.subr.bf16.mxu1 %v2880_v20 }
 0x1bc   : > { %v1632_v26 = vsub.f32 %v3209_v15, %v3221_v21  ;;  %2218 = vst.msk [vmem:[#allocation2 + $0x8] sm:$0xff] %vm322_vm0, %v3221_v21  ;;  %2811 = vmatpush3.bf16.msra.mxu1 %v2880_v20 }
 0x1bd   : > { %v1592_v29 = vpop.xlane.xlu0 %1591 }
 0x1be   : > { %v3238_v30 = vmax.f32 %v3228_v23, %v1592_v29  ;;  %v1598_v33 = vpop.xlane.xlu1 %1597  ;;  %v3311_v29 = vld [vmem:[#allocation2 + $0x78] sm:$0xff] }
 0x1bf   : > { %v3241_v34 = vmax.f32 %v3235_v28, %v1598_v33  ;;  %1686 = vperm.xlu1 %2856, %v3221_v21  }
 0x1c0   : > { %2221 = vst.msk [vmem:[#allocation2 + $0x20] sm:$0xff] %vm322_vm0, %v3238_v30 }
 0x1c1   : > { %2224 = vst.msk [vmem:[#allocation2 + $0x38] sm:$0xff] %vm322_vm0, %v3241_v34  ;;  %v1596_v42 = vpop.xlane.xlu0 %1595 }
 0x1c2   : > { %v3258_v43 = vmax.f32 %v3244_v35, %v1596_v42  ;;  %v1594_v45 = vpop.xlane.xlu1 %1593 }
 0x1c3   : > { %v3261_v47 = vmax.f32 %v3251_v39, %v1594_v45 }
 0x1c4   : > { %2223 = vst.msk [vmem:[#allocation2 + $0x30] sm:$0xff] %vm322_vm0, %v3258_v43  ;;  %1711 = vperm.xlu1 %2856, %v3258_v43   ;;  %v3552_v7 = vsub.f32 %v3244_v35, %v3258_v43 }
 0x1c5   : > { %2222 = vst.msk [vmem:[#allocation2 + $0x28] sm:$0xff] %vm322_vm0, %v3261_v47  ;;  %v1600_v56 = vpop.xlane.xlu0 %1599 }
 0x1c6   : > { %v1606_v58 = vpop.xlane.xlu1 %1605  ;;  %v3278_v59 = vmax.f32 %v3263_v48, %v1600_v56  ;;  %v3324_v56 = vld [vmem:[#allocation2 + $0x70] sm:$0xff]  ;;  %v1659_v10 = vmul.f32 1.442695, %v3552_v7 }
 0x1c7   : > { %v3281_v60 = vmax.f32 %v3271_v53, %v1606_v58 }
 0x1c8   : > { %2225 = vst.msk [vmem:[#allocation2 + $0x40] sm:$0xff] %vm322_vm0, %v3278_v59  ;;  %1701 = vperm.xlu1 %2856, %v3238_v30   ;;  %v3554_v21 = vsub.f32 %v3263_v48, %v3278_v59 }
 0x1c9   : > { %2228 = vst.msk [vmem:[#allocation2 + $0x58] sm:$0xff] %vm322_vm0, %v3281_v60  ;;  %v1604_v6 = vpop.xlane.xlu0 %1603 }
 0x1ca   : > { %v1602_v9 = vpop.xlane.xlu1 %1601  ;;  %v3298_v11 = vmax.f32 %v3283_v61, %v1604_v6 }
 0x1cb   : > { %v3301_v16 = vmax.f32 %v3291_v2, %v1602_v9 }
 0x1cc   : > { %2227 = vst.msk [vmem:[#allocation2 + $0x50] sm:$0xff] %vm322_vm0, %v3298_v11  ;;  %1706 = vperm.xlu1 %2856, %v3261_v47   ;;  %v3556_v35 = vsub.f32 %v3283_v61, %v3298_v11  ;;  %v3559_v61 = vsub.f32 %v3271_v53, %v3281_v60 }
 0x1cd   : > { %2226 = vst.msk [vmem:[#allocation2 + $0x48] sm:$0xff] %vm322_vm0, %v3301_v16  ;;  %1726 = vperm.xlu0 %2855, %v3301_v16   ;;  %v1608_v36 = vpop.xlane.xlu0 %1607  ;;  %v3557_v43 = vsub.f32 %v3291_v2, %v3301_v16 }
 0x1ce   : > { %v1614_v42 = vpop.xlane.xlu1 %1613  ;;  %v3319_v45 = vmax.f32 %v3303_v18, %v1608_v36 }
 0x1cf   : > { %v3322_v49 = vmax.f32 %v3311_v29, %v1614_v42 }
 0x1d0   : > { %2229 = vst.msk [vmem:[#allocation2 + $0x60] sm:$0xff] %vm322_vm0, %v3319_v45  ;;  %1716 = vperm.xlu1 %2856, %v3241_v34  }
 0x1d1   : > { %2232 = vst.msk [vmem:[#allocation2 + $0x78] sm:$0xff] %vm322_vm0, %v3322_v49  ;;  %1736 = vperm.xlu0 %2855, %v3281_v60   ;;  %v1612_v9 = vpop.xlane.xlu0 %1611  ;;  %v3562_v60 = vsub.f32 %v3311_v29, %v3322_v49 }
 0x1d2   : > { %v1610_v20 = vpop.xlane.xlu1 %1609  ;;  %v3339_v36 = vmax.f32 %v3324_v56, %v1612_v9 }
 0x1d3   : > { %v3342_v42 = vmax.f32 %v3331_v62, %v1610_v20 }
 0x1d4   : > { %2231 = vst.msk [vmem:[#allocation2 + $0x70] sm:$0xff] %vm322_vm0, %v3339_v36  ;;  %1721 = vperm.xlu1 %2856, %v3278_v59   ;;  %v3560_v2 = vsub.f32 %v3324_v56, %v3339_v36  ;;  %v1677_v56 = vmul.f32 1.442695, %v3562_v60 }
 0x1d5   : > { %2230 = vst.msk [vmem:[#allocation2 + $0x68] sm:$0xff] %vm322_vm0, %v3342_v42  ;;  %1746 = vperm.xlu0 %2855, %v3342_v42  }
 0x1d6   : > { %v1675_v16 = vmul.f32 1.442695, %v3560_v2  ;;  %v1815_v2 = vld [vmem:[#allocation3 + $0x40] sm:$0xff] }
 0x1d8   : > { %1731 = vperm.xlu1 %2856, %v3298_v11   ;;  %v1669_v11 = vmul.f32 1.442695, %v3559_v61 }
 0x1d9   : > { %1756 = vperm.xlu0 %2855, %v3322_v49  }
 0x1dc   : > { %1741 = vperm.xlu1 %2856, %v3319_v45  }
 0x1e0   : > { %1751 = vperm.xlu1 %2856, %v3339_v36  }
 0x236   : > { %v1692_v9 = vpop.permute.xlu1 %1691 }
 0x237   : > { %v1761_v20 = vsub.f32 %v3088_v25, %v1692_v9  ;;  %v1682_v5 = vpop.permute.xlu0 %1681 }
 0x238   : > { %v1759_v58 = vsub.f32 %v3091_v27, %v1682_v5 }
 0x239   : > { %v1779_v6 = vmul.f32 1.442695, %v1761_v20 }
 0x23a   : > { %v1775_v33 = vmul.f32 1.442695, %v1759_v58  ;;  %v1697_v24 = vpop.permute.xlu1 %1696 }
 0x23b   : > { %2881 = vpow2.f32 %v1779_v6  ;;  %v1762_v41 = vsub.f32 %v3098_v31, %v1697_v24 }
 0x23c   : > { %2883 = vpow2.f32 %v1775_v33 }
 0x23d   : > { %v1781_v63 = vmul.f32 1.442695, %v1762_v41 }
 0x23e   : > { %v1687_v54 = vpop.permute.xlu1 %1686 }
 0x23f   : > { %2885 = vpow2.f32 %v1781_v63  ;;  %v1760_v50 = vsub.f32 %v3101_v32, %v1687_v54 }
 0x241   : > { %v1777_v22 = vmul.f32 1.442695, %v1760_v50 }
 0x243   : > { %2887 = vpow2.f32 %v1777_v22  ;;  %v1712_v37 = vpop.permute.xlu1 %1711 }
 0x244   : > { %v1765_v25 = vsub.f32 %v3119_v44, %v1712_v37 }
 0x245   : > { %v2882_v9 = vpop.eup %2881 }
 0x246   : > { %v2884_v17 = vpop.eup %2883  ;;  %v1787_v27 = vmul.f32 1.442695, %v1765_v25  ;;  %1843 = vadd.xlane.f32.xlu0 %v2882_v9 }
 0x247   : > { %1839 = vadd.xlane.f32.xlu1 %v2884_v17  ;;  %v1702_v5 = vpop.permute.xlu1 %1701 }
 0x248   : > { %2889 = vpow2.f32 %v1787_v27  ;;  %v1763_v31 = vsub.f32 %v3108_v38, %v1702_v5 }
 0x249   : > { %v2886_v24 = vpop.eup %2885 }
 0x24a   : > { %v1783_v41 = vmul.f32 1.442695, %v1763_v31  ;;  %v2017_v58 = vpack.c.bf16 %v2886_v24, %v2882_v9 }
 0x24b   : > { %1845 = vadd.xlane.f32.xlu1 %v2886_v24  ;;  %v1707_v63 = vpop.permute.xlu1 %1706 }
 0x24c   : > { %2891 = vpow2.f32 %v1783_v41  ;;  %v1764_v32 = vsub.f32 %v3123_v46, %v1707_v63  ;;  %v1727_v22 = vpop.permute.xlu0 %1726 }
 0x24d   : > { %v2888_v50 = vpop.eup %2887  ;;  %v1768_v37 = vsub.f32 %v3140_v57, %v1727_v22 }
 0x24e   : > { %v1785_v54 = vmul.f32 1.442695, %v1764_v32  ;;  %1841 = vadd.xlane.f32.xlu0 %v2888_v50  ;;  %v2016_v44 = vpack.c.bf16 %v2888_v50, %v2884_v17 }
 0x24f   : > { %v1717_v33 = vpop.permute.xlu1 %1716  ;;  %v1793_v27 = vmul.f32 1.442695, %v1768_v37 }
 0x250   : > { %2893 = vpow2.f32 %v1785_v54  ;;  %v1766_v6 = vsub.f32 %v3111_v40, %v1717_v33  ;;  %v1737_v38 = vpop.permute.xlu0 %1736  ;;  %2812 = vmatprep.mubr.bf16.mxu1 %v2016_v44 }
 0x251   : > { %2813 = vmatmul.mubr.bf16.vlgmr.msra.gmra.mrb[0].mxu1 %v2017_v58  ;;  %v1770_v46 = vsub.f32 %v3132_v52, %v1737_v38 }
 0x252   : > { %v2890_v20 = vpop.eup %2889  ;;  %v1789_v25 = vmul.f32 1.442695, %v1766_v6 }
 0x253   : > { %1851 = vadd.xlane.f32.xlu0 %v2890_v20  ;;  %v1722_v5 = vpop.permute.xlu1 %1721  ;;  %v1797_v9 = vmul.f32 1.442695, %v1770_v46 }
 0x254   : > { %2895 = vpow2.f32 %v1789_v25  ;;  %v1767_v17 = vsub.f32 %v3129_v51, %v1722_v5  ;;  %v1747_v31 = vpop.permute.xlu0 %1746 }
 0x255   : > { %2897 = vpow2.f32 %v1793_v27  ;;  %v1772_v40 = vsub.f32 %v3180_v4, %v1747_v31 }
 0x256   : > { %v2892_v57 = vpop.eup %2891  ;;  %v1791_v41 = vmul.f32 1.442695, %v1767_v17 }
 0x257   : > { %1847 = vadd.xlane.f32.xlu0 %v2892_v57  ;;  %v1732_v24 = vpop.permute.xlu1 %1731  ;;  %v1801_v50 = vmul.f32 1.442695, %v1772_v40  ;;  %v1649_v40 = vmul.f32 1.442695, %v1632_v26 }
 0x258   : > { %2899 = vpow2.f32 %v1791_v41  ;;  %v1769_v63 = vsub.f32 %v3137_v55, %v1732_v24  ;;  %v1757_v32 = vpop.permute.xlu0 %1756  ;;  %v1651_v24 = vmul.f32 1.442695, %v1633_v14 }
 0x259   : > { %2901 = vpow2.f32 %v1797_v9  ;;  %v1774_v54 = vsub.f32 %v3172_v1, %v1757_v32 }
 0x25a   : > { %v2894_v22 = vpop.eup %2893  ;;  %v1795_v52 = vmul.f32 1.442695, %v1769_v63  ;;  %v3549_v63 = vsub.f32 %v3194_v8, %v3200_v12  ;;  %v3553_v8 = vsub.f32 %v3251_v39, %v3261_v47  ;;  %v1667_v39 = vmul.f32 1.442695, %v3556_v35 }
 0x25b   : > { %v1742_v51 = vpop.permute.xlu1 %1741  ;;  %v2018_v44 = vpack.c.bf16 %v2894_v22, %v2892_v57  ;;  %v1805_v58 = vmul.f32 1.442695, %v1774_v54  ;;  %v1665_v47 = vmul.f32 1.442695, %v3557_v43 }
 0x25c   : > { %2903 = vpow2.f32 %v1795_v52  ;;  %v1771_v37 = vsub.f32 %v3167_v0, %v1742_v51  ;;  %v1647_v32 = vmul.f32 1.442695, %v3549_v63  ;;  %v1657_v12 = vmul.f32 1.442695, %v3553_v8 }
 0x25d   : > { %2816 = vmatprep.mubr.bf16.mxu1 %v2018_v44  ;;  %2905 = vpow2.f32 %v1801_v50  ;;  %v3551_v50 = vsub.f32 %v3202_v13, %v3218_v19  ;;  %v1663_v13 = vmul.f32 1.442695, %v3554_v21  ;;  %v3555_v19 = vsub.f32 %v3235_v28, %v3241_v34 }
 0x25e   : > { %v2896_v33 = vpop.eup %2895  ;;  %v1799_v4 = vmul.f32 1.442695, %v1771_v37  ;;  %v3558_v28 = vsub.f32 %v3303_v18, %v3319_v45  ;;  %v3561_v18 = vsub.f32 %v3331_v62, %v3342_v42 }
 0x25f   : > { %1853 = vadd.xlane.f32.xlu1 %v2896_v33  ;;  %v1752_v6 = vpop.permute.xlu1 %1751  ;;  %v2019_v55 = vpack.c.bf16 %v2896_v33, %v2890_v20  ;;  %v2898_v25 = vpop.eup %2897  ;;  %v1653_v15 = vmul.f32 1.442695, %v3551_v50 }
 0x260   : > { %2907 = vpow2.f32 %v1799_v4  ;;  %v1773_v38 = vsub.f32 %v3178_v3, %v1752_v6  ;;  %v1671_v34 = vmul.f32 1.442695, %v3558_v28  ;;  %v1673_v45 = vmul.f32 1.442695, %v3561_v18  ;;  %v1809_v4 = vld [vmem:[#allocation3 + $0x10] sm:$0xff] }
 0x261   : > { %2817 = vmatmul.mubr.bf16.gmra.mrb[4].mxu1 %v2019_v55  ;;  %2909 = vpow2.f32 %v1805_v58  ;;  %v1807_v58 = vld [vmem:[#allocation3] sm:$0xff] }
 0x262   : > { %v2900_v27 = vpop.eup %2899  ;;  %v1803_v1 = vmul.f32 1.442695, %v1773_v38 }
 0x263   : > { %1849 = vadd.xlane.f32.xlu1 %v2894_v22  ;;  %v2020_v46 = vpack.c.bf16 %v2898_v25, %v2900_v27  ;;  %v2902_v0 = vpop.eup %2901  ;;  %v3550_v22 = vsub.f32 %v3228_v23, %v3238_v30  ;;  %v1661_v23 = vmul.f32 1.442695, %v3555_v19 }
 0x264   : > { %2911 = vpow2.f32 %v1803_v1  ;;  %v1810_v1 = vld [vmem:[#allocation3 + $0x18] sm:$0xff] }
 0x265   : > { %2820 = vmatprep.mubr.bf16.mxu1 %v2020_v46  ;;  %2913 = vpow2.f32 %v1649_v40  ;;  %v1655_v52 = vmul.f32 1.442695, %v3550_v22 }
 0x266   : > { %v2904_v5 = vpop.eup %2903  ;;  %2915 = vpow2.f32 %v1651_v24 }
 0x267   : > { %1861 = vadd.xlane.f32.xlu1 %v2902_v0  ;;  %1859 = vadd.xlane.f32.xlu0 %v2904_v5  ;;  %v2021_v17 = vpack.c.bf16 %v2902_v0, %v2904_v5  ;;  %v2906_v31 = vpop.eup %2905  ;;  %2917 = vpow2.f32 %v1647_v32  ;;  %v1808_v5 = vld [vmem:[#allocation3 + $0x8] sm:$0xff]  ;;  %v1811_v32 = vld [vmem:[#allocation3 + $0x20] sm:$0xff] }
 0x268   : > { %2919 = vpow2.f32 %v1655_v52 }
 0x269   : > { %2821 = vmatmul.mubr.bf16.gmra.mrb[8].mxu1 %v2021_v17  ;;  %2921 = vpow2.f32 %v1653_v15 }
 0x26a   : > { %v2908_v20 = vpop.eup %2907  ;;  %2923 = vpow2.f32 %v1659_v10 }
 0x26b   : > { %1857 = vadd.xlane.f32.xlu1 %v2898_v25  ;;  %1855 = vadd.xlane.f32.xlu0 %v2900_v27  ;;  %v2022_v3 = vpack.c.bf16 %v2906_v31, %v2908_v20  ;;  %v2910_v57 = vpop.eup %2909  ;;  %2925 = vpow2.f32 %v1657_v12  ;;  %v1814_v12 = vld [vmem:[#allocation3 + $0x38] sm:$0xff] }
 0x26c   : > { %2927 = vpow2.f32 %v1663_v13 }
 0x26d   : > { %2824 = vmatprep.mubr.bf16.mxu1 %v2022_v3  ;;  %2929 = vpow2.f32 %v1661_v23  ;;  %v1812_v23 = vld [vmem:[#allocation3 + $0x28] sm:$0xff] }
 0x26e   : > { %v2912_v41 = vpop.eup %2911  ;;  %2931 = vpow2.f32 %v1667_v39 }
 0x26f   : > { %1869 = vadd.xlane.f32.xlu1 %v2910_v57  ;;  %1863 = vadd.xlane.f32.xlu0 %v2908_v20  ;;  %v2023_v9 = vpack.c.bf16 %v2910_v57, %v2912_v41  ;;  %v3395_v14 = vpop.eup %2913  ;;  %2933 = vpow2.f32 %v1665_v47 }
 0x270   : > { %v2916_v26 = vpop.eup %2915  ;;  %2935 = vpow2.f32 %v1671_v34  ;;  %v1824_v20 = vmul.f32 %v3395_v14, %v1808_v5 }
 0x271   : > { %2825 = vmatmul.mubr.bf16.gmra.mrb[12].mxu1 %v2023_v9  ;;  %v2918_v30 = vpop.eup %2917  ;;  %2937 = vpow2.f32 %v1669_v11  ;;  %v1825_v6 = vmul.f32 %v2916_v26, %v1809_v4  ;;  %v1819_v4 = vld [vmem:[#allocation3 + $0x60] sm:$0xff] }
 0x272   : > { %v3410_v48 = vpop.eup %2919  ;;  %2939 = vpow2.f32 %v1675_v16  ;;  %v1823_v38 = vmul.f32 %v2918_v30, %v1807_v58  ;;  %v1816_v16 = vld [vmem:[#allocation3 + $0x48] sm:$0xff]  ;;  %v1822_v58 = vld [vmem:[#allocation3 + $0x78] sm:$0xff] }
 0x273   : > { %1865 = vadd.xlane.f32.xlu1 %v2906_v31  ;;  %1867 = vadd.xlane.f32.xlu0 %v2912_v41  ;;  %v2922_v59 = vpop.eup %2921  ;;  %2941 = vpow2.f32 %v1673_v45  ;;  %v1813_v41 = vld [vmem:[#allocation3 + $0x30] sm:$0xff]  ;;  %v1827_v50 = vmul.f32 %v3410_v48, %v1811_v32 }
 0x274   : > { %v2924_v54 = vpop.eup %2923  ;;  %2943 = vpow2.f32 %v1677_v56  ;;  %v1826_v0 = vmul.f32 %v2922_v59, %v1810_v1 }
 0x275   : > { %v3419_v51 = vpop.eup %2925  ;;  %v1829_v40 = vmul.f32 %v2924_v54, %v1813_v41 }
 0x276   : > { %v3428_v44 = vpop.eup %2927  ;;  %v1828_v39 = vmul.f32 %v3419_v51, %v1812_v23 }
 0x277   : > { %v3430_v53 = vpop.eup %2929  ;;  %v1831_v60 = vmul.f32 %v3428_v44, %v1815_v2 }
 0x278   : > { %v3437_v36 = vpop.eup %2931  ;;  %v1830_v21 = vmul.f32 %v3430_v53, %v1814_v12 }
 0x279   : > { %v3439_v37 = vpop.eup %2933 }
 0x27a   : > { %v3443_v62 = vpop.eup %2935  ;;  %v1832_v56 = vmul.f32 %v3439_v37, %v1816_v16 }
 0x27b   : > { %v3445_v42 = vpop.eup %2937 }
 0x27c   : > { %v3449_v29 = vpop.eup %2939 }
 0x27d   : > { %v3451_v49 = vpop.eup %2941 }
 0x27e   : > { %v3455_v33 = vpop.eup %2943 }
 0x284   : > { %1927 = vperm.xlu1 %2856, %v3395_v14  }
 0x288   : > { %1932 = vperm.xlu1 %2856, %v2916_v26  }
 0x289   : > { %1922 = vperm.xlu0 %2855, %v2918_v30  }
 0x28c   : > { %1942 = vperm.xlu1 %2856, %v3410_v48   ;;  %v1817_v48 = vld [vmem:[#allocation3 + $0x50] sm:$0xff] }
 0x28d   : > { %1937 = vperm.xlu0 %2855, %v2922_v59   ;;  %v1818_v59 = vld [vmem:[#allocation3 + $0x58] sm:$0xff]  ;;  %v1833_v34 = vmul.f32 %v3437_v36, %v1817_v48 }
 0x28e   : > { %v1834_v61 = vmul.f32 %v3445_v42, %v1818_v59 }
 0x290   : > { %1952 = vperm.xlu1 %2856, %v2924_v54  }
 0x291   : > { %1947 = vperm.xlu0 %2855, %v3419_v51  }
 0x294   : > { %1962 = vperm.xlu1 %2856, %v3428_v44   ;;  %v1838_v44 = vmul.f32 %v3455_v33, %v1822_v58 }
 0x295   : > { %1957 = vperm.xlu0 %2855, %v3430_v53  }
 0x298   : > { %1972 = vperm.xlu1 %2856, %v3437_v36  }
 0x299   : > { %1967 = vperm.xlu0 %2855, %v3439_v37  }
 0x29c   : > { %1982 = vperm.xlu1 %2856, %v3443_v62  }
 0x29d   : > { %1977 = vperm.xlu0 %2855, %v3445_v42  }
 0x2a0   : > { %1992 = vperm.xlu1 %2856, %v3449_v29  }
 0x2a1   : > { %1987 = vperm.xlu0 %2855, %v3451_v49  }
 0x2a5   : > { %1997 = vperm.xlu0 %2855, %v3455_v33  }
 0x2d3   : > { %v1844_v55 = vpop.xlane.xlu0 %1843 }
 0x2d4   : > { %v1873_v25 = vadd.f32 %v1844_v55, %v1825_v6  ;;  %v1840_v27 = vpop.xlane.xlu1 %1839 }
 0x2d5   : > { %v1871_v46 = vadd.f32 %v1840_v27, %v1823_v38  ;;  %v1835_v27 = vmul.f32 %v3443_v62, %v1819_v4 }
 0x2d6   : > { %1890 = vst.msk [vmem:[#allocation3 + $0x10] sm:$0xff] %vm322_vm0, %v1873_v25 }
 0x2d7   : > { %1888 = vst.msk [vmem:[#allocation3] sm:$0xff] %vm322_vm0, %v1871_v46  ;;  %v1821_v46 = vld [vmem:[#allocation3 + $0x70] sm:$0xff] }
 0x2d8   : > { %v1846_v17 = vpop.xlane.xlu1 %1845 }
 0x2d9   : > { %v1874_v31 = vadd.f32 %v1846_v17, %v1826_v0  ;;  %v1820_v0 = vld [vmem:[#allocation3 + $0x68] sm:$0xff] }
 0x2db   : > { %1891 = vst.msk [vmem:[#allocation3 + $0x18] sm:$0xff] %vm322_vm0, %v1874_v31  ;;  %v1842_v3 = vpop.xlane.xlu0 %1841 }
 0x2dc   : > { %v1872_v57 = vadd.f32 %v1842_v3, %v1824_v20  ;;  %v1837_v3 = vmul.f32 %v3449_v29, %v1821_v46 }
 0x2dd   : > { %v2254_v9 = vld [vmem:[#allocation3 + $0x10] sm:$0xff] }
 0x2de   : > { %1889 = vst.msk [vmem:[#allocation3 + $0x8] sm:$0xff] %vm322_vm0, %v1872_v57  ;;  %2945 = vrcp.f32 %v2254_v9  ;;  %v2252_v24 = vld [vmem:[#allocation3] sm:$0xff]  ;;  %v1836_v57 = vmul.f32 %v3451_v49, %v1820_v0 }
 0x2df   : > { %2947 = vrcp.f32 %v2252_v24 }
 0x2e0   : > { %v1852_v63 = vpop.xlane.xlu0 %1851 }
 0x2e1   : > { %v1877_v22 = vadd.f32 %v1852_v63, %v1829_v40 }
 0x2e2   : > { %v2255_v52 = vld [vmem:[#allocation3 + $0x18] sm:$0xff] }
 0x2e3   : > { %1894 = vst.msk [vmem:[#allocation3 + $0x30] sm:$0xff] %vm322_vm0, %v1877_v22  ;;  %2949 = vrcp.f32 %v2255_v52 }
 0x2e4   : > { %v1848_v15 = vpop.xlane.xlu0 %1847 }
 0x2e5   : > { %v1875_v7 = vadd.f32 %v1848_v15, %v1827_v50  ;;  %v2253_v10 = vld [vmem:[#allocation3 + $0x8] sm:$0xff] }
 0x2e6   : > { %2951 = vrcp.f32 %v2253_v10 }
 0x2e7   : > { %1892 = vst.msk [vmem:[#allocation3 + $0x20] sm:$0xff] %vm322_vm0, %v1875_v7 }
 0x2e8   : > { %v2946_v8 = vpop.eup %2945 }
 0x2e9   : > { %2296 = vperm.xlu1 %2856, %v2946_v8   ;;  %v2948_v13 = vpop.eup %2947 }
 0x2ea   : > { %v2258_v14 = vld [vmem:[#allocation3 + $0x30] sm:$0xff] }
 0x2eb   : > { %2953 = vrcp.f32 %v2258_v14 }
 0x2ec   : > { %v1854_v19 = vpop.xlane.xlu1 %1853 }
 0x2ed   : > { %v2950_v26 = vpop.eup %2949  ;;  %v1878_v30 = vadd.f32 %v1854_v19, %v1830_v21  ;;  %2286 = vperm.xlu1 %2856, %v2948_v13  }
 0x2ee   : > { %2301 = vperm.xlu0 %2855, %v2950_v26   ;;  %v2256_v35 = vld [vmem:[#allocation3 + $0x20] sm:$0xff] }
 0x2ef   : > { %1895 = vst.msk [vmem:[#allocation3 + $0x38] sm:$0xff] %vm322_vm0, %v1878_v30  ;;  %2955 = vrcp.f32 %v2256_v35 }
 0x2f0   : > { %v2952_v43 = vpop.eup %2951  ;;  %v1850_v47 = vpop.xlane.xlu1 %1849 }
 0x2f1   : > { %v1876_v28 = vadd.f32 %v1850_v47, %v1828_v39 }
 0x2f2   : > { %2291 = vperm.xlu0 %2855, %v2952_v43  }
 0x2f3   : > { %1893 = vst.msk [vmem:[#allocation3 + $0x28] sm:$0xff] %vm322_vm0, %v1876_v28 }
 0x2f4   : > { %v1860_v11 = vpop.xlane.xlu0 %1859  ;;  %v1862_v54 = vpop.xlane.xlu1 %1861 }
 0x2f5   : > { %v2954_v18 = vpop.eup %2953  ;;  %v1881_v45 = vadd.f32 %v1860_v11, %v1833_v34  ;;  %v1882_v51 = vadd.f32 %v1862_v54, %v1834_v61 }
 0x2f6   : > { %2316 = vperm.xlu1 %2856, %v2954_v18   ;;  %v2259_v53 = vld [vmem:[#allocation3 + $0x38] sm:$0xff] }
 0x2f7   : > { %1898 = vst.msk [vmem:[#allocation3 + $0x50] sm:$0xff] %vm322_vm0, %v1881_v45  ;;  %1899 = vst.msk [vmem:[#allocation3 + $0x58] sm:$0xff] %vm322_vm0, %v1882_v51  ;;  %2957 = vrcp.f32 %v2259_v53 }
 0x2f8   : > { %v1856_v36 = vpop.xlane.xlu0 %1855  ;;  %v1858_v42 = vpop.xlane.xlu1 %1857 }
 0x2f9   : > { %v2956_v6 = vpop.eup %2955  ;;  %v1879_v55 = vadd.f32 %v1856_v36, %v1831_v60  ;;  %v1880_v38 = vadd.f32 %v1858_v42, %v1832_v56 }
 0x2fa   : > { %2306 = vperm.xlu1 %2856, %v2956_v6   ;;  %v2257_v25 = vld [vmem:[#allocation3 + $0x28] sm:$0xff] }
 0x2fb   : > { %1896 = vst.msk [vmem:[#allocation3 + $0x40] sm:$0xff] %vm322_vm0, %v1879_v55  ;;  %1897 = vst.msk [vmem:[#allocation3 + $0x48] sm:$0xff] %vm322_vm0, %v1880_v38  ;;  %2959 = vrcp.f32 %v2257_v25 }
 0x2fc   : > { %v1864_v37 = vpop.xlane.xlu0 %1863  ;;  %v1870_v1 = vpop.xlane.xlu1 %1869 }
 0x2fd   : > { %v1883_v5 = vadd.f32 %v1864_v37, %v1835_v27  ;;  %v1886_v17 = vadd.f32 %v1870_v1, %v1838_v44 }
 0x2fe   : > { %v2262_v31 = vld [vmem:[#allocation3 + $0x50] sm:$0xff]  ;;  %v2263_v20 = vld [vmem:[#allocation3 + $0x58] sm:$0xff] }
 0x2ff   : > { %1900 = vst.msk [vmem:[#allocation3 + $0x60] sm:$0xff] %vm322_vm0, %v1883_v5  ;;  %1903 = vst.msk [vmem:[#allocation3 + $0x78] sm:$0xff] %vm322_vm0, %v1886_v17  ;;  %2961 = vrcp.f32 %v2262_v31 }
 0x300   : > { %v1868_v62 = vpop.xlane.xlu0 %1867  ;;  %v1866_v33 = vpop.xlane.xlu1 %1865  ;;  %2963 = vrcp.f32 %v2263_v20 }
 0x301   : > { %v2958_v41 = vpop.eup %2957  ;;  %v1885_v9 = vadd.f32 %v1868_v62, %v1837_v3  ;;  %v1884_v40 = vadd.f32 %v1866_v33, %v1836_v57 }
 0x302   : > { %2321 = vperm.xlu0 %2855, %v2958_v41   ;;  %v2260_v24 = vld [vmem:[#allocation3 + $0x40] sm:$0xff]  ;;  %v2261_v63 = vld [vmem:[#allocation3 + $0x48] sm:$0xff] }
 0x303   : > { %1902 = vst.msk [vmem:[#allocation3 + $0x70] sm:$0xff] %vm322_vm0, %v1885_v9  ;;  %1901 = vst.msk [vmem:[#allocation3 + $0x68] sm:$0xff] %vm322_vm0, %v1884_v40  ;;  %2965 = vrcp.f32 %v2260_v24 }
 0x304   : > { %2967 = vrcp.f32 %v2261_v63  ;;  %v1928_v47 = vpop.permute.xlu1 %1927 }
 0x305   : > { %v2960_v32 = vpop.eup %2959  ;;  %v2001_v5 = vmul.f32 0.0, %v1928_v47 }
 0x306   : > { %2311 = vperm.xlu0 %2855, %v2960_v32   ;;  %v2264_v29 = vld [vmem:[#allocation3 + $0x60] sm:$0xff]  ;;  %v2267_v7 = vld [vmem:[#allocation3 + $0x78] sm:$0xff] }
 0x307   : > { %2969 = vrcp.f32 %v2264_v29 }
 0x308   : > { %v1923_v34 = vpop.permute.xlu0 %1922  ;;  %v1933_v11 = vpop.permute.xlu1 %1932 }
 0x309   : > { %v2962_v49 = vpop.eup %2961  ;;  %v2002_v44 = vmul.f32 0.0, %v1933_v11  ;;  %v2000_v17 = vmul.f32 0.0, %v1923_v34 }
 0x30a   : > { %v2964_v22 = vpop.eup %2963  ;;  %2336 = vperm.xlu1 %2856, %v2962_v49   ;;  %v2266_v52 = vld [vmem:[#allocation3 + $0x70] sm:$0xff]  ;;  %v2265_v50 = vld [vmem:[#allocation3 + $0x68] sm:$0xff] }
 0x30b   : > { %2341 = vperm.xlu0 %2855, %v2964_v22   ;;  %2971 = vrcp.f32 %v2266_v52 }
 0x30c   : > { %2973 = vrcp.f32 %v2265_v50  ;;  %v1938_v2 = vpop.permute.xlu0 %1937  ;;  %v1943_v45 = vpop.permute.xlu1 %1942 }
 0x30d   : > { %v2966_v15 = vpop.eup %2965  ;;  %2975 = vrcp.f32 %v2267_v7  ;;  %v2003_v37 = vmul.f32 0.0, %v1938_v2  ;;  %v2004_v50 = vmul.f32 0.0, %v1943_v45 }
 0x30e   : > { %v2968_v10 = vpop.eup %2967  ;;  %2326 = vperm.xlu1 %2856, %v2966_v15  }
 0x30f   : > { %2331 = vperm.xlu0 %2855, %v2968_v10  }
 0x310   : > { %v1948_v53 = vpop.permute.xlu0 %1947  ;;  %v1953_v60 = vpop.permute.xlu1 %1952 }
 0x311   : > { %v2970_v8 = vpop.eup %2969  ;;  %v2006_v32 = vmul.f32 0.0, %v1953_v60  ;;  %v2005_v15 = vmul.f32 0.0, %v1948_v53 }
 0x312   : > { %2346 = vperm.xlu1 %2856, %v2970_v8  }
 0x314   : > { %v1958_v56 = vpop.permute.xlu0 %1957  ;;  %v1963_v36 = vpop.permute.xlu1 %1962 }
 0x315   : > { %v2972_v12 = vpop.eup %2971  ;;  %v2007_v29 = vmul.f32 0.0, %v1958_v56  ;;  %v2008_v2 = vmul.f32 0.0, %v1963_v36 }
 0x316   : > { %v2974_v14 = vpop.eup %2973  ;;  %2356 = vperm.xlu1 %2856, %v2972_v12  }
 0x317   : > { %2351 = vperm.xlu0 %2855, %v2974_v14   ;;  %v2976_v21 = vpop.eup %2975 }
 0x318   : > { %v1968_v42 = vpop.permute.xlu0 %1967  ;;  %v1973_v4 = vpop.permute.xlu1 %1972 }
 0x31b   : > { %2361 = vperm.xlu0 %2855, %v2976_v21  }
 0x31c   : > { %v1978_v58 = vpop.permute.xlu0 %1977  ;;  %v3502_v6 = vpop.permute.xlu1 %1982 }
 0x31d   : > { %v2011_v47 = vmul.f32 0.0, %v1978_v58  ;;  %v2012_v36 = vmul.f32 0.0, %v3502_v6 }
 0x320   : > { %v3504_v55 = vpop.permute.xlu0 %1987  ;;  %v3506_v38 = vpop.permute.xlu1 %1992 }
 0x324   : > { %v2814_v13 = vpop.f32.mrb[0].mxu1  ;;  %v3508_v25 = vpop.permute.xlu0 %1997 }
 0x325   : > { %v2122_v19 = vpop.f32.mrb[1].mxu1  ;;  %v2187_v1 = vadd.f32 %v2814_v13, %v2002_v44 }
 0x326   : > { %v2815_v23 = vpop.f32.mrb[2].mxu1  ;;  %v2185_v57 = vadd.f32 %v2122_v19, %v2000_v17  ;;  %v2010_v19 = vmul.f32 0.0, %v1973_v4 }
 0x327   : > { %v2125_v26 = vpop.f32.mrb[3].mxu1  ;;  %v2188_v46 = vadd.f32 %v2815_v23, %v2003_v37 }
 0x328   : > { %v2186_v62 = vadd.f32 %v2125_v26, %v2001_v5 }
 0x334   : > { %v2818_v30 = vpop.f32.mrb[4].mxu1 }
 0x335   : > { %v2138_v35 = vpop.f32.mrb[5].mxu1  ;;  %v2191_v49 = vadd.f32 %v2818_v30, %v2006_v32 }
 0x336   : > { %v2819_v39 = vpop.f32.mrb[6].mxu1  ;;  %v2189_v12 = vadd.f32 %v2138_v35, %v2004_v50 }
 0x337   : > { %v2141_v43 = vpop.f32.mrb[7].mxu1  ;;  %v2192_v22 = vadd.f32 %v2819_v39, %v2007_v29 }
 0x338   : > { %v2190_v14 = vadd.f32 %v2141_v43, %v2005_v15  ;;  %v2009_v43 = vmul.f32 0.0, %v1968_v42 }
 0x33c   : > { %v3486_v48 = vpop.f32.mrb[8].mxu1 }
 0x33d   : > { %v3488_v59 = vpop.f32.mrb[9].mxu1  ;;  %v2195_v34 = vadd.f32 %v3486_v48, %v2010_v19 }
 0x33e   : > { %v3490_v28 = vpop.f32.mrb[10].mxu1  ;;  %v2193_v60 = vadd.f32 %v3488_v59, %v2008_v2 }
 0x33f   : > { %v3492_v61 = vpop.f32.mrb[11].mxu1  ;;  %v2196_v39 = vadd.f32 %v3490_v28, %v2011_v47 }
 0x340   : > { %v2194_v56 = vadd.f32 %v3492_v61, %v2009_v43 }
 0x344   : > { %v3494_v54 = vpop.f32.mrb[12].mxu1 }
 0x345   : > { %v3496_v16 = vpop.f32.mrb[13].mxu1 }
 0x346   : > { %v3498_v18 = vpop.f32.mrb[14].mxu1  ;;  %v2197_v42 = vadd.f32 %v3496_v16, %v2012_v36 }
 0x347   : > { %v3500_v51 = vpop.f32.mrb[15].mxu1 }
 0x368   : > { %v2297_v27 = vpop.permute.xlu1 %2296 }
 0x369   : > { %v2366_v31 = vmul.f32 %v2297_v27, %v2187_v1  ;;  %v2013_v1 = vmul.f32 0.0, %v3504_v55 }
 0x36b   : > { %v2198_v59 = vadd.f32 %v3500_v51, %v2013_v1 }
 0x36c   : > { %v2287_v3 = vpop.permute.xlu1 %2286 }
 0x36d   : > { %v2302_v0 = vpop.permute.xlu0 %2301  ;;  %v2364_v9 = vmul.f32 %v2287_v3, %v2185_v57 }
 0x36e   : > { %v2367_v20 = vmul.f32 %v2302_v0, %v2188_v46  ;;  %v2014_v46 = vmul.f32 0.0, %v3506_v38  ;;  %v2015_v0 = vmul.f32 0.0, %v3508_v25 }
 0x370   : > { %v2693_v33 = vpack.c.bf16 %v2367_v20, %v2366_v31  ;;  %v2199_v20 = vadd.f32 %v3494_v54, %v2014_v46  ;;  %v2200_v6 = vadd.f32 %v3498_v18, %v2015_v0 }
 0x371   : > { %v2292_v41 = vpop.permute.xlu0 %2291 }
 0x372   : > { %2725 = vst [vmem:[%s3514_s28 + $0x8] sm:$0xff] %v2693_v33   ;;  %v2365_v40 = vmul.f32 %v2292_v41, %v2186_v62 }
 0x374   : > { %v2688_v24 = vpack.c.bf16 %v2365_v40, %v2364_v9 }
 0x375   : > { %v2317_v63 = vpop.permute.xlu1 %2316 }
 0x376   : > { %2689 = vst [vmem:[%s3514_s28] sm:$0xff] %v2688_v24   ;;  %v2370_v7 = vmul.f32 %v2317_v63, %v2191_v49 }
 0x379   : > { %v2307_v8 = vpop.permute.xlu1 %2306 }
 0x37a   : > { %v2368_v23 = vmul.f32 %v2307_v8, %v2189_v12 }
 0x381   : > { %v2322_v52 = vpop.permute.xlu0 %2321 }
 0x382   : > { %v2371_v10 = vmul.f32 %v2322_v52, %v2192_v22 }
 0x384   : > { %v2703_v21 = vpack.c.bf16 %v2371_v10, %v2370_v7 }
 0x385   : > { %v2312_v13 = vpop.permute.xlu0 %2311 }
 0x386   : > { %2727 = vst [vmem:[%s3514_s28 + $0x18] sm:$0xff] %v2703_v21   ;;  %v2369_v26 = vmul.f32 %v2312_v13, %v2190_v14 }
 0x388   : > { %v2698_v30 = vpack.c.bf16 %v2369_v26, %v2368_v23 }
 0x389   : > { %v2337_v11 = vpop.permute.xlu1 %2336 }
 0x38a   : > { %2726 = vst [vmem:[%s3514_s28 + $0x10] sm:$0xff] %v2698_v30   ;;  %v2342_v45 = vpop.permute.xlu0 %2341  ;;  %v2374_v35 = vmul.f32 %v2337_v11, %v2195_v34 }
 0x38b   : > { %v2375_v53 = vmul.f32 %v2342_v45, %v2196_v39 }
 0x38d   : > { %v2713_v4 = vpack.c.bf16 %v2375_v53, %v2374_v35  ;;  %v2327_v58 = vpop.permute.xlu1 %2326 }
 0x38e   : > { %v2332_v27 = vpop.permute.xlu0 %2331  ;;  %v2372_v48 = vmul.f32 %v2327_v58, %v2193_v60 }
 0x38f   : > { %2729 = vst [vmem:[%s3514_s28 + $0x28] sm:$0xff] %v2713_v4   ;;  %v2373_v44 = vmul.f32 %v2332_v27, %v2194_v56 }
 0x391   : > { %v2708_v37 = vpack.c.bf16 %v2373_v44, %v2372_v48  ;;  %v2347_v28 = vpop.permute.xlu1 %2346 }
 0x392   : > { %v2376_v5 = vmul.f32 %v2347_v28, %v2197_v42 }
 0x393   : > { %2728 = vst [vmem:[%s3514_s28 + $0x20] sm:$0xff] %v2708_v37  }
 0x395   : > { %v2357_v31 = vpop.permute.xlu1 %2356 }
 0x396   : > { %v2352_v61 = vpop.permute.xlu0 %2351  ;;  %v2378_v57 = vmul.f32 %v2357_v31, %v2199_v20 }
 0x397   : > { %v2377_v17 = vmul.f32 %v2352_v61, %v2198_v59 }
 0x399   : > { %v2718_v3 = vpack.c.bf16 %v2377_v17, %v2376_v5 }
 0x39a   : > { %v2362_v55 = vpop.permute.xlu0 %2361 }
 0x39b   : > { %2730 = vst [vmem:[%s3514_s28 + $0x30] sm:$0xff] %v2718_v3   ;;  %v2379_v16 = vmul.f32 %v2362_v55, %v2200_v6 }
 0x39d   : > { %v2723_v62 = vpack.c.bf16 %v2379_v16, %v2378_v57 }
 0x39f   : > { %2731 = vst [vmem:[%s3514_s28 + $0x38] sm:$0xff] %v2723_v62  }
 0x3a0 PF: > { %s13_s14 = sadd.s32 1, %s2999_s14   ;;  %s3563_s12 = smov %s2995_s13 }
 0x3a1   : > { %p10_p5 = scmp.ge.s32.totalorder %s13_s14, 6   ;;  %s3564_s13 = smov %s3566_s15 }
 0x3a3   :  { %12 = sbr.rel (!%p10_p5) target bundleno = 2 (0x2), region = 84 }

// kernel: deepseek_forward.11
= control target key start
LH: loop header
LB: loop body
LE: loop exit
PB: predicated region body
PF: predicated region fallthrough
CT: control target
= control target key end

     0   :  { %s4820_s0 = inlined_call_operand.vmem [shape: f32[256,256], index: 0, kind: input, shape index: {}]   ;;  %s4821_s1 = inlined_call_operand.vmem [shape: f32[1,256], index: 1, kind: input, shape index: {}]   ;;  %s4822_s2 = inlined_call_operand.vmem [shape: bf16[256,768], index: 2, kind: input, shape index: {}, may-alias: {2,3,4}]   ;;  %s4823_s3 = inlined_call_operand.vmem [shape: bf16[256,768], index: 3, kind: input, shape index: {}, may-alias: {2,3,4}]   ;;  %s4824_s4 = inlined_call_operand.vmem [shape: bf16[256,768], index: 4, kind: input, shape index: {}, may-alias: {2,3,4}]   ;;  %s4825_s5 = inlined_call_operand.vmem [shape: f32[128,128], index: 5, kind: input, shape index: {}]   ;;  %s4826_s6 = inlined_call_operand.vmem [shape: f32[128,128], index: 6, kind: input, shape index: {}]   ;;  %s4827_s7 = inlined_call_operand.vmem [shape: bf16[4,128,128], index: 7, kind: output, shape index: {0}]   ;;  %s4828_s8 = inlined_call_operand.vmem [shape: bf16[4,128,128], index: 8, kind: output, shape index: {1}]   ;;  %s4829_s9 = inlined_call_operand.vmem [shape: bf16[4,128,128], index: 9, kind: output, shape index: {2}]  }
   0x1   :  { %4839 = sst [smem:[#allocation14_spill]] %s4821_s1 }
   0x2   :  { %4840 = sst [smem:[#allocation15_spill]] %s4822_s2 }
   0x3   :  { %4841 = sst [smem:[#allocation16_spill]] %s4823_s3 }
   0x4   :  { %4842 = sst [smem:[#allocation17_spill]] %s4824_s4 }
   0x5   :  { %4843 = sst [smem:[#allocation18_spill]] %s4825_s5 }
   0x6   :  { %4844 = sst [smem:[#allocation19_spill]] %s4826_s6 }
   0x7   :  { %4845 = sst [smem:[#allocation20_spill]] %s4829_s9 }
   0x8   :  { %s3669_s30 = smov 0   ;;  %s3671_s10 = smov 0  }
   0x9   :  { %s3673_s11 = smov 0   ;;  %s3675_s12 = smov 0  }
   0xa   :  { %s3677_s13 = smov 0   ;;  %s3679_s14 = smov 0  }
   0xb   :  { %s3681_s15 = smov 0   ;;  %s3683_s16 = smov 0  }
   0xc   :  { %s3685_s17 = smov 0   ;;  %s3687_s18 = smov 0  }
   0xd   :  { %s3689_s19 = smov 0  }
   0xe LB: > { %4846 = sst [smem:[#allocation6_spill]] %s3612_s18  ;;  %s32_s20 = sadd.s32 1, %s3608_s17  ;;  %s3616_s19 = sphi %s3689_s19, %s20_s19   ;;  %s3612_s18 = sphi %s3687_s18, %s4872_s18   ;;  %s3608_s17 = sphi %s3685_s17, %s4880_s17   ;;  %s3604_s16 = sphi %s3683_s16, %s4870_s16   ;;  %s3600_s15 = sphi %s3681_s15, %s4879_s15   ;;  %s3596_s14 = sphi %s3679_s14, %s4878_s14   ;;  %s3592_s13 = sphi %s3677_s13, %s4877_s13   ;;  %s3588_s12 = sphi %s3675_s12, %s4876_s12   ;;  %s3584_s11 = sphi %s3673_s11, %s4875_s11   ;;  %s3580_s10 = sphi %s3671_s10, %s4874_s10   ;;  %s3576_s30 = sphi %s3669_s30, %s4873_s30  }
   0xf   : > { %s39_s21 = sadd.s32 1, %s3612_s18  ;;  %p33_p0 = scmp.ge.s32.totalorder %s32_s20, 2 }
  0x10   : > { %s95_s22 = sadd.s32 1, %s3596_s14  ;;  %p102_p1 = scmp.ne.s32.totalorder %s3596_s14, %s3592_s13 }
  0x11   : > { %p103_p2 = scmp.eq.s32.totalorder %s3616_s19, 0  ;;  %s4882_s20 = smov (%p33_p0, %s32_s20), 0 }
  0x12   : > { %4847 = sst [smem:[#allocation7_spill]] %s4882_s20  ;;  %s4884_s21 = smov (!%p33_p0, %s39_s21), %s3612_s18 }
  0x13   : > { %s92_s23 = ssub.s32 %s3608_s17, %s4882_s20  ;;  %p3737_p3 = por %p103_p2, %p102_p1 }
  0x14   : > { %p41_p4 = scmp.ge.s32.totalorder %s4884_s21, 2  ;;  %p93_p5 = scmp.eq.s32.totalorder %s92_s23, 0 }
  0x15   : > { %s118_s25 = sadd.s32 2, %s3608_s17  ;;  %s119_s26 = sadd.s32 2, %s4882_s20 }
  0x16   : > { %s4886_s21 = smov (%p41_p4, %s4884_s21), 0  ;;  %s120_s28 = ssub.s32 %s118_s25, %s119_s26 }
  0x17   : > { %4849 = sst [smem:[#allocation8_spill]] %s4886_s21  ;;  %s123_s29 = sadd.s32 1, %s3588_s12 }
  0x18   : > { %s3746_s27 = scalar_select %p93_p5, %s3596_s14, %s95_s22  }
  0x19   : > { %p121_p6 = scmp.eq.s32.totalorder %s120_s28, 0  ;;  %p130_p7 = scmp.ne.s32.totalorder %s3588_s12, %s3584_s11 }
  0x1a   : > { %s146_s18 = sadd.s32 4, %s3608_s17  ;;  %s147_s6 = sadd.s32 4, %s4882_s20 }
  0x1b   : > { %s3754_s5 = scalar_select %p121_p6, %s3588_s12, %s123_s29  }
  0x1c   : > { %p3758_p8 = por %p130_p7, %p103_p2  ;;  %s148_s1 = ssub.s32 %s146_s18, %s147_s6 }
  0x1d   : > { %p149_p9 = scmp.eq.s32.totalorder %s148_s1, 0  ;;  %s151_s9 = sadd.s32 1, %s3580_s10 }
  0x1e   : > { %p158_p10 = scmp.ne.s32.totalorder %s3580_s10, %s3576_s30  ;;  %p2774_p12 = scmp.ge.s32.totalorder %s3616_s19, 4 }
  0x1f   : > { %s3766_s21 = scalar_select %p149_p9, %s3580_s10, %s151_s9  }
  0x20   : > { %p3770_p11 = por %p158_p10, %p103_p2  ;;  %353 = sbr.rel (%p2774_p12) target bundleno = 132 (0x84), region = 28 }
  0x27   : > { %368 = sbr.rel (!%p3737_p3) target bundleno = 70 (0x46), region = 36  ;;  %s370_s25 = sand.u32 (%p3737_p3), 1, %s3596_s14  }
  0x28   : > { %s2776_s6 = sshll.u32 (%p3737_p3), %s3608_s17, 2  ;;  %s2775_s1 = sshll.u32 (%p3737_p3), %s370_s25, 7 }
  0x29   : > { %s4852_s2 = sld [smem:[#allocation15_spill]] (%p3737_p3)  ;;  %s3786_s24 = scalar_lea.vmem (%p3737_p3), [#allocation3], %s2775_s1 }
  0x2f   : > { %s3782_s9 = scalar_lea.vmem %s4852_s2, %s2776_s6 }
  0x30   : > { %v390_v0 = vld [vmem:[%s3782_s9] sm:$0xf]  ;;  %v392_v1 = vld [vmem:[%s3782_s9 + $0x18] sm:$0xf]  ;;  %v394_v2 = vld [vmem:[%s3782_s9 + $0x30] sm:$0xf] }
  0x31   : > { %391 = vst [vmem:[%s3786_s24] sm:$0xf] %v390_v0  ;;  %393 = vst [vmem:[%s3786_s24 + $0x4] sm:$0xf] %v392_v1  ;;  %v396_v3 = vld [vmem:[%s3782_s9 + $0x48] sm:$0xf] }
  0x32   : > { %v398_v4 = vld [vmem:[%s3782_s9 + $0x60] sm:$0xf]  ;;  %395 = vst [vmem:[%s3786_s24 + $0x8] sm:$0xf] %v394_v2  ;;  %397 = vst [vmem:[%s3786_s24 + $0xc] sm:$0xf] %v396_v3 }
  0x33   : > { %399 = vst [vmem:[%s3786_s24 + $0x10] sm:$0xf] %v398_v4  ;;  %v400_v5 = vld [vmem:[%s3782_s9 + $0x78] sm:$0xf]  ;;  %v402_v6 = vld [vmem:[%s3782_s9 + $0x90] sm:$0xf] }
  0x34   : > { %v404_v7 = vld [vmem:[%s3782_s9 + $0xa8] sm:$0xf]  ;;  %401 = vst [vmem:[%s3786_s24 + $0x14] sm:$0xf] %v400_v5  ;;  %403 = vst [vmem:[%s3786_s24 + $0x18] sm:$0xf] %v402_v6 }
  0x35   : > { %405 = vst [vmem:[%s3786_s24 + $0x1c] sm:$0xf] %v404_v7  ;;  %v406_v8 = vld [vmem:[%s3782_s9 + $0xc0] sm:$0xf]  ;;  %v408_v9 = vld [vmem:[%s3782_s9 + $0xd8] sm:$0xf] }
  0x36   : > { %v410_v10 = vld [vmem:[%s3782_s9 + $0xf0] sm:$0xf]  ;;  %407 = vst [vmem:[%s3786_s24 + $0x20] sm:$0xf] %v406_v8  ;;  %409 = vst [vmem:[%s3786_s24 + $0x24] sm:$0xf] %v408_v9 }
  0x37   : > { %411 = vst [vmem:[%s3786_s24 + $0x28] sm:$0xf] %v410_v10  ;;  %v412_v11 = vld [vmem:[%s3782_s9 + $0x108] sm:$0xf]  ;;  %v414_v12 = vld [vmem:[%s3782_s9 + $0x120] sm:$0xf] }
  0x38   : > { %v416_v13 = vld [vmem:[%s3782_s9 + $0x138] sm:$0xf]  ;;  %413 = vst [vmem:[%s3786_s24 + $0x2c] sm:$0xf] %v412_v11  ;;  %415 = vst [vmem:[%s3786_s24 + $0x30] sm:$0xf] %v414_v12 }
  0x39   : > { %417 = vst [vmem:[%s3786_s24 + $0x34] sm:$0xf] %v416_v13  ;;  %v418_v14 = vld [vmem:[%s3782_s9 + $0x150] sm:$0xf]  ;;  %v420_v15 = vld [vmem:[%s3782_s9 + $0x168] sm:$0xf] }
  0x3a   : > { %v422_v16 = vld [vmem:[%s3782_s9 + $0x180] sm:$0xf]  ;;  %419 = vst [vmem:[%s3786_s24 + $0x38] sm:$0xf] %v418_v14  ;;  %421 = vst [vmem:[%s3786_s24 + $0x3c] sm:$0xf] %v420_v15 }
  0x3b   : > { %423 = vst [vmem:[%s3786_s24 + $0x40] sm:$0xf] %v422_v16  ;;  %v424_v17 = vld [vmem:[%s3782_s9 + $0x198] sm:$0xf]  ;;  %v426_v18 = vld [vmem:[%s3782_s9 + $0x1b0] sm:$0xf] }
  0x3c   : > { %v428_v19 = vld [vmem:[%s3782_s9 + $0x1c8] sm:$0xf]  ;;  %425 = vst [vmem:[%s3786_s24 + $0x44] sm:$0xf] %v424_v17  ;;  %427 = vst [vmem:[%s3786_s24 + $0x48] sm:$0xf] %v426_v18 }
  0x3d   : > { %429 = vst [vmem:[%s3786_s24 + $0x4c] sm:$0xf] %v428_v19  ;;  %v430_v20 = vld [vmem:[%s3782_s9 + $0x1e0] sm:$0xf]  ;;  %v432_v21 = vld [vmem:[%s3782_s9 + $0x1f8] sm:$0xf] }
  0x3e   : > { %v434_v22 = vld [vmem:[%s3782_s9 + $0x210] sm:$0xf]  ;;  %431 = vst [vmem:[%s3786_s24 + $0x50] sm:$0xf] %v430_v20  ;;  %433 = vst [vmem:[%s3786_s24 + $0x54] sm:$0xf] %v432_v21 }
  0x3f   : > { %435 = vst [vmem:[%s3786_s24 + $0x58] sm:$0xf] %v434_v22  ;;  %v436_v23 = vld [vmem:[%s3782_s9 + $0x228] sm:$0xf]  ;;  %v438_v24 = vld [vmem:[%s3782_s9 + $0x240] sm:$0xf] }
  0x40   : > { %v440_v25 = vld [vmem:[%s3782_s9 + $0x258] sm:$0xf]  ;;  %437 = vst [vmem:[%s3786_s24 + $0x5c] sm:$0xf] %v436_v23  ;;  %439 = vst [vmem:[%s3786_s24 + $0x60] sm:$0xf] %v438_v24 }
  0x41   : > { %441 = vst [vmem:[%s3786_s24 + $0x64] sm:$0xf] %v440_v25  ;;  %v442_v26 = vld [vmem:[%s3782_s9 + $0x270] sm:$0xf]  ;;  %v444_v27 = vld [vmem:[%s3782_s9 + $0x288] sm:$0xf] }
  0x42   : > { %v446_v28 = vld [vmem:[%s3782_s9 + $0x2a0] sm:$0xf]  ;;  %443 = vst [vmem:[%s3786_s24 + $0x68] sm:$0xf] %v442_v26  ;;  %445 = vst [vmem:[%s3786_s24 + $0x6c] sm:$0xf] %v444_v27 }
  0x43   : > { %447 = vst [vmem:[%s3786_s24 + $0x70] sm:$0xf] %v446_v28  ;;  %v448_v29 = vld [vmem:[%s3782_s9 + $0x2b8] sm:$0xf]  ;;  %v450_v30 = vld [vmem:[%s3782_s9 + $0x2d0] sm:$0xf] }
  0x44   : > { %v452_v31 = vld [vmem:[%s3782_s9 + $0x2e8] sm:$0xf]  ;;  %449 = vst [vmem:[%s3786_s24 + $0x74] sm:$0xf] %v448_v29  ;;  %451 = vst [vmem:[%s3786_s24 + $0x78] sm:$0xf] %v450_v30 }
  0x45   : > { %453 = vst [vmem:[%s3786_s24 + $0x7c] sm:$0xf] %v452_v31 }
  0x46 PF: > { %540 = sbr.rel (!%p3758_p8) target bundleno = 101 (0x65), region = 77  ;;  %s542_s28 = sand.u32 (%p3758_p8), 1, %s3588_s12  }
  0x47   : > { %s2778_s29 = sshll.u32 (%p3758_p8), %s3608_s17, 2  ;;  %s2777_s25 = sshll.u32 (%p3758_p8), %s542_s28, 7 }
  0x48   : > { %s4853_s3 = sld [smem:[#allocation16_spill]] (%p3758_p8)  ;;  %s3861_s23 = scalar_lea.vmem (%p3758_p8), [#allocation4], %s2777_s25 }
  0x4e   : > { %s3857_s18 = scalar_lea.vmem %s4853_s3, %s2778_s29 }
  0x4f   : > { %v2779_v32 = vld [vmem:[%s3857_s18 + $0x8] sm:$0xf]  ;;  %v2780_v33 = vld [vmem:[%s3857_s18 + $0x20] sm:$0xf]  ;;  %v2781_v34 = vld [vmem:[%s3857_s18 + $0x38] sm:$0xf] }
  0x50   : > { %564 = vst [vmem:[%s3861_s23] sm:$0xf] %v2779_v32  ;;  %566 = vst [vmem:[%s3861_s23 + $0x4] sm:$0xf] %v2780_v33  ;;  %v2782_v35 = vld [vmem:[%s3857_s18 + $0x50] sm:$0xf] }
  0x51   : > { %v2783_v36 = vld [vmem:[%s3857_s18 + $0x68] sm:$0xf]  ;;  %568 = vst [vmem:[%s3861_s23 + $0x8] sm:$0xf] %v2781_v34  ;;  %570 = vst [vmem:[%s3861_s23 + $0xc] sm:$0xf] %v2782_v35 }
  0x52   : > { %572 = vst [vmem:[%s3861_s23 + $0x10] sm:$0xf] %v2783_v36  ;;  %v2784_v37 = vld [vmem:[%s3857_s18 + $0x80] sm:$0xf]  ;;  %v2785_v38 = vld [vmem:[%s3857_s18 + $0x98] sm:$0xf] }
  0x53   : > { %v2786_v39 = vld [vmem:[%s3857_s18 + $0xb0] sm:$0xf]  ;;  %574 = vst [vmem:[%s3861_s23 + $0x14] sm:$0xf] %v2784_v37  ;;  %576 = vst [vmem:[%s3861_s23 + $0x18] sm:$0xf] %v2785_v38 }
  0x54   : > { %578 = vst [vmem:[%s3861_s23 + $0x1c] sm:$0xf] %v2786_v39  ;;  %v2787_v40 = vld [vmem:[%s3857_s18 + $0xc8] sm:$0xf]  ;;  %v2788_v41 = vld [vmem:[%s3857_s18 + $0xe0] sm:$0xf] }
  0x55   : > { %v2789_v42 = vld [vmem:[%s3857_s18 + $0xf8] sm:$0xf]  ;;  %580 = vst [vmem:[%s3861_s23 + $0x20] sm:$0xf] %v2787_v40  ;;  %582 = vst [vmem:[%s3861_s23 + $0x24] sm:$0xf] %v2788_v41 }
  0x56   : > { %584 = vst [vmem:[%s3861_s23 + $0x28] sm:$0xf] %v2789_v42  ;;  %v2790_v43 = vld [vmem:[%s3857_s18 + $0x110] sm:$0xf]  ;;  %v2791_v44 = vld [vmem:[%s3857_s18 + $0x128] sm:$0xf] }
  0x57   : > { %v2792_v45 = vld [vmem:[%s3857_s18 + $0x140] sm:$0xf]  ;;  %586 = vst [vmem:[%s3861_s23 + $0x2c] sm:$0xf] %v2790_v43  ;;  %588 = vst [vmem:[%s3861_s23 + $0x30] sm:$0xf] %v2791_v44 }
  0x58   : > { %590 = vst [vmem:[%s3861_s23 + $0x34] sm:$0xf] %v2792_v45  ;;  %v2793_v46 = vld [vmem:[%s3857_s18 + $0x158] sm:$0xf]  ;;  %v2794_v47 = vld [vmem:[%s3857_s18 + $0x170] sm:$0xf] }
  0x59   : > { %v2795_v48 = vld [vmem:[%s3857_s18 + $0x188] sm:$0xf]  ;;  %592 = vst [vmem:[%s3861_s23 + $0x38] sm:$0xf] %v2793_v46  ;;  %594 = vst [vmem:[%s3861_s23 + $0x3c] sm:$0xf] %v2794_v47 }
  0x5a   : > { %596 = vst [vmem:[%s3861_s23 + $0x40] sm:$0xf] %v2795_v48  ;;  %v2796_v49 = vld [vmem:[%s3857_s18 + $0x1a0] sm:$0xf]  ;;  %v2797_v50 = vld [vmem:[%s3857_s18 + $0x1b8] sm:$0xf] }
  0x5b   : > { %v2798_v51 = vld [vmem:[%s3857_s18 + $0x1d0] sm:$0xf]  ;;  %598 = vst [vmem:[%s3861_s23 + $0x44] sm:$0xf] %v2796_v49  ;;  %600 = vst [vmem:[%s3861_s23 + $0x48] sm:$0xf] %v2797_v50 }
  0x5c   : > { %602 = vst [vmem:[%s3861_s23 + $0x4c] sm:$0xf] %v2798_v51  ;;  %v2799_v52 = vld [vmem:[%s3857_s18 + $0x1e8] sm:$0xf]  ;;  %v2800_v53 = vld [vmem:[%s3857_s18 + $0x200] sm:$0xf] }
  0x5d   : > { %v2801_v54 = vld [vmem:[%s3857_s18 + $0x218] sm:$0xf]  ;;  %604 = vst [vmem:[%s3861_s23 + $0x50] sm:$0xf] %v2799_v52  ;;  %606 = vst [vmem:[%s3861_s23 + $0x54] sm:$0xf] %v2800_v53 }
  0x5e   : > { %608 = vst [vmem:[%s3861_s23 + $0x58] sm:$0xf] %v2801_v54  ;;  %v2802_v55 = vld [vmem:[%s3857_s18 + $0x230] sm:$0xf]  ;;  %v2803_v56 = vld [vmem:[%s3857_s18 + $0x248] sm:$0xf] }
  0x5f   : > { %v2804_v57 = vld [vmem:[%s3857_s18 + $0x260] sm:$0xf]  ;;  %610 = vst [vmem:[%s3861_s23 + $0x5c] sm:$0xf] %v2802_v55  ;;  %612 = vst [vmem:[%s3861_s23 + $0x60] sm:$0xf] %v2803_v56 }
  0x60   : > { %614 = vst [vmem:[%s3861_s23 + $0x64] sm:$0xf] %v2804_v57  ;;  %v2805_v58 = vld [vmem:[%s3857_s18 + $0x278] sm:$0xf]  ;;  %v2806_v59 = vld [vmem:[%s3857_s18 + $0x290] sm:$0xf] }
  0x61   : > { %v2807_v60 = vld [vmem:[%s3857_s18 + $0x2a8] sm:$0xf]  ;;  %616 = vst [vmem:[%s3861_s23 + $0x68] sm:$0xf] %v2805_v58  ;;  %618 = vst [vmem:[%s3861_s23 + $0x6c] sm:$0xf] %v2806_v59 }
  0x62   : > { %620 = vst [vmem:[%s3861_s23 + $0x70] sm:$0xf] %v2807_v60  ;;  %v2808_v61 = vld [vmem:[%s3857_s18 + $0x2c0] sm:$0xf]  ;;  %v2809_v62 = vld [vmem:[%s3857_s18 + $0x2d8] sm:$0xf] }
  0x63   : > { %v2810_v63 = vld [vmem:[%s3857_s18 + $0x2f0] sm:$0xf]  ;;  %622 = vst [vmem:[%s3861_s23 + $0x74] sm:$0xf] %v2808_v61  ;;  %624 = vst [vmem:[%s3861_s23 + $0x78] sm:$0xf] %v2809_v62 }
  0x64   : > { %626 = vst [vmem:[%s3861_s23 + $0x7c] sm:$0xf] %v2810_v63 }
  0x65 PF: > { %713 = sbr.rel (!%p3770_p11) target bundleno = 132 (0x84), region = 118  ;;  %s715_s26 = sand.u32 (%p3770_p11), 1, %s3580_s10  }
  0x66   : > { %s2812_s9 = sshll.u32 (%p3770_p11), %s3608_s17, 2  ;;  %s2811_s24 = sshll.u32 (%p3770_p11), %s715_s26, 7 }
  0x67   : > { %s4854_s4 = sld [smem:[#allocation17_spill]] (%p3770_p11)  ;;  %s3936_s22 = scalar_lea.vmem (%p3770_p11), [#allocation5], %s2811_s24 }
  0x6d   : > { %s3932_s25 = scalar_lea.vmem %s4854_s4, %s2812_s9 }
  0x6e   : > { %v2813_v0 = vld [vmem:[%s3932_s25 + $0x10] sm:$0xf]  ;;  %v2814_v1 = vld [vmem:[%s3932_s25 + $0x28] sm:$0xf]  ;;  %v2815_v2 = vld [vmem:[%s3932_s25 + $0x40] sm:$0xf] }
  0x6f   : > { %737 = vst [vmem:[%s3936_s22] sm:$0xf] %v2813_v0  ;;  %739 = vst [vmem:[%s3936_s22 + $0x4] sm:$0xf] %v2814_v1  ;;  %v2816_v3 = vld [vmem:[%s3932_s25 + $0x58] sm:$0xf] }
  0x70   : > { %v2817_v4 = vld [vmem:[%s3932_s25 + $0x70] sm:$0xf]  ;;  %741 = vst [vmem:[%s3936_s22 + $0x8] sm:$0xf] %v2815_v2  ;;  %743 = vst [vmem:[%s3936_s22 + $0xc] sm:$0xf] %v2816_v3 }
  0x71   : > { %745 = vst [vmem:[%s3936_s22 + $0x10] sm:$0xf] %v2817_v4  ;;  %v2818_v5 = vld [vmem:[%s3932_s25 + $0x88] sm:$0xf]  ;;  %v2819_v6 = vld [vmem:[%s3932_s25 + $0xa0] sm:$0xf] }
  0x72   : > { %v2820_v7 = vld [vmem:[%s3932_s25 + $0xb8] sm:$0xf]  ;;  %747 = vst [vmem:[%s3936_s22 + $0x14] sm:$0xf] %v2818_v5  ;;  %749 = vst [vmem:[%s3936_s22 + $0x18] sm:$0xf] %v2819_v6 }
  0x73   : > { %751 = vst [vmem:[%s3936_s22 + $0x1c] sm:$0xf] %v2820_v7  ;;  %v2821_v8 = vld [vmem:[%s3932_s25 + $0xd0] sm:$0xf]  ;;  %v2822_v9 = vld [vmem:[%s3932_s25 + $0xe8] sm:$0xf] }
  0x74   : > { %v2823_v10 = vld [vmem:[%s3932_s25 + $0x100] sm:$0xf]  ;;  %753 = vst [vmem:[%s3936_s22 + $0x20] sm:$0xf] %v2821_v8  ;;  %755 = vst [vmem:[%s3936_s22 + $0x24] sm:$0xf] %v2822_v9 }
  0x75   : > { %757 = vst [vmem:[%s3936_s22 + $0x28] sm:$0xf] %v2823_v10  ;;  %v2824_v11 = vld [vmem:[%s3932_s25 + $0x118] sm:$0xf]  ;;  %v2825_v12 = vld [vmem:[%s3932_s25 + $0x130] sm:$0xf] }
  0x76   : > { %v2826_v13 = vld [vmem:[%s3932_s25 + $0x148] sm:$0xf]  ;;  %759 = vst [vmem:[%s3936_s22 + $0x2c] sm:$0xf] %v2824_v11  ;;  %761 = vst [vmem:[%s3936_s22 + $0x30] sm:$0xf] %v2825_v12 }
  0x77   : > { %763 = vst [vmem:[%s3936_s22 + $0x34] sm:$0xf] %v2826_v13  ;;  %v2827_v14 = vld [vmem:[%s3932_s25 + $0x160] sm:$0xf]  ;;  %v2828_v15 = vld [vmem:[%s3932_s25 + $0x178] sm:$0xf] }
  0x78   : > { %v2829_v16 = vld [vmem:[%s3932_s25 + $0x190] sm:$0xf]  ;;  %765 = vst [vmem:[%s3936_s22 + $0x38] sm:$0xf] %v2827_v14  ;;  %767 = vst [vmem:[%s3936_s22 + $0x3c] sm:$0xf] %v2828_v15 }
  0x79   : > { %769 = vst [vmem:[%s3936_s22 + $0x40] sm:$0xf] %v2829_v16  ;;  %v2830_v17 = vld [vmem:[%s3932_s25 + $0x1a8] sm:$0xf]  ;;  %v2831_v18 = vld [vmem:[%s3932_s25 + $0x1c0] sm:$0xf] }
  0x7a   : > { %v2832_v19 = vld [vmem:[%s3932_s25 + $0x1d8] sm:$0xf]  ;;  %771 = vst [vmem:[%s3936_s22 + $0x44] sm:$0xf] %v2830_v17  ;;  %773 = vst [vmem:[%s3936_s22 + $0x48] sm:$0xf] %v2831_v18 }
  0x7b   : > { %775 = vst [vmem:[%s3936_s22 + $0x4c] sm:$0xf] %v2832_v19  ;;  %v2833_v20 = vld [vmem:[%s3932_s25 + $0x1f0] sm:$0xf]  ;;  %v2834_v21 = vld [vmem:[%s3932_s25 + $0x208] sm:$0xf] }
  0x7c   : > { %v2835_v22 = vld [vmem:[%s3932_s25 + $0x220] sm:$0xf]  ;;  %777 = vst [vmem:[%s3936_s22 + $0x50] sm:$0xf] %v2833_v20  ;;  %779 = vst [vmem:[%s3936_s22 + $0x54] sm:$0xf] %v2834_v21 }
  0x7d   : > { %781 = vst [vmem:[%s3936_s22 + $0x58] sm:$0xf] %v2835_v22  ;;  %v2836_v23 = vld [vmem:[%s3932_s25 + $0x238] sm:$0xf]  ;;  %v2837_v24 = vld [vmem:[%s3932_s25 + $0x250] sm:$0xf] }
  0x7e   : > { %v2838_v25 = vld [vmem:[%s3932_s25 + $0x268] sm:$0xf]  ;;  %783 = vst [vmem:[%s3936_s22 + $0x5c] sm:$0xf] %v2836_v23  ;;  %785 = vst [vmem:[%s3936_s22 + $0x60] sm:$0xf] %v2837_v24 }
  0x7f   : > { %787 = vst [vmem:[%s3936_s22 + $0x64] sm:$0xf] %v2838_v25  ;;  %v2839_v26 = vld [vmem:[%s3932_s25 + $0x280] sm:$0xf]  ;;  %v2840_v27 = vld [vmem:[%s3932_s25 + $0x298] sm:$0xf] }
  0x80   : > { %v2841_v28 = vld [vmem:[%s3932_s25 + $0x2b0] sm:$0xf]  ;;  %789 = vst [vmem:[%s3936_s22 + $0x68] sm:$0xf] %v2839_v26  ;;  %791 = vst [vmem:[%s3936_s22 + $0x6c] sm:$0xf] %v2840_v27 }
  0x81   : > { %793 = vst [vmem:[%s3936_s22 + $0x70] sm:$0xf] %v2841_v28  ;;  %v2842_v29 = vld [vmem:[%s3932_s25 + $0x2c8] sm:$0xf]  ;;  %v2843_v30 = vld [vmem:[%s3932_s25 + $0x2e0] sm:$0xf] }
  0x82   : > { %v2844_v31 = vld [vmem:[%s3932_s25 + $0x2f8] sm:$0xf]  ;;  %795 = vst [vmem:[%s3936_s22 + $0x74] sm:$0xf] %v2842_v29  ;;  %797 = vst [vmem:[%s3936_s22 + $0x78] sm:$0xf] %v2843_v30 }
  0x83   : > { %799 = vst [vmem:[%s3936_s22 + $0x7c] sm:$0xf] %v2844_v31 }
  0x84 PF: > { %p2845_p13 = scmp.ge.s32.totalorder %s3616_s19, 1  ;;  %p885_p0 = scmp.lt.s32.totalorder %s3616_s19, 5 }
  0x86   : > { %p886_p1 = pnand %p2845_p13, %p885_p0 }
  0x88   : > { %889 = sbr.rel (%p886_p1) target bundleno = 818 (0x332), region = 159 }
  0x8f   : > { %s892_s6 = sand.u32 1, %s3592_s13   ;;  %s899_s1 = sand.u32 1, %s3584_s11  }
  0x90   : > { %s2846_s18 = sshll.u32 %s892_s6, 7  ;;  %s2847_s23 = sshll.u32 %s899_s1, 7 }
  0x91   : > { %s906_s26 = sand.u32 1, %s3576_s30   ;;  %s2849_s9 = sshll.u32 %s3604_s16, 4 }
  0x92   : > { %s2848_s24 = sshll.u32 %s906_s26, 7  ;;  %p996_p2 = scmp.lt.s32.totalorder %s2849_s9, 31 }
  0x93   : > { %s2852_s28 = sshll.u32 %s3604_s16, 1  ;;  %s4028_s2 = scalar_lea.vmem [#allocation3], %s2846_s18 }
  0x94   : > { %s4888_s9 = smov (!%p996_p2, %s2849_s9), 31  ;;  %s1018_s29 = sadd.s32 %s3600_s15, %s2852_s28 }
  0x95   : > { %s2960_s25 = sshll.u32 %s4888_s9, 4  ;;  %p1020_p3 = scmp.lt.s32.totalorder %s1018_s29, 3 }
  0x96   : > { %s4011_s3 = scalar_lea.vmem %s4820_s0, %s2960_s25  ;;  %s4855_s28 = sld [smem:[#allocation20_spill]] }
  0x97   : > { %s4890_s29 = smov (!%p1020_p3, %s1018_s29), 3  ;;  %s4030_s25 = scalar_lea.vmem [#allocation4], %s2847_s23 }
  0x98   : > { %s2961_s4 = sshll.u32 %s4890_s29, 6  ;;  %s4032_s29 = scalar_lea.vmem [#allocation5], %s2848_s24 }
  0x99   : > { %s4016_s6 = scalar_lea.vmem %s4827_s7, %s2961_s4  ;;  %s4021_s16 = scalar_lea.vmem %s4828_s8, %s2961_s4 }
  0x9a   : > { %p2861_p4 = scmp.ne.s32.totalorder %s3600_s15, 0 }
  0x9b   : > { %v4036_v32 = vld [vmem:[%s4011_s3 + $0x20] sm:$0xff] (!%p2861_p4)  ;;  %v4039_v33 = vld [vmem:[%s4011_s3 + $0x28] sm:$0xff] (!%p2861_p4)  ;;  %v4054_v39 = vld [vmem:[%s4011_s3 + $0x30] sm:$0xff] (!%p2861_p4)  ;;  %s4856_s15 = sld [smem:[#allocation14_spill]] (!%p2861_p4) }
  0x9c   : > { %s4026_s20 = scalar_lea.vmem %s4855_s28, %s2961_s4  ;;  %1063 = sbr.rel (%p2861_p4) target bundleno = 358 (0x166), region = 175  ;;  %v4042_v34 = vld [vmem:[%s4011_s3] sm:$0xff] (!%p2861_p4)  ;;  %v1100_v35 = vmul.f32 (!%p2861_p4), %v4036_v32, %v4036_v32  ;;  %v1101_v36 = vmul.f32 (!%p2861_p4), %v4039_v33, %v4039_v33  ;;  %v4049_v37 = vld [vmem:[%s4011_s3 + $0x8] sm:$0xff] (!%p2861_p4)  ;;  %v4057_v40 = vld [vmem:[%s4011_s3 + $0x38] sm:$0xff] (!%p2861_p4)  ;;  %v1102_v42 = vmul.f32 (!%p2861_p4), %v4054_v39, %v4054_v39 }
  0x9d   : > { %v1096_v38 = vmul.f32 (!%p2861_p4), %v4042_v34, %v4042_v34  ;;  %v1097_v41 = vmul.f32 (!%p2861_p4), %v4049_v37, %v4049_v37  ;;  %v1103_v43 = vmul.f32 (!%p2861_p4), %v4057_v40, %v4057_v40  ;;  %v4066_v44 = vld [vmem:[%s4011_s3 + $0x10] sm:$0xff] (!%p2861_p4)  ;;  %v4069_v45 = vld [vmem:[%s4011_s3 + $0x18] sm:$0xff] (!%p2861_p4)  ;;  %v4082_v51 = vld [vmem:[%s4011_s3 + $0x40] sm:$0xff] (!%p2861_p4) }
  0x9e   : > { %v4072_v46 = vld [vmem:[%s4011_s3 + $0x50] sm:$0xff] (!%p2861_p4)  ;;  %v1134_v47 = vadd.f32 (!%p2861_p4), %v1101_v36, %v1100_v35  ;;  %v1098_v48 = vmul.f32 (!%p2861_p4), %v4066_v44, %v4066_v44  ;;  %v1099_v49 = vmul.f32 (!%p2861_p4), %v4069_v45, %v4069_v45  ;;  %v4079_v50 = vld [vmem:[%s4011_s3 + $0x58] sm:$0xff] (!%p2861_p4)  ;;  %v4085_v52 = vld [vmem:[%s4011_s3 + $0x48] sm:$0xff] (!%p2861_p4)  ;;  %v1104_v58 = vmul.f32 (!%p2861_p4), %v4082_v51, %v4082_v51 }
  0x9f   : > { %v1128_v53 = vadd.f32 (!%p2861_p4), %v1097_v41, %v1096_v38  ;;  %v1137_v54 = vadd.f32 (!%p2861_p4), %v1103_v43, %v1102_v42  ;;  %v1106_v55 = vmul.f32 (!%p2861_p4), %v4072_v46, %v4072_v46  ;;  %v1107_v56 = vmul.f32 (!%p2861_p4), %v4079_v50, %v4079_v50  ;;  %v4096_v60 = vld [vmem:[%s4011_s3 + $0x70] sm:$0xff] (!%p2861_p4)  ;;  %v4099_v61 = vld [vmem:[%s4011_s3 + $0x78] sm:$0xff] (!%p2861_p4)  ;;  %v4102_v62 = vld [vmem:[%s4011_s3 + $0x60] sm:$0xff] (!%p2861_p4) }
  0xa0   : > { %1135 = vadd.xlane.f32.xlu1 (!%p2861_p4), %v1134_v47  ;;  %v1131_v57 = vadd.f32 (!%p2861_p4), %v1099_v49, %v1098_v48  ;;  %v1105_v59 = vmul.f32 (!%p2861_p4), %v4085_v52, %v4085_v52  ;;  %v4105_v63 = vld [vmem:[%s4011_s3 + $0x68] sm:$0xff] (!%p2861_p4)  ;;  %v1110_v1 = vmul.f32 (!%p2861_p4), %v4096_v60, %v4096_v60  ;;  %v1111_v2 = vmul.f32 (!%p2861_p4), %v4099_v61, %v4099_v61  ;;  %v4116_v6 = vld [vmem:[%s4011_s3 + $0x90] sm:$0xff] (!%p2861_p4)  ;;  %v4119_v7 = vld [vmem:[%s4011_s3 + $0x98] sm:$0xff] (!%p2861_p4) }
  0xa1   : > { %1129 = vadd.xlane.f32.xlu0 (!%p2861_p4), %v1128_v53  ;;  %v1143_v0 = vadd.f32 (!%p2861_p4), %v1107_v56, %v1106_v55  ;;  %v1108_v4 = vmul.f32 (!%p2861_p4), %v4102_v62, %v4102_v62  ;;  %v1109_v5 = vmul.f32 (!%p2861_p4), %v4105_v63, %v4105_v63  ;;  %v4122_v8 = vld [vmem:[%s4011_s3 + $0x80] sm:$0xff] (!%p2861_p4)  ;;  %v4125_v9 = vld [vmem:[%s4011_s3 + $0x88] sm:$0xff] (!%p2861_p4)  ;;  %v1114_v11 = vmul.f32 (!%p2861_p4), %v4116_v6, %v4116_v6  ;;  %v4136_v16 = vld [vmem:[%s4011_s3 + $0xb0] sm:$0xff] (!%p2861_p4) }
  0xa2   : > { %v1140_v3 = vadd.f32 (!%p2861_p4), %v1105_v59, %v1104_v58  ;;  %v1149_v10 = vadd.f32 (!%p2861_p4), %v1111_v2, %v1110_v1  ;;  %v1115_v12 = vmul.f32 (!%p2861_p4), %v4119_v7, %v4119_v7  ;;  %v1112_v14 = vmul.f32 (!%p2861_p4), %v4122_v8, %v4122_v8  ;;  %v4139_v17 = vld [vmem:[%s4011_s3 + $0xb8] sm:$0xff] (!%p2861_p4)  ;;  %v4142_v18 = vld [vmem:[%s4011_s3 + $0xa0] sm:$0xff] (!%p2861_p4)  ;;  %v4145_v19 = vld [vmem:[%s4011_s3 + $0xa8] sm:$0xff] (!%p2861_p4) }
  0xa3   : > { %v1146_v13 = vadd.f32 %v1109_v5, %v1108_v4  ;;  %v1113_v15 = vmul.f32 %v4125_v9, %v4125_v9  ;;  %v1118_v21 = vmul.f32 %v4136_v16, %v4136_v16  ;;  %v1119_v22 = vmul.f32 %v4139_v17, %v4139_v17  ;;  %v4156_v26 = vld [vmem:[%s4011_s3 + $0xd0] sm:$0xff]  ;;  %v4159_v27 = vld [vmem:[%s4011_s3 + $0xd8] sm:$0xff]  ;;  %v4162_v28 = vld [vmem:[%s4011_s3 + $0xc0] sm:$0xff] }
  0xa4   : > { %1138 = vadd.xlane.f32.xlu1 %v1137_v54  ;;  %v1155_v20 = vadd.f32 %v1115_v12, %v1114_v11  ;;  %v1116_v24 = vmul.f32 %v4142_v18, %v4142_v18  ;;  %v1117_v25 = vmul.f32 %v4145_v19, %v4145_v19  ;;  %v4165_v29 = vld [vmem:[%s4011_s3 + $0xc8] sm:$0xff]  ;;  %v1122_v31 = vmul.f32 %v4156_v26, %v4156_v26  ;;  %v4176_v42 = vld [vmem:[%s4011_s3 + $0xf0] sm:$0xff]  ;;  %v4179_v43 = vld [vmem:[%s4011_s3 + $0xf8] sm:$0xff] }
  0xa5   : > { %1132 = vadd.xlane.f32.xlu0 %v1131_v57  ;;  %v1152_v23 = vadd.f32 %v1113_v15, %v1112_v14  ;;  %v1161_v30 = vadd.f32 %v1119_v22, %v1118_v21  ;;  %v1123_v35 = vmul.f32 %v4159_v27, %v4159_v27  ;;  %v1120_v38 = vmul.f32 %v4162_v28, %v4162_v28  ;;  %v4182_v47 = vld [vmem:[%s4011_s3 + $0xe0] sm:$0xff]  ;;  %v4185_v48 = vld [vmem:[%s4011_s3 + $0xe8] sm:$0xff] }
  0xa6   : > { %v1158_v36 = vadd.f32 %v1117_v25, %v1116_v24  ;;  %v1121_v41 = vmul.f32 %v4165_v29, %v4165_v29  ;;  %v1126_v53 = vmul.f32 %v4176_v42, %v4176_v42  ;;  %v1127_v54 = vmul.f32 %v4179_v43, %v4179_v43 }
  0xa7   : > { %v1167_v49 = vadd.f32 %v1123_v35, %v1122_v31  ;;  %v1124_v56 = vmul.f32 %v4182_v47, %v4182_v47  ;;  %v1125_v57 = vmul.f32 %v4185_v48, %v4185_v48  ;;  %v1259_v4 = vlaneseq }
  0xa8   : > { %1144 = vadd.xlane.f32.xlu1 %v1143_v0  ;;  %v1164_v55 = vadd.f32 %v1121_v41, %v1120_v38  ;;  %v1173_v58 = vadd.f32 %v1127_v54, %v1126_v53 }
  0xa9   : > { %1141 = vadd.xlane.f32.xlu0 %v1140_v3  ;;  %v1170_v59 = vadd.f32 %v1125_v57, %v1124_v56  ;;  %v1260_v15 = vshrl.u32 %v1259_v4, 7 }
  0xab   : > { %v1265_v31 = vsub.s32 1, %v1260_v15 }
  0xac   : > { %1150 = vadd.xlane.f32.xlu1 %v1149_v10 }
  0xad   : > { %1147 = vadd.xlane.f32.xlu0 %v1146_v13 }
  0xb0   : > { %1156 = vadd.xlane.f32.xlu1 %v1155_v20 }
  0xb1   : > { %1153 = vadd.xlane.f32.xlu0 %v1152_v23 }
  0xb4   : > { %1162 = vadd.xlane.f32.xlu1 %v1161_v30  ;;  %v1261_v30 = vsub.s32 0, %v1260_v15 }
  0xb5   : > { %1159 = vadd.xlane.f32.xlu0 %v1158_v36  ;;  %v1257_v36 = vld [vmem:[%s4856_s15] sm:$0x3] }
  0xb6   : > { %v4198_v56 = vrot.slane %v1257_v36, %v1261_v30  ;;  %v4200_v57 = vrot.slane %v1257_v36, %v1265_v31 }
  0xb8   : > { %1168 = vadd.xlane.f32.xlu1 %v1167_v49 }
  0xb9   : > { %1165 = vadd.xlane.f32.xlu0 %v1164_v55 }
  0xbc   : > { %1174 = vadd.xlane.f32.xlu1 %v1173_v58 }
  0xbd   : > { %1171 = vadd.xlane.f32.xlu0 %v1170_v59 }
 0x12d   : > { %v1136_v0 = vpop.xlane.xlu1 %1135 }
 0x12e   : > { %v1179_v1 = vmul.f32 0.00390625, %v1136_v0  ;;  %v1130_v2 = vpop.xlane.xlu0 %1129 }
 0x12f   : > { %v1177_v3 = vmul.f32 0.00390625, %v1130_v2 }
 0x130   : > { %v1195_v5 = vadd.f32 1e-06, %v1179_v1 }
 0x131   : > { %v1193_v10 = vadd.f32 1e-06, %v1177_v3  ;;  %v1139_v11 = vpop.xlane.xlu1 %1138 }
 0x132   : > { %3450 = vrsqrt.f32 %v1195_v5  ;;  %v1180_v12 = vmul.f32 0.00390625, %v1139_v11  ;;  %v1133_v13 = vpop.xlane.xlu0 %1132 }
 0x133   : > { %3452 = vrsqrt.f32 %v1193_v10  ;;  %v1178_v14 = vmul.f32 0.00390625, %v1133_v13 }
 0x134   : > { %v1196_v20 = vadd.f32 1e-06, %v1180_v12 }
 0x135   : > { %v1194_v21 = vadd.f32 1e-06, %v1178_v14  ;;  %v1145_v22 = vpop.xlane.xlu1 %1144 }
 0x136   : > { %3454 = vrsqrt.f32 %v1196_v20  ;;  %v1182_v23 = vmul.f32 0.00390625, %v1145_v22  ;;  %v1142_v24 = vpop.xlane.xlu0 %1141 }
 0x137   : > { %3456 = vrsqrt.f32 %v1194_v21  ;;  %v1181_v25 = vmul.f32 0.00390625, %v1142_v24 }
 0x138   : > { %v1198_v35 = vadd.f32 1e-06, %v1182_v23 }
 0x139   : > { %v1197_v38 = vadd.f32 1e-06, %v1181_v25  ;;  %v1151_v41 = vpop.xlane.xlu1 %1150 }
 0x13a   : > { %3458 = vrsqrt.f32 %v1198_v35  ;;  %v1184_v49 = vmul.f32 0.00390625, %v1151_v41  ;;  %v1148_v53 = vpop.xlane.xlu0 %1147 }
 0x13b   : > { %3460 = vrsqrt.f32 %v1197_v38  ;;  %v1183_v54 = vmul.f32 0.00390625, %v1148_v53 }
 0x13c   : > { %v3451_v55 = vpop.eup %3450  ;;  %v1200_v58 = vadd.f32 1e-06, %v1184_v49 }
 0x13d   : > { %v3453_v59 = vpop.eup %3452  ;;  %v1229_v0 = vmul.f32 %v3451_v55, %v4036_v32  ;;  %v1230_v1 = vmul.f32 %v3451_v55, %v4039_v33  ;;  %v1199_v2 = vadd.f32 1e-06, %v1183_v54  ;;  %v1157_v3 = vpop.xlane.xlu1 %1156 }
 0x13e   : > { %v1225_v4 = vmul.f32 %v3453_v59, %v4042_v34  ;;  %3462 = vrsqrt.f32 %v1200_v58  ;;  %v1186_v5 = vmul.f32 0.00390625, %v1157_v3  ;;  %v1154_v10 = vpop.xlane.xlu0 %1153  ;;  %v1226_v15 = vmul.f32 %v3453_v59, %v4049_v37 }
 0x13f   : > { %3464 = vrsqrt.f32 %v1199_v2  ;;  %v1185_v11 = vmul.f32 0.00390625, %v1154_v10  ;;  %v1273_v13 = vmul.f32 %v4198_v56, %v1229_v0  ;;  %v1274_v14 = vmul.f32 %v4200_v57, %v1230_v1 }
 0x140   : > { %v3455_v12 = vpop.eup %3454  ;;  %v1202_v20 = vadd.f32 1e-06, %v1186_v5  ;;  %v1269_v33 = vmul.f32 %v4198_v56, %v1225_v4 }
 0x141   : > { %v3457_v32 = vpop.eup %3456  ;;  %v1231_v21 = vmul.f32 %v3455_v12, %v4054_v39  ;;  %v1232_v34 = vmul.f32 %v3455_v12, %v4057_v40  ;;  %v1201_v22 = vadd.f32 1e-06, %v1185_v11  ;;  %v1163_v23 = vpop.xlane.xlu1 %1162  ;;  %v1270_v39 = vmul.f32 %v4200_v57, %v1226_v15 }
 0x142   : > { %v1227_v24 = vmul.f32 %v3457_v32, %v4066_v44  ;;  %v1228_v25 = vmul.f32 %v3457_v32, %v4069_v45  ;;  %3466 = vrsqrt.f32 %v1202_v20  ;;  %v1188_v30 = vmul.f32 0.00390625, %v1163_v23  ;;  %v1160_v31 = vpop.xlane.xlu0 %1159 }
 0x143   : > { %v1275_v35 = vmul.f32 %v4198_v56, %v1231_v21  ;;  %v1276_v37 = vmul.f32 %v4200_v57, %v1232_v34  ;;  %3468 = vrsqrt.f32 %v1201_v22  ;;  %v1187_v36 = vmul.f32 0.00390625, %v1160_v31 }
 0x144   : > { %v3459_v38 = vpop.eup %3458  ;;  %v1271_v40 = vmul.f32 %v4198_v56, %v1227_v24  ;;  %v1272_v41 = vmul.f32 %v4200_v57, %v1228_v25  ;;  %v1204_v49 = vadd.f32 1e-06, %v1188_v30 }
 0x145   : > { %v3461_v44 = vpop.eup %3460  ;;  %v1303_v53 = vpack.c.bf16 %v1275_v35, %v1273_v13  ;;  %v1304_v45 = vpack.c.bf16 %v1276_v37, %v1274_v14  ;;  %v1235_v54 = vmul.f32 %v3459_v38, %v4072_v46  ;;  %v1236_v55 = vmul.f32 %v3459_v38, %v4079_v50  ;;  %v1169_v58 = vpop.xlane.xlu1 %1168 }
 0x146   : > { %v1301_v59 = vpack.c.bf16 %v1271_v40, %v1269_v33  ;;  %v1302_v0 = vpack.c.bf16 %v1272_v41, %v1270_v39  ;;  %v1233_v1 = vmul.f32 %v3461_v44, %v4082_v51  ;;  %v1234_v2 = vmul.f32 %v3461_v44, %v4085_v52  ;;  %v1166_v3 = vpop.xlane.xlu0 %1165 }
 0x147   : > { %1319 = vst [vmem:[#allocation2 + $0x10] sm:$0xff] %v1303_v53  ;;  %1320 = vst [vmem:[#allocation2 + $0x18] sm:$0xff] %v1304_v45  ;;  %v1279_v4 = vmul.f32 %v4198_v56, %v1235_v54  ;;  %v1280_v5 = vmul.f32 %v4200_v57, %v1236_v55  ;;  %3470 = vrsqrt.f32 %v1204_v49  ;;  %v1203_v10 = vadd.f32 1e-06, %v1187_v36 }
 0x148   : > { %v3463_v11 = vpop.eup %3462  ;;  %1317 = vst [vmem:[#allocation2] sm:$0xff] %v1301_v59  ;;  %1318 = vst [vmem:[#allocation2 + $0x8] sm:$0xff] %v1302_v0  ;;  %v1277_v46 = vmul.f32 %v4198_v56, %v1233_v1  ;;  %v1278_v50 = vmul.f32 %v4200_v57, %v1234_v2  ;;  %v1190_v12 = vmul.f32 0.00390625, %v1169_v58  ;;  %v1189_v51 = vmul.f32 0.00390625, %v1166_v3 }
 0x149   : > { %v3465_v13 = vpop.eup %3464  ;;  %v1239_v52 = vmul.f32 %v3463_v11, %v4096_v60  ;;  %v1240_v14 = vmul.f32 %v3463_v11, %v4099_v61  ;;  %3472 = vrsqrt.f32 %v1203_v10  ;;  %v1175_v15 = vpop.xlane.xlu1 %1174 }
 0x14a   : > { %v1305_v20 = vpack.c.bf16 %v1279_v4, %v1277_v46  ;;  %v1306_v32 = vpack.c.bf16 %v1280_v5, %v1278_v50  ;;  %v1237_v33 = vmul.f32 %v3465_v13, %v4102_v62  ;;  %v1238_v21 = vmul.f32 %v3465_v13, %v4105_v63  ;;  %v1172_v34 = vpop.xlane.xlu0 %1171 }
 0x14b   : > { %v1283_v22 = vmul.f32 %v4198_v56, %v1239_v52  ;;  %v1284_v23 = vmul.f32 %v4200_v57, %v1240_v14  ;;  %v1206_v24 = vadd.f32 1e-06, %v1190_v12  ;;  %v1205_v25 = vadd.f32 1e-06, %v1189_v51 }
 0x14c   : > { %v3467_v30 = vpop.eup %3466  ;;  %1321 = vst [vmem:[#allocation2 + $0x20] sm:$0xff] %v1305_v20  ;;  %1322 = vst [vmem:[#allocation2 + $0x28] sm:$0xff] %v1306_v32  ;;  %v1281_v60 = vmul.f32 %v4198_v56, %v1237_v33  ;;  %v1282_v61 = vmul.f32 %v4200_v57, %v1238_v21  ;;  %v1192_v31 = vmul.f32 0.00390625, %v1175_v15  ;;  %v1191_v35 = vmul.f32 0.00390625, %v1172_v34 }
 0x14d   : > { %v3469_v37 = vpop.eup %3468  ;;  %v1243_v62 = vmul.f32 %v3467_v30, %v4116_v6  ;;  %v1244_v63 = vmul.f32 %v3467_v30, %v4119_v7  ;;  %3474 = vrsqrt.f32 %v1206_v24 }
 0x14e   : > { %v1307_v36 = vpack.c.bf16 %v1283_v22, %v1281_v60  ;;  %v1308_v38 = vpack.c.bf16 %v1284_v23, %v1282_v61  ;;  %v1241_v39 = vmul.f32 %v3469_v37, %v4122_v8  ;;  %v1242_v40 = vmul.f32 %v3469_v37, %v4125_v9 }
 0x14f   : > { %v1287_v41 = vmul.f32 %v4198_v56, %v1243_v62  ;;  %v1288_v49 = vmul.f32 %v4200_v57, %v1244_v63  ;;  %3476 = vrsqrt.f32 %v1205_v25  ;;  %v1208_v44 = vadd.f32 1e-06, %v1192_v31 }
 0x150   : > { %1323 = vst [vmem:[#allocation2 + $0x30] sm:$0xff] %v1307_v36  ;;  %1324 = vst [vmem:[#allocation2 + $0x38] sm:$0xff] %v1308_v38  ;;  %v1285_v53 = vmul.f32 %v4198_v56, %v1241_v39  ;;  %v1286_v6 = vmul.f32 %v4200_v57, %v1242_v40  ;;  %v1207_v7 = vadd.f32 1e-06, %v1191_v35 }
 0x151   : > { %v3471_v45 = vpop.eup %3470  ;;  %3478 = vrsqrt.f32 %v1208_v44 }
 0x152   : > { %v1309_v54 = vpack.c.bf16 %v1287_v41, %v1285_v53  ;;  %v1310_v55 = vpack.c.bf16 %v1288_v49, %v1286_v6  ;;  %v1247_v8 = vmul.f32 %v3471_v45, %v4136_v16  ;;  %v1248_v9 = vmul.f32 %v3471_v45, %v4139_v17 }
 0x153   : > { %v3473_v58 = vpop.eup %3472  ;;  %3480 = vrsqrt.f32 %v1207_v7 }
 0x154   : > { %1325 = vst [vmem:[#allocation2 + $0x40] sm:$0xff] %v1309_v54  ;;  %1326 = vst [vmem:[#allocation2 + $0x48] sm:$0xff] %v1310_v55  ;;  %v1291_v59 = vmul.f32 %v4198_v56, %v1247_v8  ;;  %v1292_v0 = vmul.f32 %v4200_v57, %v1248_v9  ;;  %v1245_v1 = vmul.f32 %v3473_v58, %v4142_v18 }
 0x155   : > { %v1246_v2 = vmul.f32 %v3473_v58, %v4145_v19 }
 0x156   : > { %v1289_v3 = vmul.f32 %v4198_v56, %v1245_v1 }
 0x157   : > { %v1290_v4 = vmul.f32 %v4200_v57, %v1246_v2  ;;  %v3475_v5 = vpop.eup %3474 }
 0x158   : > { %v1311_v16 = vpack.c.bf16 %v1291_v59, %v1289_v3  ;;  %v1251_v17 = vmul.f32 %v3475_v5, %v4156_v26  ;;  %v1252_v11 = vmul.f32 %v3475_v5, %v4159_v27 }
 0x159   : > { %v1312_v10 = vpack.c.bf16 %v1292_v0, %v1290_v4  ;;  %v3477_v46 = vpop.eup %3476 }
 0x15a   : > { %1327 = vst [vmem:[#allocation2 + $0x50] sm:$0xff] %v1311_v16  ;;  %v1295_v50 = vmul.f32 %v4198_v56, %v1251_v17  ;;  %v1296_v18 = vmul.f32 %v4200_v57, %v1252_v11  ;;  %v1249_v19 = vmul.f32 %v3477_v46, %v4162_v28  ;;  %v1250_v12 = vmul.f32 %v3477_v46, %v4165_v29 }
 0x15b   : > { %1328 = vst [vmem:[#allocation2 + $0x58] sm:$0xff] %v1312_v10  ;;  %v3479_v51 = vpop.eup %3478 }
 0x15c   : > { %v1293_v13 = vmul.f32 %v4198_v56, %v1249_v19  ;;  %v1294_v52 = vmul.f32 %v4200_v57, %v1250_v12  ;;  %v1255_v26 = vmul.f32 %v3479_v51, %v4176_v42  ;;  %v1256_v27 = vmul.f32 %v3479_v51, %v4179_v43 }
 0x15d   : > { %v3481_v14 = vpop.eup %3480 }
 0x15e   : > { %v1313_v15 = vpack.c.bf16 %v1295_v50, %v1293_v13  ;;  %v1314_v20 = vpack.c.bf16 %v1296_v18, %v1294_v52  ;;  %v1299_v32 = vmul.f32 %v4198_v56, %v1255_v26  ;;  %v1300_v33 = vmul.f32 %v4200_v57, %v1256_v27 }
 0x15f   : > { %v1253_v28 = vmul.f32 %v3481_v14, %v4182_v47  ;;  %v1254_v29 = vmul.f32 %v3481_v14, %v4185_v48 }
 0x160   : > { %1329 = vst [vmem:[#allocation2 + $0x60] sm:$0xff] %v1313_v15  ;;  %1330 = vst [vmem:[#allocation2 + $0x68] sm:$0xff] %v1314_v20 }
 0x161   : > { %v1297_v21 = vmul.f32 %v4198_v56, %v1253_v28  ;;  %v1298_v34 = vmul.f32 %v4200_v57, %v1254_v29 }
 0x163   : > { %v1315_v42 = vpack.c.bf16 %v1299_v32, %v1297_v21  ;;  %v1316_v22 = vpack.c.bf16 %v1300_v33, %v1298_v34 }
 0x165   : > { %1331 = vst [vmem:[#allocation2 + $0x70] sm:$0xff] %v1315_v42  ;;  %1332 = vst [vmem:[#allocation2 + $0x78] sm:$0xff] %v1316_v22 }
 0x166 PF: > { %v3482_v43 = vld [vmem:[%s4028_s2 + $0x40] sm:$0xff]   ;;  %v3484_v48 = vld [vmem:[%s4028_s2 + $0x48] sm:$0xff]   ;;  %v3486_v57 = vld [vmem:[%s4028_s2 + $0x50] sm:$0xff]   ;;  %s3618_s18 = smov 64   ;;  %s4860_s22 = sld [smem:[#allocation18_spill]] }
 0x167   : > { %v3483_v47 = vld [vmem:[%s4028_s2] sm:$0xff]   ;;  %3153 = vmatprep.subr.bf16.mxu0 %v3482_v43  ;;  %3345 = vmatprep.subr.bf16.mxu1 %v3482_v43  ;;  %v3485_v56 = vld [vmem:[%s4028_s2 + $0x8] sm:$0xff]   ;;  %v3487_v23 = vld [vmem:[%s4028_s2 + $0x10] sm:$0xff]   ;;  %s4861_s30 = sld [smem:[#allocation19_spill]] }
 0x168   : > { %3154 = vmatpush3.bf16.msra.mxu0 %v3483_v47  ;;  %3353 = vmatpush3.bf16.msra.mxu1 %v3483_v47  ;;  %v3488_v24 = vld [vmem:[%s4028_s2 + $0x58] sm:$0xff]   ;;  %v3490_v30 = vld [vmem:[%s4028_s2 + $0x60] sm:$0xff]   ;;  %v3492_v61 = vld [vmem:[%s4028_s2 + $0x68] sm:$0xff]  }
 0x169   : > { %3155 = vmatprep.subr.bf16.mxu0 %v3484_v48  ;;  %3346 = vmatprep.subr.bf16.mxu1 %v3484_v48  ;;  %v3489_v25 = vld [vmem:[%s4028_s2 + $0x18] sm:$0xff]   ;;  %v3491_v60 = vld [vmem:[%s4028_s2 + $0x20] sm:$0xff]   ;;  %v4277_v31 = vld [vmem:[#allocation2 + $0x8] sm:$0xff] }
 0x16a   : > { %v4279_v35 = vld [vmem:[#allocation2 + $0x48] sm:$0xff]  ;;  %1541 = vmatprep.mubr.bf16.mxu0 %v4277_v31  ;;  %v3494_v62 = vld [vmem:[%s4028_s2 + $0x70] sm:$0xff]   ;;  %v3496_v36 = vld [vmem:[%s4028_s2 + $0x78] sm:$0xff]  }
 0x16b   : > { %1573 = vmatprep.mubr.bf16.mxu1 %v4279_v35  ;;  %v3493_v37 = vld [vmem:[%s4028_s2 + $0x28] sm:$0xff]   ;;  %v3495_v63 = vld [vmem:[%s4028_s2 + $0x30] sm:$0xff]   ;;  %v3497_v38 = vld [vmem:[%s4028_s2 + $0x38] sm:$0xff]  }
 0x16c   : > { %3156 = vmatpush3.bf16.msra.mxu0 %v3485_v56  ;;  %3354 = vmatpush3.bf16.msra.mxu1 %v3485_v56  ;;  %v3498_v39 = vld [vmem:[%s4030_s25 + $0x40] sm:$0xff]   ;;  %v3500_v44 = vld [vmem:[%s4030_s25 + $0x48] sm:$0xff]   ;;  %v4295_v53 = vld [vmem:[#allocation2 + $0x18] sm:$0xff] }
 0x16d   : > { %3157 = vmatprep.subr.bf16.mxu0 %v3486_v57  ;;  %3347 = vmatprep.subr.bf16.mxu1 %v3486_v57  ;;  %v4289_v40 = vld [vmem:[#allocation2] sm:$0xff]  ;;  %v4297_v6 = vld [vmem:[#allocation2 + $0x58] sm:$0xff]  ;;  %v3501_v7 = vld [vmem:[%s4030_s25 + $0x8] sm:$0xff]   ;;  %s4862_s1 = smov %s4861_s30 }
 0x16e   : > { %v4291_v41 = vld [vmem:[#allocation2 + $0x40] sm:$0xff]  ;;  %v3502_v45 = vld [vmem:[%s4030_s25 + $0x50] sm:$0xff]   ;;  %v3504_v9 = vld [vmem:[%s4030_s25 + $0x58] sm:$0xff]  }
 0x16f   : > { %v3499_v49 = vld [vmem:[%s4030_s25] sm:$0xff]   ;;  %v4305_v54 = vld [vmem:[#allocation2 + $0x10] sm:$0xff]  ;;  %v4311_v58 = vld [vmem:[#allocation2 + $0x28] sm:$0xff] }
 0x170   : > { %3158 = vmatpush3.bf16.msra.mxu0 %v3487_v23  ;;  %3355 = vmatpush3.bf16.msra.mxu1 %v3487_v23  ;;  %v4307_v55 = vld [vmem:[#allocation2 + $0x50] sm:$0xff]  ;;  %v3514_v59 = vld [vmem:[%s4032_s29 + $0x40] sm:$0xff]   ;;  %v4315_v1 = vld [vmem:[#allocation2 + $0x68] sm:$0xff] }
 0x171   : > { %3159 = vmatprep.subr.bf16.mxu0 %v3488_v24  ;;  %3348 = vmatprep.subr.bf16.mxu1 %v3488_v24  ;;  %v3503_v8 = vld [vmem:[%s4030_s25 + $0x10] sm:$0xff]   ;;  %v3515_v0 = vld [vmem:[%s4032_s29] sm:$0xff]   ;;  %v3505_v2 = vld [vmem:[%s4030_s25 + $0x18] sm:$0xff]  }
 0x172   : > { %v3516_v3 = vld [vmem:[%s4032_s29 + $0x48] sm:$0xff]   ;;  %v3518_v5 = vld [vmem:[%s4032_s29 + $0x50] sm:$0xff]   ;;  %v3506_v16 = vld [vmem:[%s4030_s25 + $0x60] sm:$0xff]  }
 0x173   : > { %v3517_v4 = vld [vmem:[%s4032_s29 + $0x8] sm:$0xff]   ;;  %v4326_v10 = vld [vmem:[#allocation2 + $0x20] sm:$0xff]  ;;  %v1340_v50 = vld [vmem:[#allocation2 + $0x38] sm:$0xff] }
 0x174   : > { %3160 = vmatpush3.bf16.msra.mxu0 %v3489_v25  ;;  %3356 = vmatpush3.bf16.msra.mxu1 %v3489_v25  ;;  %v4328_v17 = vld [vmem:[#allocation2 + $0x60] sm:$0xff]  ;;  %v3508_v46 = vld [vmem:[%s4030_s25 + $0x68] sm:$0xff]   ;;  %v4332_v18 = vld [vmem:[#allocation2 + $0x78] sm:$0xff] }
 0x175   : > { %3161 = vmatprep.subr.bf16.mxu0 %v3490_v30  ;;  %3349 = vmatprep.subr.bf16.mxu1 %v3490_v30  ;;  %v3507_v11 = vld [vmem:[%s4030_s25 + $0x20] sm:$0xff]   ;;  %v3519_v19 = vld [vmem:[%s4032_s29 + $0x10] sm:$0xff]   ;;  %v3520_v12 = vld [vmem:[%s4032_s29 + $0x58] sm:$0xff]  }
 0x176   : > { %v3509_v51 = vld [vmem:[%s4030_s25 + $0x28] sm:$0xff]   ;;  %v3510_v13 = vld [vmem:[%s4030_s25 + $0x70] sm:$0xff]   ;;  %v3521_v52 = vld [vmem:[%s4032_s29 + $0x18] sm:$0xff]  }
 0x177   : > { %v1339_v26 = vld [vmem:[#allocation2 + $0x30] sm:$0xff]  ;;  %v3512_v15 = vld [vmem:[%s4030_s25 + $0x78] sm:$0xff]   ;;  %v3522_v20 = vld [vmem:[%s4032_s29 + $0x60] sm:$0xff]  }
 0x178   : > { %3162 = vmatpush3.bf16.msra.mxu0 %v3491_v60  ;;  %3357 = vmatpush3.bf16.msra.mxu1 %v3491_v60  ;;  %v1347_v27 = vld [vmem:[#allocation2 + $0x70] sm:$0xff]  ;;  %v3523_v32 = vld [vmem:[%s4032_s29 + $0x20] sm:$0xff]   ;;  %v3524_v33 = vld [vmem:[%s4032_s29 + $0x68] sm:$0xff]  }
 0x179   : > { %3163 = vmatprep.subr.bf16.mxu0 %v3492_v61  ;;  %3350 = vmatprep.subr.bf16.mxu1 %v3492_v61  ;;  %v3511_v14 = vld [vmem:[%s4030_s25 + $0x30] sm:$0xff]   ;;  %v3513_v28 = vld [vmem:[%s4030_s25 + $0x38] sm:$0xff]   ;;  %v3525_v29 = vld [vmem:[%s4032_s29 + $0x28] sm:$0xff]  }
 0x17a   : > { %v3526_v21 = vld [vmem:[%s4032_s29 + $0x70] sm:$0xff]   ;;  %v3528_v42 = vld [vmem:[%s4032_s29 + $0x78] sm:$0xff]  }
 0x17b   : > { %v3527_v34 = vld [vmem:[%s4032_s29 + $0x30] sm:$0xff]   ;;  %v3529_v22 = vld [vmem:[%s4032_s29 + $0x38] sm:$0xff]  }
 0x17c   : > { %3164 = vmatpush3.bf16.msra.mxu0 %v3493_v37  ;;  %3358 = vmatpush3.bf16.msra.mxu1 %v3493_v37 }
 0x17d   : > { %3165 = vmatprep.subr.bf16.mxu0 %v3494_v62  ;;  %3351 = vmatprep.subr.bf16.mxu1 %v3494_v62 }
 0x180   : > { %3166 = vmatpush3.bf16.msra.mxu0 %v3495_v63  ;;  %3359 = vmatpush3.bf16.msra.mxu1 %v3495_v63 }
 0x181   : > { %3167 = vmatprep.subr.bf16.mxu0 %v3496_v36  ;;  %3352 = vmatprep.subr.bf16.mxu1 %v3496_v36 }
 0x184   : > { %3168 = vmatpush3.bf16.msra.mxu0 %v3497_v38  ;;  %3360 = vmatpush3.bf16.msra.mxu1 %v3497_v38 }
 0x185   : > { %3217 = vmatprep.subr.bf16.mxu1 %v3498_v39  ;;  %3281 = vmatprep.subr.bf16.mxu0 %v3514_v59 }
 0x187   : > { %1542 = vmatmul.mubr.bf16.vlgmr.msra.gmra.mrb[0].mxu0 %v4289_v40  ;;  %1574 = vmatmul.mubr.bf16.vlgmr.msra.gmra.mrb[0].mxu1 %v4291_v41 }
 0x188   : > { %3218 = vmatpush3.bf16.msra.mxu1 %v3499_v49  ;;  %1549 = vmatprep.mubr.bf16.mxu0 %v4295_v53 }
 0x189   : > { %3219 = vmatprep.subr.bf16.mxu1 %v3500_v44  ;;  %1581 = vmatprep.mubr.bf16.mxu1 %v4297_v6 }
 0x18a   : > { %3282 = vmatpush3.bf16.msra.mxu0 %v3515_v0 }
 0x18b   : > { %3283 = vmatprep.subr.bf16.mxu0 %v3516_v3 }
 0x18c   : > { %3220 = vmatpush3.bf16.msra.mxu1 %v3501_v7 }
 0x18d   : > { %3221 = vmatprep.subr.bf16.mxu1 %v3502_v45 }
 0x18e   : > { %3284 = vmatpush3.bf16.msra.mxu0 %v3517_v4 }
 0x18f   : > { %1550 = vmatmul.mubr.bf16.gmra.mrb[4].mxu0 %v4305_v54  ;;  %1582 = vmatmul.mubr.bf16.gmra.mrb[4].mxu1 %v4307_v55 }
 0x190   : > { %3222 = vmatpush3.bf16.msra.mxu1 %v3503_v8  ;;  %1557 = vmatprep.mubr.bf16.mxu0 %v4311_v58 }
 0x191   : > { %3223 = vmatprep.subr.bf16.mxu1 %v3504_v9  ;;  %1589 = vmatprep.mubr.bf16.mxu1 %v4315_v1 }
 0x192   : > { %3285 = vmatprep.subr.bf16.mxu0 %v3518_v5 }
 0x193   : > { %3286 = vmatpush3.bf16.msra.mxu0 %v3519_v19 }
 0x194   : > { %3224 = vmatpush3.bf16.msra.mxu1 %v3505_v2  ;;  %3287 = vmatprep.subr.bf16.mxu0 %v3520_v12 }
 0x195   : > { %3225 = vmatprep.subr.bf16.mxu1 %v3506_v16 }
 0x197   : > { %1558 = vmatmul.mubr.bf16.gmra.mrb[8].mxu0 %v4326_v10  ;;  %1590 = vmatmul.mubr.bf16.gmra.mrb[8].mxu1 %v4328_v17 }
 0x198   : > { %3226 = vmatpush3.bf16.msra.mxu1 %v3507_v11  ;;  %1565 = vmatprep.mubr.bf16.mxu0 %v1340_v50 }
 0x199   : > { %3227 = vmatprep.subr.bf16.mxu1 %v3508_v46  ;;  %1597 = vmatprep.mubr.bf16.mxu1 %v4332_v18 }
 0x19a   : > { %3288 = vmatpush3.bf16.msra.mxu0 %v3521_v52 }
 0x19b   : > { %3289 = vmatprep.subr.bf16.mxu0 %v3522_v20 }
 0x19c   : > { %3228 = vmatpush3.bf16.msra.mxu1 %v3509_v51 }
 0x19d   : > { %3229 = vmatprep.subr.bf16.mxu1 %v3510_v13 }
 0x19e   : > { %3290 = vmatpush3.bf16.msra.mxu0 %v3523_v32 }
 0x19f   : > { %1566 = vmatmul.mubr.bf16.gmra.mrb[12].mxu0 %v1339_v26  ;;  %1598 = vmatmul.mubr.bf16.gmra.mrb[12].mxu1 %v1347_v27 }
 0x1a0   : > { %3230 = vmatpush3.bf16.msra.mxu1 %v3511_v14  ;;  %1766 = vmatprep.mubr.bf16.mxu1 %v4277_v31 }
 0x1a1   : > { %3231 = vmatprep.subr.bf16.mxu1 %v3512_v15  ;;  %1991 = vmatprep.mubr.bf16.mxu0 %v4277_v31 }
 0x1a2   : > { %3291 = vmatprep.subr.bf16.mxu0 %v3524_v33 }
 0x1a3   : > { %3292 = vmatpush3.bf16.msra.mxu0 %v3525_v29 }
 0x1a4   : > { %3232 = vmatpush3.bf16.msra.mxu1 %v3513_v28  ;;  %3293 = vmatprep.subr.bf16.mxu0 %v3526_v21 }
 0x1a7   : > { %1767 = vmatmul.mubr.bf16.vlgmr.msra.gmra.mrb[16].mxu1 %v4289_v40  ;;  %3294 = vmatpush3.bf16.msra.mxu0 %v3527_v34 }
 0x1a8   : > { %1774 = vmatprep.mubr.bf16.mxu1 %v4295_v53  ;;  %3295 = vmatprep.subr.bf16.mxu0 %v3528_v42 }
 0x1ab   : > { %3296 = vmatpush3.bf16.msra.mxu0 %v3529_v22 }
 0x1ae   : > { %1992 = vmatmul.mubr.bf16.vlgmr.msra.gmra.mrb[16].mxu0 %v4289_v40 }
 0x1af   : > { %1775 = vmatmul.mubr.bf16.gmra.mrb[20].mxu1 %v4305_v54  ;;  %1999 = vmatprep.mubr.bf16.mxu0 %v4295_v53 }
 0x1b0   : > { %1782 = vmatprep.mubr.bf16.mxu1 %v4311_v58 }
 0x1b6   : > { %2000 = vmatmul.mubr.bf16.gmra.mrb[20].mxu0 %v4305_v54 }
 0x1b7   : > { %1783 = vmatmul.mubr.bf16.gmra.mrb[24].mxu1 %v4326_v10  ;;  %2007 = vmatprep.mubr.bf16.mxu0 %v4311_v58 }
 0x1b8   : > { %1790 = vmatprep.mubr.bf16.mxu1 %v1340_v50 }
 0x1be   : > { %2008 = vmatmul.mubr.bf16.gmra.mrb[24].mxu0 %v4326_v10 }
 0x1bf   : > { %1791 = vmatmul.mubr.bf16.gmra.mrb[28].mxu1 %v1339_v26  ;;  %2015 = vmatprep.mubr.bf16.mxu0 %v1340_v50 }
 0x1c0   : > { %1798 = vmatprep.mubr.bf16.mxu1 %v4279_v35 }
 0x1c6   : > { %2016 = vmatmul.mubr.bf16.gmra.mrb[28].mxu0 %v1339_v26 }
 0x1c7   : > { %1799 = vmatmul.mubr.bf16.gmra.mrb[32].mxu1 %v4291_v41  ;;  %2023 = vmatprep.mubr.bf16.mxu0 %v4279_v35 }
 0x1c8   : > { %1806 = vmatprep.mubr.bf16.mxu1 %v4297_v6 }
 0x1ce   : > { %2024 = vmatmul.mubr.bf16.gmra.mrb[32].mxu0 %v4291_v41 }
 0x1cf   : > { %1807 = vmatmul.mubr.bf16.gmra.mrb[36].mxu1 %v4307_v55  ;;  %2031 = vmatprep.mubr.bf16.mxu0 %v4297_v6 }
 0x1d0   : > { %1814 = vmatprep.mubr.bf16.mxu1 %v4315_v1 }
 0x1d6   : > { %2032 = vmatmul.mubr.bf16.gmra.mrb[36].mxu0 %v4307_v55 }
 0x1d7   : > { %1815 = vmatmul.mubr.bf16.gmra.mrb[40].mxu1 %v4328_v17  ;;  %2039 = vmatprep.mubr.bf16.mxu0 %v4315_v1 }
 0x1d8   : > { %1822 = vmatprep.mubr.bf16.mxu1 %v4332_v18 }
 0x1de   : > { %2040 = vmatmul.mubr.bf16.gmra.mrb[40].mxu0 %v4328_v17 }
 0x1df   : > { %1823 = vmatmul.mubr.bf16.gmra.mrb[44].mxu1 %v1347_v27  ;;  %2047 = vmatprep.mubr.bf16.mxu0 %v4332_v18 }
 0x1e6   : > { %2048 = vmatmul.mubr.bf16.gmra.mrb[44].mxu0 %v1347_v27 }
 0x25a   : > { %v3169_v43 = vpop.f32.mrb[0].mxu0  ;;  %v3193_v47 = vpop.f32.mrb[0].mxu1 }
 0x25b   : > { %v3170_v48 = vpop.f32.mrb[1].mxu0  ;;  %v3194_v56 = vpop.f32.mrb[1].mxu1 }
 0x25c   : > { %v4379_v57 = vadd.f32 %v3170_v48, %v3169_v43  ;;  %v4381_v23 = vadd.f32 %v3194_v56, %v3193_v47  ;;  %v3196_v24 = vpop.f32.mrb[2].mxu1  ;;  %v3172_v25 = vpop.f32.mrb[2].mxu0 }
 0x25d   : > { %v3197_v30 = vpop.f32.mrb[3].mxu1  ;;  %v3173_v60 = vpop.f32.mrb[3].mxu0 }
 0x25e   : > { %v4383_v61 = vadd.f32 %v3197_v30, %v3196_v24  ;;  %2072 = vrot.lane.b32.xlu0 %v4379_v57, %s3618_s18  ;;  %v4387_v31 = vadd.f32 %v3173_v60, %v3172_v25 }
 0x260   : > { %2090 = vrot.lane.b32.xlu1 %v4383_v61, %s3618_s18 }
 0x262   : > { %v3175_v35 = vpop.f32.mrb[4].mxu0  ;;  %v3199_v37 = vpop.f32.mrb[4].mxu1  ;;  %2088 = vrot.lane.b32.xlu0 %v4381_v23, %s3618_s18 }
 0x263   : > { %v3176_v62 = vpop.f32.mrb[5].mxu0  ;;  %v3200_v63 = vpop.f32.mrb[5].mxu1 }
 0x264   : > { %v4393_v36 = vadd.f32 %v3176_v62, %v3175_v35  ;;  %v4395_v38 = vadd.f32 %v3200_v63, %v3199_v37  ;;  %v3202_v39 = vpop.f32.mrb[6].mxu1  ;;  %v3178_v40 = vpop.f32.mrb[6].mxu0 }
 0x265   : > { %v3203_v41 = vpop.f32.mrb[7].mxu1  ;;  %v3179_v49 = vpop.f32.mrb[7].mxu0 }
 0x266   : > { %v4397_v44 = vadd.f32 %v3203_v41, %v3202_v39  ;;  %2076 = vrot.lane.b32.xlu1 %v4393_v36, %s3618_s18  ;;  %2074 = vrot.lane.b32.xlu0 %v4387_v31, %s3618_s18  ;;  %v4403_v53 = vadd.f32 %v3179_v49, %v3178_v40 }
 0x26a   : > { %v3181_v6 = vpop.f32.mrb[8].mxu0  ;;  %v3205_v7 = vpop.f32.mrb[8].mxu1  ;;  %2078 = vrot.lane.b32.xlu1 %v4403_v53, %s3618_s18  ;;  %2092 = vrot.lane.b32.xlu0 %v4395_v38, %s3618_s18 }
 0x26b   : > { %v3182_v45 = vpop.f32.mrb[9].mxu0  ;;  %v3206_v54 = vpop.f32.mrb[9].mxu1 }
 0x26c   : > { %v4409_v55 = vadd.f32 %v3182_v45, %v3181_v6  ;;  %v4411_v8 = vadd.f32 %v3206_v54, %v3205_v7  ;;  %v3208_v9 = vpop.f32.mrb[10].mxu1  ;;  %v3184_v58 = vpop.f32.mrb[10].mxu0 }
 0x26d   : > { %v3209_v59 = vpop.f32.mrb[11].mxu1  ;;  %v3185_v0 = vpop.f32.mrb[11].mxu0 }
 0x26e   : > { %v4413_v1 = vadd.f32 %v3209_v59, %v3208_v9  ;;  %2094 = vrot.lane.b32.xlu1 %v4397_v44, %s3618_s18  ;;  %2080 = vrot.lane.b32.xlu0 %v4409_v55, %s3618_s18  ;;  %v4419_v2 = vadd.f32 %v3185_v0, %v3184_v58 }
 0x272   : > { %v3187_v3 = vpop.f32.mrb[12].mxu0  ;;  %v3211_v4 = vpop.f32.mrb[12].mxu1  ;;  %2082 = vrot.lane.b32.xlu1 %v4419_v2, %s3618_s18  ;;  %2096 = vrot.lane.b32.xlu0 %v4411_v8, %s3618_s18 }
 0x273   : > { %v3188_v5 = vpop.f32.mrb[13].mxu0  ;;  %v3212_v16 = vpop.f32.mrb[13].mxu1 }
 0x274   : > { %v4425_v10 = vadd.f32 %v3188_v5, %v3187_v3  ;;  %v4427_v17 = vadd.f32 %v3212_v16, %v3211_v4  ;;  %v3214_v11 = vpop.f32.mrb[14].mxu1  ;;  %v3190_v46 = vpop.f32.mrb[14].mxu0 }
 0x275   : > { %v3215_v50 = vpop.f32.mrb[15].mxu1  ;;  %v3191_v18 = vpop.f32.mrb[15].mxu0 }
 0x276   : > { %v4429_v19 = vadd.f32 %v3215_v50, %v3214_v11  ;;  %2098 = vrot.lane.b32.xlu1 %v4413_v1, %s3618_s18  ;;  %2084 = vrot.lane.b32.xlu0 %v4425_v10, %s3618_s18  ;;  %v4435_v12 = vadd.f32 %v3191_v18, %v3190_v46 }
 0x27a   : > { %v3233_v51 = vpop.f32.mrb[16].mxu1  ;;  %2086 = vrot.lane.b32.xlu1 %v4435_v12, %s3618_s18  ;;  %2100 = vrot.lane.b32.xlu0 %v4427_v17, %s3618_s18 }
 0x27b   : > { %v3234_v13 = vpop.f32.mrb[17].mxu1 }
 0x27c   : > { %v4441_v52 = vadd.f32 %v3234_v13, %v3233_v51  ;;  %v3236_v26 = vpop.f32.mrb[18].mxu1 }
 0x27d   : > { %v3237_v27 = vpop.f32.mrb[19].mxu1 }
 0x27e   : > { %v4443_v14 = vadd.f32 %v3237_v27, %v3236_v26  ;;  %2102 = vrot.lane.b32.xlu1 %v4429_v19, %s3618_s18  ;;  %2168 = vrot.lane.b32.xlu0 %v4441_v52, %s3618_s18 }
 0x281   : > { %v3297_v28 = vpop.f32.mrb[16].mxu0 }
 0x282   : > { %v3239_v15 = vpop.f32.mrb[20].mxu1  ;;  %2170 = vrot.lane.b32.xlu1 %v4443_v14, %s3618_s18  ;;  %v3298_v21 = vpop.f32.mrb[17].mxu0 }
 0x283   : > { %v3240_v20 = vpop.f32.mrb[21].mxu1  ;;  %v3299_v42 = vadd.f32 %v3298_v21, %v3297_v28  ;;  %v3300_v22 = vpop.f32.mrb[18].mxu0 }
 0x284   : > { %v4451_v32 = vadd.f32 %v3240_v20, %v3239_v15  ;;  %v3242_v33 = vpop.f32.mrb[22].mxu1  ;;  %v3301_v43 = vpop.f32.mrb[19].mxu0 }
 0x285   : > { %v3243_v29 = vpop.f32.mrb[23].mxu1  ;;  %v3302_v47 = vadd.f32 %v3301_v43, %v3300_v22 }
 0x286   : > { %v4453_v34 = vadd.f32 %v3243_v29, %v3242_v33  ;;  %2172 = vrot.lane.b32.xlu0 %v4451_v32, %s3618_s18 }
 0x287   : > { %v3095_v56 = vpack.c.bf16 %v3302_v47, %v3299_v42 }
 0x288   : > { %2174 = vrot.lane.b32.xlu1 %v4453_v34, %s3618_s18 }
 0x289   : > { %3096 = vst [vmem:[%s4026_s20] sm:$0xff] %v3095_v56   ;;  %v3303_v60 = vpop.f32.mrb[20].mxu0 }
 0x28a   : > { %v3245_v48 = vpop.f32.mrb[24].mxu1  ;;  %v3304_v37 = vpop.f32.mrb[21].mxu0 }
 0x28b   : > { %v3246_v24 = vpop.f32.mrb[25].mxu1  ;;  %v3305_v63 = vadd.f32 %v3304_v37, %v3303_v60  ;;  %v3306_v39 = vpop.f32.mrb[22].mxu0 }
 0x28c   : > { %v4459_v25 = vadd.f32 %v3246_v24, %v3245_v48  ;;  %v3248_v30 = vpop.f32.mrb[26].mxu1  ;;  %v3307_v40 = vpop.f32.mrb[23].mxu0 }
 0x28d   : > { %v3249_v35 = vpop.f32.mrb[27].mxu1  ;;  %v3308_v41 = vadd.f32 %v3307_v40, %v3306_v39 }
 0x28e   : > { %v4462_v62 = vadd.f32 %v3249_v35, %v3248_v30  ;;  %2176 = vrot.lane.b32.xlu0 %v4459_v25, %s3618_s18 }
 0x28f   : > { %v3100_v6 = vpack.c.bf16 %v3308_v41, %v3305_v63 }
 0x290   : > { %2178 = vrot.lane.b32.xlu1 %v4462_v62, %s3618_s18 }
 0x291   : > { %3146 = vst [vmem:[%s4026_s20 + $0x8] sm:$0xff] %v3100_v6   ;;  %v3309_v9 = vpop.f32.mrb[24].mxu0 }
 0x292   : > { %v3251_v49 = vpop.f32.mrb[28].mxu1  ;;  %v3310_v59 = vpop.f32.mrb[25].mxu0 }
 0x293   : > { %v3252_v7 = vpop.f32.mrb[29].mxu1  ;;  %v3311_v3 = vadd.f32 %v3310_v59, %v3309_v9  ;;  %v3312_v4 = vpop.f32.mrb[26].mxu0 }
 0x294   : > { %v4468_v45 = vadd.f32 %v3252_v7, %v3251_v49  ;;  %v3254_v54 = vpop.f32.mrb[30].mxu1  ;;  %v3313_v5 = vpop.f32.mrb[27].mxu0 }
 0x295   : > { %v3255_v58 = vpop.f32.mrb[31].mxu1  ;;  %v3314_v16 = vadd.f32 %v3313_v5, %v3312_v4 }
 0x296   : > { %v4471_v0 = vadd.f32 %v3255_v58, %v3254_v54  ;;  %2180 = vrot.lane.b32.xlu0 %v4468_v45, %s3618_s18 }
 0x297   : > { %v3105_v46 = vpack.c.bf16 %v3314_v16, %v3311_v3 }
 0x298   : > { %2182 = vrot.lane.b32.xlu1 %v4471_v0, %s3618_s18 }
 0x299   : > { %3147 = vst [vmem:[%s4026_s20 + $0x10] sm:$0xff] %v3105_v46   ;;  %v3315_v13 = vpop.f32.mrb[28].mxu0 }
 0x29a   : > { %v3257_v11 = vpop.f32.mrb[32].mxu1  ;;  %v3316_v27 = vpop.f32.mrb[29].mxu0 }
 0x29b   : > { %v3258_v50 = vpop.f32.mrb[33].mxu1  ;;  %v3317_v20 = vadd.f32 %v3316_v27, %v3315_v13  ;;  %v3318_v33 = vpop.f32.mrb[30].mxu0 }
 0x29c   : > { %v4477_v18 = vadd.f32 %v3258_v50, %v3257_v11  ;;  %v3260_v51 = vpop.f32.mrb[34].mxu1  ;;  %v3319_v28 = vpop.f32.mrb[31].mxu0 }
 0x29d   : > { %v3261_v26 = vpop.f32.mrb[35].mxu1  ;;  %v3320_v29 = vadd.f32 %v3319_v28, %v3318_v33 }
 0x29e   : > { %v4480_v15 = vadd.f32 %v3261_v26, %v3260_v51  ;;  %2184 = vrot.lane.b32.xlu0 %v4477_v18, %s3618_s18 }
 0x29f   : > { %v3110_v42 = vpack.c.bf16 %v3320_v29, %v3317_v20 }
 0x2a0   : > { %2186 = vrot.lane.b32.xlu1 %v4480_v15, %s3618_s18 }
 0x2a1   : > { %3148 = vst [vmem:[%s4026_s20 + $0x18] sm:$0xff] %v3110_v42   ;;  %v3321_v48 = vpop.f32.mrb[32].mxu0 }
 0x2a2   : > { %v3263_v21 = vpop.f32.mrb[36].mxu1  ;;  %v3322_v24 = vpop.f32.mrb[33].mxu0 }
 0x2a3   : > { %v3264_v22 = vpop.f32.mrb[37].mxu1  ;;  %v3323_v60 = vadd.f32 %v3322_v24, %v3321_v48  ;;  %v3324_v35 = vpop.f32.mrb[34].mxu0 }
 0x2a4   : > { %v4486_v43 = vadd.f32 %v3264_v22, %v3263_v21  ;;  %v3266_v47 = vpop.f32.mrb[38].mxu1  ;;  %v3325_v37 = vpop.f32.mrb[35].mxu0 }
 0x2a5   : > { %v3267_v56 = vpop.f32.mrb[39].mxu1  ;;  %v3326_v63 = vadd.f32 %v3325_v37, %v3324_v35  ;;  %v4518_v37 = vld [vmem:[%s4860_s22 + $0x48] sm:$0xff] }
 0x2a6   : > { %v4489_v30 = vadd.f32 %v3267_v56, %v3266_v47  ;;  %2188 = vrot.lane.b32.xlu0 %v4486_v43, %s3618_s18 }
 0x2a7   : > { %v3115_v40 = vpack.c.bf16 %v3326_v63, %v3323_v60 }
 0x2a8   : > { %2190 = vrot.lane.b32.xlu1 %v4489_v30, %s3618_s18 }
 0x2a9   : > { %3149 = vst [vmem:[%s4026_s20 + $0x20] sm:$0xff] %v3115_v40   ;;  %v3327_v7 = vpop.f32.mrb[36].mxu0  ;;  %v4528_v40 = vld [vmem:[%s4862_s1] sm:$0xff] }
 0x2aa   : > { %v3269_v39 = vpop.f32.mrb[40].mxu1  ;;  %v3328_v9 = vpop.f32.mrb[37].mxu0 }
 0x2ab   : > { %v3270_v41 = vpop.f32.mrb[41].mxu1  ;;  %v3329_v59 = vadd.f32 %v3328_v9, %v3327_v7  ;;  %v3330_v3 = vpop.f32.mrb[38].mxu0  ;;  %v4538_v7 = vld [vmem:[%s4862_s1 + $0x40] sm:$0xff]  ;;  %v2065_v9 = vmul.f32 %v4383_v61, %v4518_v37  ;;  %v4562_v61 = vld [vmem:[%s4862_s1 + $0x10] sm:$0xff] }
 0x2ac   : > { %v4495_v49 = vadd.f32 %v3270_v41, %v3269_v39  ;;  %v3272_v6 = vpop.f32.mrb[42].mxu1  ;;  %v3331_v4 = vpop.f32.mrb[39].mxu0  ;;  %v4523_v39 = vld [vmem:[%s4861_s30 + $0x48] sm:$0xff]  ;;  %v4533_v41 = vld [vmem:[%s4860_s22 + $0x40] sm:$0xff] }
 0x2ad   : > { %v3273_v54 = vpop.f32.mrb[43].mxu1  ;;  %v3332_v5 = vadd.f32 %v3331_v4, %v3330_v3 }
 0x2ae   : > { %v4498_v58 = vadd.f32 %v3273_v54, %v3272_v6  ;;  %2192 = vrot.lane.b32.xlu0 %v4495_v49, %s3618_s18  ;;  %v4543_v54 = vld [vmem:[%s4860_s22] sm:$0xff] }
 0x2af   : > { %v3120_v11 = vpack.c.bf16 %v3332_v5, %v3329_v59  ;;  %v2064_v5 = vmul.f32 %v4381_v23, %v4533_v41  ;;  %v4567_v23 = vld [vmem:[%s4862_s1 + $0x8] sm:$0xff] }
 0x2b0   : > { %4857 = vst [vmem:[#allocation9_spill] sm:$0xff] %v4498_v58  ;;  %2194 = vrot.lane.b32.xlu1 %v4498_v58, %s3618_s18 }
 0x2b1   : > { %3150 = vst [vmem:[%s4026_s20 + $0x28] sm:$0xff] %v3120_v11   ;;  %v3333_v13 = vpop.f32.mrb[40].mxu0 }
 0x2b2   : > { %v3275_v16 = vpop.f32.mrb[44].mxu1  ;;  %v3334_v27 = vpop.f32.mrb[41].mxu0 }
 0x2b3   : > { %v3276_v46 = vpop.f32.mrb[45].mxu1  ;;  %v3335_v33 = vadd.f32 %v3334_v27, %v3333_v13  ;;  %v3336_v28 = vpop.f32.mrb[42].mxu0  ;;  %v4574_v27 = vld [vmem:[%s4860_s22 + $0x10] sm:$0xff] }
 0x2b4   : > { %v4504_v50 = vadd.f32 %v3276_v46, %v3275_v16  ;;  %v3278_v51 = vpop.f32.mrb[46].mxu1  ;;  %v3337_v29 = vpop.f32.mrb[43].mxu0  ;;  %v4554_v16 = vld [vmem:[%s4860_s22 + $0x8] sm:$0xff] }
 0x2b5   : > { %v3279_v26 = vpop.f32.mrb[47].mxu1  ;;  %v3338_v21 = vadd.f32 %v3337_v29, %v3336_v28  ;;  %v4579_v29 = vld [vmem:[%s4860_s22 + $0x18] sm:$0xff] }
 0x2b6   : > { %4858 = vst [vmem:[#allocation10_spill] sm:$0xff] %v4504_v50  ;;  %v4507_v20 = vadd.f32 %v3279_v26, %v3278_v51  ;;  %2196 = vrot.lane.b32.xlu0 %v4504_v50, %s3618_s18  ;;  %v2056_v51 = vmul.f32 %v4379_v57, %v4543_v54  ;;  %v2057_v26 = vmul.f32 %v4387_v31, %v4554_v16 }
 0x2b7   : > { %v3125_v42 = vpack.c.bf16 %v3338_v21, %v3335_v33 }
 0x2b8   : > { %4859 = vst [vmem:[#allocation11_spill] sm:$0xff] %v4507_v20  ;;  %2198 = vrot.lane.b32.xlu1 %v4507_v20, %s3618_s18 }
 0x2b9   : > { %3151 = vst [vmem:[%s4026_s20 + $0x30] sm:$0xff] %v3125_v42   ;;  %v3339_v22 = vpop.f32.mrb[44].mxu0 }
 0x2ba   : > { %v3340_v47 = vpop.f32.mrb[45].mxu0 }
 0x2bb   : > { %v3341_v48 = vadd.f32 %v3340_v47, %v3339_v22  ;;  %v3342_v56 = vpop.f32.mrb[46].mxu0  ;;  %v4586_v47 = vld [vmem:[%s4862_s1 + $0x18] sm:$0xff] }
 0x2bc   : > { %v3343_v24 = vpop.f32.mrb[47].mxu0 }
 0x2bd   : > { %v3344_v60 = vadd.f32 %v3343_v24, %v3342_v56  ;;  %v2058_v56 = vmul.f32 %v4393_v36, %v4574_v27  ;;  %v4598_v24 = vld [vmem:[%s4860_s22 + $0x50] sm:$0xff] }
 0x2bf   : > { %v3130_v35 = vpack.c.bf16 %v3344_v60, %v3341_v48  ;;  %v4591_v48 = vld [vmem:[%s4862_s1 + $0x50] sm:$0xff] }
 0x2c1   : > { %3152 = vst [vmem:[%s4026_s20 + $0x38] sm:$0xff] %v3130_v35  }
 0x2d0   : > { %v2073_v63 = vpop.permute.xlu0 %2072 }
 0x2d1   : > { %v2104_v3 = vmul.f32 %v2073_v63, %v4528_v40  ;;  %v2059_v63 = vmul.f32 %v4403_v53, %v4579_v29  ;;  %v4615_v53 = vld [vmem:[%s4862_s1 + $0x58] sm:$0xff] }
 0x2d2   : > { %v2091_v6 = vpop.permute.xlu1 %2090 }
 0x2d3   : > { %v2113_v59 = vmul.f32 %v2091_v6, %v4523_v39  ;;  %v2120_v57 = vadd.f32 %v2104_v3, %v2056_v51  ;;  %v4605_v3 = vld [vmem:[%s4860_s22 + $0x58] sm:$0xff]  ;;  %v4620_v51 = vld [vmem:[%s4862_s1 + $0x20] sm:$0xff] }
 0x2d4   : > { %v2089_v4 = vpop.permute.xlu0 %2088 }
 0x2d5   : > { %v2129_v11 = vadd.f32 %v2113_v59, %v2065_v9  ;;  %v2112_v46 = vmul.f32 %v2089_v4, %v4538_v7  ;;  %v2136_v6 = vmul.f32 0.088388346, %v2120_v57  ;;  %v2067_v57 = vmul.f32 %v4397_v44, %v4605_v3 }
 0x2d7   : > { %v2128_v13 = vadd.f32 %v2112_v46, %v2064_v5  ;;  %v2145_v21 = vmul.f32 0.088388346, %v2129_v11  ;;  %v2066_v46 = vmul.f32 %v4395_v38, %v4598_v24 }
 0x2d8   : > { %v2077_v33 = vpop.permute.xlu1 %2076  ;;  %v2075_v28 = vpop.permute.xlu0 %2074 }
 0x2d9   : > { %v2144_v42 = vmul.f32 0.088388346, %v2128_v13  ;;  %v2106_v22 = vmul.f32 %v2077_v33, %v4562_v61  ;;  %v2105_v31 = vmul.f32 %v2075_v28, %v4567_v23  ;;  %v4627_v33 = vld [vmem:[%s4860_s22 + $0x20] sm:$0xff] }
 0x2db   : > { %v3035_v60 = vpack.c.bf16 %v2145_v21, %v2144_v42  ;;  %v2121_v35 = vadd.f32 %v2105_v31, %v2057_v26  ;;  %v2122_v36 = vadd.f32 %v2106_v22, %v2058_v56  ;;  %v4632_v42 = vld [vmem:[%s4860_s22 + $0x28] sm:$0xff] }
 0x2dc   : > { %v2079_v9 = vpop.permute.xlu1 %2078  ;;  %v2093_v59 = vpop.permute.xlu0 %2092 }
 0x2dd   : > { %3135 = vst [vmem:[%s4016_s6 + $0x20] sm:$0xff] %v3035_v60   ;;  %v2137_v4 = vmul.f32 0.088388346, %v2121_v35  ;;  %v2107_v5 = vmul.f32 %v2079_v9, %v4586_v47  ;;  %v2114_v11 = vmul.f32 %v2093_v59, %v4591_v48  ;;  %v2138_v22 = vmul.f32 0.088388346, %v2122_v36  ;;  %v4640_v60 = vld [vmem:[%s4862_s1 + $0x28] sm:$0xff] }
 0x2de   : > { %v4645_v35 = vld [vmem:[%s4862_s1 + $0x60] sm:$0xff]  ;;  %v2061_v36 = vmul.f32 %v4419_v2, %v4632_v42  ;;  %v4669_v2 = vld [vmem:[%s4862_s1 + $0x68] sm:$0xff] }
 0x2df   : > { %v3015_v13 = vpack.c.bf16 %v2137_v4, %v2136_v6  ;;  %v2123_v26 = vadd.f32 %v2107_v5, %v2059_v63  ;;  %v2130_v38 = vadd.f32 %v2114_v11, %v2066_v46  ;;  %v2060_v63 = vmul.f32 %v4409_v55, %v4627_v33  ;;  %v4652_v6 = vld [vmem:[%s4860_s22 + $0x60] sm:$0xff]  ;;  %v4659_v46 = vld [vmem:[%s4860_s22 + $0x68] sm:$0xff]  ;;  %4863 = vst [vmem:[#allocation12_spill] sm:$0xff] %v4669_v2 }
 0x2e0   : > { %v2095_v28 = vpop.permute.xlu1 %2094  ;;  %v2081_v21 = vpop.permute.xlu0 %2080 }
 0x2e1   : > { %3016 = vst [vmem:[%s4016_s6] sm:$0xff] %v3015_v13   ;;  %v2139_v31 = vmul.f32 0.088388346, %v2123_v26  ;;  %v2115_v56 = vmul.f32 %v2095_v28, %v4615_v53  ;;  %v2108_v44 = vmul.f32 %v2081_v21, %v4620_v51  ;;  %v2146_v4 = vmul.f32 0.088388346, %v2130_v38  ;;  %v4674_v38 = vld [vmem:[%s4862_s1 + $0x30] sm:$0xff] }
 0x2e3   : > { %v3020_v9 = vpack.c.bf16 %v2139_v31, %v2138_v22  ;;  %v2131_v59 = vadd.f32 %v2115_v56, %v2067_v57  ;;  %v2124_v13 = vadd.f32 %v2108_v44, %v2060_v63  ;;  %v2068_v57 = vmul.f32 %v4411_v8, %v4652_v6  ;;  %v4681_v56 = vld [vmem:[%s4860_s22 + $0x30] sm:$0xff] }
 0x2e4   : > { %v2083_v5 = vpop.permute.xlu1 %2082  ;;  %v2097_v11 = vpop.permute.xlu0 %2096  ;;  %v2069_v31 = vmul.f32 %v4413_v1, %v4659_v46 }
 0x2e5   : > { %3132 = vst [vmem:[%s4016_s6 + $0x8] sm:$0xff] %v3020_v9   ;;  %v2147_v55 = vmul.f32 0.088388346, %v2131_v59  ;;  %v2109_v26 = vmul.f32 %v2083_v5, %v4640_v60  ;;  %v2116_v28 = vmul.f32 %v2097_v11, %v4645_v35  ;;  %v4686_v9 = vld [vmem:[%s4860_s22 + $0x38] sm:$0xff]  ;;  %v2140_v59 = vmul.f32 0.088388346, %v2124_v13 }
 0x2e6   : > { %v4694_v5 = vld [vmem:[%s4862_s1 + $0x38] sm:$0xff]  ;;  %v4699_v11 = vld [vmem:[%s4862_s1 + $0x70] sm:$0xff] }
 0x2e7   : > { %v3040_v21 = vpack.c.bf16 %v2147_v55, %v2146_v4  ;;  %v2125_v22 = vadd.f32 %v2109_v26, %v2061_v36  ;;  %v2132_v8 = vadd.f32 %v2116_v28, %v2068_v57  ;;  %4864 = vst [vmem:[#allocation13_spill] sm:$0xff] %v4699_v11  ;;  %v2062_v55 = vmul.f32 %v4425_v10, %v4681_v56  ;;  %v4706_v28 = vld [vmem:[%s4860_s22 + $0x70] sm:$0xff] }
 0x2e8   : > { %v2099_v44 = vpop.permute.xlu1 %2098  ;;  %v2085_v63 = vpop.permute.xlu0 %2084  ;;  %v2063_v57 = vmul.f32 %v4435_v12, %v4686_v9  ;;  %v4721_v12 = vld [vmem:[%s4862_s1 + $0x78] sm:$0xff] }
 0x2e9   : > { %3136 = vst [vmem:[%s4016_s6 + $0x28] sm:$0xff] %v3040_v21   ;;  %v2141_v36 = vmul.f32 0.088388346, %v2125_v22  ;;  %v2117_v4 = vmul.f32 %v2099_v44, %v4669_v2  ;;  %v2110_v1 = vmul.f32 %v2085_v63, %v4674_v38  ;;  %v2148_v21 = vmul.f32 0.088388346, %v2132_v8  ;;  %v4713_v63 = vld [vmem:[%s4860_s22 + $0x78] sm:$0xff] }
 0x2ea   : > { %v2070_v8 = vmul.f32 %v4427_v17, %v4706_v28  ;;  %v2152_v17 = vmul.f32 %v4441_v52, %v4543_v54  ;;  %v2154_v54 = vmul.f32 %v4451_v32, %v4574_v27  ;;  %v2157_v32 = vmul.f32 %v4462_v62, %v4632_v42 }
 0x2eb   : > { %v3025_v26 = vpack.c.bf16 %v2141_v36, %v2140_v59  ;;  %v2133_v13 = vadd.f32 %v2117_v4, %v2069_v31  ;;  %v2126_v31 = vadd.f32 %v2110_v1, %v2062_v55 }
 0x2ec   : > { %v2087_v22 = vpop.permute.xlu1 %2086  ;;  %v2101_v44 = vpop.permute.xlu0 %2100 }
 0x2ed   : > { %3133 = vst [vmem:[%s4016_s6 + $0x10] sm:$0xff] %v3025_v26   ;;  %v2149_v10 = vmul.f32 0.088388346, %v2133_v13  ;;  %v2111_v59 = vmul.f32 %v2087_v22, %v4694_v5  ;;  %v2118_v36 = vmul.f32 %v2101_v44, %v4699_v11  ;;  %v2071_v26 = vmul.f32 %v4429_v19, %v4713_v63 }
 0x2ee   : > { %v2142_v55 = vmul.f32 0.088388346, %v2126_v31  ;;  %v2153_v19 = vmul.f32 %v4443_v14, %v4554_v16  ;;  %v2155_v14 = vmul.f32 %v4453_v34, %v4579_v29 }
 0x2ef   : > { %v3045_v4 = vpack.c.bf16 %v2149_v10, %v2148_v21  ;;  %v2127_v20 = vadd.f32 %v2111_v59, %v2063_v57  ;;  %v2134_v44 = vadd.f32 %v2118_v36, %v2070_v8 }
 0x2f0   : > { %v2103_v13 = vpop.permute.xlu1 %2102  ;;  %v2169_v1 = vpop.permute.xlu0 %2168 }
 0x2f1   : > { %3137 = vst [vmem:[%s4016_s6 + $0x30] sm:$0xff] %v3045_v4   ;;  %v2143_v22 = vmul.f32 0.088388346, %v2127_v20  ;;  %v2119_v50 = vmul.f32 %v2103_v13, %v4721_v12  ;;  %v2200_v58 = vmul.f32 %v2169_v1, %v4528_v40  ;;  %v2150_v21 = vmul.f32 0.088388346, %v2134_v44 }
 0x2f3   : > { %v3030_v11 = vpack.c.bf16 %v2143_v22, %v2142_v55  ;;  %v2135_v2 = vadd.f32 %v2119_v50, %v2071_v26  ;;  %v2216_v59 = vadd.f32 %v2200_v58, %v2152_v17 }
 0x2f4   : > { %v2171_v57 = vpop.permute.xlu1 %2170 }
 0x2f5   : > { %3134 = vst [vmem:[%s4016_s6 + $0x18] sm:$0xff] %v3030_v11   ;;  %v2151_v10 = vmul.f32 0.088388346, %v2135_v2  ;;  %v2201_v20 = vmul.f32 %v2171_v57, %v4567_v23 }
 0x2f7   : > { %v3050_v31 = vpack.c.bf16 %v2151_v10, %v2150_v21  ;;  %v2217_v36 = vadd.f32 %v2201_v20, %v2153_v19 }
 0x2f8   : > { %v2173_v50 = vpop.permute.xlu0 %2172 }
 0x2f9   : > { %3138 = vst [vmem:[%s4016_s6 + $0x38] sm:$0xff] %v3050_v31   ;;  %v3055_v40 = vpack.c.bf16 %v2217_v36, %v2216_v59  ;;  %v2202_v8 = vmul.f32 %v2173_v50, %v4562_v61  ;;  %v2156_v61 = vmul.f32 %v4459_v25, %v4627_v33  ;;  %v2159_v25 = vmul.f32 %v4471_v0, %v4686_v9  ;;  %v4865_v59 = vld [vmem:[#allocation9_spill] sm:$0xff] }
 0x2fa   : > { %v2175_v52 = vpop.permute.xlu1 %2174 }
 0x2fb   : > { %3056 = vst [vmem:[%s4021_s16] sm:$0xff] %v3055_v40   ;;  %v2203_v16 = vmul.f32 %v2175_v52, %v4586_v47  ;;  %v2218_v23 = vadd.f32 %v2202_v8, %v2154_v54  ;;  %v4867_v40 = vld [vmem:[#allocation13_spill] sm:$0xff] }
 0x2fd   : > { %v2219_v2 = vadd.f32 %v2203_v16, %v2155_v14  ;;  %v4869_v14 = vld [vmem:[#allocation11_spill] sm:$0xff] }
 0x2ff   : > { %v3060_v58 = vpack.c.bf16 %v2219_v2, %v2218_v23 }
 0x300   : > { %v2177_v11 = vpop.permute.xlu0 %2176 }
 0x301   : > { %3139 = vst [vmem:[%s4021_s16 + $0x8] sm:$0xff] %v3060_v58   ;;  %v2204_v4 = vmul.f32 %v2177_v11, %v4620_v51  ;;  %v2158_v51 = vmul.f32 %v4468_v45, %v4681_v56  ;;  %v2161_v45 = vmul.f32 %v4480_v15, %v4518_v37 }
 0x302   : > { %v2179_v26 = vpop.permute.xlu1 %2178 }
 0x303   : > { %v2205_v34 = vmul.f32 %v2179_v26, %v4640_v60  ;;  %v2220_v27 = vadd.f32 %v2204_v4, %v2156_v61 }
 0x305   : > { %v2221_v29 = vadd.f32 %v2205_v34, %v2157_v32 }
 0x307   : > { %v3065_v47 = vpack.c.bf16 %v2221_v29, %v2220_v27 }
 0x308   : > { %v2181_v13 = vpop.permute.xlu0 %2180 }
 0x309   : > { %3140 = vst [vmem:[%s4021_s16 + $0x10] sm:$0xff] %v3065_v47   ;;  %v2206_v1 = vmul.f32 %v2181_v13, %v4674_v38  ;;  %v2160_v38 = vmul.f32 %v4477_v18, %v4533_v41  ;;  %v2163_v18 = vmul.f32 %v4489_v30, %v4605_v3 }
 0x30a   : > { %v2183_v55 = vpop.permute.xlu1 %2182 }
 0x30b   : > { %v2207_v62 = vmul.f32 %v2183_v55, %v4694_v5  ;;  %v2222_v33 = vadd.f32 %v2206_v1, %v2158_v51 }
 0x30d   : > { %v2223_v42 = vadd.f32 %v2207_v62, %v2159_v25 }
 0x30f   : > { %v3070_v60 = vpack.c.bf16 %v2223_v42, %v2222_v33 }
 0x310   : > { %v2185_v22 = vpop.permute.xlu0 %2184 }
 0x311   : > { %3141 = vst [vmem:[%s4021_s16 + $0x18] sm:$0xff] %v3070_v60   ;;  %v2208_v44 = vmul.f32 %v2185_v22, %v4538_v7  ;;  %v2162_v7 = vmul.f32 %v4486_v43, %v4598_v24  ;;  %v2165_v43 = vmul.f32 %v4865_v59, %v4659_v46  ;;  %v4866_v24 = vld [vmem:[#allocation12_spill] sm:$0xff] }
 0x312   : > { %v2187_v17 = vpop.permute.xlu1 %2186 }
 0x313   : > { %v2209_v0 = vmul.f32 %v2187_v17, %v4523_v39  ;;  %v2224_v56 = vadd.f32 %v2208_v44, %v2160_v38 }
 0x315   : > { %v2225_v9 = vadd.f32 %v2209_v0, %v2161_v45 }
 0x317   : > { %v3075_v5 = vpack.c.bf16 %v2225_v9, %v2224_v56 }
 0x318   : > { %v2189_v57 = vpop.permute.xlu0 %2188 }
 0x319   : > { %3142 = vst [vmem:[%s4021_s16 + $0x20] sm:$0xff] %v3075_v5   ;;  %v2210_v19 = vmul.f32 %v2189_v57, %v4591_v48  ;;  %v2164_v48 = vmul.f32 %v4495_v49, %v4652_v6  ;;  %v2167_v49 = vmul.f32 %v4869_v14, %v4713_v63 }
 0x31a   : > { %v2191_v21 = vpop.permute.xlu1 %2190 }
 0x31b   : > { %v2211_v15 = vmul.f32 %v2191_v21, %v4615_v53  ;;  %v2226_v37 = vadd.f32 %v2210_v19, %v2162_v7 }
 0x31d   : > { %v2227_v41 = vadd.f32 %v2211_v15, %v2163_v18 }
 0x31f   : > { %v3080_v39 = vpack.c.bf16 %v2227_v41, %v2226_v37 }
 0x320   : > { %v2193_v10 = vpop.permute.xlu0 %2192 }
 0x321   : > { %3143 = vst [vmem:[%s4021_s16 + $0x28] sm:$0xff] %v3080_v39   ;;  %v2212_v20 = vmul.f32 %v2193_v10, %v4645_v35  ;;  %v4868_v35 = vld [vmem:[#allocation10_spill] sm:$0xff] }
 0x322   : > { %v2195_v31 = vpop.permute.xlu1 %2194  ;;  %v2166_v54 = vmul.f32 %v4868_v35, %v4706_v28 }
 0x323   : > { %v2213_v30 = vmul.f32 %v2195_v31, %v4866_v24  ;;  %v2228_v3 = vadd.f32 %v2212_v20, %v2164_v48 }
 0x325   : > { %v2229_v36 = vadd.f32 %v2213_v30, %v2165_v43 }
 0x327   : > { %v3085_v53 = vpack.c.bf16 %v2229_v36, %v2228_v3 }
 0x328   : > { %v2197_v50 = vpop.permute.xlu0 %2196 }
 0x329   : > { %3144 = vst [vmem:[%s4021_s16 + $0x30] sm:$0xff] %v3085_v53   ;;  %v2214_v8 = vmul.f32 %v2197_v50, %v4867_v40 }
 0x32a   : > { %v2199_v52 = vpop.permute.xlu1 %2198 }
 0x32b   : > { %v2215_v6 = vmul.f32 %v2199_v52, %v4721_v12  ;;  %v2230_v16 = vadd.f32 %v2214_v8, %v2166_v54 }
 0x32d   : > { %v2231_v46 = vadd.f32 %v2215_v6, %v2167_v49 }
 0x32f   : > { %v3090_v23 = vpack.c.bf16 %v2231_v46, %v2230_v16 }
 0x331   : > { %3145 = vst [vmem:[%s4021_s16 + $0x38] sm:$0xff] %v3090_v23  }
 0x332 PF: > { %s20_s19 = sadd.s32 1, %s3616_s19   ;;  %s4870_s16 = sld [smem:[#allocation6_spill]] }
 0x333   : > { %p17_p5 = scmp.ge.s32.totalorder %s20_s19, 6   ;;  %s4871_s6 = sld [smem:[#allocation7_spill]] }
 0x334   : > { %s4872_s18 = sld [smem:[#allocation8_spill]]  ;;  %s4873_s30 = smov %s3580_s10 }
 0x335   : > { %s4874_s10 = smov %s3766_s21  ;;  %s4875_s11 = smov %s3588_s12 }
 0x336   : > { %s4876_s12 = smov %s3754_s5  ;;  %s4877_s13 = smov %s3596_s14 }
 0x337   : > { %s4878_s14 = smov %s3746_s27  ;;  %s4879_s15 = smov %s3608_s17 }
 0x338   :  { %19 = sbr.rel (!%p17_p5) target bundleno = 14 (0xe), region = 259 }
 0x339   : > { %s4880_s17 = smov %s4871_s6 }

// kernel: deepseek_forward.14
= control target key start
LH: loop header
LB: loop body
LE: loop exit
PB: predicated region body
PF: predicated region fallthrough
CT: control target
= control target key end

     0   :  { %s7194_s0 = inlined_call_operand.vmem [shape: f32[256,256], index: 0, kind: input, shape index: {}]   ;;  %s7195_s2 = inlined_call_operand.vmem [shape: bf16[256,512], index: 2, kind: input, shape index: {}]   ;;  %s7196_s3 = inlined_call_operand.vmem [shape: bf16[256,512], index: 3, kind: input, shape index: {}]   ;;  %s7197_s1 = inlined_call_operand.vmem [shape: f32[1,256], index: 1, kind: input, shape index: {}]   ;;  %s7198_s4 = inlined_call_operand.vmem [shape: bf16[256,512], index: 4, kind: output, shape index: {}]  }
   0x1   :  { %v4830_v0 = vld [vmem:[%s7194_s0] sm:$0xff]  ;;  %v4835_v1 = vld [vmem:[%s7194_s0 + $0x8] sm:$0xff]  ;;  %v4852_v7 = vld [vmem:[%s7194_s0 + $0x10] sm:$0xff] }
   0x2   :  { %v25_v2 = vld [vmem:[%s7194_s0 + $0x20] sm:$0xff]  ;;  %v85_v3 = vmul.f32 %v4830_v0, %v4830_v0  ;;  %v86_v4 = vmul.f32 %v4835_v1, %v4835_v1  ;;  %v4847_v5 = vld [vmem:[%s7194_s0 + $0x28] sm:$0xff]  ;;  %v4857_v8 = vld [vmem:[%s7194_s0 + $0x18] sm:$0xff]  ;;  %v87_v10 = vmul.f32 %v4852_v7, %v4852_v7 }
   0x3   :  { %v89_v6 = vmul.f32 %v25_v2, %v25_v2  ;;  %v90_v9 = vmul.f32 %v4847_v5, %v4847_v5  ;;  %v88_v11 = vmul.f32 %v4857_v8, %v4857_v8  ;;  %v27_v12 = vld [vmem:[%s7194_s0 + $0x30] sm:$0xff]  ;;  %v4871_v13 = vld [vmem:[%s7194_s0 + $0x38] sm:$0xff]  ;;  %v29_v19 = vld [vmem:[%s7194_s0 + $0x40] sm:$0xff] }
   0x4   :  { %v31_v14 = vld [vmem:[%s7194_s0 + $0x50] sm:$0xff]  ;;  %v149_v15 = vadd.f32 %v86_v4, %v85_v3  ;;  %v91_v16 = vmul.f32 %v27_v12, %v27_v12  ;;  %v92_v17 = vmul.f32 %v4871_v13, %v4871_v13  ;;  %v4881_v18 = vld [vmem:[%s7194_s0 + $0x58] sm:$0xff]  ;;  %v4889_v20 = vld [vmem:[%s7194_s0 + $0x48] sm:$0xff]  ;;  %v93_v23 = vmul.f32 %v29_v19, %v29_v19 }
   0x5   :  { %v155_v21 = vadd.f32 %v90_v9, %v89_v6  ;;  %v152_v22 = vadd.f32 %v88_v11, %v87_v10  ;;  %v94_v24 = vmul.f32 %v4889_v20, %v4889_v20  ;;  %v95_v26 = vmul.f32 %v31_v14, %v31_v14  ;;  %v33_v28 = vld [vmem:[%s7194_s0 + $0x60] sm:$0xff]  ;;  %v34_v29 = vld [vmem:[%s7194_s0 + $0x68] sm:$0xff]  ;;  %v35_v30 = vld [vmem:[%s7194_s0 + $0x70] sm:$0xff] }
   0x6   :  { %150 = vadd.xlane.f32.xlu0 %v149_v15  ;;  %v158_v25 = vadd.f32 %v92_v17, %v91_v16  ;;  %v96_v27 = vmul.f32 %v4881_v18, %v4881_v18  ;;  %v36_v31 = vld [vmem:[%s7194_s0 + $0x78] sm:$0xff]  ;;  %v97_v33 = vmul.f32 %v33_v28, %v33_v28  ;;  %v98_v34 = vmul.f32 %v34_v29, %v34_v29  ;;  %v37_v38 = vld [vmem:[%s7194_s0 + $0x80] sm:$0xff]  ;;  %v38_v39 = vld [vmem:[%s7194_s0 + $0x88] sm:$0xff] }
   0x7   :  { %156 = vadd.xlane.f32.xlu1 %v155_v21  ;;  %v161_v32 = vadd.f32 %v94_v24, %v93_v23  ;;  %v99_v36 = vmul.f32 %v35_v30, %v35_v30  ;;  %v100_v37 = vmul.f32 %v36_v31, %v36_v31  ;;  %v39_v40 = vld [vmem:[%s7194_s0 + $0x90] sm:$0xff]  ;;  %v40_v41 = vld [vmem:[%s7194_s0 + $0x98] sm:$0xff]  ;;  %v101_v43 = vmul.f32 %v37_v38, %v37_v38  ;;  %v41_v48 = vld [vmem:[%s7194_s0 + $0xa0] sm:$0xff] }
   0x8   :  { %v164_v35 = vadd.f32 %v96_v27, %v95_v26  ;;  %v167_v42 = vadd.f32 %v98_v34, %v97_v33  ;;  %v102_v44 = vmul.f32 %v38_v39, %v38_v39  ;;  %v103_v46 = vmul.f32 %v39_v40, %v39_v40  ;;  %v42_v49 = vld [vmem:[%s7194_s0 + $0xa8] sm:$0xff]  ;;  %v43_v50 = vld [vmem:[%s7194_s0 + $0xb0] sm:$0xff]  ;;  %v44_v51 = vld [vmem:[%s7194_s0 + $0xb8] sm:$0xff] }
   0x9   :  { %v170_v45 = vadd.f32 %v100_v37, %v99_v36  ;;  %v104_v47 = vmul.f32 %v40_v41, %v40_v41  ;;  %v45_v52 = vld [vmem:[%s7194_s0 + $0xc0] sm:$0xff]  ;;  %v105_v54 = vmul.f32 %v41_v48, %v41_v48  ;;  %v106_v55 = vmul.f32 %v42_v49, %v42_v49  ;;  %v47_v56 = vld [vmem:[%s7194_s0 + $0xd0] sm:$0xff]  ;;  %v48_v57 = vld [vmem:[%s7194_s0 + $0xd8] sm:$0xff] }
   0xa   :  { %153 = vadd.xlane.f32.xlu0 %v152_v22  ;;  %v173_v53 = vadd.f32 %v102_v44, %v101_v43  ;;  %v46_v58 = vld [vmem:[%s7194_s0 + $0xc8] sm:$0xff]  ;;  %v107_v60 = vmul.f32 %v43_v50, %v43_v50  ;;  %v108_v61 = vmul.f32 %v44_v51, %v44_v51  ;;  %v3978_v62 = vld [vmem:[%s7195_s2 + $0x4] ss:$16 sps:$4 sm:$0xff]   ;;  %v3982_v2 = vld [vmem:[%s7195_s2] ss:$16 sps:$4 sm:$0xff]   ;;  %v109_v9 = vmul.f32 %v45_v52, %v45_v52 }
   0xb   :  { %159 = vadd.xlane.f32.xlu1 %v158_v25  ;;  %v176_v59 = vadd.f32 %v104_v47, %v103_v46  ;;  %v3980_v63 = vld [vmem:[%s7195_s2 + $0xc] ss:$16 sps:$4 sm:$0xff]   ;;  %v3983_v3 = vld [vmem:[%s7195_s2 + $0x8] ss:$16 sps:$4 sm:$0xff]   ;;  %962 = vmatprep.subr.bf16.mxu0 %v3978_v62  ;;  %v3984_v4 = vld [vmem:[%s7195_s2 + $0x24] ss:$16 sps:$4 sm:$0xff]   ;;  %v179_v6 = vadd.f32 %v106_v55, %v105_v54  ;;  %v110_v10 = vmul.f32 %v46_v58, %v46_v58 }
   0xc   :  { %1155 = vmatprep.subr.bf16.mxu1 %v3980_v63  ;;  %v3986_v11 = vld [vmem:[%s7195_s2 + $0x2c] ss:$16 sps:$4 sm:$0xff]   ;;  %v182_v12 = vadd.f32 %v108_v61, %v107_v60  ;;  %v111_v14 = vmul.f32 %v47_v56, %v47_v56  ;;  %v112_v15 = vmul.f32 %v48_v57, %v48_v57  ;;  %v49_v16 = vld [vmem:[%s7194_s0 + $0xe0] sm:$0xff]  ;;  %963 = vmatpush1.bf16.msra.mxu0 %v3982_v2  ;;  %v51_v21 = vld [vmem:[%s7194_s0 + $0xf0] sm:$0xff] }
   0xd   :  { %v50_v17 = vld [vmem:[%s7194_s0 + $0xe8] sm:$0xff]  ;;  %v3988_v19 = vld [vmem:[%s7195_s2 + $0x20] ss:$16 sps:$4 sm:$0xff]   ;;  %v52_v22 = vld [vmem:[%s7194_s0 + $0xf8] sm:$0xff]  ;;  %1156 = vmatpush1.bf16.msra.mxu1 %v3983_v3  ;;  %964 = vmatprep.subr.bf16.mxu0 %v3984_v4  ;;  %v185_v27 = vadd.f32 %v110_v10, %v109_v9  ;;  %v113_v28 = vmul.f32 %v49_v16, %v49_v16  ;;  %v115_v34 = vmul.f32 %v51_v21, %v51_v21 }
   0xe   :  { %162 = vadd.xlane.f32.xlu0 %v161_v32  ;;  %v3989_v23 = vld [vmem:[%s7195_s2 + $0x28] ss:$16 sps:$4 sm:$0xff]   ;;  %v53_v24 = vld [vmem:[%s7194_s0 + $0x100] sm:$0xff]  ;;  %1157 = vmatprep.subr.bf16.mxu1 %v3986_v11  ;;  %v114_v29 = vmul.f32 %v50_v17, %v50_v17  ;;  %v55_v30 = vld [vmem:[%s7194_s0 + $0x110] sm:$0xff]  ;;  %v188_v33 = vadd.f32 %v112_v15, %v111_v14 }
   0xf   :  { %165 = vadd.xlane.f32.xlu1 %v164_v35  ;;  %v54_v25 = vld [vmem:[%s7194_s0 + $0x108] sm:$0xff]  ;;  %v3990_v26 = vld [vmem:[%s7195_s2 + $0x44] ss:$16 sps:$4 sm:$0xff]   ;;  %v56_v31 = vld [vmem:[%s7194_s0 + $0x118] sm:$0xff]  ;;  %v116_v35 = vmul.f32 %v52_v22, %v52_v22  ;;  %v117_v41 = vmul.f32 %v53_v24, %v53_v24  ;;  %v119_v48 = vmul.f32 %v55_v30, %v55_v30 }
  0x10   :  { %v3992_v32 = vld [vmem:[%s7195_s2 + $0x4c] ss:$16 sps:$4 sm:$0xff]   ;;  %965 = vmatpush1.bf16.msra.mxu0 %v3988_v19  ;;  %v3994_v36 = vld [vmem:[%s7195_s2 + $0x40] ss:$16 sps:$4 sm:$0xff]   ;;  %v3995_v37 = vld [vmem:[%s7195_s2 + $0x48] ss:$16 sps:$4 sm:$0xff]   ;;  %v191_v40 = vadd.f32 %v114_v29, %v113_v28  ;;  %v120_v49 = vmul.f32 %v56_v31, %v56_v31 }
  0x11   :  { %1158 = vmatpush1.bf16.msra.mxu1 %v3989_v23  ;;  %966 = vmatprep.subr.bf16.mxu0 %v3990_v26  ;;  %v3996_v38 = vld [vmem:[%s7195_s2 + $0x64] ss:$16 sps:$4 sm:$0xff]   ;;  %v3998_v39 = vld [vmem:[%s7195_s2 + $0x6c] ss:$16 sps:$4 sm:$0xff]   ;;  %v194_v47 = vadd.f32 %v116_v35, %v115_v34  ;;  %v4000_v50 = vld [vmem:[%s7195_s2 + $0x60] ss:$16 sps:$4 sm:$0xff]  }
  0x12   :  { %168 = vadd.xlane.f32.xlu0 %v167_v42  ;;  %1159 = vmatprep.subr.bf16.mxu1 %v3992_v32  ;;  %v118_v42 = vmul.f32 %v54_v25, %v54_v25  ;;  %v59_v43 = vld [vmem:[%s7194_s0 + $0x130] sm:$0xff]  ;;  %v60_v44 = vld [vmem:[%s7194_s0 + $0x138] sm:$0xff]  ;;  %v58_v46 = vld [vmem:[%s7194_s0 + $0x128] sm:$0xff]  ;;  %v200_v60 = vadd.f32 %v120_v49, %v119_v48 }
  0x13   :  { %171 = vadd.xlane.f32.xlu1 %v170_v45  ;;  %v57_v45 = vld [vmem:[%s7194_s0 + $0x120] sm:$0xff]  ;;  %v4001_v51 = vld [vmem:[%s7195_s2 + $0x68] ss:$16 sps:$4 sm:$0xff]   ;;  %v4004_v54 = vld [vmem:[%s7195_s2 + $0x8c] ss:$16 sps:$4 sm:$0xff]   ;;  %v122_v57 = vmul.f32 %v58_v46, %v58_v46  ;;  %v123_v61 = vmul.f32 %v59_v43, %v59_v43  ;;  %v124_v62 = vmul.f32 %v60_v44, %v60_v44 }
  0x14   :  { %967 = vmatpush1.bf16.msra.mxu0 %v3994_v36  ;;  %v4002_v52 = vld [vmem:[%s7195_s2 + $0x84] ss:$16 sps:$4 sm:$0xff]   ;;  %v197_v55 = vadd.f32 %v118_v42, %v117_v41  ;;  %v121_v56 = vmul.f32 %v57_v45, %v57_v45  ;;  %v4006_v63 = vld [vmem:[%s7195_s2 + $0x80] ss:$16 sps:$4 sm:$0xff]   ;;  %v64_v2 = vld [vmem:[%s7194_s0 + $0x158] sm:$0xff] }
  0x15   :  { %1160 = vmatpush1.bf16.msra.mxu1 %v3995_v37  ;;  %968 = vmatprep.subr.bf16.mxu0 %v3996_v38  ;;  %v63_v58 = vld [vmem:[%s7194_s0 + $0x150] sm:$0xff]  ;;  %v4007_v3 = vld [vmem:[%s7195_s2 + $0x88] ss:$16 sps:$4 sm:$0xff]   ;;  %v4010_v9 = vld [vmem:[%s7195_s2 + $0xac] ss:$16 sps:$4 sm:$0xff]   ;;  %v206_v16 = vadd.f32 %v124_v62, %v123_v61  ;;  %v128_v19 = vmul.f32 %v64_v2, %v64_v2 }
  0x16   :  { %174 = vadd.xlane.f32.xlu0 %v173_v53  ;;  %v61_v53 = vld [vmem:[%s7194_s0 + $0x140] sm:$0xff]  ;;  %1161 = vmatprep.subr.bf16.mxu1 %v3998_v39  ;;  %v203_v10 = vadd.f32 %v122_v57, %v121_v56  ;;  %v67_v14 = vld [vmem:[%s7194_s0 + $0x170] sm:$0xff]  ;;  %v66_v15 = vld [vmem:[%s7194_s0 + $0x168] sm:$0xff]  ;;  %v127_v17 = vmul.f32 %v63_v58, %v63_v58 }
  0x17   :  { %177 = vadd.xlane.f32.xlu1 %v176_v59  ;;  %v62_v59 = vld [vmem:[%s7194_s0 + $0x148] sm:$0xff]  ;;  %v4008_v4 = vld [vmem:[%s7195_s2 + $0xa4] ss:$16 sps:$4 sm:$0xff]   ;;  %v125_v11 = vmul.f32 %v61_v53, %v61_v53  ;;  %v4012_v21 = vld [vmem:[%s7195_s2 + $0xa0] ss:$16 sps:$4 sm:$0xff]   ;;  %v130_v29 = vmul.f32 %v66_v15, %v66_v15  ;;  %v131_v34 = vmul.f32 %v67_v14, %v67_v14 }
  0x18   :  { %969 = vmatpush1.bf16.msra.mxu0 %v4000_v50  ;;  %v68_v22 = vld [vmem:[%s7194_s0 + $0x178] sm:$0xff]  ;;  %v4014_v24 = vld [vmem:[%s7195_s2 + $0xc4] ss:$16 sps:$4 sm:$0xff]   ;;  %v70_v32 = vld [vmem:[%s7194_s0 + $0x188] sm:$0xff] }
  0x19   :  { %1162 = vmatpush1.bf16.msra.mxu1 %v4001_v51  ;;  %970 = vmatprep.subr.bf16.mxu0 %v4002_v52  ;;  %v4013_v23 = vld [vmem:[%s7195_s2 + $0xa8] ss:$16 sps:$4 sm:$0xff]   ;;  %v69_v25 = vld [vmem:[%s7194_s0 + $0x180] sm:$0xff]  ;;  %v4016_v26 = vld [vmem:[%s7195_s2 + $0xcc] ss:$16 sps:$4 sm:$0xff]   ;;  %v132_v35 = vmul.f32 %v68_v22, %v68_v22  ;;  %v134_v43 = vmul.f32 %v70_v32, %v70_v32 }
  0x1a   :  { %180 = vadd.xlane.f32.xlu0 %v179_v6  ;;  %v65_v6 = vld [vmem:[%s7194_s0 + $0x160] sm:$0xff]  ;;  %1163 = vmatprep.subr.bf16.mxu1 %v4004_v54  ;;  %v71_v30 = vld [vmem:[%s7194_s0 + $0x190] sm:$0xff]  ;;  %v72_v31 = vld [vmem:[%s7194_s0 + $0x198] sm:$0xff]  ;;  %v133_v42 = vmul.f32 %v69_v25, %v69_v25 }
  0x1b   :  { %183 = vadd.xlane.f32.xlu1 %v182_v12  ;;  %v126_v12 = vmul.f32 %v62_v59, %v62_v59  ;;  %v129_v28 = vmul.f32 %v65_v6, %v65_v6  ;;  %v4018_v36 = vld [vmem:[%s7195_s2 + $0xc0] ss:$16 sps:$4 sm:$0xff]   ;;  %v4019_v37 = vld [vmem:[%s7195_s2 + $0xc8] ss:$16 sps:$4 sm:$0xff]   ;;  %v4020_v38 = vld [vmem:[%s7195_s2 + $0xe4] ss:$16 sps:$4 sm:$0xff]   ;;  %v218_v46 = vadd.f32 %v132_v35, %v131_v34  ;;  %v136_v48 = vmul.f32 %v72_v31, %v72_v31 }
  0x1c   :  { %971 = vmatpush1.bf16.msra.mxu0 %v4006_v63  ;;  %v73_v39 = vld [vmem:[%s7194_s0 + $0x1a0] sm:$0xff]  ;;  %v75_v44 = vld [vmem:[%s7194_s0 + $0x1b0] sm:$0xff]  ;;  %v74_v45 = vld [vmem:[%s7194_s0 + $0x1a8] sm:$0xff] }
  0x1d   :  { %1164 = vmatpush1.bf16.msra.mxu1 %v4007_v3  ;;  %972 = vmatprep.subr.bf16.mxu0 %v4008_v4  ;;  %v215_v41 = vadd.f32 %v130_v29, %v129_v28  ;;  %v4024_v49 = vld [vmem:[%s7195_s2 + $0xe0] ss:$16 sps:$4 sm:$0xff]   ;;  %v76_v50 = vld [vmem:[%s7194_s0 + $0x1b8] sm:$0xff]  ;;  %v4026_v52 = vld [vmem:[%s7195_s2 + $0x104] ss:$16 sps:$4 sm:$0xff]   ;;  %v137_v56 = vmul.f32 %v73_v39, %v73_v39  ;;  %v138_v57 = vmul.f32 %v74_v45, %v74_v45 }
  0x1e   :  { %186 = vadd.xlane.f32.xlu0 %v185_v27  ;;  %1165 = vmatprep.subr.bf16.mxu1 %v4010_v9  ;;  %v209_v27 = vadd.f32 %v126_v12, %v125_v11  ;;  %v4025_v51 = vld [vmem:[%s7195_s2 + $0xe8] ss:$16 sps:$4 sm:$0xff]   ;;  %v77_v53 = vld [vmem:[%s7194_s0 + $0x1c0] sm:$0xff]  ;;  %v4028_v54 = vld [vmem:[%s7195_s2 + $0x10c] ss:$16 sps:$4 sm:$0xff]   ;;  %v139_v62 = vmul.f32 %v75_v44, %v75_v44  ;;  %v140_v63 = vmul.f32 %v76_v50, %v76_v50 }
  0x1f   :  { %189 = vadd.xlane.f32.xlu1 %v188_v33  ;;  %v212_v33 = vadd.f32 %v128_v19, %v127_v17  ;;  %v79_v58 = vld [vmem:[%s7194_s0 + $0x1d0] sm:$0xff]  ;;  %v80_v59 = vld [vmem:[%s7194_s0 + $0x1d8] sm:$0xff]  ;;  %v81_v6 = vld [vmem:[%s7194_s0 + $0x1e0] sm:$0xff]  ;;  %v141_v11 = vmul.f32 %v77_v53, %v77_v53 }
  0x20   :  { %973 = vmatpush1.bf16.msra.mxu0 %v4012_v21  ;;  %v4030_v2 = vld [vmem:[%s7195_s2 + $0x100] ss:$16 sps:$4 sm:$0xff]   ;;  %v4031_v3 = vld [vmem:[%s7195_s2 + $0x108] ss:$16 sps:$4 sm:$0xff]   ;;  %v4032_v4 = vld [vmem:[%s7195_s2 + $0x124] ss:$16 sps:$4 sm:$0xff]   ;;  %v143_v17 = vmul.f32 %v79_v58, %v79_v58  ;;  %v144_v19 = vmul.f32 %v80_v59, %v80_v59 }
  0x21   :  { %1166 = vmatpush1.bf16.msra.mxu1 %v4013_v23  ;;  %974 = vmatprep.subr.bf16.mxu0 %v4014_v24  ;;  %v4034_v9 = vld [vmem:[%s7195_s2 + $0x12c] ss:$16 sps:$4 sm:$0xff]   ;;  %v83_v14 = vld [vmem:[%s7194_s0 + $0x1f0] sm:$0xff]  ;;  %v4037_v23 = vld [vmem:[%s7195_s2 + $0x128] ss:$16 sps:$4 sm:$0xff]  }
  0x22   :  { %192 = vadd.xlane.f32.xlu0 %v191_v40  ;;  %1167 = vmatprep.subr.bf16.mxu1 %v4016_v26  ;;  %v4022_v40 = vld [vmem:[%s7195_s2 + $0xec] ss:$16 sps:$4 sm:$0xff]   ;;  %v4036_v21 = vld [vmem:[%s7195_s2 + $0x120] ss:$16 sps:$4 sm:$0xff]   ;;  %v4038_v24 = vld [vmem:[%s7195_s2 + $0x144] ss:$16 sps:$4 sm:$0xff]   ;;  %v236_v29 = vadd.f32 %v144_v19, %v143_v17 }
  0x23   :  { %195 = vadd.xlane.f32.xlu1 %v194_v47  ;;  %v135_v47 = vmul.f32 %v71_v30, %v71_v30  ;;  %v82_v15 = vld [vmem:[%s7194_s0 + $0x1e8] sm:$0xff]  ;;  %v84_v22 = vld [vmem:[%s7194_s0 + $0x1f8] sm:$0xff]  ;;  %v147_v30 = vmul.f32 %v83_v14, %v83_v14  ;;  %v4042_v32 = vld [vmem:[%s7195_s2 + $0x140] ss:$16 sps:$4 sm:$0xff]  }
  0x24   :  { %975 = vmatpush1.bf16.msra.mxu0 %v4018_v36  ;;  %v4040_v25 = vld [vmem:[%s7195_s2 + $0x14c] ss:$16 sps:$4 sm:$0xff]   ;;  %v146_v28 = vmul.f32 %v82_v15, %v82_v15  ;;  %v148_v31 = vmul.f32 %v84_v22, %v84_v22  ;;  %v4044_v34 = vld [vmem:[%s7195_s2 + $0x164] ss:$16 sps:$4 sm:$0xff]   ;;  %v4049_v39 = vld [vmem:[%s7195_s2 + $0x168] ss:$16 sps:$4 sm:$0xff]  }
  0x25   :  { %1168 = vmatpush1.bf16.msra.mxu1 %v4019_v37  ;;  %976 = vmatprep.subr.bf16.mxu0 %v4020_v38  ;;  %v224_v61 = vadd.f32 %v136_v48, %v135_v47  ;;  %v4046_v35 = vld [vmem:[%s7195_s2 + $0x16c] ss:$16 sps:$4 sm:$0xff]   ;;  %v4048_v38 = vld [vmem:[%s7195_s2 + $0x160] ss:$16 sps:$4 sm:$0xff]   ;;  %v4056_v44 = vld [vmem:[%s7195_s2 + $0x1a4] ss:$16 sps:$4 sm:$0xff]  }
  0x26   :  { %198 = vadd.xlane.f32.xlu0 %v197_v55  ;;  %1169 = vmatprep.subr.bf16.mxu1 %v4022_v40  ;;  %v221_v55 = vadd.f32 %v134_v43, %v133_v42  ;;  %v242_v37 = vadd.f32 %v148_v31, %v147_v30  ;;  %v4050_v40 = vld [vmem:[%s7195_s2 + $0x184] ss:$16 sps:$4 sm:$0xff]   ;;  %v4054_v42 = vld [vmem:[%s7195_s2 + $0x180] ss:$16 sps:$4 sm:$0xff]   ;;  %v4055_v43 = vld [vmem:[%s7195_s2 + $0x188] ss:$16 sps:$4 sm:$0xff]  }
  0x27   :  { %201 = vadd.xlane.f32.xlu1 %v200_v60  ;;  %v78_v60 = vld [vmem:[%s7194_s0 + $0x1c8] sm:$0xff]  ;;  %v4062_v48 = vld [vmem:[%s7195_s2 + $0x1c4] ss:$16 sps:$4 sm:$0xff]   ;;  %v4066_v50 = vld [vmem:[%s7195_s2 + $0x1c0] ss:$16 sps:$4 sm:$0xff]  }
  0x28   :  { %977 = vmatpush1.bf16.msra.mxu0 %v4024_v49  ;;  %v142_v12 = vmul.f32 %v78_v60, %v78_v60  ;;  %v4058_v45 = vld [vmem:[%s7195_s2 + $0x1ac] ss:$16 sps:$4 sm:$0xff]   ;;  %v4061_v47 = vld [vmem:[%s7195_s2 + $0x1a8] ss:$16 sps:$4 sm:$0xff]  }
  0x29   :  { %1170 = vmatpush1.bf16.msra.mxu1 %v4025_v51  ;;  %978 = vmatprep.subr.bf16.mxu0 %v4026_v52  ;;  %v4064_v49 = vld [vmem:[%s7195_s2 + $0x1cc] ss:$16 sps:$4 sm:$0xff]   ;;  %v4067_v51 = vld [vmem:[%s7195_s2 + $0x1c8] ss:$16 sps:$4 sm:$0xff]   ;;  %v4068_v52 = vld [vmem:[%s7195_s2 + $0x1e4] ss:$16 sps:$4 sm:$0xff]  }
  0x2a   :  { %204 = vadd.xlane.f32.xlu0 %v203_v10  ;;  %1171 = vmatprep.subr.bf16.mxu1 %v4028_v54  ;;  %v227_v10 = vadd.f32 %v138_v57, %v137_v56  ;;  %v233_v26 = vadd.f32 %v142_v12, %v141_v11  ;;  %v4070_v53 = vld [vmem:[%s7195_s2 + $0x1ec] ss:$16 sps:$4 sm:$0xff]   ;;  %v4072_v54 = vld [vmem:[%s7195_s2 + $0x1e0] ss:$16 sps:$4 sm:$0xff]   ;;  %v4076_v56 = vld [vmem:[%s7196_s3 + $0x4] ss:$16 sps:$4 sm:$0xff]  }
  0x2b   :  { %207 = vadd.xlane.f32.xlu1 %v206_v16  ;;  %v230_v16 = vadd.f32 %v140_v63, %v139_v62  ;;  %v4079_v57 = vld [vmem:[%s7196_s3 + $0xc] ss:$16 sps:$4 sm:$0xff]  }
  0x2c   :  { %979 = vmatpush1.bf16.msra.mxu0 %v4030_v2 }
  0x2d   :  { %1172 = vmatpush1.bf16.msra.mxu1 %v4031_v3  ;;  %980 = vmatprep.subr.bf16.mxu0 %v4032_v4 }
  0x2e   :  { %210 = vadd.xlane.f32.xlu0 %v209_v27  ;;  %1173 = vmatprep.subr.bf16.mxu1 %v4034_v9  ;;  %v145_v27 = vmul.f32 %v81_v6, %v81_v6  ;;  %v408_v6 = vlaneseq }
  0x2f   :  { %213 = vadd.xlane.f32.xlu1 %v212_v33  ;;  %v4043_v33 = vld [vmem:[%s7195_s2 + $0x148] ss:$16 sps:$4 sm:$0xff]  }
  0x30   :  { %981 = vmatpush1.bf16.msra.mxu0 %v4036_v21  ;;  %v239_v36 = vadd.f32 %v146_v28, %v145_v27 }
  0x31   :  { %1174 = vmatpush1.bf16.msra.mxu1 %v4037_v23  ;;  %982 = vmatprep.subr.bf16.mxu0 %v4038_v24 }
  0x32   :  { %216 = vadd.xlane.f32.xlu0 %v215_v41  ;;  %1175 = vmatprep.subr.bf16.mxu1 %v4040_v25  ;;  %v4052_v41 = vld [vmem:[%s7195_s2 + $0x18c] ss:$16 sps:$4 sm:$0xff]  }
  0x33   :  { %219 = vadd.xlane.f32.xlu1 %v218_v46  ;;  %v4060_v46 = vld [vmem:[%s7195_s2 + $0x1a0] ss:$16 sps:$4 sm:$0xff]  }
  0x34   :  { %983 = vmatpush1.bf16.msra.mxu0 %v4042_v32 }
  0x35   :  { %1176 = vmatpush1.bf16.msra.mxu1 %v4043_v33  ;;  %984 = vmatprep.subr.bf16.mxu0 %v4044_v34 }
  0x36   :  { %222 = vadd.xlane.f32.xlu0 %v221_v55  ;;  %1177 = vmatprep.subr.bf16.mxu1 %v4046_v35  ;;  %v4073_v55 = vld [vmem:[%s7195_s2 + $0x1e8] ss:$16 sps:$4 sm:$0xff]  }
  0x37   :  { %225 = vadd.xlane.f32.xlu1 %v224_v61 }
  0x38   :  { %985 = vmatpush1.bf16.msra.mxu0 %v4048_v38 }
  0x39   :  { %1178 = vmatpush1.bf16.msra.mxu1 %v4049_v39  ;;  %986 = vmatprep.subr.bf16.mxu0 %v4050_v40 }
  0x3a   :  { %228 = vadd.xlane.f32.xlu0 %v227_v10  ;;  %1179 = vmatprep.subr.bf16.mxu1 %v4052_v41 }
  0x3b   :  { %231 = vadd.xlane.f32.xlu1 %v230_v16  ;;  %v409_v16 = vshrl.u32 %v408_v6, 7  ;;  %v4080_v6 = vld [vmem:[%s7196_s3 + $0x20] ss:$16 sps:$4 sm:$0xff]  }
  0x3c   :  { %987 = vmatpush1.bf16.msra.mxu0 %v4054_v42 }
  0x3d   :  { %1180 = vmatpush1.bf16.msra.mxu1 %v4055_v43  ;;  %988 = vmatprep.subr.bf16.mxu0 %v4056_v44  ;;  %v414_v23 = vsub.s32 1, %v409_v16  ;;  %v410_v27 = vsub.s32 0, %v409_v16  ;;  %v4088_v16 = vld [vmem:[%s7196_s3 + $0x44] ss:$16 sps:$4 sm:$0xff]  }
  0x3e   :  { %234 = vadd.xlane.f32.xlu0 %v233_v26  ;;  %1181 = vmatprep.subr.bf16.mxu1 %v4058_v45  ;;  %v406_v26 = vld [vmem:[%s7197_s1] sm:$0x3] }
  0x3f   :  { %237 = vadd.xlane.f32.xlu1 %v236_v29  ;;  %v5253_v35 = vrot.slane %v406_v26, %v414_v23  ;;  %v5257_v39 = vrot.slane %v406_v26, %v410_v27  ;;  %v4749_v23 = vld [vmem:[%s7194_s0 + $0x50] sm:$0xff] }
  0x40   :  { %989 = vmatpush1.bf16.msra.mxu0 %v4060_v46 }
  0x41   :  { %1182 = vmatpush1.bf16.msra.mxu1 %v4061_v47  ;;  %990 = vmatprep.subr.bf16.mxu0 %v4062_v48 }
  0x42   :  { %240 = vadd.xlane.f32.xlu0 %v239_v36  ;;  %1183 = vmatprep.subr.bf16.mxu1 %v4064_v49 }
  0x43   :  { %243 = vadd.xlane.f32.xlu1 %v242_v37 }
  0x44   :  { %991 = vmatpush1.bf16.msra.mxu0 %v4066_v50 }
  0x45   :  { %1184 = vmatpush1.bf16.msra.mxu1 %v4067_v51  ;;  %992 = vmatprep.subr.bf16.mxu0 %v4068_v52 }
  0x46   :  { %1185 = vmatprep.subr.bf16.mxu1 %v4070_v53 }
  0x48   :  { %993 = vmatpush1.bf16.msra.mxu0 %v4072_v54  ;;  %v4077_v54 = vld [vmem:[%s7196_s3 + $0x8] ss:$16 sps:$4 sm:$0xff]  }
  0x49   :  { %1186 = vmatpush1.bf16.msra.mxu1 %v4073_v55  ;;  %1732 = vmatprep.subr.bf16.mxu0 %v4076_v56 }
  0x4a   :  { %1925 = vmatprep.subr.bf16.mxu1 %v4079_v57 }
  0x93   :  { %v151_v58 = vpop.xlane.xlu0 %150 }
  0x94   :  { %v246_v59 = vmul.f32 0.00390625, %v151_v58  ;;  %v157_v60 = vpop.xlane.xlu1 %156 }
  0x95   :  { %v248_v61 = vmul.f32 0.00390625, %v157_v60 }
  0x96   :  { %v278_v62 = vadd.f32 1e-06, %v246_v59  ;;  %v4746_v59 = vld [vmem:[%s7194_s0 + $0x20] sm:$0xff] }
  0x97   :  { %v280_v63 = vadd.f32 1e-06, %v248_v61  ;;  %v154_v2 = vpop.xlane.xlu0 %153  ;;  %v4747_v61 = vld [vmem:[%s7194_s0 + $0x30] sm:$0xff] }
  0x98   :  { %4170 = vrsqrt.f32 %v278_v62  ;;  %v247_v3 = vmul.f32 0.00390625, %v154_v2  ;;  %v160_v4 = vpop.xlane.xlu1 %159  ;;  %v4085_v2 = vld [vmem:[%s7196_s3 + $0x2c] ss:$16 sps:$4 sm:$0xff]  }
  0x99   :  { %4172 = vrsqrt.f32 %v280_v63  ;;  %v249_v9 = vmul.f32 0.00390625, %v160_v4 }
  0x9a   :  { %v279_v10 = vadd.f32 1e-06, %v247_v3 }
  0x9b   :  { %v281_v11 = vadd.f32 1e-06, %v249_v9  ;;  %v163_v12 = vpop.xlane.xlu0 %162  ;;  %v4083_v9 = vld [vmem:[%s7196_s3 + $0x28] ss:$16 sps:$4 sm:$0xff]  }
  0x9c   :  { %4174 = vrsqrt.f32 %v279_v10  ;;  %v166_v14 = vpop.xlane.xlu1 %165  ;;  %v250_v15 = vmul.f32 0.00390625, %v163_v12 }
  0x9d   :  { %4176 = vrsqrt.f32 %v281_v11  ;;  %v251_v17 = vmul.f32 0.00390625, %v166_v14 }
  0x9e   :  { %v282_v19 = vadd.f32 1e-06, %v250_v15 }
  0x9f   :  { %v283_v21 = vadd.f32 1e-06, %v251_v17  ;;  %v169_v22 = vpop.xlane.xlu0 %168  ;;  %v4091_v17 = vld [vmem:[%s7196_s3 + $0x4c] ss:$16 sps:$4 sm:$0xff]  }
  0xa0   :  { %4178 = vrsqrt.f32 %v282_v19  ;;  %v172_v24 = vpop.xlane.xlu1 %171  ;;  %v252_v25 = vmul.f32 0.00390625, %v169_v22 }
  0xa1   :  { %4180 = vrsqrt.f32 %v283_v21  ;;  %v253_v28 = vmul.f32 0.00390625, %v172_v24  ;;  %v4748_v21 = vld [vmem:[%s7194_s0 + $0x40] sm:$0xff] }
  0xa2   :  { %v4171_v29 = vpop.eup %4170  ;;  %v284_v30 = vadd.f32 1e-06, %v252_v25 }
  0xa3   :  { %v4173_v31 = vpop.eup %4172  ;;  %v285_v32 = vadd.f32 1e-06, %v253_v28  ;;  %v175_v33 = vpop.xlane.xlu0 %174  ;;  %v343_v34 = vmul.f32 %v4171_v29, %v4835_v1  ;;  %v342_v38 = vmul.f32 %v4171_v29, %v4830_v0  ;;  %v4750_v28 = vld [vmem:[%s7194_s0 + $0x68] sm:$0xff] }
  0xa4   :  { %v347_v36 = vmul.f32 %v4173_v31, %v4847_v5  ;;  %v178_v37 = vpop.xlane.xlu1 %177  ;;  %4182 = vrsqrt.f32 %v284_v30  ;;  %v254_v40 = vmul.f32 0.00390625, %v175_v33  ;;  %v346_v60 = vmul.f32 %v4746_v59, %v4173_v31  ;;  %v4751_v30 = vld [vmem:[%s7194_s0 + $0x78] sm:$0xff] }
  0xa5   :  { %4184 = vrsqrt.f32 %v285_v32  ;;  %v255_v42 = vmul.f32 0.00390625, %v178_v37  ;;  %v419_v1 = vmul.f32 %v5253_v35, %v343_v34  ;;  %v418_v47 = vmul.f32 %v5257_v39, %v342_v38  ;;  %v4086_v34 = vld [vmem:[%s7196_s3 + $0x40] ss:$16 sps:$4 sm:$0xff]   ;;  %v4094_v37 = vld [vmem:[%s7196_s3 + $0x64] ss:$16 sps:$4 sm:$0xff]  }
  0xa6   :  { %v4175_v41 = vpop.eup %4174  ;;  %v423_v5 = vmul.f32 %v5253_v35, %v347_v36  ;;  %v286_v49 = vadd.f32 1e-06, %v254_v40  ;;  %v422_v14 = vmul.f32 %v5257_v39, %v346_v60  ;;  %v4089_v36 = vld [vmem:[%s7196_s3 + $0x48] ss:$16 sps:$4 sm:$0xff]   ;;  %v4097_v38 = vld [vmem:[%s7196_s3 + $0x6c] ss:$16 sps:$4 sm:$0xff]  }
  0xa7   :  { %v4177_v43 = vpop.eup %4176  ;;  %v345_v44 = vmul.f32 %v4175_v41, %v4857_v8  ;;  %v344_v45 = vmul.f32 %v4175_v41, %v4852_v7  ;;  %v287_v52 = vadd.f32 1e-06, %v255_v42  ;;  %v181_v8 = vpop.xlane.xlu0 %180  ;;  %v4755_v60 = vld [vmem:[%s7194_s0 + $0x98] sm:$0xff] }
  0xa8   :  { %v349_v46 = vmul.f32 %v4177_v43, %v4871_v13  ;;  %v4074_v13 = vld [vmem:[%s7196_s3] ss:$16 sps:$4 sm:$0xff]   ;;  %v184_v57 = vpop.xlane.xlu1 %183  ;;  %v348_v62 = vmul.f32 %v4747_v61, %v4177_v43  ;;  %4186 = vrsqrt.f32 %v286_v49  ;;  %v256_v3 = vmul.f32 0.00390625, %v181_v8  ;;  %v4103_v49 = vld [vmem:[%s7196_s3 + $0x8c] ss:$16 sps:$4 sm:$0xff]  }
  0xa9   :  { %v421_v0 = vmul.f32 %v5253_v35, %v345_v44  ;;  %v420_v48 = vmul.f32 %v5257_v39, %v344_v45  ;;  %4188 = vrsqrt.f32 %v287_v52  ;;  %v4753_v8 = vld [vmem:[%s7194_s0 + $0x70] sm:$0xff] }
  0xaa   :  { %v4179_v50 = vpop.eup %4178  ;;  %v425_v51 = vmul.f32 %v5253_v35, %v349_v46  ;;  %v424_v15 = vmul.f32 %v5257_v39, %v348_v62  ;;  %v288_v19 = vadd.f32 1e-06, %v256_v3  ;;  %v4106_v3 = vld [vmem:[%s7196_s3 + $0xa4] ss:$16 sps:$4 sm:$0xff]  }
  0xab   :  { %v4181_v53 = vpop.eup %4180  ;;  %v5268_v7 = vpack.c.bf16 %v421_v0, %v419_v1  ;;  %v5276_v55 = vpack.c.bf16 %v420_v48, %v418_v47  ;;  %v351_v56 = vmul.f32 %v4179_v50, %v4889_v20  ;;  %v4082_v20 = vld [vmem:[%s7196_s3 + $0x24] ss:$16 sps:$4 sm:$0xff]   ;;  %v350_v22 = vmul.f32 %v4748_v21, %v4179_v50  ;;  %v187_v32 = vpop.xlane.xlu0 %186  ;;  %v4095_v0 = vld [vmem:[%s7196_s3 + $0x68] ss:$16 sps:$4 sm:$0xff]   ;;  %v4115_v21 = vld [vmem:[%s7196_s3 + $0xcc] ss:$16 sps:$4 sm:$0xff]  }
  0xac   :  { %v5279_v58 = vpack.c.bf16 %v425_v51, %v423_v5  ;;  %v353_v63 = vmul.f32 %v4181_v53, %v4881_v18  ;;  %v257_v18 = vmul.f32 0.00390625, %v184_v57  ;;  %v352_v24 = vmul.f32 %v4749_v23, %v4181_v53  ;;  %v190_v26 = vpop.xlane.xlu1 %189  ;;  %v4092_v5 = vld [vmem:[%s7196_s3 + $0x60] ss:$16 sps:$4 sm:$0xff]   ;;  %v4100_v48 = vld [vmem:[%s7196_s3 + $0x84] ss:$16 sps:$4 sm:$0xff]   ;;  %v4754_v57 = vld [vmem:[%s7194_s0 + $0x88] sm:$0xff] }
  0xad   :  { %994 = vmatprep.mubr.bf16.mxu0 %v5268_v7  ;;  %1187 = vmatprep.mubr.bf16.mxu1 %v5268_v7  ;;  %v427_v10 = vmul.f32 %v5253_v35, %v351_v56  ;;  %v5333_v33 = vpack.c.bf16 %v424_v15, %v422_v14  ;;  %4190 = vrsqrt.f32 %v288_v19  ;;  %v259_v40 = vmul.f32 0.00390625, %v190_v26  ;;  %v4752_v51 = vld [vmem:[%s7194_s0 + $0x60] sm:$0xff] }
  0xae   :  { %995 = vmatmul.mubr.bf16.vlgmr.msra.gmra.mrb[0].mxu0 %v5276_v55  ;;  %1188 = vmatmul.mubr.bf16.vlgmr.msra.gmra.mrb[0].mxu1 %v5276_v55  ;;  %v5298_v4 = vpop.eup %4182  ;;  %v429_v11 = vmul.f32 %v5253_v35, %v353_v63  ;;  %v289_v25 = vadd.f32 1e-06, %v257_v18  ;;  %v426_v41 = vmul.f32 %v5257_v39, %v350_v22  ;;  %v428_v42 = vmul.f32 %v5257_v39, %v352_v24  ;;  %v4098_v63 = vld [vmem:[%s7196_s3 + $0x80] ss:$16 sps:$4 sm:$0xff]   ;;  %v4109_v18 = vld [vmem:[%s7196_s3 + $0xac] ss:$16 sps:$4 sm:$0xff]  }
  0xaf   :  { %1733 = vmatpush1.bf16.msra.mxu0 %v4074_v13  ;;  %1926 = vmatpush1.bf16.msra.mxu1 %v4077_v54  ;;  %v4185_v12 = vpop.eup %4184  ;;  %v355_v29 = vmul.f32 %v4750_v28, %v5298_v4  ;;  %v258_v43 = vmul.f32 0.00390625, %v187_v32  ;;  %v291_v47 = vadd.f32 1e-06, %v259_v40  ;;  %v354_v52 = vmul.f32 %v4752_v51, %v5298_v4  ;;  %v193_v62 = vpop.xlane.xlu0 %192  ;;  %v4104_v15 = vld [vmem:[%s7196_s3 + $0xa0] ss:$16 sps:$4 sm:$0xff]  }
  0xb0   :  { %1004 = vmatprep.mubr.bf16.mxu0 %v5279_v58  ;;  %1197 = vmatprep.mubr.bf16.mxu1 %v5279_v58  ;;  %v5324_v27 = vpack.c.bf16 %v429_v11, %v427_v10  ;;  %v357_v31 = vmul.f32 %v4751_v30, %v4185_v12  ;;  %4192 = vrsqrt.f32 %v289_v25  ;;  %v5367_v50 = vpack.c.bf16 %v428_v42, %v426_v41  ;;  %v196_v54 = vpop.xlane.xlu1 %195  ;;  %v4112_v19 = vld [vmem:[%s7196_s3 + $0xc4] ss:$16 sps:$4 sm:$0xff]   ;;  %v4113_v40 = vld [vmem:[%s7196_s3 + $0xc8] ss:$16 sps:$4 sm:$0xff]  }
  0xb1   :  { %1734 = vmatprep.subr.bf16.mxu0 %v4082_v20  ;;  %1927 = vmatprep.subr.bf16.mxu1 %v4085_v2  ;;  %v431_v45 = vmul.f32 %v5253_v35, %v355_v29  ;;  %v356_v53 = vmul.f32 %v4753_v8, %v4185_v12  ;;  %v290_v13 = vadd.f32 1e-06, %v258_v43  ;;  %v4101_v20 = vld [vmem:[%s7196_s3 + $0x88] ss:$16 sps:$4 sm:$0xff]   ;;  %4194 = vrsqrt.f32 %v291_v47  ;;  %v4756_v23 = vld [vmem:[%s7194_s0 + $0x80] sm:$0xff]  ;;  %v4757_v25 = vld [vmem:[%s7194_s0 + $0x90] sm:$0xff] }
  0xb2   :  { %v4187_v44 = vpop.eup %4186  ;;  %v433_v1 = vmul.f32 %v5253_v35, %v357_v31  ;;  %v261_v2 = vmul.f32 0.00390625, %v196_v54  ;;  %v430_v4 = vmul.f32 %v5257_v39, %v354_v52  ;;  %v4758_v31 = vld [vmem:[%s7194_s0 + $0xa8] sm:$0xff]  ;;  %v4118_v42 = vld [vmem:[%s7196_s3 + $0xe4] ss:$16 sps:$4 sm:$0xff]  }
  0xb3   :  { %1735 = vmatpush1.bf16.msra.mxu0 %v4080_v6  ;;  %1928 = vmatpush1.bf16.msra.mxu1 %v4083_v9  ;;  %v4189_v46 = vpop.eup %4188  ;;  %v359_v59 = vmul.f32 %v4754_v57, %v4187_v44  ;;  %v432_v6 = vmul.f32 %v5257_v39, %v356_v53  ;;  %4196 = vrsqrt.f32 %v290_v13  ;;  %v260_v9 = vmul.f32 0.00390625, %v193_v62  ;;  %v4121_v43 = vld [vmem:[%s7196_s3 + $0xec] ss:$16 sps:$4 sm:$0xff]   ;;  %v4124_v52 = vld [vmem:[%s7196_s3 + $0x104] ss:$16 sps:$4 sm:$0xff]  }
  0xb4   :  { %1736 = vmatprep.subr.bf16.mxu0 %v4088_v16  ;;  %1929 = vmatprep.subr.bf16.mxu1 %v4091_v17  ;;  %v5376_v56 = vpack.c.bf16 %v433_v1, %v431_v45  ;;  %v361_v61 = vmul.f32 %v4755_v60, %v4189_v46  ;;  %v4107_v16 = vld [vmem:[%s7196_s3 + $0xa8] ss:$16 sps:$4 sm:$0xff]   ;;  %v293_v17 = vadd.f32 1e-06, %v261_v2  ;;  %v358_v24 = vmul.f32 %v4756_v23, %v4187_v44  ;;  %v202_v29 = vpop.xlane.xlu1 %201  ;;  %v4127_v8 = vld [vmem:[%s7196_s3 + $0x10c] ss:$16 sps:$4 sm:$0xff]  }
  0xb5   :  { %v435_v11 = vmul.f32 %v5253_v35, %v359_v59  ;;  %v5416_v22 = vpack.c.bf16 %v432_v6, %v430_v4  ;;  %v360_v26 = vmul.f32 %v4757_v25, %v4189_v46  ;;  %v292_v28 = vadd.f32 1e-06, %v260_v9  ;;  %v4760_v13 = vld [vmem:[%s7194_s0 + $0xa0] sm:$0xff]  ;;  %v4761_v57 = vld [vmem:[%s7194_s0 + $0xb0] sm:$0xff]  ;;  %v4763_v2 = vld [vmem:[%s7194_s0 + $0xd8] sm:$0xff] }
  0xb6   :  { %1005 = vmatmul.mubr.bf16.gmra.mrb[4].mxu0 %v5333_v33  ;;  %1198 = vmatmul.mubr.bf16.gmra.mrb[4].mxu1 %v5333_v33  ;;  %v437_v12 = vmul.f32 %v5253_v35, %v361_v61  ;;  %4198 = vrsqrt.f32 %v293_v17  ;;  %v263_v41 = vmul.f32 0.00390625, %v202_v29  ;;  %v434_v44 = vmul.f32 %v5257_v39, %v358_v24  ;;  %v4122_v4 = vld [vmem:[%s7196_s3 + $0x100] ss:$16 sps:$4 sm:$0xff]   ;;  %v4125_v6 = vld [vmem:[%s7196_s3 + $0x108] ss:$16 sps:$4 sm:$0xff]  }
  0xb7   :  { %1014 = vmatprep.mubr.bf16.mxu0 %v5324_v27  ;;  %1207 = vmatprep.mubr.bf16.mxu1 %v5324_v27  ;;  %v4191_v10 = vpop.eup %4190  ;;  %v436_v45 = vmul.f32 %v5257_v39, %v360_v26  ;;  %4200 = vrsqrt.f32 %v292_v28  ;;  %v4128_v23 = vld [vmem:[%s7196_s3 + $0x120] ss:$16 sps:$4 sm:$0xff]   ;;  %v4131_v24 = vld [vmem:[%s7196_s3 + $0x128] ss:$16 sps:$4 sm:$0xff]   ;;  %v4136_v26 = vld [vmem:[%s7196_s3 + $0x144] ss:$16 sps:$4 sm:$0xff]  }
  0xb8   :  { %1737 = vmatpush1.bf16.msra.mxu0 %v4086_v34  ;;  %1930 = vmatpush1.bf16.msra.mxu1 %v4089_v36  ;;  %v5424_v30 = vpack.c.bf16 %v437_v12, %v435_v11  ;;  %v363_v32 = vmul.f32 %v4758_v31, %v4191_v10  ;;  %v4759_v34 = vld [vmem:[%s7194_s0 + $0xb8] sm:$0xff]  ;;  %v295_v51 = vadd.f32 1e-06, %v263_v41  ;;  %v362_v54 = vmul.f32 %v4760_v13, %v4191_v10  ;;  %v208_v61 = vpop.xlane.xlu1 %207  ;;  %v4130_v10 = vld [vmem:[%s7196_s3 + $0x124] ss:$16 sps:$4 sm:$0xff]   ;;  %v4766_v41 = vld [vmem:[%s7194_s0 + $0xe8] sm:$0xff] }
  0xb9   :  { %1738 = vmatprep.subr.bf16.mxu0 %v4094_v37  ;;  %1931 = vmatprep.subr.bf16.mxu1 %v4097_v38  ;;  %v199_v37 = vpop.xlane.xlu0 %198  ;;  %v4110_v38 = vld [vmem:[%s7196_s3 + $0xc0] ss:$16 sps:$4 sm:$0xff]   ;;  %v5466_v53 = vpack.c.bf16 %v436_v45, %v434_v44  ;;  %v265_v9 = vmul.f32 0.00390625, %v208_v61  ;;  %v4133_v11 = vld [vmem:[%s7196_s3 + $0x12c] ss:$16 sps:$4 sm:$0xff]  }
  0xba   :  { %v4193_v14 = vpop.eup %4192  ;;  %v262_v1 = vmul.f32 0.00390625, %v199_v37  ;;  %4202 = vrsqrt.f32 %v295_v51  ;;  %v438_v12 = vmul.f32 %v5257_v39, %v362_v54  ;;  %v4139_v28 = vld [vmem:[%s7196_s3 + $0x14c] ss:$16 sps:$4 sm:$0xff]   ;;  %v4764_v31 = vld [vmem:[%s7194_s0 + $0xc0] sm:$0xff] }
  0xbb   :  { %v365_v36 = vmul.f32 %v4759_v34, %v4193_v14  ;;  %v5448_v46 = vpop.eup %4194  ;;  %v364_v59 = vmul.f32 %v4761_v57, %v4193_v14  ;;  %v297_v25 = vadd.f32 1e-06, %v265_v9  ;;  %v4765_v34 = vld [vmem:[%s7194_s0 + $0xd0] sm:$0xff] }
  0xbc   :  { %1739 = vmatpush1.bf16.msra.mxu0 %v4092_v5  ;;  %1932 = vmatpush1.bf16.msra.mxu1 %v4095_v0  ;;  %v439_v5 = vmul.f32 %v5253_v35, %v363_v32  ;;  %v294_v60 = vadd.f32 1e-06, %v262_v1  ;;  %v4134_v1 = vld [vmem:[%s7196_s3 + $0x140] ss:$16 sps:$4 sm:$0xff]   ;;  %v4148_v61 = vld [vmem:[%s7196_s3 + $0x184] ss:$16 sps:$4 sm:$0xff]  }
  0xbd   :  { %1740 = vmatprep.subr.bf16.mxu0 %v4100_v48  ;;  %1933 = vmatprep.subr.bf16.mxu1 %v4103_v49  ;;  %v441_v0 = vmul.f32 %v5253_v35, %v365_v36  ;;  %v4197_v47 = vpop.eup %4196  ;;  %v4116_v48 = vld [vmem:[%s7196_s3 + $0xe0] ss:$16 sps:$4 sm:$0xff]   ;;  %v4119_v49 = vld [vmem:[%s7196_s3 + $0xe8] ss:$16 sps:$4 sm:$0xff]   ;;  %v440_v14 = vmul.f32 %v5257_v39, %v364_v59  ;;  %v368_v36 = vmul.f32 %v4765_v34, %v5448_v46 }
  0xbe   :  { %1015 = vmatmul.mubr.bf16.gmra.mrb[8].mxu0 %v5367_v50  ;;  %1208 = vmatmul.mubr.bf16.gmra.mrb[8].mxu1 %v5367_v50  ;;  %4204 = vrsqrt.f32 %v294_v60  ;;  %v366_v32 = vmul.f32 %v4764_v31, %v4197_v47  ;;  %v4140_v57 = vld [vmem:[%s7196_s3 + $0x160] ss:$16 sps:$4 sm:$0xff]   ;;  %v4143_v59 = vld [vmem:[%s7196_s3 + $0x168] ss:$16 sps:$4 sm:$0xff]  }
  0xbf   :  { %1024 = vmatprep.mubr.bf16.mxu0 %v5376_v56  ;;  %1217 = vmatprep.mubr.bf16.mxu1 %v5376_v56  ;;  %v5474_v62 = vpack.c.bf16 %v441_v0, %v439_v5  ;;  %v5517_v29 = vpack.c.bf16 %v440_v14, %v438_v12  ;;  %4206 = vrsqrt.f32 %v297_v25  ;;  %v4142_v0 = vld [vmem:[%s7196_s3 + $0x164] ss:$16 sps:$4 sm:$0xff]   ;;  %v4771_v14 = vld [vmem:[%s7194_s0 + $0x118] sm:$0xff] }
  0xc0   :  { %1741 = vmatpush1.bf16.msra.mxu0 %v4098_v63  ;;  %1934 = vmatpush1.bf16.msra.mxu1 %v4101_v20  ;;  %v4762_v63 = vld [vmem:[%s7194_s0 + $0xc8] sm:$0xff] }
  0xc1   :  { %1742 = vmatprep.subr.bf16.mxu0 %v4106_v3  ;;  %1935 = vmatprep.subr.bf16.mxu1 %v4109_v18  ;;  %v367_v20 = vmul.f32 %v4762_v63, %v4197_v47  ;;  %v369_v3 = vmul.f32 %v4763_v2, %v5448_v46  ;;  %v205_v18 = vpop.xlane.xlu0 %204  ;;  %v4137_v46 = vld [vmem:[%s7196_s3 + $0x148] ss:$16 sps:$4 sm:$0xff]   ;;  %v4145_v47 = vld [vmem:[%s7196_s3 + $0x16c] ss:$16 sps:$4 sm:$0xff]   ;;  %v4768_v2 = vld [vmem:[%s7194_s0 + $0xe0] sm:$0xff] }
  0xc2   :  { %v4151_v63 = vld [vmem:[%s7196_s3 + $0x18c] ss:$16 sps:$4 sm:$0xff]  }
  0xc3   :  { %v443_v17 = vmul.f32 %v5253_v35, %v367_v20 }
  0xc4   :  { %1743 = vmatpush1.bf16.msra.mxu0 %v4104_v15  ;;  %1936 = vmatpush1.bf16.msra.mxu1 %v4107_v16  ;;  %v264_v15 = vmul.f32 0.00390625, %v205_v18  ;;  %v5499_v16 = vpop.eup %4198  ;;  %v4769_v18 = vld [vmem:[%s7194_s0 + $0xf0] sm:$0xff] }
  0xc5   :  { %1744 = vmatprep.subr.bf16.mxu0 %v4112_v19  ;;  %1937 = vmatprep.subr.bf16.mxu1 %v4115_v21  ;;  %v445_v19 = vmul.f32 %v5253_v35, %v369_v3  ;;  %v4201_v21 = vpop.eup %4200  ;;  %v211_v45 = vpop.xlane.xlu0 %210 }
  0xc6   :  { %1025 = vmatmul.mubr.bf16.gmra.mrb[12].mxu0 %v5416_v22  ;;  %1218 = vmatmul.mubr.bf16.gmra.mrb[12].mxu1 %v5416_v22  ;;  %v296_v37 = vadd.f32 1e-06, %v264_v15  ;;  %v266_v51 = vmul.f32 0.00390625, %v211_v45  ;;  %v370_v3 = vmul.f32 %v4768_v2, %v4201_v21  ;;  %v4772_v45 = vld [vmem:[%s7194_s0 + $0x100] sm:$0xff] }
  0xc7   :  { %1034 = vmatprep.mubr.bf16.mxu0 %v5424_v30  ;;  %1227 = vmatprep.mubr.bf16.mxu1 %v5424_v30 }
  0xc8   :  { %1745 = vmatpush1.bf16.msra.mxu0 %v4110_v38  ;;  %1938 = vmatpush1.bf16.msra.mxu1 %v4113_v40  ;;  %v214_v38 = vpop.xlane.xlu1 %213  ;;  %v5526_v40 = vpack.c.bf16 %v445_v19, %v443_v17  ;;  %4208 = vrsqrt.f32 %v296_v37  ;;  %v4149_v19 = vld [vmem:[%s7196_s3 + $0x188] ss:$16 sps:$4 sm:$0xff]   ;;  %v446_v25 = vmul.f32 %v5257_v39, %v370_v3  ;;  %v4152_v37 = vld [vmem:[%s7196_s3 + $0x1a0] ss:$16 sps:$4 sm:$0xff]  }
  0xc9   :  { %1746 = vmatprep.subr.bf16.mxu0 %v4118_v42  ;;  %1939 = vmatprep.subr.bf16.mxu1 %v4121_v43  ;;  %v371_v42 = vmul.f32 %v4766_v41, %v4201_v21  ;;  %v4767_v43 = vld [vmem:[%s7194_s0 + $0xf8] sm:$0xff]  ;;  %v267_v5 = vmul.f32 0.00390625, %v214_v38  ;;  %v217_v9 = vpop.xlane.xlu0 %216 }
  0xca   :  { %v373_v44 = vmul.f32 %v4767_v43, %v5499_v16  ;;  %v268_v21 = vmul.f32 0.00390625, %v217_v9  ;;  %v4155_v38 = vld [vmem:[%s7196_s3 + $0x1a8] ss:$16 sps:$4 sm:$0xff]   ;;  %v4163_v43 = vld [vmem:[%s7196_s3 + $0x1cc] ss:$16 sps:$4 sm:$0xff]  }
  0xcb   :  { %v299_v60 = vadd.f32 1e-06, %v267_v5 }
  0xcc   :  { %1747 = vmatpush1.bf16.msra.mxu0 %v4116_v48  ;;  %1940 = vmatpush1.bf16.msra.mxu1 %v4119_v49  ;;  %v442_v48 = vmul.f32 %v5257_v39, %v366_v32  ;;  %v444_v49 = vmul.f32 %v5257_v39, %v368_v36  ;;  %v449_v13 = vmul.f32 %v5253_v35, %v373_v44  ;;  %v220_v17 = vpop.xlane.xlu1 %219  ;;  %v300_v41 = vadd.f32 1e-06, %v268_v21 }
  0xcd   :  { %1748 = vmatprep.subr.bf16.mxu0 %v4124_v52  ;;  %1941 = vmatprep.subr.bf16.mxu1 %v4127_v8  ;;  %v5551_v52 = vpop.eup %4202  ;;  %v447_v8 = vmul.f32 %v5253_v35, %v371_v42  ;;  %4210 = vrsqrt.f32 %v299_v60  ;;  %v4160_v42 = vld [vmem:[%s7196_s3 + $0x1c4] ss:$16 sps:$4 sm:$0xff]  }
  0xce   :  { %1035 = vmatmul.mubr.bf16.gmra.mrb[16].mxu0 %v5466_v53  ;;  %1228 = vmatmul.mubr.bf16.gmra.mrb[16].mxu1 %v5466_v53  ;;  %v4205_v54 = vpop.eup %4204  ;;  %v5569_v20 = vpack.c.bf16 %v444_v49, %v442_v48  ;;  %v377_v15 = vmul.f32 %v4771_v14, %v5551_v52  ;;  %v4774_v49 = vld [vmem:[%s7194_s0 + $0x128] sm:$0xff]  ;;  %v4166_v60 = vld [vmem:[%s7196_s3 + $0x1e4] ss:$16 sps:$4 sm:$0xff]  }
  0xcf   :  { %1044 = vmatprep.mubr.bf16.mxu0 %v5474_v62  ;;  %1237 = vmatprep.mubr.bf16.mxu1 %v5474_v62  ;;  %v4207_v31 = vpop.eup %4206 }
  0xd0   :  { %1749 = vmatpush1.bf16.msra.mxu0 %v4122_v4  ;;  %1942 = vmatpush1.bf16.msra.mxu1 %v4125_v6  ;;  %v372_v4 = vmul.f32 %v4769_v18, %v5499_v16  ;;  %v298_v6 = vadd.f32 1e-06, %v266_v51  ;;  %v4146_v16 = vld [vmem:[%s7196_s3 + $0x180] ss:$16 sps:$4 sm:$0xff]   ;;  %v453_v34 = vmul.f32 %v5253_v35, %v377_v15 }
  0xd1   :  { %1750 = vmatprep.subr.bf16.mxu0 %v4130_v10  ;;  %1943 = vmatprep.subr.bf16.mxu1 %v4133_v11  ;;  %v5578_v10 = vpack.c.bf16 %v449_v13, %v447_v8  ;;  %v4770_v11 = vld [vmem:[%s7194_s0 + $0x108] sm:$0xff]  ;;  %v4775_v8 = vld [vmem:[%s7194_s0 + $0x138] sm:$0xff] }
  0xd2   :  { %v375_v12 = vmul.f32 %v4770_v11, %v4205_v54  ;;  %4212 = vrsqrt.f32 %v298_v6  ;;  %v4209_v36 = vpop.eup %4208  ;;  %v381_v13 = vmul.f32 %v4775_v8, %v4207_v31  ;;  %v4164_v11 = vld [vmem:[%s7196_s3 + $0x1e0] ss:$16 sps:$4 sm:$0xff]  }
  0xd3   :  { %v379_v51 = vmul.f32 %v4774_v49, %v4209_v36  ;;  %4214 = vrsqrt.f32 %v300_v41  ;;  %v4781_v49 = vld [vmem:[%s7194_s0 + $0x150] sm:$0xff] }
  0xd4   :  { %1751 = vmatpush1.bf16.msra.mxu0 %v4128_v23  ;;  %1944 = vmatpush1.bf16.msra.mxu1 %v4131_v24  ;;  %v4154_v23 = vld [vmem:[%s7196_s3 + $0x1a4] ss:$16 sps:$4 sm:$0xff]   ;;  %v4157_v24 = vld [vmem:[%s7196_s3 + $0x1ac] ss:$16 sps:$4 sm:$0xff]   ;;  %v451_v32 = vmul.f32 %v5253_v35, %v375_v12  ;;  %v457_v6 = vmul.f32 %v5253_v35, %v381_v13  ;;  %v4167_v12 = vld [vmem:[%s7196_s3 + $0x1e8] ss:$16 sps:$4 sm:$0xff]  }
  0xd5   :  { %1752 = vmatprep.subr.bf16.mxu0 %v4136_v26  ;;  %1945 = vmatprep.subr.bf16.mxu1 %v4139_v28  ;;  %v448_v26 = vmul.f32 %v5257_v39, %v372_v4  ;;  %v269_v28 = vmul.f32 0.00390625, %v220_v17  ;;  %v455_v4 = vmul.f32 %v5253_v35, %v379_v51  ;;  %v4776_v17 = vld [vmem:[%s7194_s0 + $0x120] sm:$0xff] }
  0xd6   :  { %1045 = vmatmul.mubr.bf16.gmra.mrb[20].mxu0 %v5517_v29  ;;  %1238 = vmatmul.mubr.bf16.gmra.mrb[20].mxu1 %v5517_v29  ;;  %v5628_v48 = vpack.c.bf16 %v453_v34, %v451_v32  ;;  %v4779_v32 = vld [vmem:[%s7194_s0 + $0x158] sm:$0xff] }
  0xd7   :  { %1054 = vmatprep.mubr.bf16.mxu0 %v5526_v40  ;;  %1247 = vmatprep.mubr.bf16.mxu1 %v5526_v40  ;;  %v5619_v44 = vpack.c.bf16 %v448_v26, %v446_v25  ;;  %v4211_v18 = vpop.eup %4210  ;;  %v5670_v25 = vpack.c.bf16 %v457_v6, %v455_v4  ;;  %v4778_v26 = vld [vmem:[%s7194_s0 + $0x148] sm:$0xff] }
  0xd8   :  { %1753 = vmatpush1.bf16.msra.mxu0 %v4134_v1  ;;  %1946 = vmatpush1.bf16.msra.mxu1 %v4137_v46  ;;  %v374_v1 = vmul.f32 %v4772_v45, %v4205_v54  ;;  %v4773_v46 = vld [vmem:[%s7194_s0 + $0x110] sm:$0xff]  ;;  %v223_v54 = vpop.xlane.xlu0 %222  ;;  %v385_v34 = vmul.f32 %v4779_v32, %v4211_v18  ;;  %v384_v51 = vmul.f32 %v4781_v49, %v4211_v18  ;;  %v4788_v49 = vld [vmem:[%s7194_s0 + $0x180] sm:$0xff] }
  0xd9   :  { %1754 = vmatprep.subr.bf16.mxu0 %v4142_v0  ;;  %1947 = vmatprep.subr.bf16.mxu1 %v4145_v47  ;;  %v376_v5 = vmul.f32 %v4773_v46, %v5551_v52  ;;  %v301_v0 = vadd.f32 1e-06, %v269_v28  ;;  %v226_v47 = vpop.xlane.xlu1 %225  ;;  %v4158_v52 = vld [vmem:[%s7196_s3 + $0x1c0] ss:$16 sps:$4 sm:$0xff]   ;;  %v270_v3 = vmul.f32 0.00390625, %v223_v54 }
  0xda   :  { %v461_v45 = vmul.f32 %v5253_v35, %v385_v34  ;;  %v4787_v34 = vld [vmem:[%s7194_s0 + $0x198] sm:$0xff] }
  0xdb   :  { %v452_v2 = vmul.f32 %v5257_v39, %v376_v5  ;;  %4216 = vrsqrt.f32 %v301_v0  ;;  %v4780_v0 = vld [vmem:[%s7194_s0 + $0x140] sm:$0xff] }
  0xdc   :  { %1755 = vmatpush1.bf16.msra.mxu0 %v4140_v57  ;;  %1948 = vmatpush1.bf16.msra.mxu1 %v4143_v59  ;;  %v4161_v57 = vld [vmem:[%s7196_s3 + $0x1c8] ss:$16 sps:$4 sm:$0xff]   ;;  %v271_v59 = vmul.f32 0.00390625, %v226_v47  ;;  %v4213_v9 = vpop.eup %4212 }
  0xdd   :  { %1756 = vmatprep.subr.bf16.mxu0 %v4148_v61  ;;  %1949 = vmatprep.subr.bf16.mxu1 %v4151_v63  ;;  %v4169_v61 = vld [vmem:[%s7196_s3 + $0x1ec] ss:$16 sps:$4 sm:$0xff]   ;;  %v450_v63 = vmul.f32 %v5257_v39, %v374_v1  ;;  %v383_v28 = vmul.f32 %v4778_v26, %v4213_v9  ;;  %v382_v47 = vmul.f32 %v4780_v0, %v4213_v9 }
  0xde   :  { %1055 = vmatmul.mubr.bf16.gmra.mrb[24].mxu0 %v5569_v20  ;;  %1248 = vmatmul.mubr.bf16.gmra.mrb[24].mxu1 %v5569_v20  ;;  %v303_v14 = vadd.f32 1e-06, %v271_v59  ;;  %v4783_v59 = vld [vmem:[%s7194_s0 + $0x178] sm:$0xff] }
  0xdf   :  { %1064 = vmatprep.mubr.bf16.mxu0 %v5578_v10  ;;  %1257 = vmatprep.mubr.bf16.mxu1 %v5578_v10  ;;  %v5662_v15 = vpack.c.bf16 %v452_v2, %v450_v63  ;;  %v458_v2 = vmul.f32 %v5257_v39, %v382_v47 }
  0xe0   :  { %1757 = vmatpush1.bf16.msra.mxu0 %v4146_v16  ;;  %1950 = vmatpush1.bf16.msra.mxu1 %v4149_v19  ;;  %v378_v16 = vmul.f32 %v4776_v17, %v4209_v36  ;;  %v4777_v19 = vld [vmem:[%s7194_s0 + $0x130] sm:$0xff]  ;;  %v229_v36 = vpop.xlane.xlu0 %228  ;;  %4218 = vrsqrt.f32 %v303_v14  ;;  %v4784_v17 = vld [vmem:[%s7194_s0 + $0x160] sm:$0xff] }
  0xe1   :  { %1758 = vmatprep.subr.bf16.mxu0 %v4154_v23  ;;  %1951 = vmatprep.subr.bf16.mxu1 %v4157_v24  ;;  %v380_v21 = vmul.f32 %v4777_v19, %v4207_v31  ;;  %v302_v23 = vadd.f32 1e-06, %v270_v3  ;;  %v232_v24 = vpop.xlane.xlu1 %231  ;;  %v272_v41 = vmul.f32 0.00390625, %v229_v36  ;;  %v460_v3 = vmul.f32 %v5257_v39, %v384_v51  ;;  %v4785_v19 = vld [vmem:[%s7194_s0 + $0x170] sm:$0xff] }
  0xe2   :  { %v454_v31 = vmul.f32 %v5257_v39, %v378_v16 }
  0xe3   :  { %4220 = vrsqrt.f32 %v302_v23  ;;  %v304_v8 = vadd.f32 1e-06, %v272_v41  ;;  %v5710_v14 = vpack.c.bf16 %v460_v3, %v458_v2 }
  0xe4   :  { %1759 = vmatpush1.bf16.msra.mxu0 %v4152_v37  ;;  %1952 = vmatpush1.bf16.msra.mxu1 %v4155_v38  ;;  %v273_v37 = vmul.f32 0.00390625, %v232_v24  ;;  %v456_v38 = vmul.f32 %v5257_v39, %v380_v21 }
  0xe5   :  { %1760 = vmatprep.subr.bf16.mxu0 %v4160_v42  ;;  %1953 = vmatprep.subr.bf16.mxu1 %v4163_v43  ;;  %v4215_v42 = vpop.eup %4214  ;;  %v459_v43 = vmul.f32 %v5253_v35, %v383_v28  ;;  %v238_v13 = vpop.xlane.xlu1 %237  ;;  %v4786_v28 = vld [vmem:[%s7194_s0 + $0x188] sm:$0xff] }
  0xe6   :  { %1065 = vmatmul.mubr.bf16.gmra.mrb[28].mxu0 %v5619_v44  ;;  %1258 = vmatmul.mubr.bf16.gmra.mrb[28].mxu1 %v5619_v44  ;;  %v4217_v1 = vpop.eup %4216  ;;  %v305_v46 = vadd.f32 1e-06, %v273_v37  ;;  %v5686_v5 = vpack.c.bf16 %v456_v38, %v454_v31  ;;  %v275_v63 = vmul.f32 0.00390625, %v238_v13  ;;  %v386_v16 = vmul.f32 %v4784_v17, %v4215_v42 }
  0xe7   :  { %1074 = vmatprep.mubr.bf16.mxu0 %v5628_v48  ;;  %1267 = vmatprep.mubr.bf16.mxu1 %v5628_v48  ;;  %v5694_v54 = vpack.c.bf16 %v461_v45, %v459_v43  ;;  %v388_v21 = vmul.f32 %v4785_v19, %v4217_v1 }
  0xe8   :  { %1761 = vmatpush1.bf16.msra.mxu0 %v4158_v52  ;;  %1954 = vmatpush1.bf16.msra.mxu1 %v4161_v57  ;;  %v4782_v52 = vld [vmem:[%s7194_s0 + $0x168] sm:$0xff]  ;;  %4222 = vrsqrt.f32 %v305_v46  ;;  %v462_v38 = vmul.f32 %v5257_v39, %v386_v16  ;;  %v4793_v16 = vld [vmem:[%s7194_s0 + $0x1b0] sm:$0xff] }
  0xe9   :  { %1762 = vmatprep.subr.bf16.mxu0 %v4166_v60  ;;  %1955 = vmatprep.subr.bf16.mxu1 %v4169_v61  ;;  %v387_v57 = vmul.f32 %v4782_v52, %v4215_v42  ;;  %v389_v60 = vmul.f32 %v4783_v59, %v4217_v1  ;;  %v235_v61 = vpop.xlane.xlu0 %234  ;;  %4224 = vrsqrt.f32 %v304_v8  ;;  %v244_v37 = vpop.xlane.xlu1 %243  ;;  %v464_v41 = vmul.f32 %v5257_v39, %v388_v21  ;;  %v4789_v8 = vld [vmem:[%s7194_s0 + $0x190] sm:$0xff]  ;;  %v4790_v59 = vld [vmem:[%s7194_s0 + $0x1a8] sm:$0xff] }
  0xea   :  { %v274_v18 = vmul.f32 0.00390625, %v235_v61  ;;  %v4219_v4 = vpop.eup %4218  ;;  %v277_v42 = vmul.f32 0.00390625, %v244_v37  ;;  %v4791_v61 = vld [vmem:[%s7194_s0 + $0x1b8] sm:$0xff] }
  0xeb   :  { %v463_v6 = vmul.f32 %v5253_v35, %v387_v57  ;;  %v465_v9 = vmul.f32 %v5253_v35, %v389_v60  ;;  %v393_v36 = vmul.f32 %v4787_v34, %v4219_v4  ;;  %v5734_v47 = vpack.c.bf16 %v464_v41, %v462_v38 }
  0xec   :  { %1763 = vmatpush1.bf16.msra.mxu0 %v4164_v11  ;;  %1956 = vmatpush1.bf16.msra.mxu1 %v4167_v12  ;;  %v307_v12 = vadd.f32 1e-06, %v275_v63  ;;  %v306_v23 = vadd.f32 1e-06, %v274_v18  ;;  %v392_v13 = vmul.f32 %v4789_v8, %v4219_v4  ;;  %v309_v52 = vadd.f32 1e-06, %v277_v42 }
  0xed   :  { %v4221_v11 = vpop.eup %4220  ;;  %v241_v24 = vpop.xlane.xlu0 %240  ;;  %v5718_v26 = vpack.c.bf16 %v465_v9, %v463_v6  ;;  %v469_v1 = vmul.f32 %v5253_v35, %v393_v36  ;;  %v4799_v8 = vld [vmem:[%s7194_s0 + $0x1f8] sm:$0xff] }
  0xee   :  { %1075 = vmatmul.mubr.bf16.gmra.mrb[32].mxu0 %v5662_v15  ;;  %1268 = vmatmul.mubr.bf16.gmra.mrb[32].mxu1 %v5662_v15  ;;  %v391_v32 = vmul.f32 %v4786_v28, %v4221_v11  ;;  %4226 = vrsqrt.f32 %v307_v12  ;;  %v276_v31 = vmul.f32 0.00390625, %v241_v24  ;;  %v390_v51 = vmul.f32 %v4788_v49, %v4221_v11  ;;  %v4792_v12 = vld [vmem:[%s7194_s0 + $0x1a0] sm:$0xff]  ;;  %v4795_v28 = vld [vmem:[%s7194_s0 + $0x1d8] sm:$0xff]  ;;  %v4798_v49 = vld [vmem:[%s7194_s0 + $0x1e8] sm:$0xff] }
  0xef   :  { %1084 = vmatprep.mubr.bf16.mxu0 %v5670_v25  ;;  %1277 = vmatprep.mubr.bf16.mxu1 %v5670_v25  ;;  %4228 = vrsqrt.f32 %v306_v23  ;;  %v468_v3 = vmul.f32 %v5257_v39, %v392_v13  ;;  %v4794_v23 = vld [vmem:[%s7194_s0 + $0x1c8] sm:$0xff] }
  0xf0   :  { %v467_v45 = vmul.f32 %v5253_v35, %v391_v32  ;;  %v308_v0 = vadd.f32 1e-06, %v276_v31  ;;  %v466_v2 = vmul.f32 %v5257_v39, %v390_v51 }
  0xf2   :  { %v4223_v43 = vpop.eup %4222  ;;  %v5742_v57 = vpack.c.bf16 %v469_v1, %v467_v45  ;;  %4230 = vrsqrt.f32 %v308_v0  ;;  %v5758_v11 = vpack.c.bf16 %v468_v3, %v466_v2  ;;  %v4797_v1 = vld [vmem:[%s7194_s0 + $0x1d0] sm:$0xff]  ;;  %v4800_v2 = vld [vmem:[%s7194_s0 + $0x1e0] sm:$0xff] }
  0xf3   :  { %v4225_v46 = vpop.eup %4224  ;;  %v397_v63 = vmul.f32 %v4791_v61, %v4223_v43  ;;  %4232 = vrsqrt.f32 %v309_v52  ;;  %v396_v19 = vmul.f32 %v4793_v16, %v4223_v43  ;;  %v4796_v43 = vld [vmem:[%s7194_s0 + $0x1c0] sm:$0xff] }
  0xf4   :  { %v395_v60 = vmul.f32 %v4790_v59, %v4225_v46  ;;  %v394_v17 = vmul.f32 %v4792_v12, %v4225_v46 }
  0xf5   :  { %v473_v6 = vmul.f32 %v5253_v35, %v397_v63  ;;  %v472_v36 = vmul.f32 %v5257_v39, %v396_v19 }
  0xf6   :  { %1085 = vmatmul.mubr.bf16.gmra.mrb[36].mxu0 %v5686_v5  ;;  %1278 = vmatmul.mubr.bf16.gmra.mrb[36].mxu1 %v5686_v5  ;;  %v471_v4 = vmul.f32 %v5253_v35, %v395_v60  ;;  %v470_v34 = vmul.f32 %v5257_v39, %v394_v17 }
  0xf7   :  { %1094 = vmatprep.mubr.bf16.mxu0 %v5694_v54  ;;  %1287 = vmatprep.mubr.bf16.mxu1 %v5694_v54 }
  0xf8   :  { %v4227_v18 = vpop.eup %4226  ;;  %v5766_v21 = vpack.c.bf16 %v473_v6, %v471_v4  ;;  %v5782_v42 = vpack.c.bf16 %v472_v36, %v470_v34 }
  0xf9   :  { %v4229_v9 = vpop.eup %4228  ;;  %v401_v32 = vmul.f32 %v4795_v28, %v4227_v18  ;;  %v400_v46 = vmul.f32 %v4797_v1, %v4227_v18  ;;  %v4801_v18 = vld [vmem:[%s7194_s0 + $0x1f0] sm:$0xff] }
  0xfa   :  { %v399_v24 = vmul.f32 %v4794_v23, %v4229_v9  ;;  %v398_v45 = vmul.f32 %v4796_v43, %v4229_v9 }
  0xfb   :  { %v477_v38 = vmul.f32 %v5253_v35, %v401_v32  ;;  %v476_v59 = vmul.f32 %v5257_v39, %v400_v46 }
  0xfc   :  { %v4231_v37 = vpop.eup %4230  ;;  %v475_v31 = vmul.f32 %v5253_v35, %v399_v24  ;;  %v474_v52 = vmul.f32 %v5257_v39, %v398_v45 }
  0xfd   :  { %v4233_v41 = vpop.eup %4232  ;;  %v403_v51 = vmul.f32 %v4798_v49, %v4231_v37  ;;  %v402_v3 = vmul.f32 %v4800_v2, %v4231_v37 }
  0xfe   :  { %1095 = vmatmul.mubr.bf16.gmra.mrb[40].mxu0 %v5710_v14  ;;  %1288 = vmatmul.mubr.bf16.gmra.mrb[40].mxu1 %v5710_v14  ;;  %v5790_v0 = vpack.c.bf16 %v477_v38, %v475_v31  ;;  %v405_v13 = vmul.f32 %v4799_v8, %v4233_v41  ;;  %v5806_v63 = vpack.c.bf16 %v476_v59, %v474_v52 }
  0xff   :  { %1104 = vmatprep.mubr.bf16.mxu0 %v5718_v26  ;;  %1297 = vmatprep.mubr.bf16.mxu1 %v5718_v26  ;;  %v479_v60 = vmul.f32 %v5253_v35, %v403_v51  ;;  %v404_v4 = vmul.f32 %v4801_v18, %v4233_v41 }
 0x100   :  { %v481_v61 = vmul.f32 %v5253_v35, %v405_v13  ;;  %v478_v35 = vmul.f32 %v5257_v39, %v402_v3 }
 0x101   :  { %v480_v9 = vmul.f32 %v5257_v39, %v404_v4 }
 0x102   :  { %v5814_v6 = vpack.c.bf16 %v481_v61, %v479_v60 }
 0x103   :  { %v5822_v12 = vpack.c.bf16 %v480_v9, %v478_v35 }
 0x106   :  { %1105 = vmatmul.mubr.bf16.gmra.mrb[44].mxu0 %v5734_v47  ;;  %1298 = vmatmul.mubr.bf16.gmra.mrb[44].mxu1 %v5734_v47 }
 0x107   :  { %1114 = vmatprep.mubr.bf16.mxu0 %v5742_v57  ;;  %1307 = vmatprep.mubr.bf16.mxu1 %v5742_v57 }
 0x10e   :  { %1115 = vmatmul.mubr.bf16.gmra.mrb[48].mxu0 %v5758_v11  ;;  %1308 = vmatmul.mubr.bf16.gmra.mrb[48].mxu1 %v5758_v11 }
 0x10f   :  { %1124 = vmatprep.mubr.bf16.mxu0 %v5766_v21  ;;  %1317 = vmatprep.mubr.bf16.mxu1 %v5766_v21 }
 0x116   :  { %1125 = vmatmul.mubr.bf16.gmra.mrb[52].mxu0 %v5782_v42  ;;  %1318 = vmatmul.mubr.bf16.gmra.mrb[52].mxu1 %v5782_v42 }
 0x117   :  { %1134 = vmatprep.mubr.bf16.mxu0 %v5790_v0  ;;  %1327 = vmatprep.mubr.bf16.mxu1 %v5790_v0 }
 0x11e   :  { %1135 = vmatmul.mubr.bf16.gmra.mrb[56].mxu0 %v5806_v63  ;;  %1328 = vmatmul.mubr.bf16.gmra.mrb[56].mxu1 %v5806_v63 }
 0x11f   :  { %1144 = vmatprep.mubr.bf16.mxu0 %v5814_v6  ;;  %1337 = vmatprep.mubr.bf16.mxu1 %v5814_v6 }
 0x126   :  { %1145 = vmatmul.mubr.bf16.gmra.mrb[60].mxu0 %v5822_v12  ;;  %1338 = vmatmul.mubr.bf16.gmra.mrb[60].mxu1 %v5822_v12 }
 0x127   :  { %1764 = vmatprep.mubr.bf16.mxu0 %v5268_v7  ;;  %1957 = vmatprep.mubr.bf16.mxu1 %v5268_v7 }
 0x12e   :  { %1765 = vmatmul.mubr.bf16.vlgmr.msra.gmra.mrb[64].mxu0 %v5276_v55  ;;  %1958 = vmatmul.mubr.bf16.vlgmr.msra.gmra.mrb[64].mxu1 %v5276_v55 }
 0x12f   :  { %1774 = vmatprep.mubr.bf16.mxu0 %v5279_v58  ;;  %1967 = vmatprep.mubr.bf16.mxu1 %v5279_v58 }
 0x136   :  { %1775 = vmatmul.mubr.bf16.gmra.mrb[68].mxu0 %v5333_v33  ;;  %1968 = vmatmul.mubr.bf16.gmra.mrb[68].mxu1 %v5333_v33 }
 0x137   :  { %1784 = vmatprep.mubr.bf16.mxu0 %v5324_v27  ;;  %1977 = vmatprep.mubr.bf16.mxu1 %v5324_v27 }
 0x13e   :  { %1785 = vmatmul.mubr.bf16.gmra.mrb[72].mxu0 %v5367_v50  ;;  %1978 = vmatmul.mubr.bf16.gmra.mrb[72].mxu1 %v5367_v50 }
 0x13f   :  { %1794 = vmatprep.mubr.bf16.mxu0 %v5376_v56  ;;  %1987 = vmatprep.mubr.bf16.mxu1 %v5376_v56 }
 0x146   :  { %1795 = vmatmul.mubr.bf16.gmra.mrb[76].mxu0 %v5416_v22  ;;  %1988 = vmatmul.mubr.bf16.gmra.mrb[76].mxu1 %v5416_v22 }
 0x147   :  { %1804 = vmatprep.mubr.bf16.mxu0 %v5424_v30  ;;  %1997 = vmatprep.mubr.bf16.mxu1 %v5424_v30 }
 0x14e   :  { %1805 = vmatmul.mubr.bf16.gmra.mrb[80].mxu0 %v5466_v53  ;;  %1998 = vmatmul.mubr.bf16.gmra.mrb[80].mxu1 %v5466_v53 }
 0x14f   :  { %1814 = vmatprep.mubr.bf16.mxu0 %v5474_v62  ;;  %2007 = vmatprep.mubr.bf16.mxu1 %v5474_v62 }
 0x156   :  { %1815 = vmatmul.mubr.bf16.gmra.mrb[84].mxu0 %v5517_v29  ;;  %2008 = vmatmul.mubr.bf16.gmra.mrb[84].mxu1 %v5517_v29 }
 0x157   :  { %1824 = vmatprep.mubr.bf16.mxu0 %v5526_v40  ;;  %2017 = vmatprep.mubr.bf16.mxu1 %v5526_v40 }
 0x15e   :  { %1825 = vmatmul.mubr.bf16.gmra.mrb[88].mxu0 %v5569_v20  ;;  %2018 = vmatmul.mubr.bf16.gmra.mrb[88].mxu1 %v5569_v20 }
 0x15f   :  { %1834 = vmatprep.mubr.bf16.mxu0 %v5578_v10  ;;  %2027 = vmatprep.mubr.bf16.mxu1 %v5578_v10 }
 0x166   :  { %1835 = vmatmul.mubr.bf16.gmra.mrb[92].mxu0 %v5619_v44  ;;  %2028 = vmatmul.mubr.bf16.gmra.mrb[92].mxu1 %v5619_v44 }
 0x167   :  { %1844 = vmatprep.mubr.bf16.mxu0 %v5628_v48  ;;  %2037 = vmatprep.mubr.bf16.mxu1 %v5628_v48 }
 0x16e   :  { %1845 = vmatmul.mubr.bf16.gmra.mrb[96].mxu0 %v5662_v15  ;;  %2038 = vmatmul.mubr.bf16.gmra.mrb[96].mxu1 %v5662_v15 }
 0x16f   :  { %1854 = vmatprep.mubr.bf16.mxu0 %v5670_v25  ;;  %2047 = vmatprep.mubr.bf16.mxu1 %v5670_v25 }
 0x176   :  { %1855 = vmatmul.mubr.bf16.gmra.mrb[100].mxu0 %v5686_v5  ;;  %2048 = vmatmul.mubr.bf16.gmra.mrb[100].mxu1 %v5686_v5 }
 0x177   :  { %1864 = vmatprep.mubr.bf16.mxu0 %v5694_v54  ;;  %2057 = vmatprep.mubr.bf16.mxu1 %v5694_v54 }
 0x17e   :  { %1865 = vmatmul.mubr.bf16.gmra.mrb[104].mxu0 %v5710_v14  ;;  %2058 = vmatmul.mubr.bf16.gmra.mrb[104].mxu1 %v5710_v14 }
 0x17f   :  { %1874 = vmatprep.mubr.bf16.mxu0 %v5718_v26  ;;  %2067 = vmatprep.mubr.bf16.mxu1 %v5718_v26 }
 0x181   :  { %v5872_v39 = vpop.f32.mrb[0].mxu0  ;;  %v5874_v7 = vpop.f32.mrb[0].mxu1 }
 0x182   :  { %v3722_v55 = vmul.f32 -1.442695, %v5872_v39  ;;  %v3724_v58 = vmul.f32 -1.442695, %v5874_v7  ;;  %v5878_v27 = vpop.f32.mrb[1].mxu0  ;;  %v5880_v33 = vpop.f32.mrb[1].mxu1 }
 0x183   :  { %v3723_v50 = vmul.f32 -1.442695, %v5878_v27  ;;  %v3725_v56 = vmul.f32 -1.442695, %v5880_v33  ;;  %v5884_v22 = vpop.f32.mrb[2].mxu0  ;;  %v5886_v30 = vpop.f32.mrb[2].mxu1 }
 0x184   :  { %4234 = vpow2.f32 %v3722_v55  ;;  %v3726_v53 = vmul.f32 -1.442695, %v5884_v22  ;;  %v5889_v62 = vpop.f32.mrb[3].mxu0  ;;  %v5891_v29 = vpop.f32.mrb[3].mxu1  ;;  %v3728_v40 = vmul.f32 -1.442695, %v5886_v30 }
 0x185   :  { %4236 = vpow2.f32 %v3724_v58  ;;  %v3727_v20 = vmul.f32 -1.442695, %v5889_v62  ;;  %v3729_v10 = vmul.f32 -1.442695, %v5891_v29 }
 0x186   :  { %4238 = vpow2.f32 %v3723_v50  ;;  %1875 = vmatmul.mubr.bf16.gmra.mrb[108].mxu0 %v5734_v47  ;;  %2068 = vmatmul.mubr.bf16.gmra.mrb[108].mxu1 %v5734_v47 }
 0x187   :  { %4240 = vpow2.f32 %v3725_v56  ;;  %1884 = vmatprep.mubr.bf16.mxu0 %v5742_v57  ;;  %2077 = vmatprep.mubr.bf16.mxu1 %v5742_v57 }
 0x188   :  { %4242 = vpow2.f32 %v3726_v53 }
 0x189   :  { %4244 = vpow2.f32 %v3728_v40  ;;  %v5900_v44 = vpop.f32.mrb[4].mxu0  ;;  %v5902_v48 = vpop.f32.mrb[4].mxu1 }
 0x18a   :  { %4246 = vpow2.f32 %v3727_v20  ;;  %v3730_v15 = vmul.f32 -1.442695, %v5900_v44  ;;  %v3732_v25 = vmul.f32 -1.442695, %v5902_v48  ;;  %v5906_v5 = vpop.f32.mrb[5].mxu0  ;;  %v5908_v54 = vpop.f32.mrb[5].mxu1 }
 0x18b   :  { %4248 = vpow2.f32 %v3729_v10  ;;  %v3731_v14 = vmul.f32 -1.442695, %v5906_v5  ;;  %v3733_v26 = vmul.f32 -1.442695, %v5908_v54  ;;  %v5912_v47 = vpop.f32.mrb[6].mxu0  ;;  %v5914_v57 = vpop.f32.mrb[6].mxu1 }
 0x18c   :  { %7315 = vst [vmem:[#allocation3_spill] sm:$0xff] %v5912_v47  ;;  %7316 = vst [vmem:[#allocation4_spill] sm:$0xff] %v5914_v57  ;;  %4250 = vpow2.f32 %v3730_v15  ;;  %v3734_v17 = vmul.f32 -1.442695, %v5912_v47  ;;  %v5917_v16 = vpop.f32.mrb[7].mxu0  ;;  %v5919_v19 = vpop.f32.mrb[7].mxu1 }
 0x18d   :  { %7317 = vst [vmem:[#allocation5_spill] sm:$0xff] %v5917_v16  ;;  %7318 = vst [vmem:[#allocation6_spill] sm:$0xff] %v5919_v19  ;;  %4252 = vpow2.f32 %v3732_v25  ;;  %v3736_v53 = vmul.f32 -1.442695, %v5914_v57  ;;  %v3735_v10 = vmul.f32 -1.442695, %v5917_v16 }
 0x18e   :  { %v4235_v23 = vpop.eup %4234  ;;  %4254 = vpow2.f32 %v3731_v14  ;;  %1885 = vmatmul.mubr.bf16.gmra.mrb[112].mxu0 %v5758_v11  ;;  %2078 = vmatmul.mubr.bf16.gmra.mrb[112].mxu1 %v5758_v11 }
 0x18f   :  { %v4237_v24 = vpop.eup %4236  ;;  %v2502_v28 = vadd.f32 1.0, %v4235_v23  ;;  %4256 = vpow2.f32 %v3733_v26  ;;  %1894 = vmatprep.mubr.bf16.mxu0 %v5766_v21  ;;  %2087 = vmatprep.mubr.bf16.mxu1 %v5766_v21  ;;  %v3737_v26 = vmul.f32 -1.442695, %v5919_v19 }
 0x190   :  { %v4239_v32 = vpop.eup %4238  ;;  %v2504_v34 = vadd.f32 1.0, %v4237_v24  ;;  %4258 = vpow2.f32 %v3734_v17 }
 0x191   :  { %v4241_v36 = vpop.eup %4240  ;;  %4260 = vrcp.f32 %v2502_v28  ;;  %v2503_v37 = vadd.f32 1.0, %v4239_v32  ;;  %v5925_v31 = vpop.f32.mrb[8].mxu0 }
 0x192   :  { %7319 = vst [vmem:[#allocation7_spill] sm:$0xff] %v5925_v31  ;;  %v5927_v38 = vpop.f32.mrb[8].mxu1  ;;  %v4243_v41 = vpop.eup %4242  ;;  %4262 = vrcp.f32 %v2504_v34  ;;  %v2505_v11 = vadd.f32 1.0, %v4241_v36  ;;  %v3738_v28 = vmul.f32 -1.442695, %v5925_v31 }
 0x193   :  { %7320 = vst [vmem:[#allocation8_spill] sm:$0xff] %v5927_v38  ;;  %v5929_v43 = vpop.f32.mrb[9].mxu0  ;;  %v4245_v45 = vpop.eup %4244  ;;  %4264 = vrcp.f32 %v2503_v37  ;;  %v2506_v1 = vadd.f32 1.0, %v4243_v41  ;;  %v3740_v36 = vmul.f32 -1.442695, %v5927_v38 }
 0x194   :  { %7321 = vst [vmem:[#allocation9_spill] sm:$0xff] %v5929_v43  ;;  %v5931_v46 = vpop.f32.mrb[9].mxu1  ;;  %v5933_v21 = vpop.f32.mrb[10].mxu0  ;;  %4266 = vrcp.f32 %v2505_v11  ;;  %v2508_v51 = vadd.f32 1.0, %v4245_v45  ;;  %v3739_v41 = vmul.f32 -1.442695, %v5929_v43 }
 0x195   :  { %7322 = vst [vmem:[#allocation10_spill] sm:$0xff] %v5931_v46  ;;  %7323 = vst [vmem:[#allocation11_spill] sm:$0xff] %v5933_v21  ;;  %v4247_v49 = vpop.eup %4246  ;;  %v5935_v8 = vpop.f32.mrb[10].mxu1  ;;  %4268 = vrcp.f32 %v2506_v1  ;;  %v3741_v45 = vmul.f32 -1.442695, %v5931_v46 }
 0x196   :  { %7324 = vst [vmem:[#allocation12_spill] sm:$0xff] %v5935_v8  ;;  %v4249_v13 = vpop.eup %4248  ;;  %v2507_v52 = vadd.f32 1.0, %v4247_v49  ;;  %v5937_v59 = vpop.f32.mrb[11].mxu0  ;;  %4270 = vrcp.f32 %v2508_v51  ;;  %1895 = vmatmul.mubr.bf16.gmra.mrb[116].mxu0 %v5782_v42  ;;  %2088 = vmatmul.mubr.bf16.gmra.mrb[116].mxu1 %v5782_v42  ;;  %v3742_v49 = vmul.f32 -1.442695, %v5933_v21 }
 0x197   :  { %7325 = vst [vmem:[#allocation13_spill] sm:$0xff] %v5937_v59  ;;  %v5939_v60 = vpop.f32.mrb[11].mxu1  ;;  %v4251_v61 = vpop.eup %4250  ;;  %v2509_v2 = vadd.f32 1.0, %v4249_v13  ;;  %1904 = vmatprep.mubr.bf16.mxu0 %v5790_v0  ;;  %2097 = vmatprep.mubr.bf16.mxu1 %v5790_v0 }
 0x198   :  { %7326 = vst [vmem:[#allocation14_spill] sm:$0xff] %v5939_v60  ;;  %v4253_v3 = vpop.eup %4252  ;;  %4272 = vrcp.f32 %v2507_v52  ;;  %v2510_v18 = vadd.f32 1.0, %v4251_v61  ;;  %v3744_v52 = vmul.f32 -1.442695, %v5935_v8 }
 0x199   :  { %v4255_v4 = vpop.eup %4254  ;;  %4274 = vrcp.f32 %v2509_v2  ;;  %v2512_v35 = vadd.f32 1.0, %v4253_v3  ;;  %v5945_v58 = vpop.f32.mrb[12].mxu0  ;;  %v3743_v3 = vmul.f32 -1.442695, %v5937_v59 }
 0x19a   :  { %v4257_v9 = vpop.eup %4256  ;;  %4276 = vrcp.f32 %v2510_v18  ;;  %v2511_v55 = vadd.f32 1.0, %v4255_v4  ;;  %7327 = vst [vmem:[#allocation15_spill] sm:$0xff] %v5945_v58  ;;  %v5947_v50 = vpop.f32.mrb[12].mxu1 }
 0x19b   :  { %7328 = vst [vmem:[#allocation16_spill] sm:$0xff] %v5947_v50  ;;  %v4259_v56 = vpop.eup %4258  ;;  %4278 = vrcp.f32 %v2512_v35  ;;  %v2513_v42 = vadd.f32 1.0, %v4257_v9  ;;  %v5950_v40 = vpop.f32.mrb[13].mxu0  ;;  %v3745_v9 = vmul.f32 -1.442695, %v5939_v60 }
 0x19c   :  { %7329 = vst [vmem:[#allocation17_spill] sm:$0xff] %v5950_v40  ;;  %v5952_v20 = vpop.eup %4260  ;;  %4280 = vrcp.f32 %v2511_v55  ;;  %v2514_v0 = vadd.f32 1.0, %v4259_v56  ;;  %v5955_v15 = vpop.f32.mrb[13].mxu1 }
 0x19d   :  { %7330 = vst [vmem:[#allocation18_spill] sm:$0xff] %v5955_v15  ;;  %v5957_v25 = vpop.f32.mrb[14].mxu0  ;;  %v5959_v14 = vpop.eup %4262  ;;  %4282 = vrcp.f32 %v2513_v42 }
 0x19e   :  { %7331 = vst [vmem:[#allocation19_spill] sm:$0xff] %v5957_v25  ;;  %v5962_v17 = vpop.f32.mrb[14].mxu1  ;;  %v5964_v23 = vpop.f32.mrb[15].mxu0  ;;  %4284 = vrcp.f32 %v2514_v0  ;;  %1905 = vmatmul.mubr.bf16.gmra.mrb[120].mxu0 %v5806_v63  ;;  %2098 = vmatmul.mubr.bf16.gmra.mrb[120].mxu1 %v5806_v63 }
 0x19f   :  { %7332 = vst [vmem:[#allocation20_spill] sm:$0xff] %v5962_v17  ;;  %7333 = vst [vmem:[#allocation21_spill] sm:$0xff] %v5964_v23  ;;  %v5966_v24 = vpop.eup %4264  ;;  %v5969_v32 = vpop.f32.mrb[15].mxu1  ;;  %4286 = vpow2.f32 %v3736_v53  ;;  %1914 = vmatprep.mubr.bf16.mxu0 %v5814_v6  ;;  %2107 = vmatprep.mubr.bf16.mxu1 %v5814_v6  ;;  %v3746_v53 = vmul.f32 -1.442695, %v5945_v58 }
 0x1a0   :  { %7334 = vst [vmem:[#allocation22_spill] sm:$0xff] %v5969_v32  ;;  %v5971_v34 = vpop.eup %4266  ;;  %4288 = vpow2.f32 %v3735_v10  ;;  %v3748_v10 = vmul.f32 -1.442695, %v5947_v50 }
 0x1a1   :  { %v5976_v37 = vpop.eup %4268  ;;  %4290 = vpow2.f32 %v3737_v26  ;;  %v5987_v63 = vpop.f32.mrb[16].mxu0 }
 0x1a2   :  { %v5981_v11 = vpop.eup %4270  ;;  %4292 = vpow2.f32 %v3738_v28  ;;  %7335 = vst [vmem:[#allocation23_spill] sm:$0xff] %v5987_v63  ;;  %v5989_v51 = vpop.f32.mrb[16].mxu1 }
 0x1a3   :  { %v5984_v1 = vpop.eup %4272  ;;  %7336 = vst [vmem:[#allocation24_spill] sm:$0xff] %v5989_v51  ;;  %4294 = vpow2.f32 %v3740_v36  ;;  %v5994_v6 = vpop.f32.mrb[17].mxu0 }
 0x1a4   :  { %v5991_v13 = vpop.eup %4274  ;;  %7337 = vst [vmem:[#allocation25_spill] sm:$0xff] %v5994_v6  ;;  %v5996_v61 = vpop.f32.mrb[17].mxu1  ;;  %4296 = vpow2.f32 %v3739_v41 }
 0x1a5   :  { %7338 = vst [vmem:[#allocation26_spill] sm:$0xff] %v5996_v61  ;;  %v5998_v2 = vpop.eup %4276  ;;  %v6001_v18 = vpop.f32.mrb[18].mxu0  ;;  %4298 = vpow2.f32 %v3741_v45 }
 0x1a6   :  { %7339 = vst [vmem:[#allocation27_spill] sm:$0xff] %v6001_v18  ;;  %v6003_v4 = vpop.f32.mrb[18].mxu1  ;;  %v6005_v35 = vpop.eup %4278  ;;  %4300 = vpow2.f32 %v3742_v49  ;;  %1915 = vmatmul.mubr.bf16.gmra.mrb[124].mxu0 %v5822_v12  ;;  %2108 = vmatmul.mubr.bf16.gmra.mrb[124].mxu1 %v5822_v12 }
 0x1a7   :  { %7340 = vst [vmem:[#allocation28_spill] sm:$0xff] %v6003_v4  ;;  %v6008_v55 = vpop.f32.mrb[19].mxu0  ;;  %v6010_v56 = vpop.f32.mrb[19].mxu1  ;;  %4302 = vpow2.f32 %v3744_v52 }
 0x1a8   :  { %7341 = vst [vmem:[#allocation29_spill] sm:$0xff] %v6008_v55  ;;  %7342 = vst [vmem:[#allocation30_spill] sm:$0xff] %v6010_v56  ;;  %v6012_v42 = vpop.eup %4280  ;;  %4304 = vpow2.f32 %v3743_v3 }
 0x1a9   :  { %v6015_v0 = vpop.eup %4282  ;;  %4306 = vpow2.f32 %v3745_v9  ;;  %v6022_v45 = vpop.f32.mrb[20].mxu0 }
 0x1aa   :  { %7343 = vst [vmem:[#allocation31_spill] sm:$0xff] %v6015_v0  ;;  %v6020_v26 = vpop.eup %4284  ;;  %4308 = vpow2.f32 %v3746_v53  ;;  %7345 = vst [vmem:[#allocation33_spill] sm:$0xff] %v6022_v45  ;;  %v6024_v49 = vpop.f32.mrb[20].mxu1 }
 0x1ab   :  { %7344 = vst [vmem:[#allocation32_spill] sm:$0xff] %v6020_v26  ;;  %v4287_v28 = vpop.eup %4286  ;;  %7346 = vst [vmem:[#allocation34_spill] sm:$0xff] %v6024_v49  ;;  %4310 = vpow2.f32 %v3748_v10  ;;  %v6026_v50 = vpop.f32.mrb[21].mxu0 }
 0x1ac   :  { %v4289_v36 = vpop.eup %4288  ;;  %v2516_v41 = vadd.f32 1.0, %v4287_v28  ;;  %7347 = vst [vmem:[#allocation35_spill] sm:$0xff] %v6026_v50  ;;  %v6028_v59 = vpop.f32.mrb[21].mxu1 }
 0x1ad   :  { %v4291_v58 = vpop.eup %4290  ;;  %v2515_v52 = vadd.f32 1.0, %v4289_v36  ;;  %7348 = vst [vmem:[#allocation36_spill] sm:$0xff] %v6028_v59  ;;  %v6030_v3 = vpop.f32.mrb[22].mxu0 }
 0x1ae   :  { %v4293_v60 = vpop.eup %4292  ;;  %4312 = vrcp.f32 %v2516_v41  ;;  %v2517_v12 = vadd.f32 1.0, %v4291_v58  ;;  %7349 = vst [vmem:[#allocation37_spill] sm:$0xff] %v6030_v3  ;;  %v6032_v53 = vpop.f32.mrb[22].mxu1 }
 0x1af   :  { %v4295_v9 = vpop.eup %4294  ;;  %4314 = vrcp.f32 %v2515_v52  ;;  %v2518_v28 = vadd.f32 1.0, %v4293_v60  ;;  %7350 = vst [vmem:[#allocation38_spill] sm:$0xff] %v6032_v53  ;;  %v6034_v46 = vpop.f32.mrb[23].mxu0 }
 0x1b0   :  { %v4297_v8 = vpop.eup %4296  ;;  %4316 = vrcp.f32 %v2517_v12  ;;  %v2520_v21 = vadd.f32 1.0, %v4295_v9  ;;  %7351 = vst [vmem:[#allocation39_spill] sm:$0xff] %v6034_v46  ;;  %v6036_v10 = vpop.f32.mrb[23].mxu1 }
 0x1b1   :  { %7352 = vst [vmem:[#allocation40_spill] sm:$0xff] %v6036_v10  ;;  %v4299_v36 = vpop.eup %4298  ;;  %4318 = vrcp.f32 %v2518_v28  ;;  %v2519_v41 = vadd.f32 1.0, %v4297_v8  ;;  %v6038_v19 = vpop.f32.mrb[24].mxu0 }
 0x1b2   :  { %v4301_v58 = vpop.eup %4300  ;;  %4320 = vrcp.f32 %v2520_v21  ;;  %v2521_v43 = vadd.f32 1.0, %v4299_v36  ;;  %7353 = vst [vmem:[#allocation41_spill] sm:$0xff] %v6038_v19  ;;  %v6040_v12 = vpop.f32.mrb[24].mxu1 }
 0x1b3   :  { %v4303_v38 = vpop.eup %4302  ;;  %4322 = vrcp.f32 %v2519_v41  ;;  %v2522_v31 = vadd.f32 1.0, %v4301_v58  ;;  %7354 = vst [vmem:[#allocation42_spill] sm:$0xff] %v6040_v12  ;;  %v6042_v57 = vpop.f32.mrb[25].mxu0 }
 0x1b4   :  { %v4305_v52 = vpop.eup %4304  ;;  %4324 = vrcp.f32 %v2521_v43  ;;  %v2524_v60 = vadd.f32 1.0, %v4303_v38  ;;  %7355 = vst [vmem:[#allocation43_spill] sm:$0xff] %v6042_v57  ;;  %v6044_v21 = vpop.f32.mrb[25].mxu1  ;;  %v3747_v38 = vmul.f32 -1.442695, %v5950_v40 }
 0x1b5   :  { %v4307_v9 = vpop.eup %4306  ;;  %4326 = vrcp.f32 %v2522_v31  ;;  %v2523_v16 = vadd.f32 1.0, %v4305_v52  ;;  %7356 = vst [vmem:[#allocation44_spill] sm:$0xff] %v6044_v21  ;;  %v6046_v36 = vpop.f32.mrb[26].mxu0  ;;  %v3749_v52 = vmul.f32 -1.442695, %v5955_v15 }
 0x1b6   :  { %v4309_v28 = vpop.eup %4308  ;;  %4328 = vrcp.f32 %v2524_v60  ;;  %v2525_v8 = vadd.f32 1.0, %v4307_v9  ;;  %7357 = vst [vmem:[#allocation45_spill] sm:$0xff] %v6046_v36  ;;  %v6049_v58 = vpop.f32.mrb[26].mxu1  ;;  %v3752_v40 = vmul.f32 -1.442695, %v5962_v17 }
 0x1b7   :  { %v4311_v41 = vpop.eup %4310  ;;  %4330 = vrcp.f32 %v2523_v16  ;;  %v2526_v43 = vadd.f32 1.0, %v4309_v28  ;;  %7358 = vst [vmem:[#allocation46_spill] sm:$0xff] %v6049_v58  ;;  %v6054_v47 = vpop.f32.mrb[27].mxu0  ;;  %v3750_v16 = vmul.f32 -1.442695, %v5957_v25 }
 0x1b8   :  { %v6051_v26 = vpop.eup %4312  ;;  %4332 = vrcp.f32 %v2525_v8  ;;  %v2528_v31 = vadd.f32 1.0, %v4311_v41  ;;  %7360 = vst [vmem:[#allocation48_spill] sm:$0xff] %v6054_v47  ;;  %v6056_v60 = vpop.f32.mrb[27].mxu1  ;;  %v3751_v8 = vmul.f32 -1.442695, %v5964_v23 }
 0x1b9   :  { %7359 = vst [vmem:[#allocation47_spill] sm:$0xff] %v6051_v26  ;;  %7361 = vst [vmem:[#allocation49_spill] sm:$0xff] %v6056_v60  ;;  %v6058_v9 = vpop.eup %4314  ;;  %4334 = vrcp.f32 %v2526_v43  ;;  %v3753_v15 = vmul.f32 -1.442695, %v5969_v32  ;;  %v6070_v26 = vpop.f32.mrb[28].mxu0 }
 0x1ba   :  { %v6061_v28 = vpop.eup %4316  ;;  %4336 = vrcp.f32 %v2528_v31  ;;  %7364 = vst [vmem:[#allocation52_spill] sm:$0xff] %v6070_v26  ;;  %v6072_v43 = vpop.f32.mrb[28].mxu1  ;;  %v3754_v31 = vmul.f32 -1.442695, %v5987_v63 }
 0x1bb   :  { %v6064_v0 = vpop.eup %4318  ;;  %4338 = vpow2.f32 %v3747_v38  ;;  %7365 = vst [vmem:[#allocation53_spill] sm:$0xff] %v6072_v43  ;;  %v6077_v17 = vpop.f32.mrb[29].mxu0 }
 0x1bc   :  { %7362 = vst [vmem:[#allocation50_spill] sm:$0xff] %v6064_v0  ;;  %v6067_v41 = vpop.eup %4320  ;;  %4340 = vpow2.f32 %v3749_v52  ;;  %7367 = vst [vmem:[#allocation55_spill] sm:$0xff] %v6077_v17  ;;  %v6079_v0 = vpop.f32.mrb[29].mxu1  ;;  %v3756_v52 = vmul.f32 -1.442695, %v5989_v51 }
 0x1bd   :  { %7363 = vst [vmem:[#allocation51_spill] sm:$0xff] %v6067_v41  ;;  %v6074_v25 = vpop.eup %4322  ;;  %4342 = vpow2.f32 %v3750_v16  ;;  %7368 = vst [vmem:[#allocation56_spill] sm:$0xff] %v6079_v0  ;;  %v6084_v23 = vpop.f32.mrb[30].mxu0  ;;  %v3755_v16 = vmul.f32 -1.442695, %v5994_v6 }
 0x1be   :  { %7366 = vst [vmem:[#allocation54_spill] sm:$0xff] %v6074_v25  ;;  %v6081_v38 = vpop.eup %4324  ;;  %4344 = vpow2.f32 %v3752_v40  ;;  %7370 = vst [vmem:[#allocation58_spill] sm:$0xff] %v6084_v23  ;;  %v6086_v32 = vpop.f32.mrb[30].mxu1  ;;  %v3757_v40 = vmul.f32 -1.442695, %v5996_v61 }
 0x1bf   :  { %7369 = vst [vmem:[#allocation57_spill] sm:$0xff] %v6081_v38  ;;  %7371 = vst [vmem:[#allocation59_spill] sm:$0xff] %v6086_v32  ;;  %v6088_v41 = vpop.eup %4326  ;;  %4346 = vpow2.f32 %v3751_v8  ;;  %v6091_v25 = vpop.f32.mrb[31].mxu0  ;;  %v3758_v51 = vmul.f32 -1.442695, %v6001_v18 }
 0x1c0   :  { %7372 = vst [vmem:[#allocation60_spill] sm:$0xff] %v6091_v25  ;;  %v6093_v63 = vpop.f32.mrb[31].mxu1  ;;  %v6095_v17 = vpop.eup %4328  ;;  %4348 = vpow2.f32 %v3753_v15  ;;  %v3760_v8 = vmul.f32 -1.442695, %v6003_v4 }
 0x1c1   :  { %7373 = vst [vmem:[#allocation61_spill] sm:$0xff] %v6093_v63  ;;  %v6098_v38 = vpop.eup %4330  ;;  %4350 = vpow2.f32 %v3754_v31  ;;  %v3759_v63 = vmul.f32 -1.442695, %v6008_v55  ;;  %v6109_v15 = vpop.f32.mrb[32].mxu0 }
 0x1c2   :  { %7374 = vst [vmem:[#allocation62_spill] sm:$0xff] %v6098_v38  ;;  %v6101_v32 = vpop.eup %4332  ;;  %4352 = vpow2.f32 %v3756_v52  ;;  %7378 = vst [vmem:[#allocation66_spill] sm:$0xff] %v6109_v15  ;;  %v6111_v61 = vpop.f32.mrb[32].mxu1 }
 0x1c3   :  { %7375 = vst [vmem:[#allocation63_spill] sm:$0xff] %v6101_v32  ;;  %v6104_v6 = vpop.eup %4334  ;;  %4354 = vpow2.f32 %v3755_v16  ;;  %7379 = vst [vmem:[#allocation67_spill] sm:$0xff] %v6111_v61  ;;  %v6113_v18 = vpop.f32.mrb[33].mxu0 }
 0x1c4   :  { %7376 = vst [vmem:[#allocation64_spill] sm:$0xff] %v6104_v6  ;;  %v6107_v25 = vpop.eup %4336  ;;  %4356 = vpow2.f32 %v3757_v40  ;;  %7380 = vst [vmem:[#allocation68_spill] sm:$0xff] %v6113_v18  ;;  %v6115_v32 = vpop.f32.mrb[33].mxu1 }
 0x1c5   :  { %7377 = vst [vmem:[#allocation65_spill] sm:$0xff] %v6107_v25  ;;  %v4339_v31 = vpop.eup %4338  ;;  %4358 = vpow2.f32 %v3758_v51  ;;  %7381 = vst [vmem:[#allocation69_spill] sm:$0xff] %v6115_v32  ;;  %v6117_v6 = vpop.f32.mrb[34].mxu0 }
 0x1c6   :  { %v4341_v52 = vpop.eup %4340  ;;  %v2527_v4 = vadd.f32 1.0, %v4339_v31  ;;  %4360 = vpow2.f32 %v3760_v8  ;;  %7382 = vst [vmem:[#allocation70_spill] sm:$0xff] %v6117_v6  ;;  %v6119_v25 = vpop.f32.mrb[34].mxu1 }
 0x1c7   :  { %v4343_v16 = vpop.eup %4342  ;;  %v2529_v55 = vadd.f32 1.0, %v4341_v52  ;;  %4362 = vpow2.f32 %v3759_v63  ;;  %7383 = vst [vmem:[#allocation71_spill] sm:$0xff] %v6119_v25  ;;  %v6121_v40 = vpop.f32.mrb[35].mxu0 }
 0x1c8   :  { %7384 = vst [vmem:[#allocation72_spill] sm:$0xff] %v6121_v40  ;;  %v4345_v15 = vpop.eup %4344  ;;  %4364 = vrcp.f32 %v2527_v4  ;;  %v2530_v61 = vadd.f32 1.0, %v4343_v16  ;;  %v6123_v51 = vpop.f32.mrb[35].mxu1 }
 0x1c9   :  { %7385 = vst [vmem:[#allocation73_spill] sm:$0xff] %v6123_v51  ;;  %v4347_v18 = vpop.eup %4346  ;;  %4366 = vrcp.f32 %v2529_v55  ;;  %v2532_v32 = vadd.f32 1.0, %v4345_v15  ;;  %v6125_v25 = vpop.f32.mrb[36].mxu0 }
 0x1ca   :  { %v4349_v38 = vpop.eup %4348  ;;  %4368 = vrcp.f32 %v2530_v61  ;;  %v2531_v8 = vadd.f32 1.0, %v4347_v18  ;;  %7386 = vst [vmem:[#allocation74_spill] sm:$0xff] %v6125_v25  ;;  %v6127_v40 = vpop.f32.mrb[36].mxu1 }
 0x1cb   :  { %v4351_v31 = vpop.eup %4350  ;;  %4370 = vrcp.f32 %v2532_v32  ;;  %v2533_v6 = vadd.f32 1.0, %v4349_v38  ;;  %7387 = vst [vmem:[#allocation75_spill] sm:$0xff] %v6127_v40  ;;  %v6129_v51 = vpop.f32.mrb[37].mxu0 }
 0x1cc   :  { %v4353_v52 = vpop.eup %4352  ;;  %4372 = vrcp.f32 %v2531_v8  ;;  %v2534_v63 = vadd.f32 1.0, %v4351_v31  ;;  %7388 = vst [vmem:[#allocation76_spill] sm:$0xff] %v6129_v51  ;;  %v6131_v61 = vpop.f32.mrb[37].mxu1 }
 0x1cd   :  { %v4355_v4 = vpop.eup %4354  ;;  %4374 = vrcp.f32 %v2533_v6  ;;  %v2536_v16 = vadd.f32 1.0, %v4353_v52  ;;  %7389 = vst [vmem:[#allocation77_spill] sm:$0xff] %v6131_v61  ;;  %v6133_v18 = vpop.f32.mrb[38].mxu0 }
 0x1ce   :  { %v4357_v55 = vpop.eup %4356  ;;  %4376 = vrcp.f32 %v2534_v63  ;;  %v2535_v15 = vadd.f32 1.0, %v4355_v4  ;;  %7390 = vst [vmem:[#allocation78_spill] sm:$0xff] %v6133_v18  ;;  %v6135_v8 = vpop.f32.mrb[38].mxu1  ;;  %v3761_v4 = vmul.f32 -1.442695, %v6010_v56 }
 0x1cf   :  { %v4359_v32 = vpop.eup %4358  ;;  %4378 = vrcp.f32 %v2536_v16  ;;  %v2537_v38 = vadd.f32 1.0, %v4357_v55  ;;  %7391 = vst [vmem:[#allocation79_spill] sm:$0xff] %v6135_v8  ;;  %v6137_v25 = vpop.f32.mrb[39].mxu0  ;;  %v3762_v16 = vmul.f32 -1.442695, %v6022_v45 }
 0x1d0   :  { %v4361_v31 = vpop.eup %4360  ;;  %4380 = vrcp.f32 %v2535_v15  ;;  %v2538_v40 = vadd.f32 1.0, %v4359_v32  ;;  %7392 = vst [vmem:[#allocation80_spill] sm:$0xff] %v6137_v25  ;;  %v6139_v6 = vpop.f32.mrb[39].mxu1  ;;  %v3764_v15 = vmul.f32 -1.442695, %v6024_v49 }
 0x1d1   :  { %7393 = vst [vmem:[#allocation81_spill] sm:$0xff] %v6139_v6  ;;  %v4363_v52 = vpop.eup %4362  ;;  %4382 = vrcp.f32 %v2537_v38  ;;  %v2540_v63 = vadd.f32 1.0, %v4361_v31  ;;  %v3763_v6 = vmul.f32 -1.442695, %v6026_v50  ;;  %v6151_v38 = vpop.f32.mrb[40].mxu0 }
 0x1d2   :  { %v6142_v61 = vpop.eup %4364  ;;  %4384 = vrcp.f32 %v2538_v40  ;;  %v2539_v18 = vadd.f32 1.0, %v4363_v52  ;;  %7394 = vst [vmem:[#allocation82_spill] sm:$0xff] %v6151_v38  ;;  %v6153_v31 = vpop.f32.mrb[40].mxu1  ;;  %v3765_v40 = vmul.f32 -1.442695, %v6028_v59 }
 0x1d3   :  { %v6145_v55 = vpop.eup %4366  ;;  %4386 = vrcp.f32 %v2540_v63  ;;  %7395 = vst [vmem:[#allocation83_spill] sm:$0xff] %v6153_v31  ;;  %v6158_v52 = vpop.f32.mrb[41].mxu0 }
 0x1d4   :  { %v6148_v32 = vpop.eup %4368  ;;  %4388 = vrcp.f32 %v2539_v18  ;;  %7397 = vst [vmem:[#allocation85_spill] sm:$0xff] %v6158_v52  ;;  %v6160_v45 = vpop.f32.mrb[41].mxu1  ;;  %v3766_v18 = vmul.f32 -1.442695, %v6030_v3  ;;  %v3769_v3 = vmul.f32 -1.442695, %v6036_v10 }
 0x1d5   :  { %v6155_v56 = vpop.eup %4370  ;;  %4390 = vpow2.f32 %v3761_v4  ;;  %7398 = vst [vmem:[#allocation86_spill] sm:$0xff] %v6160_v45  ;;  %v6165_v49 = vpop.f32.mrb[42].mxu0  ;;  %v3768_v4 = vmul.f32 -1.442695, %v6032_v53 }
 0x1d6   :  { %7396 = vst [vmem:[#allocation84_spill] sm:$0xff] %v6155_v56  ;;  %v6162_v63 = vpop.eup %4372  ;;  %4392 = vpow2.f32 %v3762_v16  ;;  %7399 = vst [vmem:[#allocation87_spill] sm:$0xff] %v6165_v49  ;;  %v6167_v50 = vpop.f32.mrb[42].mxu1  ;;  %v3767_v16 = vmul.f32 -1.442695, %v6034_v46 }
 0x1d7   :  { %7400 = vst [vmem:[#allocation88_spill] sm:$0xff] %v6167_v50  ;;  %v6169_v38 = vpop.eup %4374  ;;  %4394 = vpow2.f32 %v3764_v15  ;;  %v6172_v56 = vpop.f32.mrb[43].mxu0  ;;  %v3770_v15 = vmul.f32 -1.442695, %v6038_v19 }
 0x1d8   :  { %7401 = vst [vmem:[#allocation89_spill] sm:$0xff] %v6172_v56  ;;  %v6174_v59 = vpop.f32.mrb[43].mxu1  ;;  %v6176_v52 = vpop.eup %4376  ;;  %4396 = vpow2.f32 %v3763_v6  ;;  %v3771_v6 = vmul.f32 -1.442695, %v6042_v57 }
 0x1d9   :  { %7402 = vst [vmem:[#allocation90_spill] sm:$0xff] %v6174_v59  ;;  %v6179_v45 = vpop.eup %4378  ;;  %4398 = vpow2.f32 %v3765_v40  ;;  %v3772_v59 = vmul.f32 -1.442695, %v6040_v12  ;;  %v6191_v46 = vpop.f32.mrb[44].mxu0 }
 0x1da   :  { %v6182_v50 = vpop.eup %4380  ;;  %4400 = vpow2.f32 %v3766_v18  ;;  %7405 = vst [vmem:[#allocation93_spill] sm:$0xff] %v6191_v46  ;;  %v6193_v40 = vpop.f32.mrb[44].mxu1  ;;  %v3773_v18 = vmul.f32 -1.442695, %v6044_v21 }
 0x1db   :  { %v6185_v53 = vpop.eup %4382  ;;  %4402 = vpow2.f32 %v3768_v4  ;;  %7406 = vst [vmem:[#allocation94_spill] sm:$0xff] %v6193_v40  ;;  %v6198_v19 = vpop.f32.mrb[45].mxu0 }
 0x1dc   :  { %7403 = vst [vmem:[#allocation91_spill] sm:$0xff] %v6185_v53  ;;  %v6188_v56 = vpop.eup %4384  ;;  %4404 = vpow2.f32 %v3767_v16  ;;  %7408 = vst [vmem:[#allocation96_spill] sm:$0xff] %v6198_v19  ;;  %v6200_v53 = vpop.f32.mrb[45].mxu1 }
 0x1dd   :  { %7404 = vst [vmem:[#allocation92_spill] sm:$0xff] %v6188_v56  ;;  %v6195_v10 = vpop.eup %4386  ;;  %4406 = vpow2.f32 %v3769_v3  ;;  %7409 = vst [vmem:[#allocation97_spill] sm:$0xff] %v6200_v53  ;;  %v6204_v12 = vpop.f32.mrb[46].mxu0 }
 0x1de   :  { %7407 = vst [vmem:[#allocation95_spill] sm:$0xff] %v6195_v10  ;;  %v6202_v4 = vpop.eup %4388  ;;  %4408 = vpow2.f32 %v3770_v15  ;;  %7411 = vst [vmem:[#allocation99_spill] sm:$0xff] %v6204_v12  ;;  %v6206_v16 = vpop.f32.mrb[46].mxu1 }
 0x1df   :  { %7410 = vst [vmem:[#allocation98_spill] sm:$0xff] %v6202_v4  ;;  %7412 = vst [vmem:[#allocation100_spill] sm:$0xff] %v6206_v16  ;;  %v4391_v57 = vpop.eup %4390  ;;  %4410 = vpow2.f32 %v3772_v59  ;;  %v6208_v46 = vpop.f32.mrb[47].mxu0 }
 0x1e0   :  { %7413 = vst [vmem:[#allocation101_spill] sm:$0xff] %v6208_v46  ;;  %v6210_v40 = vpop.f32.mrb[47].mxu1  ;;  %v4393_v3 = vpop.eup %4392  ;;  %v2541_v10 = vadd.f32 1.0, %v4391_v57  ;;  %4412 = vpow2.f32 %v3771_v6 }
 0x1e1   :  { %7414 = vst [vmem:[#allocation102_spill] sm:$0xff] %v6210_v40  ;;  %v4395_v21 = vpop.eup %4394  ;;  %v2542_v19 = vadd.f32 1.0, %v4393_v3  ;;  %4414 = vpow2.f32 %v3773_v18  ;;  %v6212_v59 = vpop.f32.mrb[48].mxu0 }
 0x1e2   :  { %v4397_v53 = vpop.eup %4396  ;;  %4416 = vrcp.f32 %v2541_v10  ;;  %v2544_v4 = vadd.f32 1.0, %v4395_v21  ;;  %7415 = vst [vmem:[#allocation103_spill] sm:$0xff] %v6212_v59  ;;  %v6214_v46 = vpop.f32.mrb[48].mxu1 }
 0x1e3   :  { %v4399_v15 = vpop.eup %4398  ;;  %4418 = vrcp.f32 %v2542_v19  ;;  %v2543_v12 = vadd.f32 1.0, %v4397_v53  ;;  %7416 = vst [vmem:[#allocation104_spill] sm:$0xff] %v6214_v46  ;;  %v6216_v6 = vpop.f32.mrb[49].mxu0 }
 0x1e4   :  { %v4401_v56 = vpop.eup %4400  ;;  %4420 = vrcp.f32 %v2544_v4  ;;  %v2545_v16 = vadd.f32 1.0, %v4399_v15  ;;  %7417 = vst [vmem:[#allocation105_spill] sm:$0xff] %v6216_v6  ;;  %v6218_v10 = vpop.f32.mrb[49].mxu1 }
 0x1e5   :  { %v4403_v40 = vpop.eup %4402  ;;  %4422 = vrcp.f32 %v2543_v12  ;;  %v2546_v57 = vadd.f32 1.0, %v4401_v56  ;;  %7418 = vst [vmem:[#allocation106_spill] sm:$0xff] %v6218_v10  ;;  %v6220_v21 = vpop.f32.mrb[50].mxu0 }
 0x1e6   :  { %v4405_v3 = vpop.eup %4404  ;;  %4424 = vrcp.f32 %v2545_v16  ;;  %v2548_v18 = vadd.f32 1.0, %v4403_v40  ;;  %7419 = vst [vmem:[#allocation107_spill] sm:$0xff] %v6220_v21  ;;  %v6222_v4 = vpop.f32.mrb[50].mxu1  ;;  %v6230_v40 = vmul.f32 %v5952_v20, %v5872_v39  ;;  %v6234_v16 = vmul.f32 %v5959_v14, %v5874_v7 }
 0x1e7   :  { %v4407_v19 = vpop.eup %4406  ;;  %4426 = vrcp.f32 %v2546_v57  ;;  %v2547_v53 = vadd.f32 1.0, %v4405_v3  ;;  %7420 = vst [vmem:[#allocation108_spill] sm:$0xff] %v6222_v4  ;;  %v6224_v59 = vpop.f32.mrb[51].mxu0  ;;  %v6246_v39 = vmul.f32 %v5976_v37, %v5884_v22  ;;  %v3774_v20 = vmul.f32 -1.442695, %v6046_v36  ;;  %v7443_v36 = vld [vmem:[#allocation6_spill] sm:$0xff] }
 0x1e8   :  { %v4409_v15 = vpop.eup %4408  ;;  %4428 = vrcp.f32 %v2548_v18  ;;  %v2549_v46 = vadd.f32 1.0, %v4407_v19  ;;  %7421 = vst [vmem:[#allocation109_spill] sm:$0xff] %v6224_v59  ;;  %v6226_v56 = vpop.f32.mrb[51].mxu1  ;;  %v6238_v18 = vmul.f32 %v5966_v24, %v5878_v27  ;;  %v6242_v19 = vmul.f32 %v5971_v34, %v5880_v33 }
 0x1e9   :  { %7422 = vst [vmem:[#allocation110_spill] sm:$0xff] %v6226_v56  ;;  %v4411_v12 = vpop.eup %4410  ;;  %4430 = vrcp.f32 %v2547_v53  ;;  %v2550_v57 = vadd.f32 1.0, %v4409_v15  ;;  %v6253_v27 = vmul.f32 %v5981_v11, %v5886_v30  ;;  %v6256_v24 = vpop.f32.mrb[52].mxu0  ;;  %v6264_v37 = vmul.f32 %v5984_v1, %v5889_v62 }
 0x1ea   :  { %v4413_v3 = vpop.eup %4412  ;;  %4432 = vrcp.f32 %v2549_v46  ;;  %v2552_v56 = vadd.f32 1.0, %v4411_v12  ;;  %v3776_v46 = vmul.f32 -1.442695, %v6049_v58  ;;  %7424 = vst [vmem:[#allocation112_spill] sm:$0xff] %v6256_v24  ;;  %v6258_v34 = vpop.f32.mrb[52].mxu1  ;;  %v6268_v53 = vmul.f32 %v5991_v13, %v5891_v29  ;;  %v7439_v58 = vld [vmem:[#allocation4_spill] sm:$0xff] }
 0x1eb   :  { %v4415_v59 = vpop.eup %4414  ;;  %4434 = vrcp.f32 %v2550_v57  ;;  %v2551_v7 = vadd.f32 1.0, %v4413_v3  ;;  %7425 = vst [vmem:[#allocation113_spill] sm:$0xff] %v6258_v34  ;;  %v3775_v30 = vmul.f32 -1.442695, %v6054_v47  ;;  %v6271_v11 = vpop.f32.mrb[53].mxu0  ;;  %v6283_v62 = vmul.f32 %v6005_v35, %v5902_v48  ;;  %v7495_v34 = vld [vmem:[#allocation77_spill] sm:$0xff] }
 0x1ec   :  { %v6249_v14 = vpop.eup %4416  ;;  %4436 = vrcp.f32 %v2552_v56  ;;  %v2553_v33 = vadd.f32 1.0, %v4415_v59  ;;  %7427 = vst [vmem:[#allocation115_spill] sm:$0xff] %v6271_v11  ;;  %v6273_v59 = vpop.f32.mrb[53].mxu1  ;;  %v6279_v56 = vmul.f32 %v5998_v2, %v5900_v44  ;;  %v3777_v29 = vmul.f32 -1.442695, %v6056_v60  ;;  %v7433_v44 = vld [vmem:[#allocation31_spill] sm:$0xff] }
 0x1ed   :  { %7423 = vst [vmem:[#allocation111_spill] sm:$0xff] %v6249_v14  ;;  %v6260_v22 = vpop.eup %4418  ;;  %4438 = vrcp.f32 %v2551_v7  ;;  %7428 = vst [vmem:[#allocation116_spill] sm:$0xff] %v6273_v59  ;;  %v6286_v1 = vpop.f32.mrb[54].mxu0  ;;  %v6294_v57 = vmul.f32 %v6012_v42, %v5906_v5  ;;  %v6298_v2 = vmul.f32 %v7433_v44, %v5908_v54  ;;  %v3778_v48 = vmul.f32 -1.442695, %v6070_v26  ;;  %v7438_v60 = vld [vmem:[#allocation32_spill] sm:$0xff] }
 0x1ee   :  { %7426 = vst [vmem:[#allocation114_spill] sm:$0xff] %v6260_v22  ;;  %v6275_v15 = vpop.eup %4420  ;;  %4440 = vrcp.f32 %v2553_v33  ;;  %7430 = vst [vmem:[#allocation118_spill] sm:$0xff] %v6286_v1  ;;  %v6288_v13 = vpop.f32.mrb[54].mxu1  ;;  %v7437_v33 = vld [vmem:[#allocation3_spill] sm:$0xff]  ;;  %v3780_v54 = vmul.f32 -1.442695, %v6072_v43 }
 0x1ef   :  { %7429 = vst [vmem:[#allocation117_spill] sm:$0xff] %v6275_v15  ;;  %7431 = vst [vmem:[#allocation119_spill] sm:$0xff] %v6288_v13  ;;  %v6290_v12 = vpop.eup %4422  ;;  %4442 = vpow2.f32 %v3774_v20  ;;  %v6301_v35 = vpop.f32.mrb[55].mxu0  ;;  %v6309_v47 = vmul.f32 %v7438_v60, %v7437_v33  ;;  %v7440_v5 = vld [vmem:[#allocation47_spill] sm:$0xff]  ;;  %v7442_v44 = vld [vmem:[#allocation5_spill] sm:$0xff] }
 0x1f0   :  { %7432 = vst [vmem:[#allocation120_spill] sm:$0xff] %v6290_v12  ;;  %7434 = vst [vmem:[#allocation31_spill] sm:$0xff] %v6301_v35  ;;  %v6303_v3 = vpop.f32.mrb[55].mxu1  ;;  %v6305_v7 = vpop.eup %4424  ;;  %v6313_v42 = vmul.f32 %v7440_v5, %v7439_v58  ;;  %4444 = vpow2.f32 %v3776_v46  ;;  %v6320_v26 = vmul.f32 %v6058_v9, %v7442_v44  ;;  %v7444_v60 = vld [vmem:[#allocation55_spill] sm:$0xff]  ;;  %v7447_v5 = vld [vmem:[#allocation50_spill] sm:$0xff] }
 0x1f1   :  { %7435 = vst [vmem:[#allocation121_spill] sm:$0xff] %v6303_v3  ;;  %7436 = vst [vmem:[#allocation122_spill] sm:$0xff] %v6305_v7  ;;  %v6316_v20 = vpop.eup %4426  ;;  %v6324_v7 = vmul.f32 %v6061_v28, %v7443_v36  ;;  %4446 = vpow2.f32 %v3775_v30  ;;  %v3779_v33 = vmul.f32 -1.442695, %v7444_v60  ;;  %v7446_v58 = vld [vmem:[#allocation7_spill] sm:$0xff]  ;;  %v7448_v43 = vld [vmem:[#allocation8_spill] sm:$0xff] }
 0x1f2   :  { %7441 = vst [vmem:[#allocation3_spill] sm:$0xff] %v6316_v20  ;;  %v6327_v3 = vpop.eup %4428  ;;  %v6331_v46 = vmul.f32 %v7447_v5, %v7446_v58  ;;  %v7449_v35 = vld [vmem:[#allocation51_spill] sm:$0xff]  ;;  %4448 = vpow2.f32 %v3777_v29  ;;  %v3781_v9 = vmul.f32 -1.442695, %v6079_v0  ;;  %v7451_v36 = vld [vmem:[#allocation9_spill] sm:$0xff]  ;;  %v7452_v28 = vld [vmem:[#allocation54_spill] sm:$0xff] }
 0x1f3   :  { %7445 = vst [vmem:[#allocation32_spill] sm:$0xff] %v6327_v3  ;;  %v6335_v20 = vmul.f32 %v7449_v35, %v7448_v43  ;;  %v6338_v44 = vpop.eup %4430  ;;  %v6342_v30 = vmul.f32 %v7452_v28, %v7451_v36  ;;  %v7453_v60 = vld [vmem:[#allocation10_spill] sm:$0xff]  ;;  %v7454_v13 = vld [vmem:[#allocation57_spill] sm:$0xff]  ;;  %4450 = vpow2.f32 %v3778_v48  ;;  %v3782_v58 = vmul.f32 -1.442695, %v6084_v23  ;;  %v7457_v43 = vld [vmem:[#allocation11_spill] sm:$0xff] }
 0x1f4   :  { %7450 = vst [vmem:[#allocation4_spill] sm:$0xff] %v6338_v44  ;;  %v6346_v3 = vmul.f32 %v7454_v13, %v7453_v60  ;;  %v6349_v5 = vpop.eup %4432  ;;  %v6353_v29 = vmul.f32 %v6088_v41, %v7457_v43  ;;  %4452 = vpow2.f32 %v3780_v54  ;;  %v7459_v35 = vld [vmem:[#allocation59_spill] sm:$0xff]  ;;  %v7460_v44 = vld [vmem:[#allocation60_spill] sm:$0xff]  ;;  %v6357_v36 = vpop.f32.mrb[56].mxu0  ;;  %v7466_v23 = vld [vmem:[#allocation13_spill] sm:$0xff] }
 0x1f5   :  { %7456 = vst [vmem:[#allocation5_spill] sm:$0xff] %v6349_v5  ;;  %v3784_v0 = vmul.f32 -1.442695, %v7459_v35  ;;  %v3783_v12 = vmul.f32 -1.442695, %v7460_v44  ;;  %7461 = vst [vmem:[#allocation7_spill] sm:$0xff] %v6357_v36  ;;  %v6361_v13 = vpop.eup %4434  ;;  %4454 = vpow2.f32 %v3779_v33 }
 0x1f6   :  { %7455 = vst [vmem:[#allocation47_spill] sm:$0xff] %v6346_v3  ;;  %7458 = vst [vmem:[#allocation6_spill] sm:$0xff] %v6353_v29  ;;  %v6359_v28 = vpop.f32.mrb[56].mxu1  ;;  %v7464_v48 = vld [vmem:[#allocation12_spill] sm:$0xff]  ;;  %v7467_v5 = vld [vmem:[#allocation62_spill] sm:$0xff]  ;;  %v6372_v43 = vpop.f32.mrb[57].mxu0  ;;  %4456 = vpow2.f32 %v3781_v9 }
 0x1f7   :  { %7462 = vst [vmem:[#allocation50_spill] sm:$0xff] %v6359_v28  ;;  %7463 = vst [vmem:[#allocation8_spill] sm:$0xff] %v6361_v13  ;;  %v6365_v60 = vmul.f32 %v6095_v17, %v7464_v48  ;;  %v6369_v1 = vmul.f32 %v7467_v5, %v7466_v23  ;;  %v7469_v41 = vld [vmem:[#allocation61_spill] sm:$0xff]  ;;  %v6374_v44 = vpop.f32.mrb[57].mxu1  ;;  %v6376_v35 = vpop.eup %4436  ;;  %v7473_v28 = vld [vmem:[#allocation14_spill] sm:$0xff]  ;;  %4458 = vpow2.f32 %v3782_v58 }
 0x1f8   :  { %v3785_v54 = vmul.f32 -1.442695, %v7469_v41  ;;  %7470 = vst [vmem:[#allocation54_spill] sm:$0xff] %v6372_v43  ;;  %7471 = vst [vmem:[#allocation10_spill] sm:$0xff] %v6374_v44  ;;  %v7474_v36 = vld [vmem:[#allocation63_spill] sm:$0xff]  ;;  %v7476_v17 = vld [vmem:[#allocation66_spill] sm:$0xff]  ;;  %v6390_v5 = vpop.eup %4438  ;;  %4460 = vpow2.f32 %v3784_v0 }
 0x1f9   :  { %7465 = vst [vmem:[#allocation51_spill] sm:$0xff] %v6365_v60  ;;  %7468 = vst [vmem:[#allocation9_spill] sm:$0xff] %v6369_v1  ;;  %v6380_v13 = vmul.f32 %v7474_v36, %v7473_v28  ;;  %v3786_v48 = vmul.f32 -1.442695, %v7476_v17  ;;  %v7477_v59 = vld [vmem:[#allocation67_spill] sm:$0xff]  ;;  %v6386_v23 = vpop.f32.mrb[58].mxu0  ;;  %4462 = vpow2.f32 %v3783_v12 }
 0x1fa   :  { %7472 = vst [vmem:[#allocation57_spill] sm:$0xff] %v6376_v35  ;;  %v6384_v11 = vmul.f32 -1.442695, %v7477_v59  ;;  %7478 = vst [vmem:[#allocation12_spill] sm:$0xff] %v6386_v23  ;;  %v6388_v33 = vpop.f32.mrb[58].mxu1  ;;  %v7481_v41 = vld [vmem:[#allocation15_spill] sm:$0xff]  ;;  %v6406_v23 = vpop.eup %4440  ;;  %4464 = vpow2.f32 %v3785_v54 }
 0x1fb   :  { %7475 = vst [vmem:[#allocation11_spill] sm:$0xff] %v6380_v13  ;;  %7479 = vst [vmem:[#allocation13_spill] sm:$0xff] %v6388_v33  ;;  %v7482_v44 = vld [vmem:[#allocation64_spill] sm:$0xff]  ;;  %v7485_v9 = vld [vmem:[#allocation69_spill] sm:$0xff]  ;;  %v6402_v17 = vpop.f32.mrb[59].mxu0  ;;  %v6404_v59 = vpop.f32.mrb[59].mxu1  ;;  %4466 = vpow2.f32 %v3786_v48 }
 0x1fc   :  { %7480 = vst [vmem:[#allocation62_spill] sm:$0xff] %v6390_v5  ;;  %v6394_v43 = vmul.f32 %v7482_v44, %v7481_v41  ;;  %v7484_v35 = vld [vmem:[#allocation68_spill] sm:$0xff]  ;;  %v6400_v28 = vmul.f32 -1.442695, %v7485_v9  ;;  %7486 = vst [vmem:[#allocation63_spill] sm:$0xff] %v6402_v17  ;;  %v7489_v33 = vld [vmem:[#allocation70_spill] sm:$0xff] }
 0x1fd   :  { %v6397_v36 = vmul.f32 -1.442695, %v7484_v35  ;;  %7487 = vst [vmem:[#allocation15_spill] sm:$0xff] %v6404_v59  ;;  %7488 = vst [vmem:[#allocation64_spill] sm:$0xff] %v6406_v23  ;;  %v6409_v5 = vmul.f32 -1.442695, %v7489_v33  ;;  %v4443_v35 = vpop.eup %4442 }
 0x1fe   :  { %7483 = vst [vmem:[#allocation14_spill] sm:$0xff] %v6394_v43  ;;  %v7490_v15 = vld [vmem:[#allocation71_spill] sm:$0xff]  ;;  %v7491_v58 = vld [vmem:[#allocation72_spill] sm:$0xff]  ;;  %v7492_v9 = vld [vmem:[#allocation73_spill] sm:$0xff]  ;;  %v4445_v0 = vpop.eup %4444  ;;  %v2554_v33 = vadd.f32 1.0, %v4443_v35 }
 0x1ff   :  { %v6412_v44 = vmul.f32 -1.442695, %v7490_v15  ;;  %v6415_v41 = vmul.f32 -1.442695, %v7491_v58  ;;  %v6418_v22 = vmul.f32 -1.442695, %v7492_v9  ;;  %v4447_v14 = vpop.eup %4446 }
 0x200   :  { %v7493_v17 = vld [vmem:[#allocation74_spill] sm:$0xff]  ;;  %v7494_v59 = vld [vmem:[#allocation75_spill] sm:$0xff]  ;;  %v6427_v15 = vmul.f32 -1.442695, %v6129_v51  ;;  %v6430_v58 = vmul.f32 -1.442695, %v7495_v34  ;;  %4468 = vrcp.f32 %v2554_v33 }
 0x201   :  { %v6421_v43 = vmul.f32 -1.442695, %v7493_v17  ;;  %v6424_v23 = vmul.f32 -1.442695, %v7494_v59  ;;  %v2556_v12 = vadd.f32 1.0, %v4445_v0  ;;  %v7496_v9 = vld [vmem:[#allocation78_spill] sm:$0xff]  ;;  %v4449_v59 = vpop.eup %4448 }
 0x202   :  { %v6433_v24 = vmul.f32 -1.442695, %v7496_v9  ;;  %v6436_v17 = vmul.f32 -1.442695, %v6135_v8  ;;  %v7497_v13 = vld [vmem:[#allocation16_spill] sm:$0xff]  ;;  %v7498_v1 = vld [vmem:[#allocation65_spill] sm:$0xff]  ;;  %v4451_v48 = vpop.eup %4450 }
 0x203   :  { %v6440_v35 = vmul.f32 %v7498_v1, %v7497_v13  ;;  %v2555_v54 = vadd.f32 1.0, %v4447_v14  ;;  %v6443_v51 = vmul.f32 -1.442695, %v6137_v25  ;;  %v6445_v34 = vpop.f32.mrb[60].mxu0  ;;  %v6447_v0 = vpop.f32.mrb[60].mxu1  ;;  %v7502_v9 = vld [vmem:[#allocation17_spill] sm:$0xff]  ;;  %4470 = vrcp.f32 %v2556_v12 }
 0x204   :  { %7500 = vst [vmem:[#allocation65_spill] sm:$0xff] %v6445_v34  ;;  %7501 = vst [vmem:[#allocation123_spill] sm:$0xff] %v6447_v0  ;;  %v6451_v60 = vmul.f32 %v6142_v61, %v7502_v9  ;;  %v2557_v8 = vadd.f32 1.0, %v4449_v59  ;;  %v7503_v29 = vld [vmem:[#allocation81_spill] sm:$0xff]  ;;  %v6456_v1 = vpop.f32.mrb[61].mxu0  ;;  %v4453_v14 = vpop.eup %4452  ;;  %v7506_v13 = vld [vmem:[#allocation18_spill] sm:$0xff] }
 0x205   :  { %7499 = vst [vmem:[#allocation16_spill] sm:$0xff] %v6443_v51  ;;  %v6454_v3 = vmul.f32 -1.442695, %v7503_v29  ;;  %7505 = vst [vmem:[#allocation124_spill] sm:$0xff] %v6456_v1  ;;  %v6460_v33 = vmul.f32 %v6145_v55, %v7506_v13  ;;  %v7507_v34 = vld [vmem:[#allocation19_spill] sm:$0xff]  ;;  %4472 = vrcp.f32 %v2555_v54  ;;  %v2558_v25 = vadd.f32 1.0, %v4451_v48  ;;  %v4455_v59 = vpop.eup %4454 }
 0x206   :  { %v6464_v0 = vmul.f32 %v6148_v32, %v7507_v34  ;;  %v6466_v61 = vpop.f32.mrb[61].mxu1  ;;  %v6468_v9 = vpop.f32.mrb[62].mxu0  ;;  %4474 = vrcp.f32 %v2557_v8  ;;  %v2560_v12 = vadd.f32 1.0, %v4453_v14  ;;  %v7510_v29 = vld [vmem:[#allocation82_spill] sm:$0xff]  ;;  %v7514_v32 = vld [vmem:[#allocation20_spill] sm:$0xff]  ;;  %v2559_v48 = vadd.f32 1.0, %v4455_v59 }
 0x207   :  { %7504 = vst [vmem:[#allocation17_spill] sm:$0xff] %v6454_v3  ;;  %7508 = vst [vmem:[#allocation18_spill] sm:$0xff] %v6466_v61  ;;  %v6471_v1 = vmul.f32 -1.442695, %v7510_v29  ;;  %v6474_v3 = vmul.f32 -1.442695, %v6153_v31  ;;  %v4457_v13 = vpop.eup %4456  ;;  %4476 = vrcp.f32 %v2558_v25 }
 0x208   :  { %7509 = vst [vmem:[#allocation19_spill] sm:$0xff] %v6468_v9  ;;  %v6476_v55 = vpop.f32.mrb[62].mxu1  ;;  %v7515_v34 = vld [vmem:[#allocation84_spill] sm:$0xff]  ;;  %v7516_v61 = vld [vmem:[#allocation85_spill] sm:$0xff]  ;;  %v6485_v8 = vpop.f32.mrb[63].mxu0  ;;  %4478 = vrcp.f32 %v2560_v12 }
 0x209   :  { %7511 = vst [vmem:[#allocation125_spill] sm:$0xff] %v6471_v1  ;;  %7512 = vst [vmem:[#allocation126_spill] sm:$0xff] %v6474_v3  ;;  %v6480_v54 = vmul.f32 %v7515_v34, %v7514_v32  ;;  %v6483_v9 = vmul.f32 -1.442695, %v7516_v61  ;;  %v6487_v14 = vpop.f32.mrb[63].mxu1  ;;  %v4459_v29 = vpop.eup %4458  ;;  %v7520_v1 = vld [vmem:[#allocation21_spill] sm:$0xff]  ;;  %4480 = vrcp.f32 %v2559_v48 }
 0x20a   :  { %7513 = vst [vmem:[#allocation127_spill] sm:$0xff] %v6476_v55  ;;  %7518 = vst [vmem:[#allocation84_spill] sm:$0xff] %v6485_v8  ;;  %v6491_v31 = vmul.f32 %v6162_v63, %v7520_v1  ;;  %v2561_v55 = vadd.f32 1.0, %v4457_v13  ;;  %v7521_v3 = vld [vmem:[#allocation86_spill] sm:$0xff]  ;;  %v4461_v32 = vpop.eup %4460  ;;  %v2562_v25 = vadd.f32 1.0, %v4459_v29  ;;  %v7524_v34 = vld [vmem:[#allocation88_spill] sm:$0xff] }
 0x20b   :  { %7517 = vst [vmem:[#allocation20_spill] sm:$0xff] %v6483_v9  ;;  %7519 = vst [vmem:[#allocation128_spill] sm:$0xff] %v6487_v14  ;;  %v6494_v51 = vmul.f32 -1.442695, %v7521_v3  ;;  %v6497_v59 = vmul.f32 -1.442695, %v6165_v49  ;;  %v4463_v14 = vpop.eup %4462 }
 0x20c   :  { %v6500_v8 = vmul.f32 -1.442695, %v7524_v34  ;;  %v7526_v61 = vld [vmem:[#allocation22_spill] sm:$0xff]  ;;  %4482 = vrcp.f32 %v2561_v55  ;;  %v2564_v63 = vadd.f32 1.0, %v4461_v32  ;;  %v7527_v1 = vld [vmem:[#allocation89_spill] sm:$0xff]  ;;  %v4465_v13 = vpop.eup %4464  ;;  %v7529_v3 = vld [vmem:[#allocation23_spill] sm:$0xff] }
 0x20d   :  { %7522 = vst [vmem:[#allocation21_spill] sm:$0xff] %v6494_v51  ;;  %7523 = vst [vmem:[#allocation129_spill] sm:$0xff] %v6497_v59  ;;  %v6504_v9 = vmul.f32 %v6169_v38, %v7526_v61  ;;  %v6507_v12 = vmul.f32 -1.442695, %v7527_v1  ;;  %v6511_v29 = vmul.f32 %v6176_v52, %v7529_v3  ;;  %4484 = vrcp.f32 %v2562_v25  ;;  %v7530_v49 = vld [vmem:[#allocation90_spill] sm:$0xff]  ;;  %v1959_v59 = vpop.f32.mrb[64].mxu1  ;;  %v4467_v51 = vpop.eup %4466 }
 0x20e   :  { %7525 = vst [vmem:[#allocation130_spill] sm:$0xff] %v6500_v8  ;;  %v2563_v48 = vadd.f32 1.0, %v4463_v14  ;;  %v6514_v34 = vmul.f32 -1.442695, %v7530_v49  ;;  %v1766_v8 = vpop.f32.mrb[64].mxu0  ;;  %4486 = vrcp.f32 %v2564_v63  ;;  %v2565_v38 = vadd.f32 1.0, %v4465_v13 }
 0x20f   :  { %7528 = vst [vmem:[#allocation22_spill] sm:$0xff] %v6507_v12  ;;  %v3014_v61 = vmul.f32 %v6230_v40, %v1766_v8  ;;  %v3016_v55 = vmul.f32 %v6234_v16, %v1959_v59  ;;  %v1768_v32 = vpop.f32.mrb[65].mxu0  ;;  %v1961_v1 = vpop.f32.mrb[65].mxu1  ;;  %v2566_v52 = vadd.f32 1.0, %v4467_v51  ;;  %v7532_v63 = vld [vmem:[#allocation24_spill] sm:$0xff] }
 0x210   :  { %7531 = vst [vmem:[#allocation23_spill] sm:$0xff] %v6514_v34  ;;  %v6518_v12 = vpop.eup %4468  ;;  %4488 = vrcp.f32 %v2563_v48  ;;  %v3015_v3 = vmul.f32 %v6238_v18, %v1768_v32  ;;  %v3017_v14 = vmul.f32 %v6242_v19, %v1961_v1  ;;  %v1770_v25 = vpop.f32.mrb[66].mxu0  ;;  %v6526_v13 = vmul.f32 %v6179_v45, %v7532_v63  ;;  %v7533_v18 = vld [vmem:[#allocation25_spill] sm:$0xff]  ;;  %v7534_v45 = vld [vmem:[#allocation26_spill] sm:$0xff]  ;;  %v7535_v63 = vld [vmem:[#allocation91_spill] sm:$0xff] }
 0x211   :  { %v1963_v49 = vpop.f32.mrb[66].mxu1  ;;  %v6522_v34 = vpop.eup %4470  ;;  %4490 = vrcp.f32 %v2565_v38  ;;  %v3018_v40 = vmul.f32 %v6246_v39, %v1770_v25  ;;  %v6534_v19 = vmul.f32 %v6182_v50, %v7533_v18  ;;  %v6540_v38 = vmul.f32 %v7535_v63, %v7534_v45  ;;  %v7536_v25 = vld [vmem:[#allocation27_spill] sm:$0xff]  ;;  %v7537_v50 = vld [vmem:[#allocation92_spill] sm:$0xff] }
 0x212   :  { %v3020_v16 = vmul.f32 %v6253_v27, %v1963_v49  ;;  %v1772_v8 = vpop.f32.mrb[67].mxu0  ;;  %v1965_v59 = vpop.f32.mrb[67].mxu1  ;;  %4492 = vrcp.f32 %v2566_v52  ;;  %v3914_v1 = vpack.c.bf16 %v3015_v3, %v3014_v61  ;;  %v3915_v48 = vpack.c.bf16 %v3017_v14, %v3016_v55  ;;  %v7538_v61 = vld [vmem:[#allocation93_spill] sm:$0xff]  ;;  %v7539_v52 = vld [vmem:[#allocation94_spill] sm:$0xff]  ;;  %v7542_v45 = vld [vmem:[#allocation95_spill] sm:$0xff] }
 0x213   :  { %v6530_v51 = vpop.eup %4472  ;;  %4494 = vpow2.f32 %v6384_v11  ;;  %v3019_v49 = vmul.f32 %v6264_v37, %v1772_v8  ;;  %v3021_v39 = vmul.f32 %v6268_v53, %v1965_v59  ;;  %v6549_v18 = vmul.f32 %v7537_v50, %v7536_v25  ;;  %v7540_v53 = vld [vmem:[#allocation96_spill] sm:$0xff] }
 0x214   :  { %v6536_v32 = vpop.eup %4474  ;;  %4496 = vpow2.f32 %v6397_v36  ;;  %v6553_v55 = vmul.f32 -1.442695, %v7538_v61  ;;  %v6556_v3 = vmul.f32 -1.442695, %v7539_v52  ;;  %3526 = vst [vmem:[%s7198_s4] sm:$0xff] %v3914_v1  ;;  %3527 = vst [vmem:[%s7198_s4 + $0x8] sm:$0xff] %v3915_v48  ;;  %v7541_v59 = vld [vmem:[#allocation28_spill] sm:$0xff] }
 0x215   :  { %v6545_v27 = vpop.eup %4476  ;;  %4498 = vpow2.f32 %v6400_v28  ;;  %v6568_v11 = vmul.f32 -1.442695, %v7540_v53  ;;  %v3916_v36 = vpack.c.bf16 %v3019_v49, %v3018_v40  ;;  %v3917_v14 = vpack.c.bf16 %v3021_v39, %v3020_v16  ;;  %v7543_v1 = vld [vmem:[#allocation97_spill] sm:$0xff]  ;;  %v7544_v48 = vld [vmem:[#allocation99_spill] sm:$0xff]  ;;  %v1776_v28 = vpop.f32.mrb[68].mxu0  ;;  %v7545_v40 = vld [vmem:[#allocation100_spill] sm:$0xff] }
 0x216   :  { %v6564_v37 = vpop.eup %4478  ;;  %v6574_v63 = vmul.f32 %v7542_v45, %v7541_v59  ;;  %4500 = vpow2.f32 %v6409_v5  ;;  %v6578_v25 = vmul.f32 -1.442695, %v7543_v1  ;;  %v6581_v50 = vmul.f32 -1.442695, %v7544_v48  ;;  %v1969_v52 = vpop.f32.mrb[68].mxu1 }
 0x217   :  { %v6570_v8 = vpop.eup %4480  ;;  %4502 = vpow2.f32 %v6412_v44  ;;  %v6587_v16 = vmul.f32 -1.442695, %v7545_v40  ;;  %3528 = vst [vmem:[%s7198_s4 + $0x10] sm:$0xff] %v3916_v36  ;;  %3529 = vst [vmem:[%s7198_s4 + $0x18] sm:$0xff] %v3917_v14  ;;  %v3022_v5 = vmul.f32 %v6279_v56, %v1776_v28  ;;  %v3024_v49 = vmul.f32 %v6283_v62, %v1969_v52  ;;  %v1778_v39 = vpop.f32.mrb[69].mxu0  ;;  %v7547_v44 = vld [vmem:[#allocation101_spill] sm:$0xff] }
 0x218   :  { %v6583_v53 = vpop.eup %4482  ;;  %v1971_v59 = vpop.f32.mrb[69].mxu1  ;;  %4504 = vpow2.f32 %v6415_v41  ;;  %v6601_v40 = vmul.f32 -1.442695, %v7547_v44  ;;  %v3023_v48 = vmul.f32 %v6294_v57, %v1778_v39  ;;  %v7549_v56 = vld [vmem:[#allocation102_spill] sm:$0xff]  ;;  %v7550_v57 = vld [vmem:[#allocation103_spill] sm:$0xff] }
 0x219   :  { %7546 = vst [vmem:[#allocation24_spill] sm:$0xff] %v6587_v16  ;;  %v6597_v45 = vpop.eup %4484  ;;  %v3025_v36 = vmul.f32 %v6298_v2, %v1971_v59  ;;  %v1780_v1 = vpop.f32.mrb[70].mxu0  ;;  %4506 = vpow2.f32 %v6418_v22  ;;  %v6609_v62 = vmul.f32 -1.442695, %v7549_v56  ;;  %v6617_v2 = vmul.f32 -1.442695, %v7550_v57 }
 0x21a   :  { %7548 = vst [vmem:[#allocation25_spill] sm:$0xff] %v6601_v40  ;;  %v1973_v61 = vpop.f32.mrb[70].mxu1  ;;  %v6605_v14 = vpop.eup %4486  ;;  %v3026_v52 = vmul.f32 %v6309_v47, %v1780_v1  ;;  %4508 = vpow2.f32 %v6421_v43  ;;  %v3918_v39 = vpack.c.bf16 %v3023_v48, %v3022_v5  ;;  %v7551_v22 = vld [vmem:[#allocation104_spill] sm:$0xff]  ;;  %v6631_v43 = vmul.f32 -1.442695, %v6216_v6  ;;  %v7560_v57 = vld [vmem:[#allocation51_spill] sm:$0xff] }
 0x21b   :  { %v3028_v41 = vmul.f32 %v6313_v42, %v1973_v61  ;;  %v1782_v28 = vpop.f32.mrb[71].mxu0  ;;  %v1975_v44 = vpop.f32.mrb[71].mxu1  ;;  %v3919_v59 = vpack.c.bf16 %v3025_v36, %v3024_v49  ;;  %4510 = vpow2.f32 %v6424_v23  ;;  %v6623_v56 = vmul.f32 -1.442695, %v7551_v22  ;;  %v7554_v49 = vld [vmem:[#allocation29_spill] sm:$0xff]  ;;  %v7559_v22 = vld [vmem:[#allocation6_spill] sm:$0xff] }
 0x21c   :  { %v6613_v40 = vpop.eup %4488  ;;  %v3027_v47 = vmul.f32 %v6320_v26, %v1782_v28  ;;  %v3029_v42 = vmul.f32 %v6324_v7, %v1975_v44  ;;  %4512 = vpow2.f32 %v6427_v15  ;;  %v6634_v1 = vmul.f32 -1.442695, %v6218_v10  ;;  %3530 = vst [vmem:[%s7198_s4 + $0x20] sm:$0xff] %v3918_v39  ;;  %v7555_v44 = vld [vmem:[#allocation98_spill] sm:$0xff]  ;;  %v7556_v39 = vld [vmem:[#allocation109_spill] sm:$0xff]  ;;  %v1979_v10 = vpop.f32.mrb[72].mxu1 }
 0x21d   :  { %v6619_v16 = vpop.eup %4490  ;;  %v6637_v48 = vmul.f32 -1.442695, %v6220_v21  ;;  %3531 = vst [vmem:[%s7198_s4 + $0x28] sm:$0xff] %v3919_v59  ;;  %4514 = vpow2.f32 %v6430_v58  ;;  %v6647_v15 = vmul.f32 -1.442695, %v6222_v4  ;;  %v6651_v36 = vmul.f32 %v7555_v44, %v7554_v49  ;;  %v1786_v59 = vpop.f32.mrb[72].mxu0 }
 0x21e   :  { %v6627_v61 = vpop.eup %4492  ;;  %v3920_v7 = vpack.c.bf16 %v3027_v47, %v3026_v52  ;;  %v3921_v23 = vpack.c.bf16 %v3029_v42, %v3028_v41  ;;  %4516 = vpow2.f32 %v6433_v24  ;;  %v6655_v21 = vmul.f32 -1.442695, %v7556_v39  ;;  %v1788_v41 = vpop.f32.mrb[73].mxu0 }
 0x21f   :  { %7552 = vst [vmem:[#allocation26_spill] sm:$0xff] %v6637_v48  ;;  %v4495_v26 = vpop.eup %4494  ;;  %7553 = vst [vmem:[#allocation91_spill] sm:$0xff] %v6647_v15  ;;  %4518 = vpow2.f32 %v6436_v17  ;;  %v3030_v52 = vmul.f32 %v6331_v46, %v1786_v59  ;;  %v3032_v24 = vmul.f32 %v6335_v20, %v1979_v10  ;;  %v1981_v47 = vpop.f32.mrb[73].mxu1  ;;  %v7558_v17 = vld [vmem:[#allocation47_spill] sm:$0xff] }
 0x220   :  { %v4497_v5 = vpop.eup %4496  ;;  %v2568_v28 = vadd.f32 1.0, %v4495_v26  ;;  %7557 = vst [vmem:[#allocation27_spill] sm:$0xff] %v6655_v21  ;;  %3532 = vst [vmem:[%s7198_s4 + $0x30] sm:$0xff] %v3920_v7  ;;  %v3033_v49 = vmul.f32 %v7558_v17, %v1981_v47  ;;  %v1790_v44 = vpop.f32.mrb[74].mxu0  ;;  %v7562_v17 = vld [vmem:[#allocation11_spill] sm:$0xff] }
 0x221   :  { %v4499_v6 = vpop.eup %4498  ;;  %v2567_v58 = vadd.f32 1.0, %v4497_v5  ;;  %3533 = vst [vmem:[%s7198_s4 + $0x38] sm:$0xff] %v3921_v23  ;;  %v3031_v5 = vmul.f32 %v6342_v30, %v1788_v41  ;;  %v1983_v39 = vpop.f32.mrb[74].mxu1  ;;  %v3034_v23 = vmul.f32 %v7559_v22, %v1790_v44  ;;  %v7561_v41 = vld [vmem:[#allocation9_spill] sm:$0xff]  ;;  %v7563_v22 = vld [vmem:[#allocation110_spill] sm:$0xff] }
 0x222   :  { %v4501_v42 = vpop.eup %4500  ;;  %4520 = vrcp.f32 %v2568_v28  ;;  %v2569_v26 = vadd.f32 1.0, %v4499_v6  ;;  %v3036_v46 = vmul.f32 %v7560_v57, %v1983_v39  ;;  %v1792_v59 = vpop.f32.mrb[75].mxu0  ;;  %v3923_v6 = vpack.c.bf16 %v3033_v49, %v3032_v24  ;;  %v7565_v57 = vld [vmem:[#allocation112_spill] sm:$0xff] }
 0x223   :  { %v4503_v7 = vpop.eup %4502  ;;  %4522 = vrcp.f32 %v2567_v58  ;;  %v2570_v4 = vadd.f32 1.0, %v4501_v42  ;;  %v1985_v10 = vpop.f32.mrb[75].mxu1  ;;  %v3922_v28 = vpack.c.bf16 %v3031_v5, %v3030_v52  ;;  %v3035_v47 = vmul.f32 %v7561_v41, %v1792_v59  ;;  %v7568_v5 = vld [vmem:[#allocation111_spill] sm:$0xff]  ;;  %v7569_v59 = vld [vmem:[#allocation113_spill] sm:$0xff] }
 0x224   :  { %v4505_v20 = vpop.eup %4504  ;;  %4524 = vrcp.f32 %v2569_v26  ;;  %v2572_v21 = vadd.f32 1.0, %v4503_v7  ;;  %v3037_v48 = vmul.f32 %v7562_v17, %v1985_v10  ;;  %v6673_v44 = vmul.f32 -1.442695, %v7563_v22  ;;  %3535 = vst [vmem:[%s7198_s4 + $0x48] sm:$0xff] %v3923_v6  ;;  %v7567_v26 = vld [vmem:[#allocation30_spill] sm:$0xff] }
 0x225   :  { %v4507_v15 = vpop.eup %4506  ;;  %4526 = vrcp.f32 %v2570_v4  ;;  %v2571_v30 = vadd.f32 1.0, %v4505_v20  ;;  %v6676_v39 = vmul.f32 -1.442695, %v7565_v57  ;;  %3534 = vst [vmem:[%s7198_s4 + $0x40] sm:$0xff] %v3922_v28  ;;  %v3924_v24 = vpack.c.bf16 %v3035_v47, %v3034_v23  ;;  %v1796_v20 = vpop.f32.mrb[76].mxu0 }
 0x226   :  { %v4509_v58 = vpop.eup %4508  ;;  %4528 = vrcp.f32 %v2572_v21  ;;  %v2573_v42 = vadd.f32 1.0, %v4507_v15  ;;  %7564 = vst [vmem:[#allocation92_spill] sm:$0xff] %v6673_v44  ;;  %v3925_v21 = vpack.c.bf16 %v3037_v48, %v3036_v46  ;;  %v6686_v49 = vmul.f32 %v7568_v5, %v7567_v26  ;;  %v1989_v28 = vpop.f32.mrb[76].mxu1  ;;  %v7571_v48 = vld [vmem:[#allocation14_spill] sm:$0xff] }
 0x227   :  { %7566 = vst [vmem:[#allocation28_spill] sm:$0xff] %v6676_v39  ;;  %v4511_v4 = vpop.eup %4510  ;;  %4530 = vrcp.f32 %v2571_v30  ;;  %v2574_v52 = vadd.f32 1.0, %v4509_v58  ;;  %v6689_v10 = vmul.f32 -1.442695, %v7569_v59  ;;  %3536 = vst [vmem:[%s7198_s4 + $0x50] sm:$0xff] %v3924_v24  ;;  %v3038_v23 = vmul.f32 %v7571_v48, %v1796_v20  ;;  %v1798_v30 = vpop.f32.mrb[77].mxu0 }
 0x228   :  { %v4513_v15 = vpop.eup %4512  ;;  %4532 = vrcp.f32 %v2573_v42  ;;  %v2576_v7 = vadd.f32 1.0, %v4511_v4  ;;  %3537 = vst [vmem:[%s7198_s4 + $0x58] sm:$0xff] %v3925_v21  ;;  %v3040_v46 = vmul.f32 %v6440_v35, %v1989_v28  ;;  %v1991_v47 = vpop.f32.mrb[77].mxu1  ;;  %v3039_v42 = vmul.f32 %v6451_v60, %v1798_v30  ;;  %v7573_v30 = vld [vmem:[#allocation114_spill] sm:$0xff]  ;;  %v7607_v39 = vld [vmem:[#allocation5_spill] sm:$0xff] }
 0x229   :  { %7570 = vst [vmem:[#allocation95_spill] sm:$0xff] %v6689_v10  ;;  %v4515_v41 = vpop.eup %4514  ;;  %4534 = vrcp.f32 %v2574_v52  ;;  %v2575_v6 = vadd.f32 1.0, %v4513_v15  ;;  %v3041_v4 = vmul.f32 %v6460_v33, %v1991_v47  ;;  %v1800_v52 = vpop.f32.mrb[78].mxu0  ;;  %v7572_v33 = vld [vmem:[#allocation33_spill] sm:$0xff]  ;;  %v7595_v59 = vld [vmem:[#allocation126_spill] sm:$0xff] }
 0x22a   :  { %v4517_v17 = vpop.eup %4516  ;;  %4536 = vrcp.f32 %v2576_v7  ;;  %v2577_v58 = vadd.f32 1.0, %v4515_v41  ;;  %v1993_v15 = vpop.f32.mrb[78].mxu1  ;;  %v3042_v21 = vmul.f32 %v6464_v0, %v1800_v52  ;;  %v3926_v41 = vpack.c.bf16 %v3039_v42, %v3038_v23  ;;  %v7575_v52 = vld [vmem:[#allocation117_spill] sm:$0xff]  ;;  %v7576_v23 = vld [vmem:[#allocation115_spill] sm:$0xff] }
 0x22b   :  { %v4519_v24 = vpop.eup %4518  ;;  %4538 = vrcp.f32 %v2575_v6  ;;  %v2578_v26 = vadd.f32 1.0, %v4517_v17  ;;  %v3044_v5 = vmul.f32 %v6480_v54, %v1993_v15  ;;  %v1802_v20 = vpop.f32.mrb[79].mxu0  ;;  %v3927_v48 = vpack.c.bf16 %v3041_v4, %v3040_v46  ;;  %v7574_v17 = vld [vmem:[#allocation34_spill] sm:$0xff]  ;;  %v7604_v10 = vld [vmem:[#allocation129_spill] sm:$0xff] }
 0x22c   :  { %v1995_v35 = vpop.f32.mrb[79].mxu1  ;;  %v6703_v28 = vpop.eup %4520  ;;  %4540 = vrcp.f32 %v2577_v58  ;;  %v2580_v7 = vadd.f32 1.0, %v4519_v24  ;;  %v6709_v47 = vmul.f32 %v7573_v30, %v7572_v33  ;;  %v3043_v6 = vmul.f32 %v6491_v31, %v1802_v20  ;;  %v7578_v58 = vld [vmem:[#allocation116_spill] sm:$0xff]  ;;  %3538 = vst [vmem:[%s7198_s4 + $0x60] sm:$0xff] %v3926_v41  ;;  %v7581_v4 = vld [vmem:[#allocation118_spill] sm:$0xff]  ;;  %v7585_v41 = vld [vmem:[#allocation17_spill] sm:$0xff] }
 0x22d   :  { %v6705_v60 = vpop.eup %4522  ;;  %4542 = vrcp.f32 %v2578_v26  ;;  %v3045_v0 = vmul.f32 %v6504_v9, %v1995_v35  ;;  %v6717_v15 = vmul.f32 %v7575_v52, %v7574_v17  ;;  %v6720_v46 = vmul.f32 -1.442695, %v7576_v23  ;;  %3539 = vst [vmem:[%s7198_s4 + $0x68] sm:$0xff] %v3927_v48  ;;  %v7580_v9 = vld [vmem:[#allocation16_spill] sm:$0xff]  ;;  %v7586_v17 = vld [vmem:[#allocation119_spill] sm:$0xff]  ;;  %v1999_v23 = vpop.f32.mrb[80].mxu1 }
 0x22e   :  { %v6713_v54 = vpop.eup %4524  ;;  %4544 = vrcp.f32 %v2580_v7  ;;  %v6723_v42 = vmul.f32 -1.442695, %v7578_v58  ;;  %v6735_v24 = vmul.f32 -1.442695, %v7581_v4  ;;  %v3928_v26 = vpack.c.bf16 %v3043_v6, %v3042_v21  ;;  %v7583_v7 = vld [vmem:[#allocation35_spill] sm:$0xff]  ;;  %v7584_v33 = vld [vmem:[#allocation120_spill] sm:$0xff] }
 0x22f   :  { %7577 = vst [vmem:[#allocation29_spill] sm:$0xff] %v6720_v46  ;;  %v6731_v31 = vpop.eup %4526  ;;  %4546 = vpow2.f32 %v7580_v9  ;;  %v3929_v20 = vpack.c.bf16 %v3045_v0, %v3044_v5  ;;  %v6741_v30 = vmul.f32 %v7584_v33, %v7583_v7  ;;  %v6745_v52 = vmul.f32 -1.442695, %v7586_v17  ;;  %v7588_v48 = vld [vmem:[#allocation31_spill] sm:$0xff]  ;;  %v1806_v9 = vpop.f32.mrb[80].mxu0  ;;  %v7590_v21 = vld [vmem:[#allocation125_spill] sm:$0xff] }
 0x230   :  { %7579 = vst [vmem:[#allocation98_spill] sm:$0xff] %v6723_v42  ;;  %7582 = vst [vmem:[#allocation47_spill] sm:$0xff] %v6735_v24  ;;  %v6737_v35 = vpop.eup %4528  ;;  %4548 = vpow2.f32 %v7585_v41  ;;  %v6748_v58 = vmul.f32 -1.442695, %v7588_v48  ;;  %v7591_v5 = vld [vmem:[#allocation121_spill] sm:$0xff]  ;;  %v3046_v0 = vmul.f32 %v6511_v29, %v1806_v9  ;;  %v3048_v7 = vmul.f32 %v6526_v13, %v1999_v23  ;;  %v1808_v33 = vpop.f32.mrb[81].mxu0 }
 0x231   :  { %7587 = vst [vmem:[#allocation6_spill] sm:$0xff] %v6745_v52  ;;  %v6750_v4 = vpop.eup %4530  ;;  %4550 = vpow2.f32 %v7590_v21  ;;  %v6754_v6 = vmul.f32 -1.442695, %v7591_v5  ;;  %3540 = vst [vmem:[%s7198_s4 + $0x70] sm:$0xff] %v3928_v26  ;;  %v2001_v41 = vpop.f32.mrb[81].mxu1  ;;  %v7593_v21 = vld [vmem:[#allocation36_spill] sm:$0xff]  ;;  %v3047_v57 = vmul.f32 %v6534_v19, %v1808_v33 }
 0x232   :  { %7589 = vst [vmem:[#allocation51_spill] sm:$0xff] %v6748_v58  ;;  %3541 = vst [vmem:[%s7198_s4 + $0x78] sm:$0xff] %v3929_v20  ;;  %v6764_v48 = vpop.eup %4532  ;;  %v7594_v17 = vld [vmem:[#allocation122_spill] sm:$0xff]  ;;  %4552 = vpow2.f32 %v7595_v59  ;;  %v3049_v26 = vmul.f32 %v6540_v38, %v2001_v41  ;;  %v1810_v22 = vpop.f32.mrb[82].mxu0  ;;  %v7596_v29 = vld [vmem:[#allocation37_spill] sm:$0xff] }
 0x233   :  { %7592 = vst [vmem:[#allocation9_spill] sm:$0xff] %v6754_v6  ;;  %v2929_v5 = vmul.f32 %v7594_v17, %v7593_v21  ;;  %v2003_v6 = vpop.f32.mrb[82].mxu1  ;;  %v6771_v20 = vpop.eup %4534  ;;  %v7597_v9 = vld [vmem:[#allocation3_spill] sm:$0xff]  ;;  %v7598_v23 = vld [vmem:[#allocation20_spill] sm:$0xff]  ;;  %v3050_v58 = vmul.f32 %v6549_v18, %v1810_v22  ;;  %v7599_v19 = vld [vmem:[#allocation38_spill] sm:$0xff]  ;;  %v3930_v24 = vpack.c.bf16 %v3047_v57, %v3046_v0 }
 0x234   :  { %v2930_v13 = vmul.f32 %v7597_v9, %v7596_v29  ;;  %4554 = vpow2.f32 %v7598_v23  ;;  %v3052_v52 = vmul.f32 %v6574_v63, %v2003_v6  ;;  %v1812_v17 = vpop.f32.mrb[83].mxu0  ;;  %v2005_v21 = vpop.f32.mrb[83].mxu1  ;;  %v7600_v33 = vld [vmem:[#allocation32_spill] sm:$0xff]  ;;  %v7601_v41 = vld [vmem:[#allocation21_spill] sm:$0xff]  ;;  %v3931_v42 = vpack.c.bf16 %v3049_v26, %v3048_v7  ;;  %v7602_v29 = vld [vmem:[#allocation39_spill] sm:$0xff] }
 0x235   :  { %v6778_v59 = vpop.eup %4536  ;;  %v2932_v38 = vmul.f32 %v7600_v33, %v7599_v19  ;;  %4556 = vpow2.f32 %v7601_v41  ;;  %v7603_v9 = vld [vmem:[#allocation4_spill] sm:$0xff]  ;;  %v3051_v18 = vmul.f32 %v6651_v36, %v1812_v17  ;;  %v3053_v63 = vmul.f32 %v6686_v49, %v2005_v21  ;;  %v7608_v33 = vld [vmem:[#allocation130_spill] sm:$0xff]  ;;  %v7609_v57 = vld [vmem:[#allocation7_spill] sm:$0xff]  ;;  %3542 = vst [vmem:[%s7198_s4 + $0x80] sm:$0xff] %v3930_v24 }
 0x236   :  { %v6783_v46 = vpop.eup %4538  ;;  %v2931_v23 = vmul.f32 %v7603_v9, %v7602_v29  ;;  %4558 = vpow2.f32 %v7604_v10  ;;  %v7606_v6 = vld [vmem:[#allocation40_spill] sm:$0xff]  ;;  %v6796_v0 = vmul.f32 -1.442695, %v7609_v57  ;;  %v7611_v7 = vld [vmem:[#allocation50_spill] sm:$0xff]  ;;  %3543 = vst [vmem:[%s7198_s4 + $0x88] sm:$0xff] %v3931_v42  ;;  %v7614_v49 = vld [vmem:[#allocation41_spill] sm:$0xff] }
 0x237   :  { %v6790_v22 = vpop.eup %4540  ;;  %v2933_v19 = vmul.f32 %v7607_v39, %v7606_v6  ;;  %4560 = vpow2.f32 %v7608_v33  ;;  %v6799_v26 = vmul.f32 -1.442695, %v7611_v7  ;;  %v7615_v39 = vld [vmem:[#allocation8_spill] sm:$0xff]  ;;  %v7616_v17 = vld [vmem:[#allocation22_spill] sm:$0xff]  ;;  %v3932_v21 = vpack.c.bf16 %v3051_v18, %v3050_v58  ;;  %v7619_v6 = vld [vmem:[#allocation57_spill] sm:$0xff] }
 0x238   :  { %7605 = vst [vmem:[#allocation11_spill] sm:$0xff] %v6790_v22  ;;  %7610 = vst [vmem:[#allocation30_spill] sm:$0xff] %v6796_v0  ;;  %v6807_v36 = vpop.eup %4542  ;;  %v6811_v10 = vmul.f32 %v7615_v39, %v7614_v49  ;;  %4562 = vpow2.f32 %v7616_v17  ;;  %v3933_v41 = vpack.c.bf16 %v3053_v63, %v3052_v52  ;;  %v7618_v9 = vld [vmem:[#allocation42_spill] sm:$0xff]  ;;  %v7620_v24 = vld [vmem:[#allocation43_spill] sm:$0xff]  ;;  %v1816_v49 = vpop.f32.mrb[84].mxu0 }
 0x239   :  { %7612 = vst [vmem:[#allocation111_spill] sm:$0xff] %v6799_v26  ;;  %7613 = vst [vmem:[#allocation14_spill] sm:$0xff] %v6807_v36  ;;  %v6814_v29 = vpop.eup %4544  ;;  %v6818_v33 = vmul.f32 %v7619_v6, %v7618_v9  ;;  %v7621_v7 = vld [vmem:[#allocation62_spill] sm:$0xff]  ;;  %v7622_v42 = vld [vmem:[#allocation23_spill] sm:$0xff]  ;;  %v2009_v39 = vpop.f32.mrb[84].mxu1  ;;  %v3054_v63 = vmul.f32 %v6709_v47, %v1816_v49 }
 0x23a   :  { %7617 = vst [vmem:[#allocation33_spill] sm:$0xff] %v6814_v29  ;;  %v6822_v57 = vmul.f32 %v7621_v7, %v7620_v24  ;;  %4564 = vpow2.f32 %v7622_v42  ;;  %v7623_v26 = vld [vmem:[#allocation54_spill] sm:$0xff]  ;;  %v4547_v17 = vpop.eup %4546  ;;  %v7625_v58 = vld [vmem:[#allocation44_spill] sm:$0xff]  ;;  %3544 = vst [vmem:[%s7198_s4 + $0x90] sm:$0xff] %v3932_v21  ;;  %v3056_v7 = vmul.f32 %v6717_v15, %v2009_v39  ;;  %v1818_v9 = vpop.f32.mrb[85].mxu0 }
 0x23b   :  { %v6826_v0 = vmul.f32 -1.442695, %v7623_v26  ;;  %v7626_v52 = vld [vmem:[#allocation64_spill] sm:$0xff]  ;;  %4566 = vpow2.f32 %v6553_v55  ;;  %3545 = vst [vmem:[%s7198_s4 + $0x98] sm:$0xff] %v3933_v41  ;;  %v2011_v6 = vpop.f32.mrb[85].mxu1  ;;  %v4549_v24 = vpop.eup %4548  ;;  %v2579_v42 = vadd.f32 1.0, %v4547_v17  ;;  %v3055_v55 = vmul.f32 %v6741_v30, %v1818_v9 }
 0x23c   :  { %v6830_v18 = vmul.f32 %v7626_v52, %v7625_v58  ;;  %4568 = vpow2.f32 %v6556_v3  ;;  %v3057_v58 = vmul.f32 %v2929_v5, %v2011_v6  ;;  %v1820_v52 = vpop.f32.mrb[86].mxu0  ;;  %v2013_v26 = vpop.f32.mrb[86].mxu1  ;;  %v7627_v6 = vld [vmem:[#allocation45_spill] sm:$0xff]  ;;  %v7628_v22 = vld [vmem:[#allocation46_spill] sm:$0xff] }
 0x23d   :  { %7624 = vst [vmem:[#allocation114_spill] sm:$0xff] %v6826_v0  ;;  %v4551_v21 = vpop.eup %4550  ;;  %v2581_v0 = vadd.f32 1.0, %v4549_v24  ;;  %4570 = vpow2.f32 %v6568_v11  ;;  %v3058_v41 = vmul.f32 %v2930_v13, %v1820_v52  ;;  %v3060_v29 = vmul.f32 %v2932_v38, %v2013_v26  ;;  %v1822_v47 = vpop.f32.mrb[87].mxu0 }
 0x23e   :  { %v2015_v49 = vpop.f32.mrb[87].mxu1  ;;  %v4553_v15 = vpop.eup %4552  ;;  %4572 = vrcp.f32 %v2579_v42  ;;  %v2582_v39 = vadd.f32 1.0, %v4551_v21  ;;  %v3934_v44 = vpack.c.bf16 %v3055_v55, %v3054_v63  ;;  %v3935_v17 = vpack.c.bf16 %v3057_v58, %v3056_v7 }
 0x23f   :  { %v4555_v36 = vpop.eup %4554  ;;  %4574 = vrcp.f32 %v2581_v0  ;;  %v2584_v3 = vadd.f32 1.0, %v4553_v15  ;;  %v3059_v30 = vmul.f32 %v2931_v23, %v1822_v47  ;;  %v3061_v5 = vmul.f32 %v2933_v19, %v2015_v49  ;;  %v1826_v7 = vpop.f32.mrb[88].mxu0 }
 0x240   :  { %v4557_v9 = vpop.eup %4556  ;;  %v2938_v24 = vmul.f32 %v6518_v12, %v7627_v6  ;;  %v2940_v11 = vmul.f32 %v6522_v34, %v7628_v22  ;;  %4576 = vrcp.f32 %v2582_v39  ;;  %v2583_v13 = vadd.f32 1.0, %v4555_v36  ;;  %3546 = vst [vmem:[%s7198_s4 + $0xa0] sm:$0xff] %v3934_v44  ;;  %3547 = vst [vmem:[%s7198_s4 + $0xa8] sm:$0xff] %v3935_v17  ;;  %v7629_v12 = vld [vmem:[#allocation48_spill] sm:$0xff]  ;;  %v7630_v34 = vld [vmem:[#allocation49_spill] sm:$0xff]  ;;  %v2019_v44 = vpop.f32.mrb[88].mxu1 }
 0x241   :  { %v4559_v38 = vpop.eup %4558  ;;  %4578 = vrcp.f32 %v2584_v3  ;;  %v2585_v23 = vadd.f32 1.0, %v4557_v9  ;;  %v3936_v19 = vpack.c.bf16 %v3059_v30, %v3058_v41  ;;  %v3937_v0 = vpack.c.bf16 %v3061_v5, %v3060_v29  ;;  %v2021_v58 = vpop.f32.mrb[89].mxu1 }
 0x242   :  { %v4561_v26 = vpop.eup %4560  ;;  %v2939_v63 = vmul.f32 %v6530_v51, %v7629_v12  ;;  %v2941_v22 = vmul.f32 %v6536_v32, %v7630_v34  ;;  %4580 = vrcp.f32 %v2583_v13  ;;  %v2586_v36 = vadd.f32 1.0, %v4559_v38  ;;  %v1828_v32 = vpop.f32.mrb[89].mxu0  ;;  %v7632_v12 = vld [vmem:[#allocation53_spill] sm:$0xff]  ;;  %v7633_v34 = vld [vmem:[#allocation55_spill] sm:$0xff] }
 0x243   :  { %v4563_v42 = vpop.eup %4562  ;;  %4582 = vrcp.f32 %v2585_v23  ;;  %v2588_v55 = vadd.f32 1.0, %v4561_v26  ;;  %3548 = vst [vmem:[%s7198_s4 + $0xb0] sm:$0xff] %v3936_v19  ;;  %3549 = vst [vmem:[%s7198_s4 + $0xb8] sm:$0xff] %v3937_v0  ;;  %v3062_v51 = vmul.f32 %v6811_v10, %v1826_v7  ;;  %v3064_v29 = vmul.f32 %v6818_v33, %v2019_v44  ;;  %v1830_v49 = vpop.f32.mrb[90].mxu0  ;;  %v7631_v0 = vld [vmem:[#allocation52_spill] sm:$0xff] }
 0x244   :  { %v4565_v52 = vpop.eup %4564  ;;  %4584 = vrcp.f32 %v2586_v36  ;;  %v2587_v21 = vadd.f32 1.0, %v4563_v42  ;;  %v3063_v41 = vmul.f32 %v6822_v57, %v1828_v32  ;;  %v3065_v47 = vmul.f32 %v6830_v18, %v2021_v58  ;;  %v2023_v15 = vpop.f32.mrb[90].mxu1  ;;  %v7635_v42 = vld [vmem:[#allocation58_spill] sm:$0xff] }
 0x245   :  { %v4567_v39 = vpop.eup %4566  ;;  %4586 = vrcp.f32 %v2588_v55  ;;  %v2589_v17 = vadd.f32 1.0, %v4565_v52  ;;  %v3066_v3 = vmul.f32 %v2938_v24, %v1830_v49  ;;  %v3068_v30 = vmul.f32 %v2940_v11, %v2023_v15  ;;  %v1832_v5 = vpop.f32.mrb[91].mxu0  ;;  %v7638_v49 = vld [vmem:[#allocation61_spill] sm:$0xff] }
 0x246   :  { %v2025_v10 = vpop.f32.mrb[91].mxu1  ;;  %v4569_v9 = vpop.eup %4568  ;;  %4588 = vrcp.f32 %v2587_v21  ;;  %v2590_v33 = vadd.f32 1.0, %v4567_v39  ;;  %v3938_v6 = vpack.c.bf16 %v3063_v41, %v3062_v51  ;;  %v3939_v13 = vpack.c.bf16 %v3065_v47, %v3064_v29  ;;  %v7636_v51 = vld [vmem:[#allocation59_spill] sm:$0xff] }
 0x247   :  { %v4571_v38 = vpop.eup %4570  ;;  %4590 = vrcp.f32 %v2589_v17  ;;  %v2592_v23 = vadd.f32 1.0, %v4569_v9  ;;  %v3067_v57 = vmul.f32 %v2939_v63, %v1832_v5  ;;  %v3069_v19 = vmul.f32 %v2941_v22, %v2025_v10  ;;  %v1836_v32 = vpop.f32.mrb[92].mxu0  ;;  %v7640_v10 = vld [vmem:[#allocation24_spill] sm:$0xff] }
 0x248   :  { %v6868_v18 = vpop.eup %4572  ;;  %v2942_v26 = vmul.f32 %v6545_v27, %v7631_v0  ;;  %v2944_v24 = vmul.f32 %v6564_v37, %v7632_v12  ;;  %4592 = vrcp.f32 %v2590_v33  ;;  %v2591_v11 = vadd.f32 1.0, %v4571_v38  ;;  %3550 = vst [vmem:[%s7198_s4 + $0xc0] sm:$0xff] %v3938_v6  ;;  %3551 = vst [vmem:[%s7198_s4 + $0xc8] sm:$0xff] %v3939_v13  ;;  %v7634_v37 = vld [vmem:[#allocation56_spill] sm:$0xff]  ;;  %v2029_v58 = vpop.f32.mrb[92].mxu1 }
 0x249   :  { %v6880_v63 = vpop.eup %4574  ;;  %v2943_v22 = vmul.f32 %v6570_v8, %v7633_v34  ;;  %4594 = vrcp.f32 %v2592_v23  ;;  %v3940_v27 = vpack.c.bf16 %v3067_v57, %v3066_v3  ;;  %v3941_v36 = vpack.c.bf16 %v3069_v19, %v3068_v30  ;;  %v7637_v8 = vld [vmem:[#allocation60_spill] sm:$0xff]  ;;  %v2031_v41 = vpop.f32.mrb[93].mxu1  ;;  %v7639_v30 = vld [vmem:[#allocation66_spill] sm:$0xff]  ;;  %v7642_v23 = vld [vmem:[#allocation25_spill] sm:$0xff] }
 0x24a   :  { %v6884_v7 = vpop.eup %4576  ;;  %v2945_v44 = vmul.f32 %v6583_v53, %v7634_v37  ;;  %v2946_v55 = vmul.f32 %v6597_v45, %v7635_v42  ;;  %v2948_v29 = vmul.f32 %v6605_v14, %v7636_v51  ;;  %4596 = vrcp.f32 %v2591_v11  ;;  %v1838_v14 = vpop.f32.mrb[93].mxu0  ;;  %v7644_v34 = vld [vmem:[#allocation69_spill] sm:$0xff] }
 0x24b   :  { %v6892_v52 = vpop.eup %4578  ;;  %v2947_v21 = vmul.f32 %v6613_v40, %v7637_v8  ;;  %4598 = vpow2.f32 %v6578_v25  ;;  %3552 = vst [vmem:[%s7198_s4 + $0xd0] sm:$0xff] %v3940_v27  ;;  %3553 = vst [vmem:[%s7198_s4 + $0xd8] sm:$0xff] %v3941_v36  ;;  %v3070_v53 = vmul.f32 %v2942_v26, %v1836_v32  ;;  %v3072_v45 = vmul.f32 %v2944_v24, %v2029_v58  ;;  %v1840_v39 = vpop.f32.mrb[94].mxu0  ;;  %v7643_v26 = vld [vmem:[#allocation68_spill] sm:$0xff]  ;;  %v7645_v27 = vld [vmem:[#allocation70_spill] sm:$0xff] }
 0x24c   :  { %v6903_v47 = vpop.eup %4580  ;;  %v2949_v15 = vmul.f32 %v6619_v16, %v7638_v49  ;;  %4600 = vpow2.f32 %v6581_v50  ;;  %v3071_v25 = vmul.f32 %v2943_v22, %v1838_v14  ;;  %v3073_v40 = vmul.f32 %v2945_v44, %v2031_v41  ;;  %v2033_v17 = vpop.f32.mrb[94].mxu1  ;;  %v7641_v16 = vld [vmem:[#allocation67_spill] sm:$0xff]  ;;  %v7654_v41 = vld [vmem:[#allocation26_spill] sm:$0xff] }
 0x24d   :  { %v6908_v3 = vpop.eup %4582  ;;  %v2950_v5 = vmul.f32 %v6627_v61, %v7639_v30  ;;  %4602 = vpow2.f32 %v7640_v10  ;;  %v3074_v9 = vmul.f32 %v2946_v55, %v1840_v39  ;;  %v3076_v33 = vmul.f32 %v2948_v29, %v2033_v17  ;;  %v1842_v6 = vpop.f32.mrb[95].mxu0  ;;  %v7646_v36 = vld [vmem:[#allocation71_spill] sm:$0xff]  ;;  %v7649_v55 = vld [vmem:[#allocation74_spill] sm:$0xff] }
 0x24e   :  { %v2035_v13 = vpop.f32.mrb[95].mxu1  ;;  %v6913_v38 = vpop.eup %4584  ;;  %v2952_v50 = vmul.f32 %v6703_v28, %v7641_v16  ;;  %4604 = vpow2.f32 %v7642_v23  ;;  %v3942_v57 = vpack.c.bf16 %v3071_v25, %v3070_v53  ;;  %v3943_v19 = vpack.c.bf16 %v3073_v40, %v3072_v45  ;;  %v7650_v29 = vld [vmem:[#allocation75_spill] sm:$0xff]  ;;  %v7652_v45 = vld [vmem:[#allocation77_spill] sm:$0xff]  ;;  %v7655_v39 = vld [vmem:[#allocation78_spill] sm:$0xff] }
 0x24f   :  { %v6918_v0 = vpop.eup %4586  ;;  %v2951_v61 = vmul.f32 %v6705_v60, %v7643_v26  ;;  %4606 = vpow2.f32 %v6609_v62  ;;  %v3075_v12 = vmul.f32 %v2947_v21, %v1842_v6  ;;  %v3077_v24 = vmul.f32 %v2949_v15, %v2035_v13  ;;  %v7647_v60 = vld [vmem:[#allocation72_spill] sm:$0xff]  ;;  %v1846_v58 = vpop.f32.mrb[96].mxu0  ;;  %v7653_v14 = vld [vmem:[#allocation11_spill] sm:$0xff]  ;;  %v7656_v17 = vld [vmem:[#allocation14_spill] sm:$0xff] }
 0x250   :  { %v6923_v11 = vpop.eup %4588  ;;  %v2953_v22 = vmul.f32 %v6713_v54, %v7644_v34  ;;  %v2954_v28 = vmul.f32 %v6731_v31, %v7645_v27  ;;  %v2956_v37 = vmul.f32 %v6737_v35, %v7646_v36  ;;  %4608 = vpow2.f32 %v6617_v2  ;;  %3554 = vst [vmem:[%s7198_s4 + $0xe0] sm:$0xff] %v3942_v57  ;;  %3555 = vst [vmem:[%s7198_s4 + $0xe8] sm:$0xff] %v3943_v19  ;;  %v7648_v2 = vld [vmem:[#allocation73_spill] sm:$0xff]  ;;  %v2039_v8 = vpop.f32.mrb[96].mxu1  ;;  %v7657_v10 = vld [vmem:[#allocation91_spill] sm:$0xff] }
 0x251   :  { %v6938_v62 = vpop.eup %4590  ;;  %v2955_v54 = vmul.f32 %v6750_v4, %v7647_v60  ;;  %4610 = vpow2.f32 %v6623_v56  ;;  %v3944_v31 = vpack.c.bf16 %v3075_v12, %v3074_v9  ;;  %v3945_v44 = vpack.c.bf16 %v3077_v24, %v3076_v33  ;;  %v7651_v56 = vld [vmem:[#allocation76_spill] sm:$0xff]  ;;  %v7661_v27 = vld [vmem:[#allocation33_spill] sm:$0xff] }
 0x252   :  { %v6943_v35 = vpop.eup %4592  ;;  %v2957_v42 = vmul.f32 %v6764_v48, %v7648_v2  ;;  %v2958_v51 = vmul.f32 %v6771_v20, %v7649_v55  ;;  %v2960_v32 = vmul.f32 %v6778_v59, %v7650_v29  ;;  %4612 = vpow2.f32 %v6631_v43  ;;  %v1848_v20 = vpop.f32.mrb[97].mxu0  ;;  %v7663_v55 = vld [vmem:[#allocation81_spill] sm:$0xff] }
 0x253   :  { %v6952_v4 = vpop.eup %4594  ;;  %v6956_v21 = vmul.f32 %v6783_v46, %v7651_v56  ;;  %4614 = vpow2.f32 %v6634_v1  ;;  %3556 = vst [vmem:[%s7198_s4 + $0xf0] sm:$0xff] %v3944_v31  ;;  %3557 = vst [vmem:[%s7198_s4 + $0xf8] sm:$0xff] %v3945_v44  ;;  %v3078_v48 = vmul.f32 %v2950_v5, %v1846_v58  ;;  %v3080_v43 = vmul.f32 %v2952_v50, %v2039_v8  ;;  %v2041_v59 = vpop.f32.mrb[97].mxu1  ;;  %v7658_v50 = vld [vmem:[#allocation27_spill] sm:$0xff] }
 0x254   :  { %v6965_v53 = vpop.eup %4596  ;;  %v2961_v46 = vmul.f32 %v7653_v14, %v7652_v45  ;;  %4616 = vpow2.f32 %v7654_v41  ;;  %v3079_v1 = vmul.f32 %v2951_v61, %v1848_v20  ;;  %v3081_v49 = vmul.f32 %v2953_v22, %v2041_v59  ;;  %v1850_v15 = vpop.f32.mrb[98].mxu0  ;;  %v7659_v61 = vld [vmem:[#allocation92_spill] sm:$0xff]  ;;  %v7660_v22 = vld [vmem:[#allocation79_spill] sm:$0xff] }
 0x255   :  { %v2043_v25 = vpop.f32.mrb[98].mxu1  ;;  %v4599_v40 = vpop.eup %4598  ;;  %v2962_v30 = vmul.f32 %v7656_v17, %v7655_v39  ;;  %4618 = vpow2.f32 %v7657_v10  ;;  %v3082_v5 = vmul.f32 %v2954_v28, %v1850_v15  ;;  %v2964_v36 = vmul.f32 %v7661_v27, %v7660_v22  ;;  %v7662_v28 = vld [vmem:[#allocation80_spill] sm:$0xff] }
 0x256   :  { %v3084_v9 = vmul.f32 %v2956_v37, %v2043_v25  ;;  %v1852_v33 = vpop.f32.mrb[99].mxu0  ;;  %v2045_v6 = vpop.f32.mrb[99].mxu1  ;;  %v2593_v16 = vadd.f32 1.0, %v4599_v40  ;;  %4620 = vpow2.f32 %v7658_v50  ;;  %v3946_v23 = vpack.c.bf16 %v3079_v1, %v3078_v48 }
 0x257   :  { %v4601_v13 = vpop.eup %4600  ;;  %v3947_v57 = vpack.c.bf16 %v3081_v49, %v3080_v43  ;;  %4622 = vpow2.f32 %v7659_v61  ;;  %v3083_v12 = vmul.f32 %v2955_v54, %v1852_v33  ;;  %v3085_v24 = vmul.f32 %v2957_v42, %v2045_v6  ;;  %v1856_v56 = vpop.f32.mrb[100].mxu0 }
 0x258   :  { %v4603_v19 = vpop.eup %4602  ;;  %v2594_v26 = vadd.f32 1.0, %v4601_v13  ;;  %v2963_v37 = vmul.f32 %v6868_v18, %v7662_v28  ;;  %4624 = vrcp.f32 %v2593_v16  ;;  %3558 = vst [vmem:[%s7198_s4 + $0x100] sm:$0xff] %v3946_v23  ;;  %v2965_v29 = vmul.f32 %v6880_v63, %v7663_v55  ;;  %v7664_v18 = vld [vmem:[#allocation82_spill] sm:$0xff]  ;;  %v2049_v48 = vpop.f32.mrb[100].mxu1  ;;  %v7665_v23 = vld [vmem:[#allocation83_spill] sm:$0xff] }
 0x259   :  { %v4605_v34 = vpop.eup %4604  ;;  %v2596_v60 = vadd.f32 1.0, %v4603_v19  ;;  %3559 = vst [vmem:[%s7198_s4 + $0x108] sm:$0xff] %v3947_v57  ;;  %v3948_v44 = vpack.c.bf16 %v3083_v12, %v3082_v5  ;;  %v3949_v2 = vpack.c.bf16 %v3085_v24, %v3084_v9  ;;  %v2966_v58 = vmul.f32 %v6884_v7, %v7664_v18  ;;  %v1858_v45 = vpop.f32.mrb[101].mxu0  ;;  %v7666_v19 = vld [vmem:[#allocation85_spill] sm:$0xff] }
 0x25a   :  { %v4607_v31 = vpop.eup %4606  ;;  %4626 = vrcp.f32 %v2594_v26  ;;  %v2595_v54 = vadd.f32 1.0, %v4605_v34  ;;  %v3086_v59 = vmul.f32 %v2958_v51, %v1856_v56  ;;  %v3088_v63 = vmul.f32 %v2960_v32, %v2049_v48  ;;  %v2051_v14 = vpop.f32.mrb[101].mxu1 }
 0x25b   :  { %v4609_v42 = vpop.eup %4608  ;;  %4628 = vrcp.f32 %v2596_v60  ;;  %v2597_v8 = vadd.f32 1.0, %v4607_v31  ;;  %3560 = vst [vmem:[%s7198_s4 + $0x110] sm:$0xff] %v3948_v44  ;;  %3561 = vst [vmem:[%s7198_s4 + $0x118] sm:$0xff] %v3949_v2  ;;  %v3087_v1 = vmul.f32 %v6956_v21, %v1858_v45  ;;  %v3089_v49 = vmul.f32 %v2961_v46, %v2051_v14  ;;  %v1860_v15 = vpop.f32.mrb[102].mxu0 }
 0x25c   :  { %v4611_v43 = vpop.eup %4610  ;;  %4630 = vrcp.f32 %v2595_v54  ;;  %v2598_v20 = vadd.f32 1.0, %v4609_v42  ;;  %v2053_v25 = vpop.f32.mrb[102].mxu1  ;;  %v3090_v17 = vmul.f32 %v2962_v30, %v1860_v15  ;;  %v2968_v57 = vmul.f32 %v6892_v52, %v7665_v23  ;;  %v7667_v52 = vld [vmem:[#allocation86_spill] sm:$0xff]  ;;  %v7669_v54 = vld [vmem:[#allocation88_spill] sm:$0xff] }
 0x25d   :  { %v4613_v7 = vpop.eup %4612  ;;  %4632 = vrcp.f32 %v2597_v8  ;;  %v2600_v41 = vadd.f32 1.0, %v4611_v43  ;;  %v3092_v10 = vmul.f32 %v2964_v36, %v2053_v25  ;;  %v1862_v5 = vpop.f32.mrb[103].mxu0  ;;  %v3950_v32 = vpack.c.bf16 %v3087_v1, %v3086_v59  ;;  %v7673_v1 = vld [vmem:[#allocation95_spill] sm:$0xff] }
 0x25e   :  { %v4615_v40 = vpop.eup %4614  ;;  %4634 = vrcp.f32 %v2598_v20  ;;  %v2599_v39 = vadd.f32 1.0, %v4613_v7  ;;  %v2055_v9 = vpop.f32.mrb[103].mxu1  ;;  %v3951_v6 = vpack.c.bf16 %v3089_v49, %v3088_v63  ;;  %v3091_v50 = vmul.f32 %v2963_v37, %v1862_v5  ;;  %v7671_v20 = vld [vmem:[#allocation90_spill] sm:$0xff]  ;;  %v7672_v63 = vld [vmem:[#allocation28_spill] sm:$0xff] }
 0x25f   :  { %v4617_v33 = vpop.eup %4616  ;;  %4636 = vrcp.f32 %v2600_v41  ;;  %v2601_v51 = vadd.f32 1.0, %v4615_v40  ;;  %v3093_v21 = vmul.f32 %v2965_v29, %v2055_v9  ;;  %v2967_v30 = vmul.f32 %v6903_v47, %v7666_v19  ;;  %3562 = vst [vmem:[%s7198_s4 + $0x120] sm:$0xff] %v3950_v32  ;;  %v7668_v47 = vld [vmem:[#allocation87_spill] sm:$0xff]  ;;  %v1866_v37 = vpop.f32.mrb[104].mxu0  ;;  %v7670_v29 = vld [vmem:[#allocation89_spill] sm:$0xff]  ;;  %v7674_v49 = vld [vmem:[#allocation10_spill] sm:$0xff] }
 0x260   :  { %v4619_v13 = vpop.eup %4618  ;;  %4638 = vrcp.f32 %v2599_v39  ;;  %v2602_v16 = vadd.f32 1.0, %v4617_v33  ;;  %3563 = vst [vmem:[%s7198_s4 + $0x128] sm:$0xff] %v3951_v6  ;;  %v3952_v24 = vpack.c.bf16 %v3091_v50, %v3090_v17  ;;  %v2969_v27 = vmul.f32 %v6908_v3, %v7667_v52  ;;  %v2059_v60 = vpop.f32.mrb[104].mxu1  ;;  %v7675_v39 = vld [vmem:[#allocation29_spill] sm:$0xff]  ;;  %v7676_v17 = vld [vmem:[#allocation12_spill] sm:$0xff]  ;;  %v7678_v32 = vld [vmem:[#allocation94_spill] sm:$0xff] }
 0x261   :  { %v4621_v46 = vpop.eup %4620  ;;  %4640 = vrcp.f32 %v2601_v51  ;;  %v2604_v26 = vadd.f32 1.0, %v4619_v13  ;;  %v3953_v34 = vpack.c.bf16 %v3093_v21, %v3092_v10  ;;  %v2970_v36 = vmul.f32 %v6913_v38, %v7668_v47  ;;  %v1868_v38 = vpop.f32.mrb[105].mxu0  ;;  %v7677_v33 = vld [vmem:[#allocation93_spill] sm:$0xff]  ;;  %v7679_v13 = vld [vmem:[#allocation96_spill] sm:$0xff]  ;;  %v7680_v50 = vld [vmem:[#allocation98_spill] sm:$0xff] }
 0x262   :  { %v4623_v61 = vpop.eup %4622  ;;  %4642 = vrcp.f32 %v2602_v16  ;;  %v2603_v12 = vadd.f32 1.0, %v4621_v46  ;;  %v2972_v44 = vmul.f32 %v6918_v0, %v7669_v54  ;;  %3564 = vst [vmem:[%s7198_s4 + $0x130] sm:$0xff] %v3952_v24  ;;  %v3094_v3 = vmul.f32 %v2966_v58, %v1866_v37  ;;  %v2061_v42 = vpop.f32.mrb[105].mxu1  ;;  %v7681_v46 = vld [vmem:[#allocation97_spill] sm:$0xff]  ;;  %v7688_v37 = vld [vmem:[#allocation51_spill] sm:$0xff] }
 0x263   :  { %v4625_v22 = vpop.eup %4624  ;;  %4644 = vrcp.f32 %v2604_v26  ;;  %v2605_v28 = vadd.f32 1.0, %v4623_v61  ;;  %3565 = vst [vmem:[%s7198_s4 + $0x138] sm:$0xff] %v3953_v34  ;;  %v3096_v2 = vmul.f32 %v2968_v57, %v2059_v60  ;;  %v2971_v18 = vmul.f32 %v6923_v11, %v7670_v29  ;;  %v1870_v56 = vpop.f32.mrb[106].mxu0  ;;  %v7684_v26 = vld [vmem:[#allocation100_spill] sm:$0xff]  ;;  %v7686_v34 = vld [vmem:[#allocation6_spill] sm:$0xff] }
 0x264   :  { %v4627_v31 = vpop.eup %4626  ;;  %4646 = vrcp.f32 %v2603_v12  ;;  %v3095_v8 = vmul.f32 %v2967_v30, %v1868_v38  ;;  %v3097_v0 = vmul.f32 %v2969_v27, %v2061_v42  ;;  %v2063_v48 = vpop.f32.mrb[106].mxu1  ;;  %v2973_v59 = vmul.f32 %v6938_v62, %v7671_v20  ;;  %v7683_v30 = vld [vmem:[#allocation99_spill] sm:$0xff]  ;;  %v7685_v12 = vld [vmem:[#allocation101_spill] sm:$0xff] }
 0x265   :  { %v4629_v55 = vpop.eup %4628  ;;  %4648 = vrcp.f32 %v2605_v28  ;;  %v3098_v45 = vmul.f32 %v2970_v36, %v1870_v56  ;;  %v3100_v58 = vmul.f32 %v2972_v44, %v2063_v48  ;;  %v1872_v14 = vpop.f32.mrb[107].mxu0  ;;  %v7025_v11 = vmul.f32 -1.442695, %v7674_v49  ;;  %v7687_v36 = vld [vmem:[#allocation102_spill] sm:$0xff]  ;;  %v7690_v38 = vld [vmem:[#allocation9_spill] sm:$0xff] }
 0x266   :  { %v4631_v43 = vpop.eup %4630  ;;  %4650 = vpow2.f32 %v7672_v63  ;;  %v2065_v7 = vpop.f32.mrb[107].mxu1  ;;  %v3954_v15 = vpack.c.bf16 %v3095_v8, %v3094_v3  ;;  %v3955_v25 = vpack.c.bf16 %v3097_v0, %v3096_v2  ;;  %v7029_v10 = vmul.f32 -1.442695, %v7676_v17  ;;  %v7689_v3 = vld [vmem:[#allocation103_spill] sm:$0xff]  ;;  %v7691_v0 = vld [vmem:[#allocation104_spill] sm:$0xff]  ;;  %v7692_v48 = vld [vmem:[#allocation30_spill] sm:$0xff] }
 0x267   :  { %v4633_v41 = vpop.eup %4632  ;;  %4652 = vpow2.f32 %v7673_v1  ;;  %v3099_v62 = vmul.f32 %v2971_v18, %v1872_v14  ;;  %v3101_v5 = vmul.f32 %v2973_v59, %v2065_v7  ;;  %v2974_v51 = vmul.f32 %v6943_v35, %v7677_v33  ;;  %v7682_v35 = vld [vmem:[#allocation47_spill] sm:$0xff]  ;;  %v1876_v52 = vpop.f32.mrb[108].mxu0 }
 0x268   :  { %v4635_v40 = vpop.eup %4634  ;;  %4654 = vpow2.f32 %v7675_v39  ;;  %v2976_v6 = vmul.f32 %v6952_v4, %v7678_v32  ;;  %v2975_v16 = vmul.f32 %v6965_v53, %v7679_v13  ;;  %3566 = vst [vmem:[%s7198_s4 + $0x140] sm:$0xff] %v3954_v15  ;;  %3567 = vst [vmem:[%s7198_s4 + $0x148] sm:$0xff] %v3955_v25  ;;  %v2977_v23 = vmul.f32 %v4625_v22, %v7681_v46  ;;  %v2069_v27 = vpop.f32.mrb[108].mxu1  ;;  %v7694_v7 = vld [vmem:[#allocation111_spill] sm:$0xff]  ;;  %v7695_v25 = vld [vmem:[#allocation106_spill] sm:$0xff] }
 0x269   :  { %v4637_v9 = vpop.eup %4636  ;;  %4656 = vpow2.f32 %v7680_v50  ;;  %v3956_v57 = vpack.c.bf16 %v3099_v62, %v3098_v45  ;;  %v3957_v4 = vpack.c.bf16 %v3101_v5, %v3100_v58  ;;  %v2978_v53 = vmul.f32 %v4627_v31, %v7683_v30  ;;  %v1878_v31 = vpop.f32.mrb[109].mxu0  ;;  %v7693_v58 = vld [vmem:[#allocation105_spill] sm:$0xff]  ;;  %v7696_v39 = vld [vmem:[#allocation114_spill] sm:$0xff]  ;;  %v7697_v33 = vld [vmem:[#allocation107_spill] sm:$0xff] }
 0x26a   :  { %v4639_v21 = vpop.eup %4638  ;;  %4658 = vpow2.f32 %v7682_v35  ;;  %v2980_v61 = vmul.f32 %v4629_v55, %v7684_v26  ;;  %v2979_v24 = vmul.f32 %v4631_v43, %v7685_v12  ;;  %v2981_v28 = vmul.f32 %v4633_v41, %v7687_v36  ;;  %v2071_v54 = vpop.f32.mrb[109].mxu1  ;;  %v7698_v32 = vld [vmem:[#allocation108_spill] sm:$0xff]  ;;  %v7699_v35 = vld [vmem:[#allocation109_spill] sm:$0xff] }
 0x26b   :  { %v4641_v19 = vpop.eup %4640  ;;  %4660 = vpow2.f32 %v7686_v34  ;;  %3568 = vst [vmem:[%s7198_s4 + $0x150] sm:$0xff] %v3956_v57  ;;  %3569 = vst [vmem:[%s7198_s4 + $0x158] sm:$0xff] %v3957_v4  ;;  %v3102_v22 = vmul.f32 %v2974_v51, %v1876_v52  ;;  %v3104_v60 = vmul.f32 %v2976_v6, %v2069_v27  ;;  %v2982_v2 = vmul.f32 %v4635_v40, %v7689_v3  ;;  %v1880_v29 = vpop.f32.mrb[110].mxu0  ;;  %v7700_v4 = vld [vmem:[#allocation110_spill] sm:$0xff] }
 0x26c   :  { %v4643_v47 = vpop.eup %4642  ;;  %4662 = vpow2.f32 %v7688_v37  ;;  %v3103_v42 = vmul.f32 %v2975_v16, %v1878_v31  ;;  %v3105_v55 = vmul.f32 %v2977_v23, %v2071_v54  ;;  %v2073_v18 = vpop.f32.mrb[110].mxu1  ;;  %v2984_v56 = vmul.f32 %v4637_v9, %v7691_v0 }
 0x26d   :  { %v4645_v44 = vpop.eup %4644  ;;  %4664 = vpow2.f32 %v7690_v38  ;;  %v3106_v43 = vmul.f32 %v2978_v53, %v1880_v29  ;;  %v3108_v20 = vmul.f32 %v2980_v61, %v2073_v18  ;;  %v1882_v59 = vpop.f32.mrb[111].mxu0  ;;  %v2983_v14 = vmul.f32 %v4639_v21, %v7693_v58 }
 0x26e   :  { %v4647_v8 = vpop.eup %4646  ;;  %4666 = vpow2.f32 %v7692_v48  ;;  %v2075_v63 = vpop.f32.mrb[111].mxu1  ;;  %v3958_v41 = vpack.c.bf16 %v3103_v42, %v3102_v22  ;;  %v3959_v1 = vpack.c.bf16 %v3105_v55, %v3104_v60  ;;  %v2985_v40 = vmul.f32 %v4641_v19, %v7695_v25 }
 0x26f   :  { %v4649_v45 = vpop.eup %4648  ;;  %4668 = vpow2.f32 %v7694_v7  ;;  %v3107_v62 = vmul.f32 %v2979_v24, %v1882_v59  ;;  %v3109_v5 = vmul.f32 %v2981_v28, %v2075_v63  ;;  %v2986_v51 = vmul.f32 %v4643_v47, %v7697_v33  ;;  %v1886_v30 = vpop.f32.mrb[112].mxu0 }
 0x270   :  { %v4651_v15 = vpop.eup %4650  ;;  %4670 = vpow2.f32 %v7696_v39  ;;  %v2988_v6 = vmul.f32 %v4645_v44, %v7698_v32  ;;  %3570 = vst [vmem:[%s7198_s4 + $0x160] sm:$0xff] %v3958_v41  ;;  %3571 = vst [vmem:[%s7198_s4 + $0x168] sm:$0xff] %v3959_v1  ;;  %v2987_v57 = vmul.f32 %v4647_v8, %v7699_v35  ;;  %v2989_v19 = vmul.f32 %v4649_v45, %v7700_v4  ;;  %v2079_v53 = vpop.f32.mrb[112].mxu1 }
 0x271   :  { %v4653_v9 = vpop.eup %4652  ;;  %v2606_v13 = vadd.f32 1.0, %v4651_v15  ;;  %4672 = vpow2.f32 %v7025_v11  ;;  %v3960_v21 = vpack.c.bf16 %v3107_v62, %v3106_v43  ;;  %v3961_v46 = vpack.c.bf16 %v3109_v5, %v3108_v20  ;;  %v1888_v24 = vpop.f32.mrb[113].mxu0  ;;  %v7701_v15 = vld [vmem:[#allocation13_spill] sm:$0xff] }
 0x272   :  { %v4655_v16 = vpop.eup %4654  ;;  %v2608_v50 = vadd.f32 1.0, %v4653_v9  ;;  %4674 = vpow2.f32 %v7029_v10  ;;  %v3110_v10 = vmul.f32 %v2982_v2, %v1886_v30  ;;  %v3112_v12 = vmul.f32 %v2984_v56, %v2079_v53  ;;  %v2081_v34 = vpop.f32.mrb[113].mxu1  ;;  %v7702_v9 = vld [vmem:[#allocation63_spill] sm:$0xff] }
 0x273   :  { %v4657_v23 = vpop.eup %4656  ;;  %4676 = vrcp.f32 %v2606_v13  ;;  %v2607_v11 = vadd.f32 1.0, %v4655_v16  ;;  %3572 = vst [vmem:[%s7198_s4 + $0x170] sm:$0xff] %v3960_v21  ;;  %3573 = vst [vmem:[%s7198_s4 + $0x178] sm:$0xff] %v3961_v46  ;;  %v3111_v47 = vmul.f32 %v2983_v14, %v1888_v24  ;;  %v3113_v36 = vmul.f32 %v2985_v40, %v2081_v34  ;;  %v1890_v28 = vpop.f32.mrb[114].mxu0  ;;  %v7703_v13 = vld [vmem:[#allocation112_spill] sm:$0xff]  ;;  %v7705_v46 = vld [vmem:[#allocation65_spill] sm:$0xff] }
 0x274   :  { %v4659_v26 = vpop.eup %4658  ;;  %4678 = vrcp.f32 %v2608_v50  ;;  %v2609_v61 = vadd.f32 1.0, %v4657_v23  ;;  %v2083_v37 = vpop.f32.mrb[114].mxu1  ;;  %v3114_v31 = vmul.f32 %v2986_v51, %v1890_v28  ;;  %v3840_v25 = vmul.f32 -1.442695, %v7701_v15  ;;  %v7704_v50 = vld [vmem:[#allocation15_spill] sm:$0xff]  ;;  %v7710_v34 = vld [vmem:[#allocation18_spill] sm:$0xff] }
 0x275   :  { %v4661_v52 = vpop.eup %4660  ;;  %4680 = vrcp.f32 %v2607_v11  ;;  %v2610_v27 = vadd.f32 1.0, %v4659_v26  ;;  %v3116_v54 = vmul.f32 %v2988_v6, %v2083_v37  ;;  %v1892_v44 = vpop.f32.mrb[115].mxu0  ;;  %v3962_v42 = vpack.c.bf16 %v3111_v47, %v3110_v10  ;;  %v7707_v30 = vld [vmem:[#allocation123_spill] sm:$0xff]  ;;  %v7708_v26 = vld [vmem:[#allocation124_spill] sm:$0xff] }
 0x276   :  { %v4663_v22 = vpop.eup %4662  ;;  %4682 = vrcp.f32 %v2609_v61  ;;  %v2612_v60 = vadd.f32 1.0, %v4661_v52  ;;  %v2085_v3 = vpop.f32.mrb[115].mxu1  ;;  %v3963_v55 = vpack.c.bf16 %v3113_v36, %v3112_v12  ;;  %v3115_v8 = vmul.f32 %v2987_v57, %v1892_v44  ;;  %v7709_v12 = vld [vmem:[#allocation115_spill] sm:$0xff]  ;;  %v7711_v36 = vld [vmem:[#allocation116_spill] sm:$0xff] }
 0x277   :  { %v4665_v38 = vpop.eup %4664  ;;  %4684 = vrcp.f32 %v2610_v27  ;;  %v2611_v2 = vadd.f32 1.0, %v4663_v22  ;;  %v3117_v0 = vmul.f32 %v2989_v19, %v2085_v3  ;;  %3574 = vst [vmem:[%s7198_s4 + $0x180] sm:$0xff] %v3962_v42  ;;  %v1896_v14 = vpop.f32.mrb[116].mxu0  ;;  %v3839_v33 = vmul.f32 -1.442695, %v7702_v9  ;;  %v7706_v19 = vld [vmem:[#allocation113_spill] sm:$0xff] }
 0x278   :  { %v4667_v29 = vpop.eup %4666  ;;  %4686 = vrcp.f32 %v2612_v60  ;;  %v2613_v18 = vadd.f32 1.0, %v4665_v38  ;;  %3575 = vst [vmem:[%s7198_s4 + $0x188] sm:$0xff] %v3963_v55  ;;  %v3964_v59 = vpack.c.bf16 %v3115_v8, %v3114_v31  ;;  %v2089_v7 = vpop.f32.mrb[116].mxu1  ;;  %v3841_v21 = vmul.f32 -1.442695, %v7704_v50  ;;  %v7712_v37 = vld [vmem:[#allocation19_spill] sm:$0xff] }
 0x279   :  { %v4669_v56 = vpop.eup %4668  ;;  %4688 = vrcp.f32 %v2611_v2  ;;  %v2614_v48 = vadd.f32 1.0, %v4667_v29  ;;  %v3965_v63 = vpack.c.bf16 %v3117_v0, %v3116_v54  ;;  %v1898_v40 = vpop.f32.mrb[117].mxu0  ;;  %v3842_v23 = vmul.f32 -1.442695, %v7705_v46  ;;  %v7713_v54 = vld [vmem:[#allocation118_spill] sm:$0xff]  ;;  %v7714_v3 = vld [vmem:[#allocation127_spill] sm:$0xff] }
 0x27a   :  { %v4671_v43 = vpop.eup %4670  ;;  %4690 = vrcp.f32 %v2613_v18  ;;  %v2616_v20 = vadd.f32 1.0, %v4669_v56  ;;  %3576 = vst [vmem:[%s7198_s4 + $0x190] sm:$0xff] %v3964_v59  ;;  %v2091_v39 = vpop.f32.mrb[117].mxu1  ;;  %v3844_v53 = vmul.f32 -1.442695, %v7707_v30  ;;  %v7715_v55 = vld [vmem:[#allocation119_spill] sm:$0xff] }
 0x27b   :  { %v4673_v45 = vpop.eup %4672  ;;  %4692 = vrcp.f32 %v2614_v48  ;;  %v2615_v58 = vadd.f32 1.0, %v4671_v43  ;;  %3577 = vst [vmem:[%s7198_s4 + $0x198] sm:$0xff] %v3965_v63  ;;  %v1900_v51 = vpop.f32.mrb[118].mxu0  ;;  %v3843_v61 = vmul.f32 -1.442695, %v7708_v26  ;;  %v7716_v18 = vld [vmem:[#allocation84_spill] sm:$0xff] }
 0x27c   :  { %v4675_v41 = vpop.eup %4674  ;;  %4694 = vrcp.f32 %v2616_v20  ;;  %v2617_v1 = vadd.f32 1.0, %v4673_v45  ;;  %v2093_v32 = vpop.f32.mrb[118].mxu1  ;;  %v3845_v52 = vmul.f32 -1.442695, %v7710_v34  ;;  %v3846_v22 = vmul.f32 -1.442695, %v7712_v37 }
 0x27d   :  { %v4677_v62 = vpop.eup %4676  ;;  %4696 = vrcp.f32 %v2615_v58  ;;  %v2618_v5 = vadd.f32 1.0, %v4675_v41  ;;  %v1902_v35 = vpop.f32.mrb[119].mxu0  ;;  %v3848_v38 = vmul.f32 -1.442695, %v7714_v3  ;;  %v3847_v8 = vmul.f32 -1.442695, %v7716_v18 }
 0x27e   :  { %v4679_v6 = vpop.eup %4678  ;;  %v2990_v16 = vmul.f32 %v4677_v62, %v7703_v13  ;;  %4698 = vrcp.f32 %v2617_v1  ;;  %v2095_v57 = vpop.f32.mrb[119].mxu1  ;;  %v7717_v20 = vld [vmem:[#allocation31_spill] sm:$0xff]  ;;  %v7718_v41 = vld [vmem:[#allocation121_spill] sm:$0xff]  ;;  %v7720_v13 = vld [vmem:[#allocation128_spill] sm:$0xff] }
 0x27f   :  { %v4681_v4 = vpop.eup %4680  ;;  %v2992_v11 = vmul.f32 %v4679_v6, %v7706_v19  ;;  %4700 = vrcp.f32 %v2618_v5  ;;  %v1906_v56 = vpop.f32.mrb[120].mxu0 }
 0x280   :  { %v4683_v10 = vpop.eup %4682  ;;  %v2991_v24 = vmul.f32 %v4681_v4, %v7709_v12  ;;  %4702 = vpow2.f32 %v3840_v25  ;;  %v3118_v27 = vmul.f32 %v2990_v16, %v1896_v14  ;;  %v2099_v48 = vpop.f32.mrb[120].mxu1  ;;  %v3849_v16 = vmul.f32 -1.442695, %v7720_v13 }
 0x281   :  { %v4685_v47 = vpop.eup %4684  ;;  %v2993_v28 = vmul.f32 %v4683_v10, %v7711_v36  ;;  %4704 = vpow2.f32 %v3839_v33  ;;  %v3120_v60 = vmul.f32 %v2992_v11, %v2089_v7  ;;  %v1908_v58 = vpop.f32.mrb[121].mxu0  ;;  %v7719_v33 = vld [vmem:[#allocation7_spill] sm:$0xff] }
 0x282   :  { %v4687_v31 = vpop.eup %4686  ;;  %v2994_v44 = vmul.f32 %v4685_v47, %v7713_v54  ;;  %4706 = vpow2.f32 %v3841_v21  ;;  %v3119_v2 = vmul.f32 %v2991_v24, %v1898_v40  ;;  %v2101_v14 = vpop.f32.mrb[121].mxu1 }
 0x283   :  { %v4689_v42 = vpop.eup %4688  ;;  %v2996_v29 = vmul.f32 %v4687_v31, %v7715_v55  ;;  %4708 = vpow2.f32 %v3842_v23  ;;  %v3121_v0 = vmul.f32 %v2993_v28, %v2091_v39  ;;  %v1910_v62 = vpop.f32.mrb[122].mxu0 }
 0x284   :  { %v4691_v43 = vpop.eup %4690  ;;  %v2995_v59 = vmul.f32 %v4689_v42, %v7717_v20  ;;  %4710 = vpow2.f32 %v3844_v53  ;;  %v3966_v63 = vpack.c.bf16 %v3119_v2, %v3118_v27  ;;  %v3122_v45 = vmul.f32 %v2994_v44, %v1900_v51  ;;  %v7114_v5 = vpop.f32.mrb[122].mxu1 }
 0x285   :  { %v4693_v7 = vpop.eup %4692  ;;  %v2997_v1 = vmul.f32 %v4691_v43, %v7718_v41  ;;  %4712 = vpow2.f32 %v3843_v61  ;;  %v3967_v25 = vpack.c.bf16 %v3121_v0, %v3120_v60  ;;  %v3124_v40 = vmul.f32 %v2996_v29, %v2093_v32  ;;  %v7121_v21 = vpop.f32.mrb[123].mxu0  ;;  %v7721_v32 = vld [vmem:[#allocation50_spill] sm:$0xff] }
 0x286   :  { %v4695_v39 = vpop.eup %4694  ;;  %v2998_v6 = vmul.f32 %v4693_v7, %v7719_v33  ;;  %4714 = vpow2.f32 %v3845_v52  ;;  %3578 = vst [vmem:[%s7198_s4 + $0x1a0] sm:$0xff] %v3966_v63  ;;  %v3123_v51 = vmul.f32 %v2995_v59, %v1902_v35  ;;  %v7123_v23 = vpop.f32.mrb[123].mxu1  ;;  %v7722_v61 = vld [vmem:[#allocation54_spill] sm:$0xff] }
 0x287   :  { %v4697_v4 = vpop.eup %4696  ;;  %v3000_v19 = vmul.f32 %v4695_v39, %v7721_v32  ;;  %4716 = vpow2.f32 %v3846_v22  ;;  %3579 = vst [vmem:[%s7198_s4 + $0x1a8] sm:$0xff] %v3967_v25  ;;  %v3125_v11 = vmul.f32 %v2997_v1, %v2095_v57  ;;  %v7138_v54 = vpop.f32.mrb[124].mxu1 }
 0x288   :  { %v4699_v53 = vpop.eup %4698  ;;  %v2999_v10 = vmul.f32 %v4697_v4, %v7722_v61  ;;  %4718 = vpow2.f32 %v3848_v38  ;;  %v3968_v12 = vpack.c.bf16 %v3123_v51, %v3122_v45  ;;  %v3126_v24 = vmul.f32 %v2998_v6, %v1906_v56  ;;  %v7140_v55 = vpop.f32.mrb[125].mxu1 }
 0x289   :  { %v4701_v35 = vpop.eup %4700  ;;  %v3001_v52 = vmul.f32 %v4699_v53, %v7674_v49  ;;  %4720 = vpow2.f32 %v3847_v8  ;;  %v3969_v27 = vpack.c.bf16 %v3125_v11, %v3124_v40  ;;  %v3128_v47 = vmul.f32 %v3000_v19, %v2099_v48  ;;  %v1916_v49 = vpop.f32.mrb[124].mxu0 }
 0x28a   :  { %v4703_v36 = vpop.eup %4702  ;;  %v3002_v28 = vmul.f32 %v4701_v35, %v7676_v17  ;;  %4722 = vpow2.f32 %v3849_v16  ;;  %3580 = vst [vmem:[%s7198_s4 + $0x1b0] sm:$0xff] %v3968_v12  ;;  %v3127_v57 = vmul.f32 %v2999_v10, %v1908_v58  ;;  %v1918_v42 = vpop.f32.mrb[125].mxu0 }
 0x28b   :  { %v4705_v22 = vpop.eup %4704  ;;  %v2620_v60 = vadd.f32 1.0, %v4703_v36  ;;  %3581 = vst [vmem:[%s7198_s4 + $0x1b8] sm:$0xff] %v3969_v27  ;;  %v3129_v31 = vmul.f32 %v3001_v52, %v2101_v14  ;;  %v7142_v56 = vpop.f32.mrb[126].mxu0 }
 0x28c   :  { %v4707_v44 = vpop.eup %4706  ;;  %v2619_v38 = vadd.f32 1.0, %v4705_v22  ;;  %v3970_v2 = vpack.c.bf16 %v3127_v57, %v3126_v24  ;;  %v3130_v17 = vmul.f32 %v3002_v28, %v1910_v62  ;;  %v7144_v48 = vpop.f32.mrb[126].mxu1 }
 0x28d   :  { %v4709_v29 = vpop.eup %4708  ;;  %4724 = vrcp.f32 %v2620_v60  ;;  %v2621_v8 = vadd.f32 1.0, %v4707_v44  ;;  %v3971_v0 = vpack.c.bf16 %v3129_v31, %v3128_v47  ;;  %v7149_v59 = vpop.f32.mrb[127].mxu0 }
 0x28e   :  { %v4711_v43 = vpop.eup %4710  ;;  %4726 = vrcp.f32 %v2619_v38  ;;  %v2622_v20 = vadd.f32 1.0, %v4709_v29  ;;  %3582 = vst [vmem:[%s7198_s4 + $0x1c0] sm:$0xff] %v3970_v2  ;;  %v7151_v63 = vpop.f32.mrb[127].mxu1 }
 0x28f   :  { %v4713_v45 = vpop.eup %4712  ;;  %4728 = vrcp.f32 %v2621_v8  ;;  %v2624_v58 = vadd.f32 1.0, %v4711_v43  ;;  %3583 = vst [vmem:[%s7198_s4 + $0x1c8] sm:$0xff] %v3971_v0 }
 0x290   :  { %v4715_v14 = vpop.eup %4714  ;;  %4730 = vrcp.f32 %v2622_v20  ;;  %v2623_v7 = vadd.f32 1.0, %v4713_v45 }
 0x291   :  { %v4717_v41 = vpop.eup %4716  ;;  %4732 = vrcp.f32 %v2624_v58  ;;  %v2625_v1 = vadd.f32 1.0, %v4715_v14 }
 0x292   :  { %v4719_v25 = vpop.eup %4718  ;;  %4734 = vrcp.f32 %v2623_v7  ;;  %v2626_v40 = vadd.f32 1.0, %v4717_v41 }
 0x293   :  { %v4721_v62 = vpop.eup %4720  ;;  %4736 = vrcp.f32 %v2625_v1  ;;  %v2628_v39 = vadd.f32 1.0, %v4719_v25 }
 0x294   :  { %v4723_v33 = vpop.eup %4722  ;;  %4738 = vrcp.f32 %v2626_v40  ;;  %v2627_v6 = vadd.f32 1.0, %v4721_v62 }
 0x295   :  { %4740 = vrcp.f32 %v2628_v39  ;;  %v2629_v16 = vadd.f32 1.0, %v4723_v33 }
 0x296   :  { %4742 = vrcp.f32 %v2627_v6 }
 0x297   :  { %v4725_v51 = vpop.eup %4724  ;;  %4744 = vrcp.f32 %v2629_v16 }
 0x298   :  { %v4727_v4 = vpop.eup %4726  ;;  %v3004_v32 = vmul.f32 %v4725_v51, %v7701_v15 }
 0x299   :  { %v4729_v19 = vpop.eup %4728  ;;  %v3003_v11 = vmul.f32 %v4727_v4, %v7702_v9 }
 0x29a   :  { %v4731_v53 = vpop.eup %4730  ;;  %v3005_v61 = vmul.f32 %v4729_v19, %v7704_v50  ;;  %v3132_v10 = vmul.f32 %v3004_v32, %v7114_v5 }
 0x29b   :  { %v4733_v12 = vpop.eup %4732  ;;  %v3006_v24 = vmul.f32 %v4731_v53, %v7705_v46  ;;  %v3131_v35 = vmul.f32 %v3003_v11, %v7121_v21 }
 0x29c   :  { %v4735_v52 = vpop.eup %4734  ;;  %v3008_v27 = vmul.f32 %v4733_v12, %v7707_v30  ;;  %v3133_v47 = vmul.f32 %v3005_v61, %v7123_v23 }
 0x29d   :  { %v4737_v36 = vpop.eup %4736  ;;  %v3007_v15 = vmul.f32 %v4735_v52, %v7708_v26  ;;  %v3972_v28 = vpack.c.bf16 %v3131_v35, %v3130_v17  ;;  %v3134_v9 = vmul.f32 %v3006_v24, %v1916_v49 }
 0x29e   :  { %v4739_v57 = vpop.eup %4738  ;;  %v3009_v50 = vmul.f32 %v4737_v36, %v7710_v34  ;;  %v3973_v22 = vpack.c.bf16 %v3133_v47, %v3132_v10  ;;  %v3136_v5 = vmul.f32 %v3008_v27, %v7138_v54 }
 0x29f   :  { %v4741_v60 = vpop.eup %4740  ;;  %v3010_v46 = vmul.f32 %v4739_v57, %v7712_v37  ;;  %3584 = vst [vmem:[%s7198_s4 + $0x1d0] sm:$0xff] %v3972_v28  ;;  %v3135_v30 = vmul.f32 %v3007_v15, %v1918_v42 }
 0x2a0   :  { %v4743_v21 = vpop.eup %4742  ;;  %v3012_v23 = vmul.f32 %v4741_v60, %v7714_v3  ;;  %3585 = vst [vmem:[%s7198_s4 + $0x1d8] sm:$0xff] %v3973_v22  ;;  %v3137_v26 = vmul.f32 %v3009_v50, %v7140_v55 }
 0x2a1   :  { %v4745_v34 = vpop.eup %4744  ;;  %v3011_v31 = vmul.f32 %v4743_v21, %v7716_v18  ;;  %v3974_v49 = vpack.c.bf16 %v3135_v30, %v3134_v9  ;;  %v3138_v37 = vmul.f32 %v3010_v46, %v7142_v56 }
 0x2a2   :  { %v3013_v54 = vmul.f32 %v4745_v34, %v7720_v13  ;;  %v3975_v44 = vpack.c.bf16 %v3137_v26, %v3136_v5  ;;  %v3140_v38 = vmul.f32 %v3012_v23, %v7144_v48 }
 0x2a3   :  { %3586 = vst [vmem:[%s7198_s4 + $0x1e0] sm:$0xff] %v3974_v49  ;;  %v3139_v3 = vmul.f32 %v3011_v31, %v7149_v59 }
 0x2a4   :  { %3587 = vst [vmem:[%s7198_s4 + $0x1e8] sm:$0xff] %v3975_v44  ;;  %v3141_v18 = vmul.f32 %v3013_v54, %v7151_v63 }
 0x2a5   :  { %v3976_v2 = vpack.c.bf16 %v3139_v3, %v3138_v37 }
 0x2a6   :  { %v3977_v17 = vpack.c.bf16 %v3141_v18, %v3140_v38 }
 0x2a7   :  { %3588 = vst [vmem:[%s7198_s4 + $0x1f0] sm:$0xff] %v3976_v2 }
 0x2a8   :  { %3589 = vst [vmem:[%s7198_s4 + $0x1f8] sm:$0xff] %v3977_v17 }

// kernel: deepseek_forward.15
= control target key start
LH: loop header
LB: loop body
LE: loop exit
PB: predicated region body
PF: predicated region fallthrough
CT: control target
= control target key end

     0   :  { %s2668_s1 = inlined_call_operand.vmem [shape: bf16[512,256], index: 1, kind: input, shape index: {}]   ;;  %s2669_s0 = inlined_call_operand.vmem [shape: bf16[256,512], index: 0, kind: input, shape index: {}]   ;;  %s2670_s2 = inlined_call_operand.vmem [shape: f32[256,256], index: 2, kind: input, shape index: {}, may-alias: {2,3}]   ;;  %s2671_s3 = inlined_call_operand.vmem [shape: f32[256,256], index: 3, kind: output, shape index: {}, may-alias: {2,3}]  }
   0x1   :  { %v1688_v0 = vld [vmem:[%s2668_s1 + $0x4] ss:$8 sps:$4 sm:$0xff]   ;;  %v1692_v2 = vld [vmem:[%s2668_s1] ss:$8 sps:$4 sm:$0xff]   ;;  %v1694_v4 = vld [vmem:[%s2668_s1 + $0x14] ss:$8 sps:$4 sm:$0xff]  }
   0x2   :  { %v1690_v1 = vld [vmem:[%s2668_s1 + $0x104] ss:$8 sps:$4 sm:$0xff]   ;;  %978 = vmatprep.subr.bf16.mxu1 %v1688_v0  ;;  %v1693_v3 = vld [vmem:[%s2668_s1 + $0x100] ss:$8 sps:$4 sm:$0xff]   ;;  %v1696_v5 = vld [vmem:[%s2668_s1 + $0x114] ss:$8 sps:$4 sm:$0xff]  }
   0x3   :  { %1171 = vmatprep.subr.bf16.mxu0 %v1690_v1  ;;  %979 = vmatpush1.bf16.msra.mxu1 %v1692_v2  ;;  %v1698_v6 = vld [vmem:[%s2668_s1 + $0x10] ss:$8 sps:$4 sm:$0xff]   ;;  %v1700_v8 = vld [vmem:[%s2668_s1 + $0x24] ss:$8 sps:$4 sm:$0xff]   ;;  %v1704_v10 = vld [vmem:[%s2668_s1 + $0x20] ss:$8 sps:$4 sm:$0xff]  }
   0x4   :  { %1172 = vmatpush1.bf16.msra.mxu0 %v1693_v3  ;;  %980 = vmatprep.subr.bf16.mxu1 %v1694_v4  ;;  %v1699_v7 = vld [vmem:[%s2668_s1 + $0x110] ss:$8 sps:$4 sm:$0xff]   ;;  %v1702_v9 = vld [vmem:[%s2668_s1 + $0x124] ss:$8 sps:$4 sm:$0xff]   ;;  %v1705_v11 = vld [vmem:[%s2668_s1 + $0x120] ss:$8 sps:$4 sm:$0xff]  }
   0x5   :  { %1173 = vmatprep.subr.bf16.mxu0 %v1696_v5  ;;  %v1706_v12 = vld [vmem:[%s2668_s1 + $0x34] ss:$8 sps:$4 sm:$0xff]   ;;  %v1710_v14 = vld [vmem:[%s2668_s1 + $0x30] ss:$8 sps:$4 sm:$0xff]   ;;  %v1712_v16 = vld [vmem:[%s2668_s1 + $0x44] ss:$8 sps:$4 sm:$0xff]  }
   0x6   :  { %v1708_v13 = vld [vmem:[%s2668_s1 + $0x134] ss:$8 sps:$4 sm:$0xff]   ;;  %v1711_v15 = vld [vmem:[%s2668_s1 + $0x130] ss:$8 sps:$4 sm:$0xff]   ;;  %v1714_v17 = vld [vmem:[%s2668_s1 + $0x144] ss:$8 sps:$4 sm:$0xff]  }
   0x7   :  { %981 = vmatpush1.bf16.msra.mxu1 %v1698_v6  ;;  %v1716_v18 = vld [vmem:[%s2668_s1 + $0x40] ss:$8 sps:$4 sm:$0xff]   ;;  %v1718_v20 = vld [vmem:[%s2668_s1 + $0x54] ss:$8 sps:$4 sm:$0xff]   ;;  %v1722_v22 = vld [vmem:[%s2668_s1 + $0x50] ss:$8 sps:$4 sm:$0xff]  }
   0x8   :  { %1174 = vmatpush1.bf16.msra.mxu0 %v1699_v7  ;;  %982 = vmatprep.subr.bf16.mxu1 %v1700_v8  ;;  %v1717_v19 = vld [vmem:[%s2668_s1 + $0x140] ss:$8 sps:$4 sm:$0xff]   ;;  %v1720_v21 = vld [vmem:[%s2668_s1 + $0x154] ss:$8 sps:$4 sm:$0xff]   ;;  %v1723_v23 = vld [vmem:[%s2668_s1 + $0x150] ss:$8 sps:$4 sm:$0xff]  }
   0x9   :  { %1175 = vmatprep.subr.bf16.mxu0 %v1702_v9  ;;  %v1724_v24 = vld [vmem:[%s2668_s1 + $0x64] ss:$8 sps:$4 sm:$0xff]   ;;  %v1728_v26 = vld [vmem:[%s2668_s1 + $0x60] ss:$8 sps:$4 sm:$0xff]   ;;  %v1730_v28 = vld [vmem:[%s2668_s1 + $0x74] ss:$8 sps:$4 sm:$0xff]  }
   0xa   :  { %v1726_v25 = vld [vmem:[%s2668_s1 + $0x164] ss:$8 sps:$4 sm:$0xff]   ;;  %v1729_v27 = vld [vmem:[%s2668_s1 + $0x160] ss:$8 sps:$4 sm:$0xff]   ;;  %v1732_v29 = vld [vmem:[%s2668_s1 + $0x174] ss:$8 sps:$4 sm:$0xff]  }
   0xb   :  { %983 = vmatpush1.bf16.msra.mxu1 %v1704_v10  ;;  %v1734_v30 = vld [vmem:[%s2668_s1 + $0x70] ss:$8 sps:$4 sm:$0xff]   ;;  %v1736_v32 = vld [vmem:[%s2668_s1 + $0x84] ss:$8 sps:$4 sm:$0xff]   ;;  %v1740_v34 = vld [vmem:[%s2668_s1 + $0x80] ss:$8 sps:$4 sm:$0xff]  }
   0xc   :  { %1176 = vmatpush1.bf16.msra.mxu0 %v1705_v11  ;;  %984 = vmatprep.subr.bf16.mxu1 %v1706_v12  ;;  %v1735_v31 = vld [vmem:[%s2668_s1 + $0x170] ss:$8 sps:$4 sm:$0xff]   ;;  %v1738_v33 = vld [vmem:[%s2668_s1 + $0x184] ss:$8 sps:$4 sm:$0xff]   ;;  %v1741_v35 = vld [vmem:[%s2668_s1 + $0x180] ss:$8 sps:$4 sm:$0xff]  }
   0xd   :  { %1177 = vmatprep.subr.bf16.mxu0 %v1708_v13  ;;  %v1742_v36 = vld [vmem:[%s2668_s1 + $0x94] ss:$8 sps:$4 sm:$0xff]   ;;  %v1746_v38 = vld [vmem:[%s2668_s1 + $0x90] ss:$8 sps:$4 sm:$0xff]   ;;  %v1748_v40 = vld [vmem:[%s2668_s1 + $0xa4] ss:$8 sps:$4 sm:$0xff]  }
   0xe   :  { %v1744_v37 = vld [vmem:[%s2668_s1 + $0x194] ss:$8 sps:$4 sm:$0xff]   ;;  %v1747_v39 = vld [vmem:[%s2668_s1 + $0x190] ss:$8 sps:$4 sm:$0xff]   ;;  %v1750_v41 = vld [vmem:[%s2668_s1 + $0x1a4] ss:$8 sps:$4 sm:$0xff]  }
   0xf   :  { %985 = vmatpush1.bf16.msra.mxu1 %v1710_v14  ;;  %v1752_v42 = vld [vmem:[%s2668_s1 + $0xa0] ss:$8 sps:$4 sm:$0xff]   ;;  %v1754_v44 = vld [vmem:[%s2668_s1 + $0xb4] ss:$8 sps:$4 sm:$0xff]   ;;  %v1758_v46 = vld [vmem:[%s2668_s1 + $0xb0] ss:$8 sps:$4 sm:$0xff]  }
  0x10   :  { %1178 = vmatpush1.bf16.msra.mxu0 %v1711_v15  ;;  %986 = vmatprep.subr.bf16.mxu1 %v1712_v16  ;;  %v1753_v43 = vld [vmem:[%s2668_s1 + $0x1a0] ss:$8 sps:$4 sm:$0xff]   ;;  %v1756_v45 = vld [vmem:[%s2668_s1 + $0x1b4] ss:$8 sps:$4 sm:$0xff]   ;;  %v1759_v47 = vld [vmem:[%s2668_s1 + $0x1b0] ss:$8 sps:$4 sm:$0xff]  }
  0x11   :  { %1179 = vmatprep.subr.bf16.mxu0 %v1714_v17  ;;  %v1760_v48 = vld [vmem:[%s2668_s1 + $0xc4] ss:$8 sps:$4 sm:$0xff]   ;;  %v1764_v52 = vld [vmem:[%s2668_s1 + $0xc0] ss:$8 sps:$4 sm:$0xff]   ;;  %v1766_v54 = vld [vmem:[%s2668_s1 + $0xd4] ss:$8 sps:$4 sm:$0xff]  }
  0x12   :  { %v1786_v49 = vld [vmem:[%s2669_s0 + $0x4] ss:$16 sps:$4 sm:$0xff]   ;;  %v1789_v51 = vld [vmem:[%s2669_s0 + $0xc] ss:$16 sps:$4 sm:$0xff]   ;;  %v1765_v53 = vld [vmem:[%s2668_s1 + $0x1c0] ss:$8 sps:$4 sm:$0xff]  }
  0x13   :  { %987 = vmatpush1.bf16.msra.mxu1 %v1716_v18  ;;  %v1762_v50 = vld [vmem:[%s2668_s1 + $0x1c4] ss:$8 sps:$4 sm:$0xff]   ;;  %1010 = vmatprep.mubr.bf16.mxu1 %v1786_v49  ;;  %v1768_v55 = vld [vmem:[%s2668_s1 + $0x1d4] ss:$8 sps:$4 sm:$0xff]   ;;  %v1770_v56 = vld [vmem:[%s2668_s1 + $0xd0] ss:$8 sps:$4 sm:$0xff]  }
  0x14   :  { %1180 = vmatpush1.bf16.msra.mxu0 %v1717_v19  ;;  %988 = vmatprep.subr.bf16.mxu1 %v1718_v20  ;;  %v1771_v57 = vld [vmem:[%s2668_s1 + $0x1d0] ss:$8 sps:$4 sm:$0xff]   ;;  %v1772_v58 = vld [vmem:[%s2668_s1 + $0xe4] ss:$8 sps:$4 sm:$0xff]   ;;  %v1776_v60 = vld [vmem:[%s2668_s1 + $0xe0] ss:$8 sps:$4 sm:$0xff]  }
  0x15   :  { %1181 = vmatprep.subr.bf16.mxu0 %v1720_v21  ;;  %1203 = vmatprep.mubr.bf16.mxu0 %v1789_v51  ;;  %v1774_v59 = vld [vmem:[%s2668_s1 + $0x1e4] ss:$8 sps:$4 sm:$0xff]   ;;  %v1777_v61 = vld [vmem:[%s2668_s1 + $0x1e0] ss:$8 sps:$4 sm:$0xff]   ;;  %v1778_v62 = vld [vmem:[%s2668_s1 + $0xf4] ss:$8 sps:$4 sm:$0xff]  }
  0x16   :  { %v1780_v63 = vld [vmem:[%s2668_s1 + $0x1f4] ss:$8 sps:$4 sm:$0xff]   ;;  %v1782_v0 = vld [vmem:[%s2668_s1 + $0xf0] ss:$8 sps:$4 sm:$0xff]  }
  0x17   :  { %989 = vmatpush1.bf16.msra.mxu1 %v1722_v22  ;;  %v1783_v1 = vld [vmem:[%s2668_s1 + $0x1f0] ss:$8 sps:$4 sm:$0xff]   ;;  %v1790_v4 = vld [vmem:[%s2669_s0 + $0x24] ss:$16 sps:$4 sm:$0xff]   ;;  %v1792_v5 = vld [vmem:[%s2669_s0 + $0x2c] ss:$16 sps:$4 sm:$0xff]  }
  0x18   :  { %1182 = vmatpush1.bf16.msra.mxu0 %v1723_v23  ;;  %990 = vmatprep.subr.bf16.mxu1 %v1724_v24  ;;  %v1784_v2 = vld [vmem:[%s2669_s0] ss:$16 sps:$4 sm:$0xff]   ;;  %v1787_v3 = vld [vmem:[%s2669_s0 + $0x8] ss:$16 sps:$4 sm:$0xff]   ;;  %v1796_v8 = vld [vmem:[%s2669_s0 + $0x44] ss:$16 sps:$4 sm:$0xff]  }
  0x19   :  { %1183 = vmatprep.subr.bf16.mxu0 %v1726_v25  ;;  %v1794_v6 = vld [vmem:[%s2669_s0 + $0x20] ss:$16 sps:$4 sm:$0xff]   ;;  %v1795_v7 = vld [vmem:[%s2669_s0 + $0x28] ss:$16 sps:$4 sm:$0xff]   ;;  %v1798_v9 = vld [vmem:[%s2669_s0 + $0x4c] ss:$16 sps:$4 sm:$0xff]  }
  0x1a   :  { %v1800_v10 = vld [vmem:[%s2669_s0 + $0x40] ss:$16 sps:$4 sm:$0xff]   ;;  %v1801_v11 = vld [vmem:[%s2669_s0 + $0x48] ss:$16 sps:$4 sm:$0xff]   ;;  %v1802_v12 = vld [vmem:[%s2669_s0 + $0x64] ss:$16 sps:$4 sm:$0xff]  }
  0x1b   :  { %991 = vmatpush1.bf16.msra.mxu1 %v1728_v26  ;;  %v1804_v13 = vld [vmem:[%s2669_s0 + $0x6c] ss:$16 sps:$4 sm:$0xff]   ;;  %v1806_v14 = vld [vmem:[%s2669_s0 + $0x60] ss:$16 sps:$4 sm:$0xff]   ;;  %v1807_v15 = vld [vmem:[%s2669_s0 + $0x68] ss:$16 sps:$4 sm:$0xff]  }
  0x1c   :  { %1184 = vmatpush1.bf16.msra.mxu0 %v1729_v27  ;;  %992 = vmatprep.subr.bf16.mxu1 %v1730_v28  ;;  %v1808_v16 = vld [vmem:[%s2669_s0 + $0x84] ss:$16 sps:$4 sm:$0xff]   ;;  %v1810_v17 = vld [vmem:[%s2669_s0 + $0x8c] ss:$16 sps:$4 sm:$0xff]   ;;  %v1812_v18 = vld [vmem:[%s2669_s0 + $0x80] ss:$16 sps:$4 sm:$0xff]  }
  0x1d   :  { %1185 = vmatprep.subr.bf16.mxu0 %v1732_v29  ;;  %v1813_v19 = vld [vmem:[%s2669_s0 + $0x88] ss:$16 sps:$4 sm:$0xff]   ;;  %v1814_v20 = vld [vmem:[%s2669_s0 + $0xa4] ss:$16 sps:$4 sm:$0xff]   ;;  %v1816_v21 = vld [vmem:[%s2669_s0 + $0xac] ss:$16 sps:$4 sm:$0xff]  }
  0x1e   :  { %v1818_v22 = vld [vmem:[%s2669_s0 + $0xa0] ss:$16 sps:$4 sm:$0xff]   ;;  %v1819_v23 = vld [vmem:[%s2669_s0 + $0xa8] ss:$16 sps:$4 sm:$0xff]   ;;  %v1820_v24 = vld [vmem:[%s2669_s0 + $0xc4] ss:$16 sps:$4 sm:$0xff]  }
  0x1f   :  { %993 = vmatpush1.bf16.msra.mxu1 %v1734_v30  ;;  %v1822_v25 = vld [vmem:[%s2669_s0 + $0xcc] ss:$16 sps:$4 sm:$0xff]   ;;  %v1824_v26 = vld [vmem:[%s2669_s0 + $0xc0] ss:$16 sps:$4 sm:$0xff]   ;;  %v1825_v27 = vld [vmem:[%s2669_s0 + $0xc8] ss:$16 sps:$4 sm:$0xff]  }
  0x20   :  { %1186 = vmatpush1.bf16.msra.mxu0 %v1735_v31  ;;  %994 = vmatprep.subr.bf16.mxu1 %v1736_v32  ;;  %v1826_v28 = vld [vmem:[%s2669_s0 + $0xe4] ss:$16 sps:$4 sm:$0xff]   ;;  %v1828_v29 = vld [vmem:[%s2669_s0 + $0xec] ss:$16 sps:$4 sm:$0xff]   ;;  %v1830_v30 = vld [vmem:[%s2669_s0 + $0xe0] ss:$16 sps:$4 sm:$0xff]  }
  0x21   :  { %1187 = vmatprep.subr.bf16.mxu0 %v1738_v33  ;;  %v1831_v31 = vld [vmem:[%s2669_s0 + $0xe8] ss:$16 sps:$4 sm:$0xff]   ;;  %v1832_v32 = vld [vmem:[%s2669_s0 + $0x104] ss:$16 sps:$4 sm:$0xff]   ;;  %v1834_v33 = vld [vmem:[%s2669_s0 + $0x10c] ss:$16 sps:$4 sm:$0xff]  }
  0x22   :  { %v1858_v49 = vld [vmem:[%s2669_s0 + $0x18c] ss:$16 sps:$4 sm:$0xff]   ;;  %v1861_v51 = vld [vmem:[%s2669_s0 + $0x188] ss:$16 sps:$4 sm:$0xff]  }
  0x23   :  { %995 = vmatpush1.bf16.msra.mxu1 %v1740_v34  ;;  %v1836_v34 = vld [vmem:[%s2669_s0 + $0x100] ss:$16 sps:$4 sm:$0xff]  }
  0x24   :  { %1188 = vmatpush1.bf16.msra.mxu0 %v1741_v35  ;;  %996 = vmatprep.subr.bf16.mxu1 %v1742_v36  ;;  %v1837_v35 = vld [vmem:[%s2669_s0 + $0x108] ss:$16 sps:$4 sm:$0xff]   ;;  %v1838_v36 = vld [vmem:[%s2669_s0 + $0x124] ss:$16 sps:$4 sm:$0xff]  }
  0x25   :  { %1189 = vmatprep.subr.bf16.mxu0 %v1744_v37  ;;  %v1840_v37 = vld [vmem:[%s2669_s0 + $0x12c] ss:$16 sps:$4 sm:$0xff]  }
  0x27   :  { %997 = vmatpush1.bf16.msra.mxu1 %v1746_v38  ;;  %v1842_v38 = vld [vmem:[%s2669_s0 + $0x120] ss:$16 sps:$4 sm:$0xff]  }
  0x28   :  { %1190 = vmatpush1.bf16.msra.mxu0 %v1747_v39  ;;  %998 = vmatprep.subr.bf16.mxu1 %v1748_v40  ;;  %v1843_v39 = vld [vmem:[%s2669_s0 + $0x128] ss:$16 sps:$4 sm:$0xff]   ;;  %v1844_v40 = vld [vmem:[%s2669_s0 + $0x144] ss:$16 sps:$4 sm:$0xff]  }
  0x29   :  { %1191 = vmatprep.subr.bf16.mxu0 %v1750_v41  ;;  %v1846_v41 = vld [vmem:[%s2669_s0 + $0x14c] ss:$16 sps:$4 sm:$0xff]  }
  0x2b   :  { %999 = vmatpush1.bf16.msra.mxu1 %v1752_v42  ;;  %v1848_v42 = vld [vmem:[%s2669_s0 + $0x140] ss:$16 sps:$4 sm:$0xff]  }
  0x2c   :  { %1192 = vmatpush1.bf16.msra.mxu0 %v1753_v43  ;;  %1000 = vmatprep.subr.bf16.mxu1 %v1754_v44  ;;  %v1849_v43 = vld [vmem:[%s2669_s0 + $0x148] ss:$16 sps:$4 sm:$0xff]   ;;  %v1850_v44 = vld [vmem:[%s2669_s0 + $0x164] ss:$16 sps:$4 sm:$0xff]  }
  0x2d   :  { %1193 = vmatprep.subr.bf16.mxu0 %v1756_v45  ;;  %v1852_v45 = vld [vmem:[%s2669_s0 + $0x16c] ss:$16 sps:$4 sm:$0xff]  }
  0x2f   :  { %1001 = vmatpush1.bf16.msra.mxu1 %v1758_v46  ;;  %v1854_v46 = vld [vmem:[%s2669_s0 + $0x160] ss:$16 sps:$4 sm:$0xff]  }
  0x30   :  { %1194 = vmatpush1.bf16.msra.mxu0 %v1759_v47  ;;  %1002 = vmatprep.subr.bf16.mxu1 %v1760_v48  ;;  %v1855_v47 = vld [vmem:[%s2669_s0 + $0x168] ss:$16 sps:$4 sm:$0xff]   ;;  %v1856_v48 = vld [vmem:[%s2669_s0 + $0x184] ss:$16 sps:$4 sm:$0xff]  }
  0x31   :  { %1195 = vmatprep.subr.bf16.mxu0 %v1762_v50  ;;  %v1860_v50 = vld [vmem:[%s2669_s0 + $0x180] ss:$16 sps:$4 sm:$0xff]  }
  0x33   :  { %1003 = vmatpush1.bf16.msra.mxu1 %v1764_v52  ;;  %v1862_v52 = vld [vmem:[%s2669_s0 + $0x1a4] ss:$16 sps:$4 sm:$0xff]  }
  0x34   :  { %1196 = vmatpush1.bf16.msra.mxu0 %v1765_v53  ;;  %1004 = vmatprep.subr.bf16.mxu1 %v1766_v54  ;;  %v1864_v53 = vld [vmem:[%s2669_s0 + $0x1ac] ss:$16 sps:$4 sm:$0xff]   ;;  %v1866_v54 = vld [vmem:[%s2669_s0 + $0x1a0] ss:$16 sps:$4 sm:$0xff]  }
  0x35   :  { %1197 = vmatprep.subr.bf16.mxu0 %v1768_v55  ;;  %v1867_v55 = vld [vmem:[%s2669_s0 + $0x1a8] ss:$16 sps:$4 sm:$0xff]  }
  0x37   :  { %1005 = vmatpush1.bf16.msra.mxu1 %v1770_v56  ;;  %v1868_v56 = vld [vmem:[%s2669_s0 + $0x1c4] ss:$16 sps:$4 sm:$0xff]  }
  0x38   :  { %1198 = vmatpush1.bf16.msra.mxu0 %v1771_v57  ;;  %1006 = vmatprep.subr.bf16.mxu1 %v1772_v58  ;;  %v1870_v57 = vld [vmem:[%s2669_s0 + $0x1cc] ss:$16 sps:$4 sm:$0xff]   ;;  %v1872_v58 = vld [vmem:[%s2669_s0 + $0x1c0] ss:$16 sps:$4 sm:$0xff]  }
  0x39   :  { %1199 = vmatprep.subr.bf16.mxu0 %v1774_v59  ;;  %v1873_v59 = vld [vmem:[%s2669_s0 + $0x1c8] ss:$16 sps:$4 sm:$0xff]  }
  0x3b   :  { %1007 = vmatpush1.bf16.msra.mxu1 %v1776_v60  ;;  %v1874_v60 = vld [vmem:[%s2669_s0 + $0x1e4] ss:$16 sps:$4 sm:$0xff]  }
  0x3c   :  { %1200 = vmatpush1.bf16.msra.mxu0 %v1777_v61  ;;  %1008 = vmatprep.subr.bf16.mxu1 %v1778_v62  ;;  %v1876_v61 = vld [vmem:[%s2669_s0 + $0x1ec] ss:$16 sps:$4 sm:$0xff]   ;;  %v1878_v62 = vld [vmem:[%s2669_s0 + $0x1e0] ss:$16 sps:$4 sm:$0xff]  }
  0x3d   :  { %1201 = vmatprep.subr.bf16.mxu0 %v1780_v63  ;;  %v1879_v63 = vld [vmem:[%s2669_s0 + $0x1e8] ss:$16 sps:$4 sm:$0xff]  }
  0x3f   :  { %1009 = vmatpush1.bf16.msra.mxu1 %v1782_v0 }
  0x40   :  { %1202 = vmatpush1.bf16.msra.mxu0 %v1783_v1  ;;  %v18_v1 = vld [vmem:[%s2670_s2] sm:$0xff] }
  0x42   :  { %1011 = vmatmul.mubr.bf16.vlgmr.msra.gmra.mrb[0].mxu1 %v1784_v2 }
  0x43   :  { %1204 = vmatmul.mubr.bf16.vlgmr.msra.gmra.mrb[0].mxu0 %v1787_v3  ;;  %1020 = vmatprep.mubr.bf16.mxu1 %v1790_v4 }
  0x44   :  { %1213 = vmatprep.mubr.bf16.mxu0 %v1792_v5  ;;  %v19_v5 = vld [vmem:[%s2670_s2 + $0x8] sm:$0xff] }
  0x4a   :  { %1021 = vmatmul.mubr.bf16.gmra.mrb[4].mxu1 %v1794_v6 }
  0x4b   :  { %1214 = vmatmul.mubr.bf16.gmra.mrb[4].mxu0 %v1795_v7  ;;  %1030 = vmatprep.mubr.bf16.mxu1 %v1796_v8 }
  0x4c   :  { %1223 = vmatprep.mubr.bf16.mxu0 %v1798_v9  ;;  %v20_v9 = vld [vmem:[%s2670_s2 + $0x10] sm:$0xff] }
  0x52   :  { %1031 = vmatmul.mubr.bf16.gmra.mrb[8].mxu1 %v1800_v10 }
  0x53   :  { %1224 = vmatmul.mubr.bf16.gmra.mrb[8].mxu0 %v1801_v11  ;;  %1040 = vmatprep.mubr.bf16.mxu1 %v1802_v12 }
  0x54   :  { %1233 = vmatprep.mubr.bf16.mxu0 %v1804_v13 }
  0x5a   :  { %1041 = vmatmul.mubr.bf16.gmra.mrb[12].mxu1 %v1806_v14  ;;  %v21_v14 = vld [vmem:[%s2670_s2 + $0x18] sm:$0xff] }
  0x5b   :  { %1234 = vmatmul.mubr.bf16.gmra.mrb[12].mxu0 %v1807_v15  ;;  %1050 = vmatprep.mubr.bf16.mxu1 %v1808_v16 }
  0x5c   :  { %1243 = vmatprep.mubr.bf16.mxu0 %v1810_v17 }
  0x62   :  { %1051 = vmatmul.mubr.bf16.gmra.mrb[16].mxu1 %v1812_v18 }
  0x63   :  { %1244 = vmatmul.mubr.bf16.gmra.mrb[16].mxu0 %v1813_v19  ;;  %1060 = vmatprep.mubr.bf16.mxu1 %v1814_v20 }
  0x64   :  { %1253 = vmatprep.mubr.bf16.mxu0 %v1816_v21 }
  0x6a   :  { %1061 = vmatmul.mubr.bf16.gmra.mrb[20].mxu1 %v1818_v22 }
  0x6b   :  { %1254 = vmatmul.mubr.bf16.gmra.mrb[20].mxu0 %v1819_v23  ;;  %1070 = vmatprep.mubr.bf16.mxu1 %v1820_v24 }
  0x6c   :  { %1263 = vmatprep.mubr.bf16.mxu0 %v1822_v25 }
  0x72   :  { %1071 = vmatmul.mubr.bf16.gmra.mrb[24].mxu1 %v1824_v26 }
  0x73   :  { %1264 = vmatmul.mubr.bf16.gmra.mrb[24].mxu0 %v1825_v27  ;;  %1080 = vmatprep.mubr.bf16.mxu1 %v1826_v28 }
  0x74   :  { %1273 = vmatprep.mubr.bf16.mxu0 %v1828_v29 }
  0x7a   :  { %1081 = vmatmul.mubr.bf16.gmra.mrb[28].mxu1 %v1830_v30 }
  0x7b   :  { %1274 = vmatmul.mubr.bf16.gmra.mrb[28].mxu0 %v1831_v31  ;;  %1090 = vmatprep.mubr.bf16.mxu1 %v1832_v32 }
  0x7c   :  { %1283 = vmatprep.mubr.bf16.mxu0 %v1834_v33 }
  0x82   :  { %1091 = vmatmul.mubr.bf16.gmra.mrb[32].mxu1 %v1836_v34 }
  0x83   :  { %1284 = vmatmul.mubr.bf16.gmra.mrb[32].mxu0 %v1837_v35  ;;  %1100 = vmatprep.mubr.bf16.mxu1 %v1838_v36 }
  0x84   :  { %1293 = vmatprep.mubr.bf16.mxu0 %v1840_v37 }
  0x8a   :  { %1101 = vmatmul.mubr.bf16.gmra.mrb[36].mxu1 %v1842_v38 }
  0x8b   :  { %1294 = vmatmul.mubr.bf16.gmra.mrb[36].mxu0 %v1843_v39  ;;  %1110 = vmatprep.mubr.bf16.mxu1 %v1844_v40 }
  0x8c   :  { %1303 = vmatprep.mubr.bf16.mxu0 %v1846_v41 }
  0x92   :  { %1111 = vmatmul.mubr.bf16.gmra.mrb[40].mxu1 %v1848_v42 }
  0x93   :  { %1304 = vmatmul.mubr.bf16.gmra.mrb[40].mxu0 %v1849_v43  ;;  %1120 = vmatprep.mubr.bf16.mxu1 %v1850_v44 }
  0x94   :  { %1313 = vmatprep.mubr.bf16.mxu0 %v1852_v45 }
  0x9a   :  { %1121 = vmatmul.mubr.bf16.gmra.mrb[44].mxu1 %v1854_v46 }
  0x9b   :  { %1314 = vmatmul.mubr.bf16.gmra.mrb[44].mxu0 %v1855_v47  ;;  %1130 = vmatprep.mubr.bf16.mxu1 %v1856_v48 }
  0x9c   :  { %1323 = vmatprep.mubr.bf16.mxu0 %v1858_v49 }
  0xa2   :  { %1131 = vmatmul.mubr.bf16.gmra.mrb[48].mxu1 %v1860_v50 }
  0xa3   :  { %1324 = vmatmul.mubr.bf16.gmra.mrb[48].mxu0 %v1861_v51  ;;  %1140 = vmatprep.mubr.bf16.mxu1 %v1862_v52 }
  0xa4   :  { %1333 = vmatprep.mubr.bf16.mxu0 %v1864_v53 }
  0xaa   :  { %1141 = vmatmul.mubr.bf16.gmra.mrb[52].mxu1 %v1866_v54 }
  0xab   :  { %1334 = vmatmul.mubr.bf16.gmra.mrb[52].mxu0 %v1867_v55  ;;  %1150 = vmatprep.mubr.bf16.mxu1 %v1868_v56 }
  0xac   :  { %1343 = vmatprep.mubr.bf16.mxu0 %v1870_v57 }
  0xb2   :  { %1151 = vmatmul.mubr.bf16.gmra.mrb[56].mxu1 %v1872_v58 }
  0xb3   :  { %1344 = vmatmul.mubr.bf16.gmra.mrb[56].mxu0 %v1873_v59  ;;  %1160 = vmatprep.mubr.bf16.mxu1 %v1874_v60 }
  0xb4   :  { %1353 = vmatprep.mubr.bf16.mxu0 %v1876_v61 }
  0xba   :  { %1161 = vmatmul.mubr.bf16.gmra.mrb[60].mxu1 %v1878_v62 }
  0xbb   :  { %1354 = vmatmul.mubr.bf16.gmra.mrb[60].mxu0 %v1879_v63 }
 0x115   :  { %v1012_v0 = vpop.f32.mrb[0].mxu1 }
 0x116   :  { %v1205_v2 = vpop.f32.mrb[0].mxu0  ;;  %v1014_v4 = vpop.f32.mrb[1].mxu1 }
 0x117   :  { %v1206_v3 = vadd.f32 %v1205_v2, %v1012_v0  ;;  %v1207_v6 = vpop.f32.mrb[1].mxu0  ;;  %v1016_v8 = vpop.f32.mrb[2].mxu1 }
 0x118   :  { %v1208_v7 = vadd.f32 %v1207_v6, %v1014_v4  ;;  %v1209_v10 = vpop.f32.mrb[2].mxu0  ;;  %v1018_v13 = vpop.f32.mrb[3].mxu1 }
 0x119   :  { %v1364_v11 = vadd.f32 %v1206_v3, %v18_v1  ;;  %v1210_v12 = vadd.f32 %v1209_v10, %v1016_v8  ;;  %v1211_v15 = vpop.f32.mrb[3].mxu0 }
 0x11a   :  { %v1365_v16 = vadd.f32 %v1208_v7, %v19_v5  ;;  %v1212_v17 = vadd.f32 %v1211_v15, %v1018_v13 }
 0x11b   :  { %1428 = vst [vmem:[%s2671_s3] sm:$0xff] %v1364_v11  ;;  %v1366_v18 = vadd.f32 %v1210_v12, %v20_v9 }
 0x11c   :  { %1429 = vst [vmem:[%s2671_s3 + $0x8] sm:$0xff] %v1365_v16  ;;  %v1367_v19 = vadd.f32 %v1212_v17, %v21_v14 }
 0x11d   :  { %1430 = vst [vmem:[%s2671_s3 + $0x10] sm:$0xff] %v1366_v18  ;;  %v1022_v20 = vpop.f32.mrb[4].mxu1 }
 0x11e   :  { %1431 = vst [vmem:[%s2671_s3 + $0x18] sm:$0xff] %v1367_v19  ;;  %v1215_v22 = vpop.f32.mrb[4].mxu0  ;;  %v1024_v24 = vpop.f32.mrb[5].mxu1 }
 0x11f   :  { %v1216_v23 = vadd.f32 %v1215_v22, %v1022_v20  ;;  %v1217_v26 = vpop.f32.mrb[5].mxu0  ;;  %v1026_v28 = vpop.f32.mrb[6].mxu1 }
 0x120   :  { %v1218_v27 = vadd.f32 %v1217_v26, %v1024_v24  ;;  %v1219_v30 = vpop.f32.mrb[6].mxu0  ;;  %v1028_v33 = vpop.f32.mrb[7].mxu1 }
 0x121   :  { %v1220_v32 = vadd.f32 %v1219_v30, %v1026_v28  ;;  %v1221_v35 = vpop.f32.mrb[7].mxu0 }
 0x122   :  { %v1222_v37 = vadd.f32 %v1221_v35, %v1028_v33 }
 0x125   :  { %v22_v21 = vld [vmem:[%s2670_s2 + $0x20] sm:$0xff]  ;;  %v23_v25 = vld [vmem:[%s2670_s2 + $0x28] sm:$0xff]  ;;  %v24_v29 = vld [vmem:[%s2670_s2 + $0x30] sm:$0xff]  ;;  %v1032_v40 = vpop.f32.mrb[8].mxu1 }
 0x126   :  { %v1368_v31 = vadd.f32 %v1216_v23, %v22_v21  ;;  %v25_v34 = vld [vmem:[%s2670_s2 + $0x38] sm:$0xff]  ;;  %v1369_v36 = vadd.f32 %v1218_v27, %v23_v25  ;;  %v1370_v38 = vadd.f32 %v1220_v32, %v24_v29  ;;  %v1225_v42 = vpop.f32.mrb[8].mxu0  ;;  %v1034_v44 = vpop.f32.mrb[9].mxu1 }
 0x127   :  { %v1371_v39 = vadd.f32 %v1222_v37, %v25_v34  ;;  %v1226_v43 = vadd.f32 %v1225_v42, %v1032_v40  ;;  %v1227_v46 = vpop.f32.mrb[9].mxu0  ;;  %v1036_v48 = vpop.f32.mrb[10].mxu1 }
 0x128   :  { %1432 = vst [vmem:[%s2671_s3 + $0x20] sm:$0xff] %v1368_v31  ;;  %1433 = vst [vmem:[%s2671_s3 + $0x28] sm:$0xff] %v1369_v36  ;;  %v1228_v47 = vadd.f32 %v1227_v46, %v1034_v44  ;;  %v1229_v50 = vpop.f32.mrb[10].mxu0  ;;  %v1038_v53 = vpop.f32.mrb[11].mxu1 }
 0x129   :  { %1434 = vst [vmem:[%s2671_s3 + $0x30] sm:$0xff] %v1370_v38  ;;  %1435 = vst [vmem:[%s2671_s3 + $0x38] sm:$0xff] %v1371_v39  ;;  %v1230_v52 = vadd.f32 %v1229_v50, %v1036_v48  ;;  %v1231_v55 = vpop.f32.mrb[11].mxu0 }
 0x12a   :  { %v1232_v57 = vadd.f32 %v1231_v55, %v1038_v53 }
 0x12d   :  { %v1042_v60 = vpop.f32.mrb[12].mxu1 }
 0x12e   :  { %v1235_v62 = vpop.f32.mrb[12].mxu0  ;;  %v1044_v0 = vpop.f32.mrb[13].mxu1 }
 0x12f   :  { %v1236_v63 = vadd.f32 %v1235_v62, %v1042_v60  ;;  %v1237_v2 = vpop.f32.mrb[13].mxu0  ;;  %v1046_v4 = vpop.f32.mrb[14].mxu1 }
 0x130   :  { %v26_v41 = vld [vmem:[%s2670_s2 + $0x40] sm:$0xff]  ;;  %v27_v45 = vld [vmem:[%s2670_s2 + $0x48] sm:$0xff]  ;;  %v28_v49 = vld [vmem:[%s2670_s2 + $0x50] sm:$0xff]  ;;  %v1238_v3 = vadd.f32 %v1237_v2, %v1044_v0  ;;  %v1239_v6 = vpop.f32.mrb[14].mxu0  ;;  %v1048_v9 = vpop.f32.mrb[15].mxu1 }
 0x131   :  { %v1372_v51 = vadd.f32 %v1226_v43, %v26_v41  ;;  %v29_v54 = vld [vmem:[%s2670_s2 + $0x58] sm:$0xff]  ;;  %v1373_v56 = vadd.f32 %v1228_v47, %v27_v45  ;;  %v1374_v58 = vadd.f32 %v1230_v52, %v28_v49  ;;  %v1240_v8 = vadd.f32 %v1239_v6, %v1046_v4  ;;  %v1241_v11 = vpop.f32.mrb[15].mxu0 }
 0x132   :  { %v1375_v59 = vadd.f32 %v1232_v57, %v29_v54  ;;  %v1242_v13 = vadd.f32 %v1241_v11, %v1048_v9 }
 0x133   :  { %1436 = vst [vmem:[%s2671_s3 + $0x40] sm:$0xff] %v1372_v51  ;;  %1437 = vst [vmem:[%s2671_s3 + $0x48] sm:$0xff] %v1373_v56 }
 0x134   :  { %1438 = vst [vmem:[%s2671_s3 + $0x50] sm:$0xff] %v1374_v58  ;;  %1439 = vst [vmem:[%s2671_s3 + $0x58] sm:$0xff] %v1375_v59 }
 0x135   :  { %v1052_v16 = vpop.f32.mrb[16].mxu1 }
 0x136   :  { %v1245_v18 = vpop.f32.mrb[16].mxu0  ;;  %v1054_v20 = vpop.f32.mrb[17].mxu1 }
 0x137   :  { %v1246_v19 = vadd.f32 %v1245_v18, %v1052_v16  ;;  %v1247_v22 = vpop.f32.mrb[17].mxu0  ;;  %v1056_v24 = vpop.f32.mrb[18].mxu1 }
 0x138   :  { %v1248_v23 = vadd.f32 %v1247_v22, %v1054_v20  ;;  %v1249_v26 = vpop.f32.mrb[18].mxu0  ;;  %v1058_v29 = vpop.f32.mrb[19].mxu1 }
 0x139   :  { %v1250_v28 = vadd.f32 %v1249_v26, %v1056_v24  ;;  %v1251_v31 = vpop.f32.mrb[19].mxu0 }
 0x13a   :  { %v1252_v33 = vadd.f32 %v1251_v31, %v1058_v29 }
 0x13b   :  { %v30_v61 = vld [vmem:[%s2670_s2 + $0x60] sm:$0xff]  ;;  %v31_v1 = vld [vmem:[%s2670_s2 + $0x68] sm:$0xff]  ;;  %v32_v5 = vld [vmem:[%s2670_s2 + $0x70] sm:$0xff] }
 0x13c   :  { %v1376_v7 = vadd.f32 %v1236_v63, %v30_v61  ;;  %v33_v10 = vld [vmem:[%s2670_s2 + $0x78] sm:$0xff]  ;;  %v1377_v12 = vadd.f32 %v1238_v3, %v31_v1  ;;  %v1378_v14 = vadd.f32 %v1240_v8, %v32_v5 }
 0x13d   :  { %v1379_v15 = vadd.f32 %v1242_v13, %v33_v10  ;;  %v1062_v36 = vpop.f32.mrb[20].mxu1 }
 0x13e   :  { %1440 = vst [vmem:[%s2671_s3 + $0x60] sm:$0xff] %v1376_v7  ;;  %1441 = vst [vmem:[%s2671_s3 + $0x68] sm:$0xff] %v1377_v12  ;;  %v1255_v38 = vpop.f32.mrb[20].mxu0  ;;  %v1064_v40 = vpop.f32.mrb[21].mxu1 }
 0x13f   :  { %1442 = vst [vmem:[%s2671_s3 + $0x70] sm:$0xff] %v1378_v14  ;;  %1443 = vst [vmem:[%s2671_s3 + $0x78] sm:$0xff] %v1379_v15  ;;  %v1256_v39 = vadd.f32 %v1255_v38, %v1062_v36  ;;  %v1257_v42 = vpop.f32.mrb[21].mxu0  ;;  %v1066_v44 = vpop.f32.mrb[22].mxu1 }
 0x140   :  { %v1258_v43 = vadd.f32 %v1257_v42, %v1064_v40  ;;  %v1259_v46 = vpop.f32.mrb[22].mxu0  ;;  %v1068_v49 = vpop.f32.mrb[23].mxu1 }
 0x141   :  { %v1260_v48 = vadd.f32 %v1259_v46, %v1066_v44  ;;  %v1261_v51 = vpop.f32.mrb[23].mxu0 }
 0x142   :  { %v1262_v53 = vadd.f32 %v1261_v51, %v1068_v49 }
 0x145   :  { %v1072_v56 = vpop.f32.mrb[24].mxu1 }
 0x146   :  { %v34_v17 = vld [vmem:[%s2670_s2 + $0x80] sm:$0xff]  ;;  %v35_v21 = vld [vmem:[%s2670_s2 + $0x88] sm:$0xff]  ;;  %v36_v25 = vld [vmem:[%s2670_s2 + $0x90] sm:$0xff]  ;;  %v1265_v58 = vpop.f32.mrb[24].mxu0  ;;  %v1074_v60 = vpop.f32.mrb[25].mxu1 }
 0x147   :  { %v1380_v27 = vadd.f32 %v1246_v19, %v34_v17  ;;  %v37_v30 = vld [vmem:[%s2670_s2 + $0x98] sm:$0xff]  ;;  %v1381_v32 = vadd.f32 %v1248_v23, %v35_v21  ;;  %v1382_v34 = vadd.f32 %v1250_v28, %v36_v25  ;;  %v1266_v59 = vadd.f32 %v1265_v58, %v1072_v56  ;;  %v1267_v62 = vpop.f32.mrb[25].mxu0  ;;  %v1076_v0 = vpop.f32.mrb[26].mxu1 }
 0x148   :  { %v1383_v35 = vadd.f32 %v1252_v33, %v37_v30  ;;  %v1268_v63 = vadd.f32 %v1267_v62, %v1074_v60  ;;  %v1269_v2 = vpop.f32.mrb[26].mxu0  ;;  %v1078_v5 = vpop.f32.mrb[27].mxu1 }
 0x149   :  { %1444 = vst [vmem:[%s2671_s3 + $0x80] sm:$0xff] %v1380_v27  ;;  %1445 = vst [vmem:[%s2671_s3 + $0x88] sm:$0xff] %v1381_v32  ;;  %v1270_v4 = vadd.f32 %v1269_v2, %v1076_v0  ;;  %v1271_v7 = vpop.f32.mrb[27].mxu0 }
 0x14a   :  { %1446 = vst [vmem:[%s2671_s3 + $0x90] sm:$0xff] %v1382_v34  ;;  %1447 = vst [vmem:[%s2671_s3 + $0x98] sm:$0xff] %v1383_v35  ;;  %v1272_v9 = vadd.f32 %v1271_v7, %v1078_v5 }
 0x14d   :  { %v1082_v12 = vpop.f32.mrb[28].mxu1 }
 0x14e   :  { %v1275_v14 = vpop.f32.mrb[28].mxu0  ;;  %v1084_v16 = vpop.f32.mrb[29].mxu1 }
 0x14f   :  { %v1276_v15 = vadd.f32 %v1275_v14, %v1082_v12  ;;  %v1277_v18 = vpop.f32.mrb[29].mxu0  ;;  %v1086_v20 = vpop.f32.mrb[30].mxu1 }
 0x150   :  { %v1278_v19 = vadd.f32 %v1277_v18, %v1084_v16  ;;  %v1279_v22 = vpop.f32.mrb[30].mxu0  ;;  %v1088_v25 = vpop.f32.mrb[31].mxu1 }
 0x151   :  { %v38_v37 = vld [vmem:[%s2670_s2 + $0xa0] sm:$0xff]  ;;  %v39_v41 = vld [vmem:[%s2670_s2 + $0xa8] sm:$0xff]  ;;  %v40_v45 = vld [vmem:[%s2670_s2 + $0xb0] sm:$0xff]  ;;  %v1280_v24 = vadd.f32 %v1279_v22, %v1086_v20  ;;  %v1281_v27 = vpop.f32.mrb[31].mxu0 }
 0x152   :  { %v1384_v47 = vadd.f32 %v1256_v39, %v38_v37  ;;  %v41_v50 = vld [vmem:[%s2670_s2 + $0xb8] sm:$0xff]  ;;  %v1385_v52 = vadd.f32 %v1258_v43, %v39_v41  ;;  %v1386_v54 = vadd.f32 %v1260_v48, %v40_v45  ;;  %v1282_v29 = vadd.f32 %v1281_v27, %v1088_v25 }
 0x153   :  { %v1387_v55 = vadd.f32 %v1262_v53, %v41_v50 }
 0x154   :  { %1448 = vst [vmem:[%s2671_s3 + $0xa0] sm:$0xff] %v1384_v47  ;;  %1449 = vst [vmem:[%s2671_s3 + $0xa8] sm:$0xff] %v1385_v52 }
 0x155   :  { %1450 = vst [vmem:[%s2671_s3 + $0xb0] sm:$0xff] %v1386_v54  ;;  %1451 = vst [vmem:[%s2671_s3 + $0xb8] sm:$0xff] %v1387_v55  ;;  %v1092_v32 = vpop.f32.mrb[32].mxu1 }
 0x156   :  { %v1285_v34 = vpop.f32.mrb[32].mxu0  ;;  %v1094_v36 = vpop.f32.mrb[33].mxu1 }
 0x157   :  { %v1286_v35 = vadd.f32 %v1285_v34, %v1092_v32  ;;  %v1287_v38 = vpop.f32.mrb[33].mxu0  ;;  %v1096_v40 = vpop.f32.mrb[34].mxu1 }
 0x158   :  { %v1288_v39 = vadd.f32 %v1287_v38, %v1094_v36  ;;  %v1289_v42 = vpop.f32.mrb[34].mxu0  ;;  %v1098_v45 = vpop.f32.mrb[35].mxu1 }
 0x159   :  { %v1290_v44 = vadd.f32 %v1289_v42, %v1096_v40  ;;  %v1291_v47 = vpop.f32.mrb[35].mxu0 }
 0x15a   :  { %v1292_v49 = vadd.f32 %v1291_v47, %v1098_v45 }
 0x15c   :  { %v42_v57 = vld [vmem:[%s2670_s2 + $0xc0] sm:$0xff]  ;;  %v43_v61 = vld [vmem:[%s2670_s2 + $0xc8] sm:$0xff]  ;;  %v44_v1 = vld [vmem:[%s2670_s2 + $0xd0] sm:$0xff] }
 0x15d   :  { %v1388_v3 = vadd.f32 %v1266_v59, %v42_v57  ;;  %v45_v6 = vld [vmem:[%s2670_s2 + $0xd8] sm:$0xff]  ;;  %v1389_v8 = vadd.f32 %v1268_v63, %v43_v61  ;;  %v1390_v10 = vadd.f32 %v1270_v4, %v44_v1  ;;  %v1102_v52 = vpop.f32.mrb[36].mxu1 }
 0x15e   :  { %v1391_v11 = vadd.f32 %v1272_v9, %v45_v6  ;;  %v1295_v54 = vpop.f32.mrb[36].mxu0  ;;  %v1104_v56 = vpop.f32.mrb[37].mxu1 }
 0x15f   :  { %1452 = vst [vmem:[%s2671_s3 + $0xc0] sm:$0xff] %v1388_v3  ;;  %1453 = vst [vmem:[%s2671_s3 + $0xc8] sm:$0xff] %v1389_v8  ;;  %v1296_v55 = vadd.f32 %v1295_v54, %v1102_v52  ;;  %v1297_v58 = vpop.f32.mrb[37].mxu0  ;;  %v1106_v60 = vpop.f32.mrb[38].mxu1 }
 0x160   :  { %1454 = vst [vmem:[%s2671_s3 + $0xd0] sm:$0xff] %v1390_v10  ;;  %1455 = vst [vmem:[%s2671_s3 + $0xd8] sm:$0xff] %v1391_v11  ;;  %v1298_v59 = vadd.f32 %v1297_v58, %v1104_v56  ;;  %v1299_v62 = vpop.f32.mrb[38].mxu0  ;;  %v1108_v1 = vpop.f32.mrb[39].mxu1 }
 0x161   :  { %v1300_v0 = vadd.f32 %v1299_v62, %v1106_v60  ;;  %v1301_v3 = vpop.f32.mrb[39].mxu0 }
 0x162   :  { %v1302_v5 = vadd.f32 %v1301_v3, %v1108_v1 }
 0x165   :  { %v1112_v8 = vpop.f32.mrb[40].mxu1 }
 0x166   :  { %v1305_v10 = vpop.f32.mrb[40].mxu0  ;;  %v1114_v12 = vpop.f32.mrb[41].mxu1 }
 0x167   :  { %v46_v13 = vld [vmem:[%s2670_s2 + $0xe0] sm:$0xff]  ;;  %v47_v17 = vld [vmem:[%s2670_s2 + $0xe8] sm:$0xff]  ;;  %v48_v21 = vld [vmem:[%s2670_s2 + $0xf0] sm:$0xff]  ;;  %v1306_v11 = vadd.f32 %v1305_v10, %v1112_v8  ;;  %v1307_v14 = vpop.f32.mrb[41].mxu0  ;;  %v1116_v16 = vpop.f32.mrb[42].mxu1 }
 0x168   :  { %v1392_v23 = vadd.f32 %v1276_v15, %v46_v13  ;;  %v49_v26 = vld [vmem:[%s2670_s2 + $0xf8] sm:$0xff]  ;;  %v1393_v28 = vadd.f32 %v1278_v19, %v47_v17  ;;  %v1394_v30 = vadd.f32 %v1280_v24, %v48_v21  ;;  %v1308_v15 = vadd.f32 %v1307_v14, %v1114_v12  ;;  %v1309_v18 = vpop.f32.mrb[42].mxu0  ;;  %v1118_v21 = vpop.f32.mrb[43].mxu1 }
 0x169   :  { %v1395_v31 = vadd.f32 %v1282_v29, %v49_v26  ;;  %v1310_v20 = vadd.f32 %v1309_v18, %v1116_v16 }
 0x16a   :  { %1456 = vst [vmem:[%s2671_s3 + $0xe0] sm:$0xff] %v1392_v23  ;;  %1457 = vst [vmem:[%s2671_s3 + $0xe8] sm:$0xff] %v1393_v28  ;;  %v1311_v23 = vpop.f32.mrb[43].mxu0 }
 0x16b   :  { %1458 = vst [vmem:[%s2671_s3 + $0xf0] sm:$0xff] %v1394_v30  ;;  %1459 = vst [vmem:[%s2671_s3 + $0xf8] sm:$0xff] %v1395_v31  ;;  %v1312_v25 = vadd.f32 %v1311_v23, %v1118_v21 }
 0x16d   :  { %v1122_v28 = vpop.f32.mrb[44].mxu1 }
 0x16e   :  { %v1315_v30 = vpop.f32.mrb[44].mxu0  ;;  %v1124_v32 = vpop.f32.mrb[45].mxu1 }
 0x16f   :  { %v1316_v31 = vadd.f32 %v1315_v30, %v1122_v28  ;;  %v1317_v34 = vpop.f32.mrb[45].mxu0  ;;  %v1126_v36 = vpop.f32.mrb[46].mxu1 }
 0x170   :  { %v1319_v38 = vpop.f32.mrb[46].mxu0 }
 0x171   :  { %v1320_v40 = vadd.f32 %v1319_v38, %v1126_v36 }
 0x172   :  { %v50_v33 = vld [vmem:[%s2670_s2 + $0x100] sm:$0xff]  ;;  %v51_v37 = vld [vmem:[%s2670_s2 + $0x108] sm:$0xff]  ;;  %v52_v41 = vld [vmem:[%s2670_s2 + $0x110] sm:$0xff] }
 0x173   :  { %v1396_v43 = vadd.f32 %v1286_v35, %v50_v33  ;;  %v53_v46 = vld [vmem:[%s2670_s2 + $0x118] sm:$0xff]  ;;  %v1397_v48 = vadd.f32 %v1288_v39, %v51_v37  ;;  %v1398_v50 = vadd.f32 %v1290_v44, %v52_v41  ;;  %v1318_v35 = vadd.f32 %v1317_v34, %v1124_v32  ;;  %v1128_v41 = vpop.f32.mrb[47].mxu1 }
 0x174   :  { %v1399_v51 = vadd.f32 %v1292_v49, %v53_v46 }
 0x175   :  { %1460 = vst [vmem:[%s2671_s3 + $0x100] sm:$0xff] %v1396_v43  ;;  %1461 = vst [vmem:[%s2671_s3 + $0x108] sm:$0xff] %v1397_v48  ;;  %v1321_v43 = vpop.f32.mrb[47].mxu0  ;;  %v1132_v48 = vpop.f32.mrb[48].mxu1 }
 0x176   :  { %1462 = vst [vmem:[%s2671_s3 + $0x110] sm:$0xff] %v1398_v50  ;;  %1463 = vst [vmem:[%s2671_s3 + $0x118] sm:$0xff] %v1399_v51  ;;  %v1322_v45 = vadd.f32 %v1321_v43, %v1128_v41  ;;  %v1325_v50 = vpop.f32.mrb[48].mxu0  ;;  %v1134_v52 = vpop.f32.mrb[49].mxu1 }
 0x177   :  { %v1326_v51 = vadd.f32 %v1325_v50, %v1132_v48  ;;  %v1327_v54 = vpop.f32.mrb[49].mxu0  ;;  %v1136_v56 = vpop.f32.mrb[50].mxu1 }
 0x178   :  { %v1329_v58 = vpop.f32.mrb[50].mxu0 }
 0x179   :  { %v1330_v60 = vadd.f32 %v1329_v58, %v1136_v56 }
 0x17d   :  { %v54_v53 = vld [vmem:[%s2670_s2 + $0x120] sm:$0xff]  ;;  %v55_v57 = vld [vmem:[%s2670_s2 + $0x128] sm:$0xff]  ;;  %v56_v61 = vld [vmem:[%s2670_s2 + $0x130] sm:$0xff] }
 0x17e   :  { %v1400_v63 = vadd.f32 %v1296_v55, %v54_v53  ;;  %v57_v2 = vld [vmem:[%s2670_s2 + $0x138] sm:$0xff]  ;;  %v1401_v4 = vadd.f32 %v1298_v59, %v55_v57  ;;  %v1402_v6 = vadd.f32 %v1300_v0, %v56_v61  ;;  %v1328_v55 = vadd.f32 %v1327_v54, %v1134_v52  ;;  %v1138_v61 = vpop.f32.mrb[51].mxu1 }
 0x17f   :  { %v1403_v7 = vadd.f32 %v1302_v5, %v57_v2 }
 0x180   :  { %1464 = vst [vmem:[%s2671_s3 + $0x120] sm:$0xff] %v1400_v63  ;;  %1465 = vst [vmem:[%s2671_s3 + $0x128] sm:$0xff] %v1401_v4  ;;  %v1331_v63 = vpop.f32.mrb[51].mxu0  ;;  %v1142_v4 = vpop.f32.mrb[52].mxu1 }
 0x181   :  { %1466 = vst [vmem:[%s2671_s3 + $0x130] sm:$0xff] %v1402_v6  ;;  %1467 = vst [vmem:[%s2671_s3 + $0x138] sm:$0xff] %v1403_v7  ;;  %v1332_v1 = vadd.f32 %v1331_v63, %v1138_v61  ;;  %v1335_v6 = vpop.f32.mrb[52].mxu0  ;;  %v1144_v8 = vpop.f32.mrb[53].mxu1 }
 0x182   :  { %v1336_v7 = vadd.f32 %v1335_v6, %v1142_v4  ;;  %v1337_v10 = vpop.f32.mrb[53].mxu0  ;;  %v1146_v12 = vpop.f32.mrb[54].mxu1 }
 0x183   :  { %v1339_v14 = vpop.f32.mrb[54].mxu0 }
 0x184   :  { %v1340_v16 = vadd.f32 %v1339_v14, %v1146_v12 }
 0x188   :  { %v58_v9 = vld [vmem:[%s2670_s2 + $0x140] sm:$0xff]  ;;  %v59_v13 = vld [vmem:[%s2670_s2 + $0x148] sm:$0xff]  ;;  %v60_v17 = vld [vmem:[%s2670_s2 + $0x150] sm:$0xff] }
 0x189   :  { %v1404_v19 = vadd.f32 %v1306_v11, %v58_v9  ;;  %v61_v22 = vld [vmem:[%s2670_s2 + $0x158] sm:$0xff]  ;;  %v1405_v24 = vadd.f32 %v1308_v15, %v59_v13  ;;  %v1406_v26 = vadd.f32 %v1310_v20, %v60_v17  ;;  %v1338_v11 = vadd.f32 %v1337_v10, %v1144_v8  ;;  %v1148_v17 = vpop.f32.mrb[55].mxu1 }
 0x18a   :  { %v1407_v27 = vadd.f32 %v1312_v25, %v61_v22 }
 0x18b   :  { %1468 = vst [vmem:[%s2671_s3 + $0x140] sm:$0xff] %v1404_v19  ;;  %1469 = vst [vmem:[%s2671_s3 + $0x148] sm:$0xff] %v1405_v24  ;;  %v1341_v19 = vpop.f32.mrb[55].mxu0  ;;  %v1152_v24 = vpop.f32.mrb[56].mxu1 }
 0x18c   :  { %1470 = vst [vmem:[%s2671_s3 + $0x150] sm:$0xff] %v1406_v26  ;;  %1471 = vst [vmem:[%s2671_s3 + $0x158] sm:$0xff] %v1407_v27  ;;  %v1342_v21 = vadd.f32 %v1341_v19, %v1148_v17  ;;  %v1345_v26 = vpop.f32.mrb[56].mxu0  ;;  %v1154_v28 = vpop.f32.mrb[57].mxu1 }
 0x18d   :  { %v1346_v27 = vadd.f32 %v1345_v26, %v1152_v24  ;;  %v1347_v30 = vpop.f32.mrb[57].mxu0  ;;  %v1156_v32 = vpop.f32.mrb[58].mxu1 }
 0x18e   :  { %v1349_v34 = vpop.f32.mrb[58].mxu0 }
 0x18f   :  { %v1350_v36 = vadd.f32 %v1349_v34, %v1156_v32 }
 0x193   :  { %v62_v29 = vld [vmem:[%s2670_s2 + $0x160] sm:$0xff]  ;;  %v63_v33 = vld [vmem:[%s2670_s2 + $0x168] sm:$0xff]  ;;  %v64_v37 = vld [vmem:[%s2670_s2 + $0x170] sm:$0xff] }
 0x194   :  { %v1408_v39 = vadd.f32 %v1316_v31, %v62_v29  ;;  %v65_v42 = vld [vmem:[%s2670_s2 + $0x178] sm:$0xff]  ;;  %v1409_v44 = vadd.f32 %v1318_v35, %v63_v33  ;;  %v1410_v46 = vadd.f32 %v1320_v40, %v64_v37  ;;  %v1348_v31 = vadd.f32 %v1347_v30, %v1154_v28  ;;  %v1158_v37 = vpop.f32.mrb[59].mxu1 }
 0x195   :  { %v1411_v47 = vadd.f32 %v1322_v45, %v65_v42 }
 0x196   :  { %1472 = vst [vmem:[%s2671_s3 + $0x160] sm:$0xff] %v1408_v39  ;;  %1473 = vst [vmem:[%s2671_s3 + $0x168] sm:$0xff] %v1409_v44  ;;  %v1351_v39 = vpop.f32.mrb[59].mxu0  ;;  %v1162_v44 = vpop.f32.mrb[60].mxu1 }
 0x197   :  { %1474 = vst [vmem:[%s2671_s3 + $0x170] sm:$0xff] %v1410_v46  ;;  %1475 = vst [vmem:[%s2671_s3 + $0x178] sm:$0xff] %v1411_v47  ;;  %v1352_v41 = vadd.f32 %v1351_v39, %v1158_v37  ;;  %v1355_v46 = vpop.f32.mrb[60].mxu0  ;;  %v1164_v48 = vpop.f32.mrb[61].mxu1 }
 0x198   :  { %v1356_v47 = vadd.f32 %v1355_v46, %v1162_v44  ;;  %v1357_v50 = vpop.f32.mrb[61].mxu0  ;;  %v1166_v52 = vpop.f32.mrb[62].mxu1 }
 0x199   :  { %v1359_v54 = vpop.f32.mrb[62].mxu0 }
 0x19a   :  { %v1360_v56 = vadd.f32 %v1359_v54, %v1166_v52 }
 0x19e   :  { %v66_v49 = vld [vmem:[%s2670_s2 + $0x180] sm:$0xff]  ;;  %v67_v53 = vld [vmem:[%s2670_s2 + $0x188] sm:$0xff]  ;;  %v68_v57 = vld [vmem:[%s2670_s2 + $0x190] sm:$0xff] }
 0x19f   :  { %v1412_v59 = vadd.f32 %v1326_v51, %v66_v49  ;;  %v69_v62 = vld [vmem:[%s2670_s2 + $0x198] sm:$0xff]  ;;  %v1413_v0 = vadd.f32 %v1328_v55, %v67_v53  ;;  %v1414_v2 = vadd.f32 %v1330_v60, %v68_v57  ;;  %v1358_v51 = vadd.f32 %v1357_v50, %v1164_v48  ;;  %v1168_v57 = vpop.f32.mrb[63].mxu1 }
 0x1a0   :  { %v1415_v3 = vadd.f32 %v1332_v1, %v69_v62 }
 0x1a1   :  { %1476 = vst [vmem:[%s2671_s3 + $0x180] sm:$0xff] %v1412_v59  ;;  %1477 = vst [vmem:[%s2671_s3 + $0x188] sm:$0xff] %v1413_v0  ;;  %v1361_v59 = vpop.f32.mrb[63].mxu0 }
 0x1a2   :  { %1478 = vst [vmem:[%s2671_s3 + $0x190] sm:$0xff] %v1414_v2  ;;  %1479 = vst [vmem:[%s2671_s3 + $0x198] sm:$0xff] %v1415_v3  ;;  %v1362_v61 = vadd.f32 %v1361_v59, %v1168_v57 }
 0x1a9   :  { %v70_v5 = vld [vmem:[%s2670_s2 + $0x1a0] sm:$0xff]  ;;  %v71_v9 = vld [vmem:[%s2670_s2 + $0x1a8] sm:$0xff]  ;;  %v72_v13 = vld [vmem:[%s2670_s2 + $0x1b0] sm:$0xff] }
 0x1aa   :  { %v1416_v15 = vadd.f32 %v1336_v7, %v70_v5  ;;  %v73_v18 = vld [vmem:[%s2670_s2 + $0x1b8] sm:$0xff]  ;;  %v1417_v20 = vadd.f32 %v1338_v11, %v71_v9  ;;  %v1418_v22 = vadd.f32 %v1340_v16, %v72_v13 }
 0x1ab   :  { %v1419_v23 = vadd.f32 %v1342_v21, %v73_v18 }
 0x1ac   :  { %1480 = vst [vmem:[%s2671_s3 + $0x1a0] sm:$0xff] %v1416_v15  ;;  %1481 = vst [vmem:[%s2671_s3 + $0x1a8] sm:$0xff] %v1417_v20 }
 0x1ad   :  { %1482 = vst [vmem:[%s2671_s3 + $0x1b0] sm:$0xff] %v1418_v22  ;;  %1483 = vst [vmem:[%s2671_s3 + $0x1b8] sm:$0xff] %v1419_v23 }
 0x1b4   :  { %v74_v25 = vld [vmem:[%s2670_s2 + $0x1c0] sm:$0xff]  ;;  %v75_v29 = vld [vmem:[%s2670_s2 + $0x1c8] sm:$0xff]  ;;  %v76_v33 = vld [vmem:[%s2670_s2 + $0x1d0] sm:$0xff] }
 0x1b5   :  { %v1420_v35 = vadd.f32 %v1346_v27, %v74_v25  ;;  %v77_v38 = vld [vmem:[%s2670_s2 + $0x1d8] sm:$0xff]  ;;  %v1421_v40 = vadd.f32 %v1348_v31, %v75_v29  ;;  %v1422_v42 = vadd.f32 %v1350_v36, %v76_v33 }
 0x1b6   :  { %v1423_v43 = vadd.f32 %v1352_v41, %v77_v38 }
 0x1b7   :  { %1484 = vst [vmem:[%s2671_s3 + $0x1c0] sm:$0xff] %v1420_v35  ;;  %1485 = vst [vmem:[%s2671_s3 + $0x1c8] sm:$0xff] %v1421_v40 }
 0x1b8   :  { %1486 = vst [vmem:[%s2671_s3 + $0x1d0] sm:$0xff] %v1422_v42  ;;  %1487 = vst [vmem:[%s2671_s3 + $0x1d8] sm:$0xff] %v1423_v43 }
 0x1bf   :  { %v78_v45 = vld [vmem:[%s2670_s2 + $0x1e0] sm:$0xff]  ;;  %v79_v49 = vld [vmem:[%s2670_s2 + $0x1e8] sm:$0xff]  ;;  %v80_v53 = vld [vmem:[%s2670_s2 + $0x1f0] sm:$0xff] }
 0x1c0   :  { %v1424_v55 = vadd.f32 %v1356_v47, %v78_v45  ;;  %v81_v58 = vld [vmem:[%s2670_s2 + $0x1f8] sm:$0xff]  ;;  %v1425_v60 = vadd.f32 %v1358_v51, %v79_v49  ;;  %v1426_v62 = vadd.f32 %v1360_v56, %v80_v53 }
 0x1c1   :  { %v1427_v63 = vadd.f32 %v1362_v61, %v81_v58 }
 0x1c2   :  { %1488 = vst [vmem:[%s2671_s3 + $0x1e0] sm:$0xff] %v1424_v55  ;;  %1489 = vst [vmem:[%s2671_s3 + $0x1e8] sm:$0xff] %v1425_v60 }
 0x1c3   :  { %1490 = vst [vmem:[%s2671_s3 + $0x1f0] sm:$0xff] %v1426_v62  ;;  %1491 = vst [vmem:[%s2671_s3 + $0x1f8] sm:$0xff] %v1427_v63 }

// kernel: deepseek_forward.21
= control target key start
LH: loop header
LB: loop body
LE: loop exit
PB: predicated region body
PF: predicated region fallthrough
CT: control target
= control target key end

     0   :  { %s2548_s0 = inlined_call_operand.vmem [shape: f32[256,256], index: 0, kind: input, shape index: {}]   ;;  %s2549_s1 = inlined_call_operand.vmem [shape: f32[1,256], index: 1, kind: input, shape index: {}]   ;;  %s2550_s2 = inlined_call_operand.vmem [shape: bf16[256,512], index: 2, kind: input, shape index: {}]   ;;  %s2551_s3 = inlined_call_operand.hbm [shape: f32[256,512], index: 3, kind: output, shape index: {}]  }
   0x1   :  { %v1770_v0 = vld [vmem:[%s2548_s0] sm:$0xff]  ;;  %v1775_v1 = vld [vmem:[%s2548_s0 + $0x8] sm:$0xff]  ;;  %v1796_v7 = vld [vmem:[%s2548_s0 + $0x10] sm:$0xff] }
   0x2   :  { %v1780_v2 = vld [vmem:[%s2548_s0 + $0x20] sm:$0xff]  ;;  %v83_v3 = vmul.f32 %v1770_v0, %v1770_v0  ;;  %v84_v4 = vmul.f32 %v1775_v1, %v1775_v1  ;;  %v1789_v5 = vld [vmem:[%s2548_s0 + $0x28] sm:$0xff]  ;;  %v1801_v8 = vld [vmem:[%s2548_s0 + $0x18] sm:$0xff]  ;;  %v85_v10 = vmul.f32 %v1796_v7, %v1796_v7 }
   0x3   :  { %v87_v6 = vmul.f32 %v1780_v2, %v1780_v2  ;;  %v88_v9 = vmul.f32 %v1789_v5, %v1789_v5  ;;  %v86_v11 = vmul.f32 %v1801_v8, %v1801_v8  ;;  %v1812_v12 = vld [vmem:[%s2548_s0 + $0x30] sm:$0xff]  ;;  %v1817_v13 = vld [vmem:[%s2548_s0 + $0x38] sm:$0xff]  ;;  %v1836_v19 = vld [vmem:[%s2548_s0 + $0x40] sm:$0xff] }
   0x4   :  { %v1822_v14 = vld [vmem:[%s2548_s0 + $0x50] sm:$0xff]  ;;  %v147_v15 = vadd.f32 %v84_v4, %v83_v3  ;;  %v89_v16 = vmul.f32 %v1812_v12, %v1812_v12  ;;  %v90_v17 = vmul.f32 %v1817_v13, %v1817_v13  ;;  %v1831_v18 = vld [vmem:[%s2548_s0 + $0x58] sm:$0xff]  ;;  %v1841_v20 = vld [vmem:[%s2548_s0 + $0x48] sm:$0xff]  ;;  %v91_v23 = vmul.f32 %v1836_v19, %v1836_v19 }
   0x5   :  { %v153_v21 = vadd.f32 %v88_v9, %v87_v6  ;;  %v150_v22 = vadd.f32 %v86_v11, %v85_v10  ;;  %v92_v24 = vmul.f32 %v1841_v20, %v1841_v20  ;;  %v93_v26 = vmul.f32 %v1822_v14, %v1822_v14  ;;  %v1854_v28 = vld [vmem:[%s2548_s0 + $0x60] sm:$0xff]  ;;  %v1859_v29 = vld [vmem:[%s2548_s0 + $0x68] sm:$0xff]  ;;  %v1864_v30 = vld [vmem:[%s2548_s0 + $0x70] sm:$0xff] }
   0x6   :  { %148 = vadd.xlane.f32.xlu0 %v147_v15  ;;  %v156_v25 = vadd.f32 %v90_v17, %v89_v16  ;;  %v94_v27 = vmul.f32 %v1831_v18, %v1831_v18  ;;  %v1869_v31 = vld [vmem:[%s2548_s0 + $0x78] sm:$0xff]  ;;  %v95_v33 = vmul.f32 %v1854_v28, %v1854_v28  ;;  %v96_v34 = vmul.f32 %v1859_v29, %v1859_v29  ;;  %v1882_v38 = vld [vmem:[%s2548_s0 + $0x80] sm:$0xff]  ;;  %v1887_v39 = vld [vmem:[%s2548_s0 + $0x88] sm:$0xff] }
   0x7   :  { %154 = vadd.xlane.f32.xlu1 %v153_v21  ;;  %v159_v32 = vadd.f32 %v92_v24, %v91_v23  ;;  %v97_v36 = vmul.f32 %v1864_v30, %v1864_v30  ;;  %v98_v37 = vmul.f32 %v1869_v31, %v1869_v31  ;;  %v1892_v40 = vld [vmem:[%s2548_s0 + $0x90] sm:$0xff]  ;;  %v1897_v41 = vld [vmem:[%s2548_s0 + $0x98] sm:$0xff]  ;;  %v99_v43 = vmul.f32 %v1882_v38, %v1882_v38  ;;  %v1910_v48 = vld [vmem:[%s2548_s0 + $0xa0] sm:$0xff] }
   0x8   :  { %v162_v35 = vadd.f32 %v94_v27, %v93_v26  ;;  %v165_v42 = vadd.f32 %v96_v34, %v95_v33  ;;  %v100_v44 = vmul.f32 %v1887_v39, %v1887_v39  ;;  %v101_v46 = vmul.f32 %v1892_v40, %v1892_v40  ;;  %v1915_v49 = vld [vmem:[%s2548_s0 + $0xa8] sm:$0xff]  ;;  %v1920_v50 = vld [vmem:[%s2548_s0 + $0xb0] sm:$0xff]  ;;  %v1925_v51 = vld [vmem:[%s2548_s0 + $0xb8] sm:$0xff] }
   0x9   :  { %v168_v45 = vadd.f32 %v98_v37, %v97_v36  ;;  %v102_v47 = vmul.f32 %v1897_v41, %v1897_v41  ;;  %v43_v52 = vld [vmem:[%s2548_s0 + $0xc0] sm:$0xff]  ;;  %v103_v54 = vmul.f32 %v1910_v48, %v1910_v48  ;;  %v104_v55 = vmul.f32 %v1915_v49, %v1915_v49  ;;  %v1937_v56 = vld [vmem:[%s2548_s0 + $0xd0] sm:$0xff]  ;;  %v1942_v57 = vld [vmem:[%s2548_s0 + $0xd8] sm:$0xff] }
   0xa   :  { %151 = vadd.xlane.f32.xlu0 %v150_v22  ;;  %v171_v53 = vadd.f32 %v100_v44, %v99_v43  ;;  %v1947_v58 = vld [vmem:[%s2548_s0 + $0xc8] sm:$0xff]  ;;  %v105_v60 = vmul.f32 %v1920_v50, %v1920_v50  ;;  %v106_v61 = vmul.f32 %v1925_v51, %v1925_v51  ;;  %v1557_v62 = vld [vmem:[%s2550_s2 + $0x4] ss:$16 sps:$4 sm:$0xff]   ;;  %v1561_v3 = vld [vmem:[%s2550_s2] ss:$16 sps:$4 sm:$0xff]   ;;  %v107_v10 = vmul.f32 %v43_v52, %v43_v52 }
   0xb   :  { %157 = vadd.xlane.f32.xlu1 %v156_v25  ;;  %v174_v59 = vadd.f32 %v102_v47, %v101_v46  ;;  %v1559_v63 = vld [vmem:[%s2550_s2 + $0xc] ss:$16 sps:$4 sm:$0xff]   ;;  %v1562_v4 = vld [vmem:[%s2550_s2 + $0x8] ss:$16 sps:$4 sm:$0xff]   ;;  %960 = vmatprep.subr.bf16.mxu0 %v1557_v62  ;;  %v1563_v6 = vld [vmem:[%s2550_s2 + $0x24] ss:$16 sps:$4 sm:$0xff]   ;;  %v177_v9 = vadd.f32 %v104_v55, %v103_v54  ;;  %v108_v11 = vmul.f32 %v1947_v58, %v1947_v58 }
   0xc   :  { %1153 = vmatprep.subr.bf16.mxu1 %v1559_v63  ;;  %v1565_v15 = vld [vmem:[%s2550_s2 + $0x2c] ss:$16 sps:$4 sm:$0xff]   ;;  %v180_v16 = vadd.f32 %v106_v61, %v105_v60  ;;  %v109_v17 = vmul.f32 %v1937_v56, %v1937_v56  ;;  %v110_v21 = vmul.f32 %v1942_v57, %v1942_v57  ;;  %v1980_v22 = vld [vmem:[%s2548_s0 + $0xf0] sm:$0xff]  ;;  %v1985_v23 = vld [vmem:[%s2548_s0 + $0xe0] sm:$0xff]  ;;  %961 = vmatpush1.bf16.msra.mxu0 %v1561_v3 }
   0xd   :  { %v1990_v24 = vld [vmem:[%s2548_s0 + $0xe8] sm:$0xff]  ;;  %v1995_v25 = vld [vmem:[%s2548_s0 + $0xf8] sm:$0xff]  ;;  %1154 = vmatpush1.bf16.msra.mxu1 %v1562_v4  ;;  %962 = vmatprep.subr.bf16.mxu0 %v1563_v6  ;;  %v1567_v26 = vld [vmem:[%s2550_s2 + $0x20] ss:$16 sps:$4 sm:$0xff]   ;;  %v111_v36 = vmul.f32 %v1985_v23, %v1985_v23  ;;  %v113_v46 = vmul.f32 %v1980_v22, %v1980_v22 }
   0xe   :  { %160 = vadd.xlane.f32.xlu0 %v159_v32  ;;  %v1568_v27 = vld [vmem:[%s2550_s2 + $0x28] ss:$16 sps:$4 sm:$0xff]   ;;  %v51_v32 = vld [vmem:[%s2548_s0 + $0x100] sm:$0xff]  ;;  %1155 = vmatprep.subr.bf16.mxu1 %v1565_v15  ;;  %v112_v37 = vmul.f32 %v1990_v24, %v1990_v24  ;;  %v1571_v44 = vld [vmem:[%s2550_s2 + $0x4c] ss:$16 sps:$4 sm:$0xff]   ;;  %v114_v47 = vmul.f32 %v1995_v25, %v1995_v25 }
   0xf   :  { %163 = vadd.xlane.f32.xlu1 %v162_v35  ;;  %v2009_v33 = vld [vmem:[%s2548_s0 + $0x108] sm:$0xff]  ;;  %v1569_v34 = vld [vmem:[%s2550_s2 + $0x44] ss:$16 sps:$4 sm:$0xff]   ;;  %v183_v35 = vadd.f32 %v108_v11, %v107_v10  ;;  %v2026_v43 = vld [vmem:[%s2548_s0 + $0x118] sm:$0xff]  ;;  %v115_v60 = vmul.f32 %v51_v32, %v51_v32 }
  0x10   :  { %963 = vmatpush1.bf16.msra.mxu0 %v1567_v26  ;;  %v1573_v52 = vld [vmem:[%s2550_s2 + $0x40] ss:$16 sps:$4 sm:$0xff]   ;;  %v1575_v54 = vld [vmem:[%s2550_s2 + $0x64] ss:$16 sps:$4 sm:$0xff]   ;;  %v1577_v55 = vld [vmem:[%s2550_s2 + $0x6c] ss:$16 sps:$4 sm:$0xff]   ;;  %v116_v61 = vmul.f32 %v2009_v33, %v2009_v33  ;;  %v192_v6 = vadd.f32 %v114_v47, %v113_v46  ;;  %v118_v10 = vmul.f32 %v2026_v43, %v2026_v43 }
  0x11   :  { %1156 = vmatpush1.bf16.msra.mxu1 %v1568_v27  ;;  %964 = vmatprep.subr.bf16.mxu0 %v1569_v34  ;;  %v2052_v62 = vld [vmem:[%s2548_s0 + $0x130] sm:$0xff]  ;;  %v2057_v63 = vld [vmem:[%s2548_s0 + $0x138] sm:$0xff]  ;;  %v2062_v3 = vld [vmem:[%s2548_s0 + $0x120] sm:$0xff] }
  0x12   :  { %166 = vadd.xlane.f32.xlu0 %v165_v42  ;;  %v2021_v42 = vld [vmem:[%s2548_s0 + $0x110] sm:$0xff]  ;;  %1157 = vmatprep.subr.bf16.mxu1 %v1571_v44  ;;  %v2067_v4 = vld [vmem:[%s2548_s0 + $0x128] sm:$0xff]  ;;  %v195_v26 = vadd.f32 %v116_v61, %v115_v60  ;;  %v119_v27 = vmul.f32 %v2062_v3, %v2062_v3  ;;  %v122_v44 = vmul.f32 %v2057_v63, %v2057_v63  ;;  %v2112_v46 = vld [vmem:[%s2548_s0 + $0x158] sm:$0xff] }
  0x13   :  { %169 = vadd.xlane.f32.xlu1 %v168_v45  ;;  %v186_v45 = vadd.f32 %v110_v21, %v109_v17  ;;  %v1579_v11 = vld [vmem:[%s2550_s2 + $0x60] ss:$16 sps:$4 sm:$0xff]   ;;  %v1580_v15 = vld [vmem:[%s2550_s2 + $0x68] ss:$16 sps:$4 sm:$0xff]   ;;  %v1583_v21 = vld [vmem:[%s2550_s2 + $0x8c] ss:$16 sps:$4 sm:$0xff]   ;;  %v120_v32 = vmul.f32 %v2067_v4, %v2067_v4 }
  0x14   :  { %965 = vmatpush1.bf16.msra.mxu0 %v1573_v52  ;;  %v59_v17 = vld [vmem:[%s2548_s0 + $0x140] sm:$0xff]  ;;  %v2095_v34 = vld [vmem:[%s2548_s0 + $0x150] sm:$0xff]  ;;  %v1586_v47 = vld [vmem:[%s2550_s2 + $0x88] ss:$16 sps:$4 sm:$0xff]  }
  0x15   :  { %966 = vmatprep.subr.bf16.mxu0 %v1575_v54  ;;  %v1587_v52 = vld [vmem:[%s2550_s2 + $0xa4] ss:$16 sps:$4 sm:$0xff]   ;;  %v1589_v54 = vld [vmem:[%s2550_s2 + $0xac] ss:$16 sps:$4 sm:$0xff]  }
  0x16   :  { %172 = vadd.xlane.f32.xlu0 %v171_v53  ;;  %v1574_v53 = vld [vmem:[%s2550_s2 + $0x48] ss:$16 sps:$4 sm:$0xff]   ;;  %v2133_v61 = vld [vmem:[%s2548_s0 + $0x170] sm:$0xff] }
  0x17   :  { %175 = vadd.xlane.f32.xlu1 %v174_v59  ;;  %v189_v59 = vadd.f32 %v112_v37, %v111_v36  ;;  %1158 = vmatpush1.bf16.msra.mxu1 %v1574_v53  ;;  %v121_v37 = vmul.f32 %v2052_v62, %v2052_v62  ;;  %v2123_v53 = vld [vmem:[%s2548_s0 + $0x160] sm:$0xff]  ;;  %2571 = vst [vmem:[#allocation7_spill] sm:$0xff] %v2133_v61 }
  0x18   :  { %1159 = vmatprep.subr.bf16.mxu1 %v1577_v55  ;;  %967 = vmatpush1.bf16.msra.mxu0 %v1579_v11  ;;  %2570 = vst [vmem:[#allocation6_spill] sm:$0xff] %v2123_v53  ;;  %v201_v55 = vadd.f32 %v120_v32, %v119_v27  ;;  %v126_v11 = vmul.f32 %v2112_v46, %v2112_v46  ;;  %v1595_v27 = vld [vmem:[%s2550_s2 + $0xcc] ss:$16 sps:$4 sm:$0xff]  }
  0x1a   :  { %178 = vadd.xlane.f32.xlu0 %v177_v9  ;;  %v117_v9 = vmul.f32 %v2021_v42, %v2021_v42 }
  0x1b   :  { %181 = vadd.xlane.f32.xlu1 %v180_v16  ;;  %v1581_v16 = vld [vmem:[%s2550_s2 + $0x84] ss:$16 sps:$4 sm:$0xff]   ;;  %1160 = vmatpush1.bf16.msra.mxu1 %v1580_v15  ;;  %v1591_v15 = vld [vmem:[%s2550_s2 + $0xa0] ss:$16 sps:$4 sm:$0xff]  }
  0x1c   :  { %v198_v36 = vadd.f32 %v118_v10, %v117_v9  ;;  %968 = vmatprep.subr.bf16.mxu0 %v1581_v16  ;;  %1161 = vmatprep.subr.bf16.mxu1 %v1583_v21  ;;  %v204_v9 = vadd.f32 %v122_v44, %v121_v37  ;;  %v125_v10 = vmul.f32 %v2095_v34, %v2095_v34  ;;  %v2150_v16 = vld [vmem:[%s2548_s0 + $0x178] sm:$0xff]  ;;  %v1593_v21 = vld [vmem:[%s2550_s2 + $0xc4] ss:$16 sps:$4 sm:$0xff]  }
  0x1d   :  { %v2173_v44 = vld [vmem:[%s2548_s0 + $0x190] sm:$0xff] }
  0x1e   :  { %184 = vadd.xlane.f32.xlu0 %v183_v35  ;;  %v2100_v35 = vld [vmem:[%s2548_s0 + $0x148] sm:$0xff]  ;;  %2573 = vst [vmem:[#allocation9_spill] sm:$0xff] %v2173_v44 }
  0x1f   :  { %187 = vadd.xlane.f32.xlu1 %v186_v45  ;;  %v1585_v45 = vld [vmem:[%s2550_s2 + $0x80] ss:$16 sps:$4 sm:$0xff]   ;;  %v124_v60 = vmul.f32 %v2100_v35, %v2100_v35  ;;  %1162 = vmatpush1.bf16.msra.mxu1 %v1586_v47  ;;  %v2183_v47 = vld [vmem:[%s2548_s0 + $0x188] sm:$0xff] }
  0x20   :  { %969 = vmatpush1.bf16.msra.mxu0 %v1585_v45  ;;  %1163 = vmatprep.subr.bf16.mxu1 %v1589_v54  ;;  %v2178_v45 = vld [vmem:[%s2548_s0 + $0x198] sm:$0xff]  ;;  %2575 = vst [vmem:[#allocation11_spill] sm:$0xff] %v2183_v47  ;;  %v129_v54 = vmul.f32 %v2133_v61, %v2133_v61  ;;  %v2213_v61 = vld [vmem:[%s2548_s0 + $0x1b0] sm:$0xff] }
  0x21   :  { %970 = vmatprep.subr.bf16.mxu0 %v1587_v52  ;;  %2574 = vst [vmem:[#allocation10_spill] sm:$0xff] %v2178_v45  ;;  %v210_v52 = vadd.f32 %v126_v11, %v125_v10  ;;  %v2201_v10 = vld [vmem:[%s2548_s0 + $0x1a0] sm:$0xff]  ;;  %v1601_v11 = vld [vmem:[%s2550_s2 + $0xec] ss:$16 sps:$4 sm:$0xff]   ;;  %2577 = vst [vmem:[#allocation13_spill] sm:$0xff] %v2213_v61 }
  0x22   :  { %190 = vadd.xlane.f32.xlu0 %v189_v59  ;;  %v123_v59 = vmul.f32 %v59_v17, %v59_v17  ;;  %v1592_v17 = vld [vmem:[%s2550_s2 + $0xa8] ss:$16 sps:$4 sm:$0xff]   ;;  %2576 = vst [vmem:[#allocation12_spill] sm:$0xff] %v2201_v10 }
  0x23   :  { %193 = vadd.xlane.f32.xlu1 %v192_v6  ;;  %v2138_v6 = vld [vmem:[%s2548_s0 + $0x168] sm:$0xff]  ;;  %1164 = vmatpush1.bf16.msra.mxu1 %v1592_v17 }
  0x24   :  { %v207_v32 = vadd.f32 %v124_v60, %v123_v59  ;;  %v128_v37 = vmul.f32 %v2138_v6, %v2138_v6  ;;  %971 = vmatpush1.bf16.msra.mxu0 %v1591_v15  ;;  %v1597_v59 = vld [vmem:[%s2550_s2 + $0xc0] ss:$16 sps:$4 sm:$0xff]   ;;  %v1598_v60 = vld [vmem:[%s2550_s2 + $0xc8] ss:$16 sps:$4 sm:$0xff]   ;;  %1165 = vmatprep.subr.bf16.mxu1 %v1595_v27 }
  0x25   :  { %972 = vmatprep.subr.bf16.mxu0 %v1593_v21  ;;  %v132_v21 = vmul.f32 %v2183_v47, %v2183_v47  ;;  %v2218_v27 = vld [vmem:[%s2548_s0 + $0x1a8] sm:$0xff] }
  0x26   :  { %196 = vadd.xlane.f32.xlu0 %v195_v26  ;;  %v2161_v26 = vld [vmem:[%s2548_s0 + $0x180] sm:$0xff]  ;;  %2578 = vst [vmem:[#allocation14_spill] sm:$0xff] %v2218_v27  ;;  %v1610_v47 = vld [vmem:[%s2550_s2 + $0x108] ss:$16 sps:$4 sm:$0xff]  }
  0x27   :  { %199 = vadd.xlane.f32.xlu1 %v198_v36  ;;  %2572 = vst [vmem:[#allocation8_spill] sm:$0xff] %v2161_v26  ;;  %v127_v36 = vmul.f32 %v2123_v53, %v2123_v53  ;;  %v131_v17 = vmul.f32 %v2161_v26, %v2161_v26  ;;  %v2230_v26 = vld [vmem:[%s2548_s0 + $0x1b8] sm:$0xff]  ;;  %1166 = vmatpush1.bf16.msra.mxu1 %v1598_v60 }
  0x28   :  { %973 = vmatpush1.bf16.msra.mxu0 %v1597_v59  ;;  %2579 = vst [vmem:[#allocation15_spill] sm:$0xff] %v2230_v26  ;;  %1167 = vmatprep.subr.bf16.mxu1 %v1601_v11  ;;  %v1607_v59 = vld [vmem:[%s2550_s2 + $0x10c] ss:$16 sps:$4 sm:$0xff]  }
  0x29   :  { %v213_v15 = vadd.f32 %v128_v37, %v127_v36  ;;  %v134_v36 = vmul.f32 %v2178_v45, %v2178_v45  ;;  %v1603_v37 = vld [vmem:[%s2550_s2 + $0xe0] ss:$16 sps:$4 sm:$0xff]   ;;  %v219_v60 = vadd.f32 %v132_v21, %v131_v17  ;;  %v2258_v11 = vld [vmem:[%s2548_s0 + $0x1d8] sm:$0xff]  ;;  %v137_v21 = vmul.f32 %v2213_v61, %v2213_v61 }
  0x2a   :  { %202 = vadd.xlane.f32.xlu0 %v201_v55  ;;  %v130_v55 = vmul.f32 %v2150_v16, %v2150_v16  ;;  %v2253_v45 = vld [vmem:[%s2548_s0 + $0x1d0] sm:$0xff]  ;;  %2582 = vst [vmem:[#allocation18_spill] sm:$0xff] %v2258_v11 }
  0x2b   :  { %205 = vadd.xlane.f32.xlu1 %v204_v9  ;;  %v1599_v9 = vld [vmem:[%s2550_s2 + $0xe4] ss:$16 sps:$4 sm:$0xff]   ;;  %2581 = vst [vmem:[#allocation17_spill] sm:$0xff] %v2253_v45 }
  0x2c   :  { %v216_v53 = vadd.f32 %v130_v55, %v129_v54  ;;  %974 = vmatprep.subr.bf16.mxu0 %v1599_v9  ;;  %v1605_v54 = vld [vmem:[%s2550_s2 + $0x104] ss:$16 sps:$4 sm:$0xff]   ;;  %v135_v9 = vmul.f32 %v2201_v10, %v2201_v10  ;;  %v138_v10 = vmul.f32 %v2230_v26, %v2230_v26 }
  0x2d   :  { %v2241_v55 = vld [vmem:[%s2548_s0 + $0x1c0] sm:$0xff]  ;;  %975 = vmatpush1.bf16.msra.mxu0 %v1603_v37  ;;  %v2293_v61 = vld [vmem:[%s2548_s0 + $0x1f0] sm:$0xff] }
  0x2e   :  { %208 = vadd.xlane.f32.xlu0 %v207_v32  ;;  %v133_v32 = vmul.f32 %v2173_v44, %v2173_v44  ;;  %2580 = vst [vmem:[#allocation16_spill] sm:$0xff] %v2241_v55  ;;  %v136_v44 = vmul.f32 %v2218_v27, %v2218_v27  ;;  %v1609_v27 = vld [vmem:[%s2550_s2 + $0x100] ss:$16 sps:$4 sm:$0xff]   ;;  %976 = vmatprep.subr.bf16.mxu0 %v1605_v54  ;;  %2585 = vst [vmem:[#allocation21_spill] sm:$0xff] %v2293_v61 }
  0x2f   :  { %211 = vadd.xlane.f32.xlu1 %v210_v52  ;;  %v1604_v52 = vld [vmem:[%s2550_s2 + $0xe8] ss:$16 sps:$4 sm:$0xff]   ;;  %v228_v26 = vadd.f32 %v138_v10, %v137_v21 }
  0x30   :  { %v222_v17 = vadd.f32 %v134_v36, %v133_v32  ;;  %1168 = vmatpush1.bf16.msra.mxu1 %v1604_v52  ;;  %v2281_v32 = vld [vmem:[%s2548_s0 + $0x1e0] sm:$0xff]  ;;  %v1613_v36 = vld [vmem:[%s2550_s2 + $0x12c] ss:$16 sps:$4 sm:$0xff]   ;;  %v225_v37 = vadd.f32 %v136_v44, %v135_v9  ;;  %v139_v52 = vmul.f32 %v2241_v55, %v2241_v55  ;;  %v141_v44 = vmul.f32 %v2253_v45, %v2253_v45  ;;  %v1616_v10 = vld [vmem:[%s2550_s2 + $0x128] ss:$16 sps:$4 sm:$0xff]  }
  0x31   :  { %2584 = vst [vmem:[#allocation20_spill] sm:$0xff] %v2281_v32  ;;  %1169 = vmatprep.subr.bf16.mxu1 %v1607_v59  ;;  %v2298_v59 = vld [vmem:[%s2548_s0 + $0x1e8] sm:$0xff]  ;;  %977 = vmatpush1.bf16.msra.mxu0 %v1609_v27  ;;  %v1615_v9 = vld [vmem:[%s2550_s2 + $0x120] ss:$16 sps:$4 sm:$0xff]   ;;  %v2310_v55 = vld [vmem:[%s2548_s0 + $0x1f8] sm:$0xff]  ;;  %v143_v45 = vmul.f32 %v2281_v32, %v2281_v32 }
  0x32   :  { %214 = vadd.xlane.f32.xlu0 %v213_v15  ;;  %v2263_v15 = vld [vmem:[%s2548_s0 + $0x1c8] sm:$0xff]  ;;  %2586 = vst [vmem:[#allocation22_spill] sm:$0xff] %v2298_v59  ;;  %2587 = vst [vmem:[#allocation23_spill] sm:$0xff] %v2310_v55 }
  0x33   :  { %2583 = vst [vmem:[#allocation19_spill] sm:$0xff] %v2263_v15  ;;  %217 = vadd.xlane.f32.xlu1 %v216_v53  ;;  %v1611_v53 = vld [vmem:[%s2550_s2 + $0x124] ss:$16 sps:$4 sm:$0xff]   ;;  %v140_v54 = vmul.f32 %v2263_v15, %v2263_v15  ;;  %v1619_v27 = vld [vmem:[%s2550_s2 + $0x14c] ss:$16 sps:$4 sm:$0xff]  }
  0x34   :  { %1170 = vmatpush1.bf16.msra.mxu1 %v1610_v47  ;;  %978 = vmatprep.subr.bf16.mxu0 %v1611_v53  ;;  %v144_v47 = vmul.f32 %v2298_v59, %v2298_v59 }
  0x35   :  { %1171 = vmatprep.subr.bf16.mxu1 %v1613_v36  ;;  %v231_v21 = vadd.f32 %v140_v54, %v139_v52  ;;  %v146_v36 = vmul.f32 %v2310_v55, %v2310_v55  ;;  %979 = vmatpush1.bf16.msra.mxu0 %v1615_v9  ;;  %v1622_v52 = vld [vmem:[%s2550_s2 + $0x148] ss:$16 sps:$4 sm:$0xff]   ;;  %v1625_v54 = vld [vmem:[%s2550_s2 + $0x16c] ss:$16 sps:$4 sm:$0xff]   ;;  %v1627_v9 = vld [vmem:[%s2550_s2 + $0x160] ss:$16 sps:$4 sm:$0xff]  }
  0x36   :  { %220 = vadd.xlane.f32.xlu0 %v219_v60  ;;  %v142_v60 = vmul.f32 %v2258_v11, %v2258_v11  ;;  %v145_v11 = vmul.f32 %v2293_v61, %v2293_v61 }
  0x37   :  { %223 = vadd.xlane.f32.xlu1 %v222_v17  ;;  %v1617_v17 = vld [vmem:[%s2550_s2 + $0x144] ss:$16 sps:$4 sm:$0xff]  }
  0x38   :  { %v234_v53 = vadd.f32 %v142_v60, %v141_v44  ;;  %1172 = vmatpush1.bf16.msra.mxu1 %v1616_v10  ;;  %980 = vmatprep.subr.bf16.mxu0 %v1617_v17  ;;  %v237_v44 = vadd.f32 %v144_v47, %v143_v45  ;;  %v240_v60 = vadd.f32 %v146_v36, %v145_v11  ;;  %v1628_v10 = vld [vmem:[%s2550_s2 + $0x168] ss:$16 sps:$4 sm:$0xff]   ;;  %v1629_v17 = vld [vmem:[%s2550_s2 + $0x184] ss:$16 sps:$4 sm:$0xff]   ;;  %v1631_v45 = vld [vmem:[%s2550_s2 + $0x18c] ss:$16 sps:$4 sm:$0xff]  }
  0x39   :  { %1173 = vmatprep.subr.bf16.mxu1 %v1619_v27 }
  0x3a   :  { %226 = vadd.xlane.f32.xlu0 %v225_v37  ;;  %v1621_v37 = vld [vmem:[%s2550_s2 + $0x140] ss:$16 sps:$4 sm:$0xff]  }
  0x3b   :  { %229 = vadd.xlane.f32.xlu1 %v228_v26  ;;  %v1623_v26 = vld [vmem:[%s2550_s2 + $0x164] ss:$16 sps:$4 sm:$0xff]   ;;  %981 = vmatpush1.bf16.msra.mxu0 %v1621_v37 }
  0x3c   :  { %1174 = vmatpush1.bf16.msra.mxu1 %v1622_v52  ;;  %982 = vmatprep.subr.bf16.mxu0 %v1623_v26 }
  0x3d   :  { %1175 = vmatprep.subr.bf16.mxu1 %v1625_v54 }
  0x3e   :  { %232 = vadd.xlane.f32.xlu0 %v231_v21 }
  0x3f   :  { %235 = vadd.xlane.f32.xlu1 %v234_v53 }
  0x40   :  { %8 = vsyncpa [#allocation4], 0  ;;  %983 = vmatpush1.bf16.msra.mxu0 %v1627_v9  ;;  %v1633_v11 = vld [vmem:[%s2550_s2 + $0x180] ss:$16 sps:$4 sm:$0xff]   ;;  %1176 = vmatpush1.bf16.msra.mxu1 %v1628_v10  ;;  %v1634_v27 = vld [vmem:[%s2550_s2 + $0x188] ss:$16 sps:$4 sm:$0xff]  }
  0x41   :  { %984 = vmatprep.subr.bf16.mxu0 %v1629_v17  ;;  %v1635_v21 = vld [vmem:[%s2550_s2 + $0x1a4] ss:$16 sps:$4 sm:$0xff]   ;;  %1177 = vmatprep.subr.bf16.mxu1 %v1631_v45  ;;  %v1637_v47 = vld [vmem:[%s2550_s2 + $0x1ac] ss:$16 sps:$4 sm:$0xff]   ;;  %v1639_v53 = vld [vmem:[%s2550_s2 + $0x1a0] ss:$16 sps:$4 sm:$0xff]  }
  0x42   :  { %238 = vadd.xlane.f32.xlu0 %v237_v44  ;;  %v1640_v36 = vld [vmem:[%s2550_s2 + $0x1a8] ss:$16 sps:$4 sm:$0xff]   ;;  %v1641_v37 = vld [vmem:[%s2550_s2 + $0x1c4] ss:$16 sps:$4 sm:$0xff]   ;;  %v1643_v52 = vld [vmem:[%s2550_s2 + $0x1cc] ss:$16 sps:$4 sm:$0xff]  }
  0x43   :  { %241 = vadd.xlane.f32.xlu1 %v240_v60  ;;  %v1645_v26 = vld [vmem:[%s2550_s2 + $0x1c0] ss:$16 sps:$4 sm:$0xff]   ;;  %v1646_v54 = vld [vmem:[%s2550_s2 + $0x1c8] ss:$16 sps:$4 sm:$0xff]   ;;  %v1647_v44 = vld [vmem:[%s2550_s2 + $0x1e4] ss:$16 sps:$4 sm:$0xff]  }
  0x44   :  { %985 = vmatpush1.bf16.msra.mxu0 %v1633_v11  ;;  %1178 = vmatpush1.bf16.msra.mxu1 %v1634_v27  ;;  %v1649_v60 = vld [vmem:[%s2550_s2 + $0x1ec] ss:$16 sps:$4 sm:$0xff]   ;;  %v1651_v9 = vld [vmem:[%s2550_s2 + $0x1e0] ss:$16 sps:$4 sm:$0xff]   ;;  %v1652_v10 = vld [vmem:[%s2550_s2 + $0x1e8] ss:$16 sps:$4 sm:$0xff]  }
  0x45   :  { %986 = vmatprep.subr.bf16.mxu0 %v1635_v21  ;;  %1179 = vmatprep.subr.bf16.mxu1 %v1637_v47 }
  0x48   :  { %987 = vmatpush1.bf16.msra.mxu0 %v1639_v53  ;;  %1180 = vmatpush1.bf16.msra.mxu1 %v1640_v36 }
  0x49   :  { %988 = vmatprep.subr.bf16.mxu0 %v1641_v37  ;;  %1181 = vmatprep.subr.bf16.mxu1 %v1643_v52  ;;  %v406_v52 = vlaneseq }
  0x4c   :  { %989 = vmatpush1.bf16.msra.mxu0 %v1645_v26  ;;  %1182 = vmatpush1.bf16.msra.mxu1 %v1646_v54 }
  0x4d   :  { %990 = vmatprep.subr.bf16.mxu0 %v1647_v44  ;;  %1183 = vmatprep.subr.bf16.mxu1 %v1649_v60 }
  0x50   :  { %991 = vmatpush1.bf16.msra.mxu0 %v1651_v9  ;;  %1184 = vmatpush1.bf16.msra.mxu1 %v1652_v10  ;;  %v407_v10 = vshrl.u32 %v406_v52, 7 }
  0x93   :  { %v149_v17 = vpop.xlane.xlu0 %148 }
  0x94   :  { %v244_v45 = vmul.f32 0.00390625, %v149_v17  ;;  %v155_v11 = vpop.xlane.xlu1 %154 }
  0x95   :  { %v246_v27 = vmul.f32 0.00390625, %v155_v11 }
  0x96   :  { %v276_v21 = vadd.f32 1e-06, %v244_v45 }
  0x97   :  { %v278_v47 = vadd.f32 1e-06, %v246_v27  ;;  %v152_v53 = vpop.xlane.xlu0 %151  ;;  %v412_v27 = vsub.s32 1, %v407_v10 }
  0x98   :  { %1653 = vrsqrt.f32 %v276_v21  ;;  %v245_v36 = vmul.f32 0.00390625, %v152_v53  ;;  %v158_v37 = vpop.xlane.xlu1 %157 }
  0x99   :  { %1655 = vrsqrt.f32 %v278_v47  ;;  %v247_v26 = vmul.f32 0.00390625, %v158_v37  ;;  %v404_v47 = vld [vmem:[%s2549_s1] sm:$0x3] }
  0x9a   :  { %v277_v54 = vadd.f32 1e-06, %v245_v36  ;;  %v408_v36 = vsub.s32 0, %v407_v10 }
  0x9b   :  { %v279_v44 = vadd.f32 1e-06, %v247_v26  ;;  %v161_v61 = vpop.xlane.xlu0 %160 }
  0x9c   :  { %1657 = vrsqrt.f32 %v277_v54  ;;  %v164_v60 = vpop.xlane.xlu1 %163  ;;  %v248_v9 = vmul.f32 0.00390625, %v161_v61 }
  0x9d   :  { %1659 = vrsqrt.f32 %v279_v44  ;;  %v249_v17 = vmul.f32 0.00390625, %v164_v60 }
  0x9e   :  { %v280_v32 = vadd.f32 1e-06, %v248_v9  ;;  %v2399_v9 = vrot.slane %v404_v47, %v412_v27 }
  0x9f   :  { %v281_v11 = vadd.f32 1e-06, %v249_v17  ;;  %v167_v45 = vpop.xlane.xlu0 %166 }
  0xa0   :  { %1661 = vrsqrt.f32 %v280_v32  ;;  %v170_v21 = vpop.xlane.xlu1 %169  ;;  %v250_v53 = vmul.f32 0.00390625, %v167_v45  ;;  %v2402_v45 = vrot.slane %v404_v47, %v408_v36 }
  0xa1   :  { %1663 = vrsqrt.f32 %v281_v11  ;;  %v251_v37 = vmul.f32 0.00390625, %v170_v21 }
  0xa2   :  { %v1654_v26 = vpop.eup %1653  ;;  %v282_v54 = vadd.f32 1e-06, %v250_v53 }
  0xa3   :  { %v1656_v61 = vpop.eup %1655  ;;  %v283_v52 = vadd.f32 1e-06, %v251_v37  ;;  %v173_v44 = vpop.xlane.xlu0 %172  ;;  %v341_v60 = vmul.f32 %v1654_v26, %v1775_v1  ;;  %v340_v11 = vmul.f32 %v1654_v26, %v1770_v0 }
  0xa4   :  { %v345_v32 = vmul.f32 %v1656_v61, %v1789_v5  ;;  %v176_v17 = vpop.xlane.xlu1 %175  ;;  %1665 = vrsqrt.f32 %v282_v54  ;;  %v252_v55 = vmul.f32 0.00390625, %v173_v44 }
  0xa5   :  { %1667 = vrsqrt.f32 %v283_v52  ;;  %v253_v21 = vmul.f32 0.00390625, %v176_v17  ;;  %v417_v1 = vmul.f32 %v2399_v9, %v341_v60  ;;  %v416_v0 = vmul.f32 %v2402_v45, %v340_v11 }
  0xa6   :  { %v1658_v10 = vpop.eup %1657  ;;  %v421_v5 = vmul.f32 %v2399_v9, %v345_v32  ;;  %v284_v26 = vadd.f32 1e-06, %v252_v55  ;;  %v344_v32 = vmul.f32 %v1656_v61, %v1780_v2 }
  0xa7   :  { %v1660_v53 = vpop.eup %1659  ;;  %v343_v37 = vmul.f32 %v1658_v10, %v1801_v8  ;;  %v342_v59 = vmul.f32 %v1658_v10, %v1796_v7  ;;  %v285_v44 = vadd.f32 1e-06, %v253_v21  ;;  %v179_v8 = vpop.xlane.xlu0 %178 }
  0xa8   :  { %v347_v27 = vmul.f32 %v1660_v53, %v1817_v13  ;;  %v182_v13 = vpop.xlane.xlu1 %181  ;;  %1669 = vrsqrt.f32 %v284_v26  ;;  %v254_v55 = vmul.f32 0.00390625, %v179_v8 }
  0xa9   :  { %v419_v47 = vmul.f32 %v2399_v9, %v343_v37  ;;  %v418_v36 = vmul.f32 %v2402_v45, %v342_v59  ;;  %v346_v37 = vmul.f32 %v1660_v53, %v1812_v12  ;;  %1671 = vrsqrt.f32 %v285_v44 }
  0xaa   :  { %v1662_v54 = vpop.eup %1661  ;;  %v423_v52 = vmul.f32 %v2399_v9, %v347_v27  ;;  %v255_v59 = vmul.f32 0.00390625, %v182_v13  ;;  %v420_v12 = vmul.f32 %v2402_v45, %v344_v32  ;;  %v286_v61 = vadd.f32 1e-06, %v254_v55 }
  0xab   :  { %v1664_v17 = vpop.eup %1663  ;;  %v481_v7 = vpack.c.bf16 %v419_v47, %v417_v1  ;;  %v480_v10 = vpack.c.bf16 %v418_v36, %v416_v0  ;;  %v349_v60 = vmul.f32 %v1662_v54, %v1841_v20  ;;  %v348_v53 = vmul.f32 %v1662_v54, %v1836_v19  ;;  %v185_v26 = vpop.xlane.xlu0 %184 }
  0xac   :  { %v483_v15 = vpack.c.bf16 %v423_v52, %v421_v5  ;;  %v351_v11 = vmul.f32 %v1664_v17, %v1831_v18  ;;  %v422_v18 = vmul.f32 %v2402_v45, %v346_v37  ;;  %v350_v27 = vmul.f32 %v1664_v17, %v1822_v14  ;;  %v188_v47 = vpop.xlane.xlu1 %187 }
  0xad   :  { %992 = vmatprep.mubr.bf16.mxu0 %v481_v7  ;;  %1185 = vmatprep.mubr.bf16.mxu1 %v481_v7  ;;  %v425_v20 = vmul.f32 %v2399_v9, %v349_v60  ;;  %v287_v5 = vadd.f32 1e-06, %v255_v59  ;;  %1673 = vrsqrt.f32 %v286_v61  ;;  %v257_v44 = vmul.f32 0.00390625, %v188_v47 }
  0xae   :  { %993 = vmatmul.mubr.bf16.vlgmr.msra.gmra.mrb[0].mxu0 %v480_v10  ;;  %1186 = vmatmul.mubr.bf16.vlgmr.msra.gmra.mrb[0].mxu1 %v480_v10  ;;  %v1666_v21 = vpop.eup %1665  ;;  %v427_v1 = vmul.f32 %v2399_v9, %v351_v11  ;;  %v482_v52 = vpack.c.bf16 %v422_v18, %v420_v12  ;;  %v424_v8 = vmul.f32 %v2402_v45, %v348_v53  ;;  %v256_v19 = vmul.f32 0.00390625, %v185_v26 }
  0xaf   :  { %1002 = vmatprep.mubr.bf16.mxu0 %v483_v15  ;;  %1195 = vmatprep.mubr.bf16.mxu1 %v483_v15  ;;  %v1668_v2 = vpop.eup %1667  ;;  %v353_v36 = vmul.f32 %v1666_v21, %v1859_v29  ;;  %v426_v7 = vmul.f32 %v2402_v45, %v350_v27  ;;  %1675 = vrsqrt.f32 %v287_v5  ;;  %v289_v17 = vadd.f32 1e-06, %v257_v44 }
  0xb0   :  { %v485_v0 = vpack.c.bf16 %v427_v1, %v425_v20  ;;  %v355_v15 = vmul.f32 %v1668_v2, %v1869_v31  ;;  %v352_v60 = vmul.f32 %v1666_v21, %v1854_v28  ;;  %v354_v13 = vmul.f32 %v1668_v2, %v1864_v30  ;;  %v194_v37 = vpop.xlane.xlu1 %193  ;;  %v191_v20 = vpop.xlane.xlu0 %190 }
  0xb1   :  { %v429_v54 = vmul.f32 %v2399_v9, %v353_v36  ;;  %v484_v10 = vpack.c.bf16 %v426_v7, %v424_v8  ;;  %v288_v32 = vadd.f32 1e-06, %v256_v19  ;;  %1677 = vrsqrt.f32 %v289_v17 }
  0xb2   :  { %v1670_v14 = vpop.eup %1669  ;;  %v431_v29 = vmul.f32 %v2399_v9, %v355_v15  ;;  %v259_v1 = vmul.f32 0.00390625, %v194_v37  ;;  %v428_v12 = vmul.f32 %v2402_v45, %v352_v60  ;;  %v430_v18 = vmul.f32 %v2402_v45, %v354_v13 }
  0xb3   :  { %v1672_v31 = vpop.eup %1671  ;;  %v357_v55 = vmul.f32 %v1670_v14, %v1887_v39  ;;  %1679 = vrsqrt.f32 %v288_v32  ;;  %v258_v28 = vmul.f32 0.00390625, %v191_v20  ;;  %v356_v53 = vmul.f32 %v1670_v14, %v1882_v38 }
  0xb4   :  { %v487_v11 = vpack.c.bf16 %v431_v29, %v429_v54  ;;  %v359_v59 = vmul.f32 %v1672_v31, %v1897_v41  ;;  %v291_v41 = vadd.f32 1e-06, %v259_v1  ;;  %v486_v61 = vpack.c.bf16 %v430_v18, %v428_v12  ;;  %v200_v47 = vpop.xlane.xlu1 %199  ;;  %v197_v26 = vpop.xlane.xlu0 %196  ;;  %v1717_v12 = vld [vmem:[%s2548_s0 + $0xc0] sm:$0xff] }
  0xb5   :  { %v433_v30 = vmul.f32 %v2399_v9, %v357_v55  ;;  %v358_v27 = vmul.f32 %v1672_v31, %v1892_v40  ;;  %v290_v5 = vadd.f32 1e-06, %v258_v28  ;;  %v432_v44 = vmul.f32 %v2402_v45, %v356_v53 }
  0xb6   :  { %1003 = vmatmul.mubr.bf16.gmra.mrb[4].mxu0 %v482_v52  ;;  %1196 = vmatmul.mubr.bf16.gmra.mrb[4].mxu1 %v482_v52  ;;  %v435_v39 = vmul.f32 %v2399_v9, %v359_v59  ;;  %1681 = vrsqrt.f32 %v291_v41  ;;  %v261_v52 = vmul.f32 0.00390625, %v200_v47  ;;  %v260_v38 = vmul.f32 0.00390625, %v197_v26 }
  0xb7   :  { %1012 = vmatprep.mubr.bf16.mxu0 %v485_v0  ;;  %1205 = vmatprep.mubr.bf16.mxu1 %v485_v0  ;;  %v1674_v21 = vpop.eup %1673  ;;  %v434_v8 = vmul.f32 %v2402_v45, %v358_v27  ;;  %1683 = vrsqrt.f32 %v290_v5 }
  0xb8   :  { %v489_v0 = vpack.c.bf16 %v435_v39, %v433_v30  ;;  %v361_v36 = vmul.f32 %v1674_v21, %v1915_v49  ;;  %v360_v54 = vmul.f32 %v1674_v21, %v1910_v48  ;;  %v292_v31 = vadd.f32 1e-06, %v260_v38  ;;  %v206_v17 = vpop.xlane.xlu1 %205  ;;  %v203_v32 = vpop.xlane.xlu0 %202 }
  0xb9   :  { %v1676_v2 = vpop.eup %1675  ;;  %v488_v14 = vpack.c.bf16 %v434_v8, %v432_v44  ;;  %v263_v37 = vmul.f32 0.00390625, %v206_v17  ;;  %v262_v48 = vmul.f32 0.00390625, %v203_v32  ;;  %v1718_v17 = vld [vmem:[%s2548_s0 + $0x100] sm:$0xff] }
  0xba   :  { %v363_v15 = vmul.f32 %v1676_v2, %v1925_v51  ;;  %v437_v40 = vmul.f32 %v2399_v9, %v361_v36  ;;  %v293_v51 = vadd.f32 1e-06, %v261_v52  ;;  %v362_v29 = vmul.f32 %v1676_v2, %v1920_v50 }
  0xbb   :  { %v1678_v7 = vpop.eup %1677  ;;  %v294_v21 = vadd.f32 1e-06, %v262_v48 }
  0xbc   :  { %v439_v49 = vmul.f32 %v2399_v9, %v363_v15  ;;  %v367_v13 = vmul.f32 %v1678_v7, %v1942_v57  ;;  %1685 = vrsqrt.f32 %v293_v51  ;;  %v438_v55 = vmul.f32 %v2402_v45, %v362_v29  ;;  %v209_v30 = vpop.xlane.xlu0 %208 }
  0xbd   :  { %v1680_v19 = vpop.eup %1679  ;;  %1687 = vrsqrt.f32 %v292_v31  ;;  %v295_v57 = vadd.f32 1e-06, %v263_v37  ;;  %v366_v28 = vmul.f32 %v1678_v7, %v1937_v56  ;;  %v264_v53 = vmul.f32 0.00390625, %v209_v30 }
  0xbe   :  { %1013 = vmatmul.mubr.bf16.gmra.mrb[8].mxu0 %v484_v10  ;;  %1206 = vmatmul.mubr.bf16.gmra.mrb[8].mxu1 %v484_v10  ;;  %v491_v10 = vpack.c.bf16 %v439_v49, %v437_v40  ;;  %v365_v60 = vmul.f32 %v1680_v19, %v1947_v58  ;;  %v443_v58 = vmul.f32 %v2399_v9, %v367_v13 }
  0xbf   :  { %1022 = vmatprep.mubr.bf16.mxu0 %v487_v11  ;;  %1215 = vmatprep.mubr.bf16.mxu1 %v487_v11  ;;  %v436_v11 = vmul.f32 %v2402_v45, %v360_v54  ;;  %v364_v18 = vmul.f32 %v1717_v12, %v1680_v19  ;;  %1689 = vrsqrt.f32 %v295_v57  ;;  %v442_v5 = vmul.f32 %v2402_v45, %v366_v28 }
  0xc0   :  { %v1682_v59 = vpop.eup %1681  ;;  %v441_v50 = vmul.f32 %v2399_v9, %v365_v60  ;;  %1691 = vrsqrt.f32 %v294_v21  ;;  %v215_v8 = vpop.xlane.xlu0 %214 }
  0xc1   :  { %v1684_v20 = vpop.eup %1683  ;;  %v490_v1 = vpack.c.bf16 %v438_v55, %v436_v11  ;;  %v371_v41 = vmul.f32 %v1682_v59, %v1995_v25  ;;  %v440_v27 = vmul.f32 %v2402_v45, %v364_v18  ;;  %v296_v25 = vadd.f32 1e-06, %v264_v53 }
  0xc2   :  { %v493_v39 = vpack.c.bf16 %v443_v58, %v441_v50  ;;  %v369_v2 = vmul.f32 %v1684_v20, %v1990_v24  ;;  %v368_v26 = vmul.f32 %v1684_v20, %v1985_v23  ;;  %v370_v52 = vmul.f32 %v1682_v59, %v1980_v22 }
  0xc3   :  { %v447_v24 = vmul.f32 %v2399_v9, %v371_v41  ;;  %v492_v15 = vpack.c.bf16 %v442_v5, %v440_v27  ;;  %1693 = vrsqrt.f32 %v296_v25  ;;  %v266_v19 = vmul.f32 0.00390625, %v215_v8 }
  0xc4   :  { %v445_v56 = vmul.f32 %v2399_v9, %v369_v2  ;;  %v444_v51 = vmul.f32 %v2402_v45, %v368_v26  ;;  %v221_v48 = vpop.xlane.xlu0 %220 }
  0xc5   :  { %v268_v20 = vmul.f32 0.00390625, %v221_v48 }
  0xc6   :  { %1023 = vmatmul.mubr.bf16.gmra.mrb[12].mxu0 %v486_v61  ;;  %1216 = vmatmul.mubr.bf16.gmra.mrb[12].mxu1 %v486_v61  ;;  %v212_v61 = vpop.xlane.xlu1 %211  ;;  %v495_v38 = vpack.c.bf16 %v447_v24, %v445_v56  ;;  %v1719_v24 = vld [vmem:[%s2548_s0 + $0x140] sm:$0xff]  ;;  %s1744_s0 = smov [#allocation3]  }
  0xc7   :  { %1032 = vmatprep.mubr.bf16.mxu0 %v489_v0  ;;  %1225 = vmatprep.mubr.bf16.mxu1 %v489_v0  ;;  %v265_v47 = vmul.f32 0.00390625, %v212_v61  ;;  %v1686_v0 = vpop.eup %1685  ;;  %v300_v21 = vadd.f32 1e-06, %v268_v20  ;;  %s1479_s4 = sshll.u32 %s1744_s0, 4  ;;  %s1480_s4 = int_to_ptr.vmem [resolvable:$true] %s1479_s4 }
  0xc8   :  { %v1688_v36 = vpop.eup %1687  ;;  %v375_v40 = vmul.f32 %v1686_v0, %v2026_v43  ;;  %v298_v43 = vadd.f32 1e-06, %v266_v19  ;;  %v374_v60 = vmul.f32 %v1686_v0, %v2021_v42  ;;  %v227_v61 = vpop.xlane.xlu0 %226  ;;  %s1720_s5 = scalar_lea.vmem %s1480_s4, 16384  ;;  %p1725_p1 = scmp.lt.s32.totalorder %s1480_s4, %s1480_s4 }
  0xc9   :  { %v297_v44 = vadd.f32 1e-06, %v265_v47  ;;  %v373_v7 = vmul.f32 %v1688_v36, %v2009_v33  ;;  %v1690_v54 = vpop.eup %1689  ;;  %p1721_p0 = scmp.ne.s32.totalorder %s1480_s4, %s1720_s5  ;;  %p1726_p2 = scmp.lt.s32.totalorder %s1720_s5, %s1720_s5 }
  0xca   :  { %v218_v49 = vpop.xlane.xlu1 %217  ;;  %v451_v33 = vmul.f32 %v2399_v9, %v375_v40  ;;  %v1692_v29 = vpop.eup %1691  ;;  %v379_v55 = vmul.f32 %v1690_v54, %v2057_v63  ;;  %v450_v58 = vmul.f32 %v2402_v45, %v374_v60  ;;  %v378_v28 = vmul.f32 %v1690_v54, %v2052_v62  ;;  %v2588_v54 = vld [vmem:[#allocation6_spill] sm:$0xff] }
  0xcb   :  { %1695 = vrsqrt.f32 %v297_v44  ;;  %v267_v23 = vmul.f32 0.00390625, %v218_v49  ;;  %v449_v22 = vmul.f32 %v2399_v9, %v373_v7  ;;  %v377_v11 = vmul.f32 %v1692_v29, %v2067_v4  ;;  %p1727_p3 = por %p1726_p2, %p1725_p1 }
  0xcc   :  { %1697 = vrsqrt.f32 %v298_v43  ;;  %v455_v4 = vmul.f32 %v2399_v9, %v379_v55  ;;  %v376_v18 = vmul.f32 %v1692_v29, %v2062_v3  ;;  %v454_v5 = vmul.f32 %v2402_v45, %v378_v28 }
  0xcd   :  { %v299_v13 = vadd.f32 1e-06, %v267_v23  ;;  %v497_v37 = vpack.c.bf16 %v451_v33, %v449_v22  ;;  %v1694_v57 = vpop.eup %1693  ;;  %v453_v42 = vmul.f32 %v2399_v9, %v377_v11  ;;  %v270_v3 = vmul.f32 0.00390625, %v227_v61  ;;  %v2589_v33 = vld [vmem:[#allocation7_spill] sm:$0xff]  ;;  %p1728_p4 = pnand %p1727_p3, %p1721_p0 }
  0xce   :  { %1033 = vmatmul.mubr.bf16.gmra.mrb[16].mxu0 %v488_v14  ;;  %1226 = vmatmul.mubr.bf16.gmra.mrb[16].mxu1 %v488_v14  ;;  %v446_v14 = vmul.f32 %v2402_v45, %v370_v52  ;;  %v224_v32 = vpop.xlane.xlu1 %223  ;;  %v381_v2 = vmul.f32 %v1694_v57, %v2100_v35  ;;  %v452_v27 = vmul.f32 %v2402_v45, %v376_v18 }
  0xcf   :  { %1042 = vmatprep.mubr.bf16.mxu0 %v491_v10  ;;  %1235 = vmatprep.mubr.bf16.mxu1 %v491_v10  ;;  %v372_v10 = vmul.f32 %v1718_v17, %v1688_v36  ;;  %v269_v59 = vmul.f32 0.00390625, %v224_v32  ;;  %1699 = vrsqrt.f32 %v299_v13  ;;  %v380_v36 = vmul.f32 %v1719_v24, %v1694_v57  ;;  %v2591_v13 = vld [vmem:[#allocation10_spill] sm:$0xff] }
  0xd0   :  { %v494_v31 = vpack.c.bf16 %v446_v14, %v444_v51  ;;  %v457_v62 = vmul.f32 %v2399_v9, %v381_v2  ;;  %v498_v56 = vpack.c.bf16 %v454_v5, %v452_v27  ;;  %v2595_v2 = vld [vmem:[#allocation15_spill] sm:$0xff] }
  0xd1   :  { %v448_v50 = vmul.f32 %v2402_v45, %v372_v10  ;;  %v301_v63 = vadd.f32 1e-06, %v269_v59  ;;  %v456_v40 = vmul.f32 %v2402_v45, %v380_v36  ;;  %v2590_v10 = vld [vmem:[#allocation11_spill] sm:$0xff] }
  0xd2   :  { %v230_v30 = vpop.xlane.xlu1 %229  ;;  %v2598_v36 = vld [vmem:[#allocation19_spill] sm:$0xff] }
  0xd3   :  { %v496_v12 = vpack.c.bf16 %v450_v58, %v448_v50  ;;  %1701 = vrsqrt.f32 %v301_v63  ;;  %v271_v53 = vmul.f32 0.00390625, %v230_v30  ;;  %v2594_v30 = vld [vmem:[#allocation14_spill] sm:$0xff] }
  0xd4   :  { %1703 = vrsqrt.f32 %v300_v21 }
  0xd6   :  { %1043 = vmatmul.mubr.bf16.gmra.mrb[20].mxu0 %v490_v1  ;;  %1236 = vmatmul.mubr.bf16.gmra.mrb[20].mxu1 %v490_v1  ;;  %v1696_v1 = vpop.eup %1695  ;;  %v236_v26 = vpop.xlane.xlu1 %235 }
  0xd7   :  { %1052 = vmatprep.mubr.bf16.mxu0 %v493_v39  ;;  %1245 = vmatprep.mubr.bf16.mxu1 %v493_v39  ;;  %v499_v39 = vpack.c.bf16 %v455_v4, %v453_v42  ;;  %v383_v41 = vmul.f32 %v1696_v1, %v2112_v46  ;;  %v1698_v47 = vpop.eup %1697  ;;  %v303_v46 = vadd.f32 1e-06, %v271_v53  ;;  %v382_v25 = vmul.f32 %v1696_v1, %v2095_v34  ;;  %v2592_v1 = vld [vmem:[#allocation8_spill] sm:$0xff] }
  0xd8   :  { %v385_v44 = vmul.f32 %v1698_v47, %v2138_v6  ;;  %v273_v7 = vmul.f32 0.00390625, %v236_v26  ;;  %v384_v22 = vmul.f32 %v1698_v47, %v2588_v54  ;;  %v2603_v54 = vld [vmem:[#allocation23_spill] sm:$0xff] }
  0xd9   :  { %v459_v35 = vmul.f32 %v2399_v9, %v383_v41  ;;  %v1700_v0 = vpop.eup %1699  ;;  %1705 = vrsqrt.f32 %v303_v46  ;;  %v458_v49 = vmul.f32 %v2402_v45, %v382_v25  ;;  %v2597_v46 = vld [vmem:[#allocation13_spill] sm:$0xff] }
  0xda   :  { %v387_v8 = vmul.f32 %v1700_v0, %v2150_v16  ;;  %v461_v34 = vmul.f32 %v2399_v9, %v385_v44  ;;  %v305_v16 = vadd.f32 1e-06, %v273_v7  ;;  %v386_v29 = vmul.f32 %v1700_v0, %v2589_v33 }
  0xdb   :  { %v501_v52 = vpack.c.bf16 %v459_v35, %v457_v62  ;;  %v500_v23 = vpack.c.bf16 %v458_v49, %v456_v40  ;;  %v460_v55 = vmul.f32 %v2402_v45, %v384_v22  ;;  %v2596_v35 = vld [vmem:[#allocation12_spill] sm:$0xff] }
  0xdc   :  { %v463_v6 = vmul.f32 %v2399_v9, %v387_v8  ;;  %v462_v48 = vmul.f32 %v2402_v45, %v386_v29 }
  0xdd   :  { %v1702_v51 = vpop.eup %1701 }
  0xde   :  { %1053 = vmatmul.mubr.bf16.gmra.mrb[24].mxu0 %v492_v15  ;;  %1246 = vmatmul.mubr.bf16.gmra.mrb[24].mxu1 %v492_v15  ;;  %v302_v15 = vadd.f32 1e-06, %v270_v3  ;;  %v1704_v14 = vpop.eup %1703  ;;  %v503_v17 = vpack.c.bf16 %v463_v6, %v461_v34  ;;  %v391_v32 = vmul.f32 %v1702_v51, %v2591_v13  ;;  %v502_v4 = vpack.c.bf16 %v462_v48, %v460_v55  ;;  %v2601_v34 = vld [vmem:[#allocation17_spill] sm:$0xff] }
  0xdf   :  { %1062 = vmatprep.mubr.bf16.mxu0 %v495_v38  ;;  %1255 = vmatprep.mubr.bf16.mxu1 %v495_v38  ;;  %v233_v38 = vpop.xlane.xlu0 %232  ;;  %v389_v60 = vmul.f32 %v1704_v14, %v2590_v10  ;;  %v388_v63 = vmul.f32 %v1704_v14, %v2592_v1  ;;  %v2604_v10 = vld [vmem:[#allocation20_spill] sm:$0xff]  ;;  %v2605_v13 = vld [vmem:[#allocation21_spill] sm:$0xff] }
  0xe0   :  { %1707 = vrsqrt.f32 %v302_v15  ;;  %v272_v19 = vmul.f32 0.00390625, %v233_v38  ;;  %v467_v20 = vmul.f32 %v2399_v9, %v391_v32  ;;  %v2599_v15 = vld [vmem:[#allocation18_spill] sm:$0xff] }
  0xe1   :  { %1709 = vrsqrt.f32 %v305_v16  ;;  %v465_v58 = vmul.f32 %v2399_v9, %v389_v60  ;;  %v464_v61 = vmul.f32 %v2402_v45, %v388_v63  ;;  %v2602_v16 = vld [vmem:[#allocation22_spill] sm:$0xff] }
  0xe2   :  { %v304_v43 = vadd.f32 1e-06, %v272_v19  ;;  %v2600_v19 = vld [vmem:[#allocation16_spill] sm:$0xff] }
  0xe3   :  { %v1706_v50 = vpop.eup %1705  ;;  %v505_v21 = vpack.c.bf16 %v467_v20, %v465_v58 }
  0xe4   :  { %1711 = vrsqrt.f32 %v304_v43  ;;  %v395_v41 = vmul.f32 %v1706_v50, %v2595_v2 }
  0xe6   :  { %1063 = vmatmul.mubr.bf16.gmra.mrb[28].mxu0 %v494_v31  ;;  %1256 = vmatmul.mubr.bf16.gmra.mrb[28].mxu1 %v494_v31  ;;  %v242_v31 = vpop.xlane.xlu1 %241  ;;  %v471_v3 = vmul.f32 %v2399_v9, %v395_v41 }
  0xe7   :  { %1072 = vmatprep.mubr.bf16.mxu0 %v497_v37  ;;  %1265 = vmatprep.mubr.bf16.mxu1 %v497_v37  ;;  %v239_v37 = vpop.xlane.xlu0 %238  ;;  %v275_v11 = vmul.f32 0.00390625, %v242_v31 }
  0xe8   :  { %v274_v59 = vmul.f32 0.00390625, %v239_v37 }
  0xe9   :  { %v307_v42 = vadd.f32 1e-06, %v275_v11 }
  0xea   :  { %v1708_v57 = vpop.eup %1707  ;;  %v306_v28 = vadd.f32 1e-06, %v274_v59 }
  0xeb   :  { %1713 = vrsqrt.f32 %v307_v42  ;;  %v1710_v27 = vpop.eup %1709  ;;  %v392_v0 = vmul.f32 %v1708_v57, %v2596_v35 }
  0xec   :  { %1715 = vrsqrt.f32 %v306_v28  ;;  %v399_v26 = vmul.f32 %v1710_v27, %v2599_v15  ;;  %v398_v6 = vmul.f32 %v1710_v27, %v2601_v34 }
  0xee   :  { %1073 = vmatmul.mubr.bf16.gmra.mrb[32].mxu0 %v496_v12  ;;  %1266 = vmatmul.mubr.bf16.gmra.mrb[32].mxu1 %v496_v12  ;;  %v2593_v12 = vld [vmem:[#allocation9_spill] sm:$0xff]  ;;  %v1712_v47 = vpop.eup %1711  ;;  %v475_v7 = vmul.f32 %v2399_v9, %v399_v26  ;;  %v474_v29 = vmul.f32 %v2402_v45, %v398_v6 }
  0xef   :  { %1082 = vmatprep.mubr.bf16.mxu0 %v499_v39  ;;  %1275 = vmatprep.mubr.bf16.mxu1 %v499_v39  ;;  %v390_v18 = vmul.f32 %v1702_v51, %v2593_v12  ;;  %v393_v39 = vmul.f32 %v1708_v57, %v2594_v30  ;;  %v397_v25 = vmul.f32 %v1712_v47, %v2598_v36 }
  0xf0   :  { %v396_v51 = vmul.f32 %v1712_v47, %v2600_v19 }
  0xf1   :  { %v466_v53 = vmul.f32 %v2402_v45, %v390_v18  ;;  %v469_v5 = vmul.f32 %v2399_v9, %v393_v39  ;;  %v473_v38 = vmul.f32 %v2399_v9, %v397_v25 }
  0xf2   :  { %v472_v33 = vmul.f32 %v2402_v45, %v396_v51 }
  0xf3   :  { %v504_v62 = vpack.c.bf16 %v466_v53, %v464_v61  ;;  %v507_v24 = vpack.c.bf16 %v471_v3, %v469_v5  ;;  %v509_v14 = vpack.c.bf16 %v475_v7, %v473_v38 }
  0xf5   :  { %v1714_v8 = vpop.eup %1713 }
  0xf6   :  { %1083 = vmatmul.mubr.bf16.gmra.mrb[36].mxu0 %v498_v56  ;;  %1276 = vmatmul.mubr.bf16.gmra.mrb[36].mxu1 %v498_v56  ;;  %v394_v56 = vmul.f32 %v1706_v50, %v2597_v46  ;;  %v1716_v40 = vpop.eup %1715  ;;  %v403_v22 = vmul.f32 %v1714_v8, %v2603_v54  ;;  %v402_v32 = vmul.f32 %v1714_v8, %v2605_v13 }
  0xf7   :  { %1092 = vmatprep.mubr.bf16.mxu0 %v501_v52  ;;  %1285 = vmatprep.mubr.bf16.mxu1 %v501_v52  ;;  %v468_v52 = vmul.f32 %v2402_v45, %v392_v0  ;;  %v400_v60 = vmul.f32 %v1716_v40, %v2604_v10 }
  0xf8   :  { %v470_v44 = vmul.f32 %v2402_v45, %v394_v56  ;;  %v479_v31 = vmul.f32 %v2399_v9, %v403_v22  ;;  %v478_v55 = vmul.f32 %v2402_v45, %v402_v32 }
  0xf9   :  { %v476_v11 = vmul.f32 %v2402_v45, %v400_v60 }
  0xfa   :  { %v506_v49 = vpack.c.bf16 %v470_v44, %v468_v52 }
  0xfb   :  { %v510_v48 = vpack.c.bf16 %v478_v55, %v476_v11 }
  0xfe   :  { %1093 = vmatmul.mubr.bf16.gmra.mrb[40].mxu0 %v500_v23  ;;  %1286 = vmatmul.mubr.bf16.gmra.mrb[40].mxu1 %v500_v23  ;;  %v401_v23 = vmul.f32 %v1716_v40, %v2602_v16 }
  0xff   :  { %1102 = vmatprep.mubr.bf16.mxu0 %v503_v17  ;;  %1295 = vmatprep.mubr.bf16.mxu1 %v503_v17  ;;  %v508_v17 = vpack.c.bf16 %v474_v29, %v472_v33 }
 0x100   :  { %v477_v43 = vmul.f32 %v2399_v9, %v401_v23 }
 0x102   :  { %v511_v37 = vpack.c.bf16 %v479_v31, %v477_v43 }
 0x106   :  { %1103 = vmatmul.mubr.bf16.gmra.mrb[44].mxu0 %v502_v4  ;;  %1296 = vmatmul.mubr.bf16.gmra.mrb[44].mxu1 %v502_v4 }
 0x107   :  { %1112 = vmatprep.mubr.bf16.mxu0 %v505_v21  ;;  %1305 = vmatprep.mubr.bf16.mxu1 %v505_v21 }
 0x10e   :  { %1113 = vmatmul.mubr.bf16.gmra.mrb[48].mxu0 %v504_v62  ;;  %1306 = vmatmul.mubr.bf16.gmra.mrb[48].mxu1 %v504_v62 }
 0x10f   :  { %1122 = vmatprep.mubr.bf16.mxu0 %v507_v24  ;;  %1315 = vmatprep.mubr.bf16.mxu1 %v507_v24 }
 0x116   :  { %1123 = vmatmul.mubr.bf16.gmra.mrb[52].mxu0 %v506_v49  ;;  %1316 = vmatmul.mubr.bf16.gmra.mrb[52].mxu1 %v506_v49 }
 0x117   :  { %1132 = vmatprep.mubr.bf16.mxu0 %v509_v14  ;;  %1325 = vmatprep.mubr.bf16.mxu1 %v509_v14 }
 0x11e   :  { %1133 = vmatmul.mubr.bf16.gmra.mrb[56].mxu0 %v508_v17  ;;  %1326 = vmatmul.mubr.bf16.gmra.mrb[56].mxu1 %v508_v17 }
 0x11f   :  { %1142 = vmatprep.mubr.bf16.mxu0 %v511_v37  ;;  %1335 = vmatprep.mubr.bf16.mxu1 %v511_v37 }
 0x126   :  { %1143 = vmatmul.mubr.bf16.gmra.mrb[60].mxu0 %v510_v48  ;;  %1336 = vmatmul.mubr.bf16.gmra.mrb[60].mxu1 %v510_v48 }
 0x181   :  { %v994_v59 = vpop.f32.mrb[0].mxu0  ;;  %v1187_v50 = vpop.f32.mrb[0].mxu1 }
 0x182   :  { %1346 = vst [vmem:[#allocation3] sm:$0xff] %v994_v59  ;;  %1348 = vst [vmem:[#allocation3 + $0x10] sm:$0xff] %v1187_v50  ;;  %v996_v9 = vpop.f32.mrb[1].mxu0  ;;  %v1189_v58 = vpop.f32.mrb[1].mxu1 }
 0x183   :  { %1347 = vst [vmem:[#allocation3 + $0x8] sm:$0xff] %v996_v9  ;;  %1349 = vst [vmem:[#allocation3 + $0x18] sm:$0xff] %v1189_v58  ;;  %v998_v20 = vpop.f32.mrb[2].mxu0  ;;  %v1191_v57 = vpop.f32.mrb[2].mxu1 }
 0x184   :  { %1350 = vst [vmem:[#allocation3 + $0x20] sm:$0xff] %v998_v20  ;;  %1352 = vst [vmem:[#allocation3 + $0x30] sm:$0xff] %v1191_v57  ;;  %v1000_v42 = vpop.f32.mrb[3].mxu0  ;;  %v1193_v4 = vpop.f32.mrb[3].mxu1 }
 0x185   :  { %1351 = vst [vmem:[#allocation3 + $0x28] sm:$0xff] %v1000_v42  ;;  %1353 = vst [vmem:[#allocation3 + $0x38] sm:$0xff] %v1193_v4 }
 0x189   :  { %v1004_v45 = vpop.f32.mrb[4].mxu0  ;;  %v1197_v1 = vpop.f32.mrb[4].mxu1 }
 0x18a   :  { %1354 = vst [vmem:[#allocation3 + $0x40] sm:$0xff] %v1004_v45  ;;  %1356 = vst [vmem:[#allocation3 + $0x50] sm:$0xff] %v1197_v1  ;;  %v1006_v63 = vpop.f32.mrb[5].mxu0  ;;  %v1199_v12 = vpop.f32.mrb[5].mxu1 }
 0x18b   :  { %1355 = vst [vmem:[#allocation3 + $0x48] sm:$0xff] %v1006_v63  ;;  %1357 = vst [vmem:[#allocation3 + $0x58] sm:$0xff] %v1199_v12  ;;  %v1008_v18 = vpop.f32.mrb[6].mxu0  ;;  %v1201_v28 = vpop.f32.mrb[6].mxu1 }
 0x18c   :  { %1358 = vst [vmem:[#allocation3 + $0x60] sm:$0xff] %v1008_v18  ;;  %1360 = vst [vmem:[#allocation3 + $0x70] sm:$0xff] %v1201_v28  ;;  %v1010_v21 = vpop.f32.mrb[7].mxu0  ;;  %v1203_v30 = vpop.f32.mrb[7].mxu1 }
 0x18d   :  { %1359 = vst [vmem:[#allocation3 + $0x68] sm:$0xff] %v1010_v21  ;;  %1361 = vst [vmem:[#allocation3 + $0x78] sm:$0xff] %v1203_v30 }
 0x191   :  { %v1014_v39 = vpop.f32.mrb[8].mxu0  ;;  %v1207_v2 = vpop.f32.mrb[8].mxu1 }
 0x192   :  { %1362 = vst [vmem:[#allocation3 + $0x80] sm:$0xff] %v1014_v39  ;;  %1364 = vst [vmem:[#allocation3 + $0x90] sm:$0xff] %v1207_v2  ;;  %v1016_v41 = vpop.f32.mrb[9].mxu0  ;;  %v1209_v61 = vpop.f32.mrb[9].mxu1 }
 0x193   :  { %1363 = vst [vmem:[#allocation3 + $0x88] sm:$0xff] %v1016_v41  ;;  %1365 = vst [vmem:[#allocation3 + $0x98] sm:$0xff] %v1209_v61  ;;  %v1018_v53 = vpop.f32.mrb[10].mxu0  ;;  %v1211_v27 = vpop.f32.mrb[10].mxu1 }
 0x194   :  { %1366 = vst [vmem:[#allocation3 + $0xa0] sm:$0xff] %v1018_v53  ;;  %1368 = vst [vmem:[#allocation3 + $0xb0] sm:$0xff] %v1211_v27  ;;  %v1020_v5 = vpop.f32.mrb[11].mxu0  ;;  %v1213_v3 = vpop.f32.mrb[11].mxu1 }
 0x195   :  { %1367 = vst [vmem:[#allocation3 + $0xa8] sm:$0xff] %v1020_v5  ;;  %1369 = vst [vmem:[#allocation3 + $0xb8] sm:$0xff] %v1213_v3 }
 0x199   :  { %v1024_v47 = vpop.f32.mrb[12].mxu0  ;;  %v1217_v62 = vpop.f32.mrb[12].mxu1 }
 0x19a   :  { %1370 = vst [vmem:[#allocation3 + $0xc0] sm:$0xff] %v1024_v47  ;;  %1372 = vst [vmem:[#allocation3 + $0xd0] sm:$0xff] %v1217_v62  ;;  %v1026_v35 = vpop.f32.mrb[13].mxu0  ;;  %v1219_v0 = vpop.f32.mrb[13].mxu1 }
 0x19b   :  { %1371 = vst [vmem:[#allocation3 + $0xc8] sm:$0xff] %v1026_v35  ;;  %1373 = vst [vmem:[#allocation3 + $0xd8] sm:$0xff] %v1219_v0  ;;  %v1028_v46 = vpop.f32.mrb[14].mxu0  ;;  %v1221_v56 = vpop.f32.mrb[14].mxu1 }
 0x19c   :  { %1374 = vst [vmem:[#allocation3 + $0xe0] sm:$0xff] %v1028_v46  ;;  %1376 = vst [vmem:[#allocation3 + $0xf0] sm:$0xff] %v1221_v56  ;;  %v1030_v24 = vpop.f32.mrb[15].mxu0  ;;  %v1223_v36 = vpop.f32.mrb[15].mxu1 }
 0x19d   :  { %1375 = vst [vmem:[#allocation3 + $0xe8] sm:$0xff] %v1030_v24  ;;  %1377 = vst [vmem:[#allocation3 + $0xf8] sm:$0xff] %v1223_v36 }
 0x1a1   :  { %v1034_v25 = vpop.f32.mrb[16].mxu0  ;;  %v1227_v15 = vpop.f32.mrb[16].mxu1 }
 0x1a2   :  { %1378 = vst [vmem:[#allocation3 + $0x100] sm:$0xff] %v1034_v25  ;;  %1380 = vst [vmem:[#allocation3 + $0x110] sm:$0xff] %v1227_v15  ;;  %v1036_v26 = vpop.f32.mrb[17].mxu0  ;;  %v1229_v52 = vpop.f32.mrb[17].mxu1 }
 0x1a3   :  { %1379 = vst [vmem:[#allocation3 + $0x108] sm:$0xff] %v1036_v26  ;;  %1381 = vst [vmem:[#allocation3 + $0x118] sm:$0xff] %v1229_v52  ;;  %v1038_v44 = vpop.f32.mrb[18].mxu0  ;;  %v1231_v8 = vpop.f32.mrb[18].mxu1 }
 0x1a4   :  { %1382 = vst [vmem:[#allocation3 + $0x120] sm:$0xff] %v1038_v44  ;;  %1384 = vst [vmem:[#allocation3 + $0x130] sm:$0xff] %v1231_v8  ;;  %v1040_v38 = vpop.f32.mrb[19].mxu0  ;;  %v1233_v7 = vpop.f32.mrb[19].mxu1 }
 0x1a5   :  { %1383 = vst [vmem:[#allocation3 + $0x128] sm:$0xff] %v1040_v38  ;;  %1385 = vst [vmem:[#allocation3 + $0x138] sm:$0xff] %v1233_v7 }
 0x1a9   :  { %v1044_v40 = vpop.f32.mrb[20].mxu0  ;;  %v1237_v49 = vpop.f32.mrb[20].mxu1 }
 0x1aa   :  { %1386 = vst [vmem:[#allocation3 + $0x140] sm:$0xff] %v1044_v40  ;;  %1388 = vst [vmem:[#allocation3 + $0x150] sm:$0xff] %v1237_v49  ;;  %v1046_v19 = vpop.f32.mrb[21].mxu0  ;;  %v1239_v51 = vpop.f32.mrb[21].mxu1 }
 0x1ab   :  { %1387 = vst [vmem:[#allocation3 + $0x148] sm:$0xff] %v1046_v19  ;;  %1389 = vst [vmem:[#allocation3 + $0x158] sm:$0xff] %v1239_v51  ;;  %v1048_v34 = vpop.f32.mrb[22].mxu0  ;;  %v1241_v6 = vpop.f32.mrb[22].mxu1 }
 0x1ac   :  { %1390 = vst [vmem:[#allocation3 + $0x160] sm:$0xff] %v1048_v34  ;;  %1392 = vst [vmem:[#allocation3 + $0x170] sm:$0xff] %v1241_v6  ;;  %v1050_v14 = vpop.f32.mrb[23].mxu0  ;;  %v1243_v16 = vpop.f32.mrb[23].mxu1 }
 0x1ad   :  { %1391 = vst [vmem:[#allocation3 + $0x168] sm:$0xff] %v1050_v14  ;;  %1393 = vst [vmem:[#allocation3 + $0x178] sm:$0xff] %v1243_v16 }
 0x1b1   :  { %v1054_v23 = vpop.f32.mrb[24].mxu0  ;;  %v1247_v54 = vpop.f32.mrb[24].mxu1 }
 0x1b2   :  { %1394 = vst [vmem:[#allocation3 + $0x180] sm:$0xff] %v1054_v23  ;;  %1396 = vst [vmem:[#allocation3 + $0x190] sm:$0xff] %v1247_v54  ;;  %v1056_v22 = vpop.f32.mrb[25].mxu0  ;;  %v1249_v33 = vpop.f32.mrb[25].mxu1 }
 0x1b3   :  { %1395 = vst [vmem:[#allocation3 + $0x188] sm:$0xff] %v1056_v22  ;;  %1397 = vst [vmem:[#allocation3 + $0x198] sm:$0xff] %v1249_v33  ;;  %v1058_v29 = vpop.f32.mrb[26].mxu0  ;;  %v1251_v43 = vpop.f32.mrb[26].mxu1 }
 0x1b4   :  { %1398 = vst [vmem:[#allocation3 + $0x1a0] sm:$0xff] %v1058_v29  ;;  %1400 = vst [vmem:[#allocation3 + $0x1b0] sm:$0xff] %v1251_v43  ;;  %v1060_v31 = vpop.f32.mrb[27].mxu0  ;;  %v1253_v17 = vpop.f32.mrb[27].mxu1 }
 0x1b5   :  { %1399 = vst [vmem:[#allocation3 + $0x1a8] sm:$0xff] %v1060_v31  ;;  %1401 = vst [vmem:[#allocation3 + $0x1b8] sm:$0xff] %v1253_v17 }
 0x1b9   :  { %v1064_v10 = vpop.f32.mrb[28].mxu0  ;;  %v1257_v60 = vpop.f32.mrb[28].mxu1 }
 0x1ba   :  { %1402 = vst [vmem:[#allocation3 + $0x1c0] sm:$0xff] %v1064_v10  ;;  %1404 = vst [vmem:[#allocation3 + $0x1d0] sm:$0xff] %v1257_v60  ;;  %v1066_v13 = vpop.f32.mrb[29].mxu0  ;;  %v1259_v32 = vpop.f32.mrb[29].mxu1 }
 0x1bb   :  { %1403 = vst [vmem:[#allocation3 + $0x1c8] sm:$0xff] %v1066_v13  ;;  %1405 = vst [vmem:[#allocation3 + $0x1d8] sm:$0xff] %v1259_v32  ;;  %v1068_v37 = vpop.f32.mrb[30].mxu0  ;;  %v1261_v11 = vpop.f32.mrb[30].mxu1 }
 0x1bc   :  { %1406 = vst [vmem:[#allocation3 + $0x1e0] sm:$0xff] %v1068_v37  ;;  %1408 = vst [vmem:[#allocation3 + $0x1f0] sm:$0xff] %v1261_v11  ;;  %v1070_v55 = vpop.f32.mrb[31].mxu0  ;;  %v1263_v48 = vpop.f32.mrb[31].mxu1 }
 0x1bd   :  { %1407 = vst [vmem:[#allocation3 + $0x1e8] sm:$0xff] %v1070_v55  ;;  %1409 = vst [vmem:[#allocation3 + $0x1f8] sm:$0xff] %v1263_v48 }
 0x1c1   :  { %v1074_v59 = vpop.f32.mrb[32].mxu0  ;;  %v1267_v50 = vpop.f32.mrb[32].mxu1 }
 0x1c2   :  { %1410 = vst [vmem:[#allocation3 + $0x200] sm:$0xff] %v1074_v59  ;;  %1412 = vst [vmem:[#allocation3 + $0x210] sm:$0xff] %v1267_v50  ;;  %v1076_v9 = vpop.f32.mrb[33].mxu0  ;;  %v1269_v58 = vpop.f32.mrb[33].mxu1 }
 0x1c3   :  { %1411 = vst [vmem:[#allocation3 + $0x208] sm:$0xff] %v1076_v9  ;;  %1413 = vst [vmem:[#allocation3 + $0x218] sm:$0xff] %v1269_v58  ;;  %v1078_v20 = vpop.f32.mrb[34].mxu0  ;;  %v1271_v57 = vpop.f32.mrb[34].mxu1 }
 0x1c4   :  { %1414 = vst [vmem:[#allocation3 + $0x220] sm:$0xff] %v1078_v20  ;;  %1416 = vst [vmem:[#allocation3 + $0x230] sm:$0xff] %v1271_v57  ;;  %v1080_v42 = vpop.f32.mrb[35].mxu0  ;;  %v1273_v4 = vpop.f32.mrb[35].mxu1 }
 0x1c5   :  { %1415 = vst [vmem:[#allocation3 + $0x228] sm:$0xff] %v1080_v42  ;;  %1417 = vst [vmem:[#allocation3 + $0x238] sm:$0xff] %v1273_v4 }
 0x1c9   :  { %v1084_v45 = vpop.f32.mrb[36].mxu0  ;;  %v1277_v1 = vpop.f32.mrb[36].mxu1 }
 0x1ca   :  { %1418 = vst [vmem:[#allocation3 + $0x240] sm:$0xff] %v1084_v45  ;;  %1420 = vst [vmem:[#allocation3 + $0x250] sm:$0xff] %v1277_v1  ;;  %v1086_v63 = vpop.f32.mrb[37].mxu0  ;;  %v1279_v12 = vpop.f32.mrb[37].mxu1 }
 0x1cb   :  { %1419 = vst [vmem:[#allocation3 + $0x248] sm:$0xff] %v1086_v63  ;;  %1421 = vst [vmem:[#allocation3 + $0x258] sm:$0xff] %v1279_v12  ;;  %v1088_v18 = vpop.f32.mrb[38].mxu0  ;;  %v1281_v28 = vpop.f32.mrb[38].mxu1 }
 0x1cc   :  { %1422 = vst [vmem:[#allocation3 + $0x260] sm:$0xff] %v1088_v18  ;;  %1424 = vst [vmem:[#allocation3 + $0x270] sm:$0xff] %v1281_v28  ;;  %v1090_v21 = vpop.f32.mrb[39].mxu0  ;;  %v1283_v30 = vpop.f32.mrb[39].mxu1 }
 0x1cd   :  { %1423 = vst [vmem:[#allocation3 + $0x268] sm:$0xff] %v1090_v21  ;;  %1425 = vst [vmem:[#allocation3 + $0x278] sm:$0xff] %v1283_v30 }
 0x1d1   :  { %v1094_v39 = vpop.f32.mrb[40].mxu0  ;;  %v1287_v2 = vpop.f32.mrb[40].mxu1 }
 0x1d2   :  { %1426 = vst [vmem:[#allocation3 + $0x280] sm:$0xff] %v1094_v39  ;;  %1428 = vst [vmem:[#allocation3 + $0x290] sm:$0xff] %v1287_v2  ;;  %v1096_v41 = vpop.f32.mrb[41].mxu0  ;;  %v1289_v61 = vpop.f32.mrb[41].mxu1 }
 0x1d3   :  { %1427 = vst [vmem:[#allocation3 + $0x288] sm:$0xff] %v1096_v41  ;;  %1429 = vst [vmem:[#allocation3 + $0x298] sm:$0xff] %v1289_v61  ;;  %v1098_v53 = vpop.f32.mrb[42].mxu0  ;;  %v1291_v27 = vpop.f32.mrb[42].mxu1 }
 0x1d4   :  { %1430 = vst [vmem:[#allocation3 + $0x2a0] sm:$0xff] %v1098_v53  ;;  %1432 = vst [vmem:[#allocation3 + $0x2b0] sm:$0xff] %v1291_v27  ;;  %v1100_v5 = vpop.f32.mrb[43].mxu0  ;;  %v1293_v3 = vpop.f32.mrb[43].mxu1 }
 0x1d5   :  { %1431 = vst [vmem:[#allocation3 + $0x2a8] sm:$0xff] %v1100_v5  ;;  %1433 = vst [vmem:[#allocation3 + $0x2b8] sm:$0xff] %v1293_v3 }
 0x1d9   :  { %v1104_v47 = vpop.f32.mrb[44].mxu0  ;;  %v1297_v62 = vpop.f32.mrb[44].mxu1 }
 0x1da   :  { %1434 = vst [vmem:[#allocation3 + $0x2c0] sm:$0xff] %v1104_v47  ;;  %1436 = vst [vmem:[#allocation3 + $0x2d0] sm:$0xff] %v1297_v62  ;;  %v1106_v35 = vpop.f32.mrb[45].mxu0  ;;  %v1299_v0 = vpop.f32.mrb[45].mxu1 }
 0x1db   :  { %1435 = vst [vmem:[#allocation3 + $0x2c8] sm:$0xff] %v1106_v35  ;;  %1437 = vst [vmem:[#allocation3 + $0x2d8] sm:$0xff] %v1299_v0  ;;  %v1108_v46 = vpop.f32.mrb[46].mxu0  ;;  %v1301_v56 = vpop.f32.mrb[46].mxu1 }
 0x1dc   :  { %1438 = vst [vmem:[#allocation3 + $0x2e0] sm:$0xff] %v1108_v46  ;;  %1440 = vst [vmem:[#allocation3 + $0x2f0] sm:$0xff] %v1301_v56  ;;  %v1110_v24 = vpop.f32.mrb[47].mxu0  ;;  %v1303_v36 = vpop.f32.mrb[47].mxu1 }
 0x1dd   :  { %1439 = vst [vmem:[#allocation3 + $0x2e8] sm:$0xff] %v1110_v24  ;;  %1441 = vst [vmem:[#allocation3 + $0x2f8] sm:$0xff] %v1303_v36 }
 0x1e1   :  { %v1114_v25 = vpop.f32.mrb[48].mxu0  ;;  %v1307_v15 = vpop.f32.mrb[48].mxu1 }
 0x1e2   :  { %1442 = vst [vmem:[#allocation3 + $0x300] sm:$0xff] %v1114_v25  ;;  %1444 = vst [vmem:[#allocation3 + $0x310] sm:$0xff] %v1307_v15  ;;  %v1116_v26 = vpop.f32.mrb[49].mxu0  ;;  %v1309_v52 = vpop.f32.mrb[49].mxu1 }
 0x1e3   :  { %1443 = vst [vmem:[#allocation3 + $0x308] sm:$0xff] %v1116_v26  ;;  %1445 = vst [vmem:[#allocation3 + $0x318] sm:$0xff] %v1309_v52  ;;  %v1118_v44 = vpop.f32.mrb[50].mxu0  ;;  %v1311_v8 = vpop.f32.mrb[50].mxu1 }
 0x1e4   :  { %1446 = vst [vmem:[#allocation3 + $0x320] sm:$0xff] %v1118_v44  ;;  %1448 = vst [vmem:[#allocation3 + $0x330] sm:$0xff] %v1311_v8  ;;  %v1120_v38 = vpop.f32.mrb[51].mxu0  ;;  %v1313_v7 = vpop.f32.mrb[51].mxu1 }
 0x1e5   :  { %1447 = vst [vmem:[#allocation3 + $0x328] sm:$0xff] %v1120_v38  ;;  %1449 = vst [vmem:[#allocation3 + $0x338] sm:$0xff] %v1313_v7 }
 0x1e9   :  { %v1124_v40 = vpop.f32.mrb[52].mxu0  ;;  %v1317_v49 = vpop.f32.mrb[52].mxu1 }
 0x1ea   :  { %1450 = vst [vmem:[#allocation3 + $0x340] sm:$0xff] %v1124_v40  ;;  %1452 = vst [vmem:[#allocation3 + $0x350] sm:$0xff] %v1317_v49  ;;  %v1126_v19 = vpop.f32.mrb[53].mxu0  ;;  %v1319_v51 = vpop.f32.mrb[53].mxu1 }
 0x1eb   :  { %1451 = vst [vmem:[#allocation3 + $0x348] sm:$0xff] %v1126_v19  ;;  %1453 = vst [vmem:[#allocation3 + $0x358] sm:$0xff] %v1319_v51  ;;  %v1128_v34 = vpop.f32.mrb[54].mxu0  ;;  %v1321_v6 = vpop.f32.mrb[54].mxu1 }
 0x1ec   :  { %1454 = vst [vmem:[#allocation3 + $0x360] sm:$0xff] %v1128_v34  ;;  %1456 = vst [vmem:[#allocation3 + $0x370] sm:$0xff] %v1321_v6  ;;  %v1130_v14 = vpop.f32.mrb[55].mxu0  ;;  %v1323_v16 = vpop.f32.mrb[55].mxu1 }
 0x1ed   :  { %1455 = vst [vmem:[#allocation3 + $0x368] sm:$0xff] %v1130_v14  ;;  %1457 = vst [vmem:[#allocation3 + $0x378] sm:$0xff] %v1323_v16 }
 0x1f1   :  { %v1134_v23 = vpop.f32.mrb[56].mxu0  ;;  %v1327_v54 = vpop.f32.mrb[56].mxu1 }
 0x1f2   :  { %1458 = vst [vmem:[#allocation3 + $0x380] sm:$0xff] %v1134_v23  ;;  %1460 = vst [vmem:[#allocation3 + $0x390] sm:$0xff] %v1327_v54  ;;  %v1136_v22 = vpop.f32.mrb[57].mxu0  ;;  %v1329_v33 = vpop.f32.mrb[57].mxu1 }
 0x1f3   :  { %1459 = vst [vmem:[#allocation3 + $0x388] sm:$0xff] %v1136_v22  ;;  %1461 = vst [vmem:[#allocation3 + $0x398] sm:$0xff] %v1329_v33  ;;  %v1138_v29 = vpop.f32.mrb[58].mxu0  ;;  %v1331_v43 = vpop.f32.mrb[58].mxu1 }
 0x1f4   :  { %1462 = vst [vmem:[#allocation3 + $0x3a0] sm:$0xff] %v1138_v29  ;;  %1464 = vst [vmem:[#allocation3 + $0x3b0] sm:$0xff] %v1331_v43  ;;  %v1140_v31 = vpop.f32.mrb[59].mxu0  ;;  %v1333_v17 = vpop.f32.mrb[59].mxu1 }
 0x1f5   :  { %1463 = vst [vmem:[#allocation3 + $0x3a8] sm:$0xff] %v1140_v31  ;;  %1465 = vst [vmem:[#allocation3 + $0x3b8] sm:$0xff] %v1333_v17 }
 0x1f9   :  { %v1144_v10 = vpop.f32.mrb[60].mxu0  ;;  %v1337_v60 = vpop.f32.mrb[60].mxu1 }
 0x1fa   :  { %1466 = vst [vmem:[#allocation3 + $0x3c0] sm:$0xff] %v1144_v10  ;;  %1468 = vst [vmem:[#allocation3 + $0x3d0] sm:$0xff] %v1337_v60  ;;  %v1146_v13 = vpop.f32.mrb[61].mxu0  ;;  %v1339_v32 = vpop.f32.mrb[61].mxu1 }
 0x1fb   :  { %1467 = vst [vmem:[#allocation3 + $0x3c8] sm:$0xff] %v1146_v13  ;;  %1469 = vst [vmem:[#allocation3 + $0x3d8] sm:$0xff] %v1339_v32  ;;  %v1148_v37 = vpop.f32.mrb[62].mxu0  ;;  %v1341_v11 = vpop.f32.mrb[62].mxu1 }
 0x1fc   :  { %1470 = vst [vmem:[#allocation3 + $0x3e0] sm:$0xff] %v1148_v37  ;;  %1472 = vst [vmem:[#allocation3 + $0x3f0] sm:$0xff] %v1341_v11  ;;  %v1150_v55 = vpop.f32.mrb[63].mxu0  ;;  %v1343_v48 = vpop.f32.mrb[63].mxu1 }
 0x1fd   :  { %1471 = vst [vmem:[#allocation3 + $0x3e8] sm:$0xff] %v1150_v55  ;;  %1473 = vst [vmem:[#allocation3 + $0x3f8] sm:$0xff] %v1343_v48 }
 0x1fe   :  { %1731 = shalt.err (!%p1728_p4)
}
 0x1ff   :  { %s1732_s8 = scalar_lea.hbm %s2551_s3, 16384 }
 0x200   :  { %p1733_p5 = scmp.ne.s32.totalorder %s2551_s3, %s1732_s8  ;;  %p1736_p6 = scmp.lt.u32.totalorder %s1732_s8, %s2551_s3 }
 0x202   :  { %p1738_p7 = pnand %p1736_p6, %p1733_p5 }
 0x204   :  { %1741 = shalt.err (!%p1738_p7)
}
 0x205   :  { %s1745_s13 = smov 512   ;;  %s1746_s14 = smov 32  }
 0x206   :  { %1485 = dma.vmem_to_hbm [thread:$0]  %s1480_s4, 16384, %s2551_s3, [#allocation4], %s1745_s13, %s1745_s13, %s1746_s14  }
 0x207   :  { %1742 = dma.done.wait [#allocation4], 16384  }
 0x208   :  { %1743 = vsyncadd [#allocation4], 4294950912 }
 0x209   :  { %1489 = vsyncpa [#allocation4], 1 }

</bundles_post_ra>
